<compile_context>
chip_gen: v7x
topology: tpu7x:2x2x1
jax: 0.10.0
libtpu: 0.0.40
codegen_flags: <defaults>
</compile_context>

<pallas_src>
import jax
import jax.numpy as jnp
from jax.experimental import pallas as pl
from jax.experimental.pallas import tpu as pltpu


def _mlp_mask_kernel(x_ref, mask_ref,
                     w1_ref, b1_ref, w2_ref, b2_ref, w3_ref, b3_ref,
                     w4_ref, b4_ref, w5_ref, b5_ref,
                     o_ref):
    # x_ref:    (B, D_in)   f32 flattened inputs
    # mask_ref: (B, D_out)  f32 (1.0 where point_locs, 0.0 elsewhere)
    # wN_ref:   (in, out)   f32 pre-transposed Linear weights
    # bN_ref:   (1, out)    f32 biases
    # o_ref:    (B, D_out)  f32 predictions
    def dense(h, w_ref, b_ref):
        return jnp.dot(h, w_ref[...], preferred_element_type=jnp.float32) + b_ref[...]

    h = x_ref[...]
    h = jnp.maximum(dense(h, w1_ref, b1_ref), 0.0)
    h = jnp.maximum(dense(h, w2_ref, b2_ref), 0.0)
    h = jnp.maximum(dense(h, w3_ref, b3_ref), 0.0)
    h = jnp.maximum(dense(h, w4_ref, b4_ref), 0.0)
    y = dense(h, w5_ref, b5_ref)
    # x[~point_locs] = 0
    o_ref[...] = jnp.where(mask_ref[...] != 0.0, y, 0.0)


def hyeonuk_candidate_model3_forward(xs, params):
    """Mirrors HyeonukCandidateModel3.forward.

    xs: (x, point_locs) where x is (B, ...) and point_locs is (B, D_out) bool.
    params: torch-Linear-layout weights: wN (out,in), bN (out,), plus
            w_out (D_out, hidden), b_out (D_out,).
    """
    x, point_locs = xs
    B = x.shape[0]
    x_flat = x.reshape(B, -1).astype(jnp.float32)
    mask = point_locs.astype(jnp.float32)
    d_out = mask.shape[1]

    # One-time layout plumbing OUTSIDE the kernel: (out,in) -> (in,out), (out,) -> (1,out).
    def wt(name):
        return params[name].astype(jnp.float32).T

    def br(name):
        return params[name].astype(jnp.float32).reshape(1, -1)

    operands = (
        x_flat, mask,
        wt("w1"), br("b1"),
        wt("w2"), br("b2"),
        wt("w3"), br("b3"),
        wt("w4"), br("b4"),
        wt("w_out"), br("b_out"),
    )

    vmem = pl.BlockSpec(memory_space=pltpu.MemorySpace.VMEM)
    out = pl.pallas_call(
        _mlp_mask_kernel,
        out_shape=jax.ShapeDtypeStruct((B, d_out), jnp.float32),
        in_specs=[vmem] * len(operands),
        out_specs=vmem,
        compiler_params=pltpu.CompilerParams(
            # ~14 MB of weights live in VMEM for the single invocation; raise
            # the scoped limit past the v5e 16 MiB default, stay well under the
            # 64 MiB physical VMEM of a v7x TensorCore.
            vmem_limit_bytes=48 * 1024 * 1024,
        ),
    )(*operands)
    return out


def _reference_forward(x, point_locs, params):
    # Pure-JAX reference for correctness checking (torch-layout weights).
    B = x.shape[0]
    h = x.reshape(B, -1).astype(jnp.float32)
    for i in (1, 2, 3, 4):
        h = jnp.maximum(h @ params[f"w{i}"].T + params[f"b{i}"], 0.0)
    y = h @ params["w_out"].T + params["b_out"]
    return jnp.where(point_locs, y, 0.0)


if __name__ == "__main__":
    # Small shapes consistent with the module: D_in = (STATE_DIM-1)*DAYS_PER_YEAR*3,
    # D_out = DAYS_PER_YEAR*3, hidden = 1024 (hard-coded in the module).
    STATE_DIM = 5
    DAYS_PER_YEAR = 16
    HIDDEN = 1024
    B = 2
    D_IN = (STATE_DIM - 1) * DAYS_PER_YEAR * 3     # 192
    D_OUT = DAYS_PER_YEAR * 3                      # 48

    key = jax.random.PRNGKey(0)
    ks = jax.random.split(key, 12)

    def kaiming(k, out_d, in_d):
        return jax.random.normal(k, (out_d, in_d), jnp.float32) * jnp.sqrt(2.0 / in_d)

    params = {
        "w1": kaiming(ks[0], HIDDEN, D_IN),
        "b1": 0.01 * jax.random.normal(ks[1], (HIDDEN,), jnp.float32),
        "w2": kaiming(ks[2], HIDDEN, HIDDEN),
        "b2": 0.01 * jax.random.normal(ks[3], (HIDDEN,), jnp.float32),
        "w3": kaiming(ks[4], HIDDEN, HIDDEN),
        "b3": 0.01 * jax.random.normal(ks[5], (HIDDEN,), jnp.float32),
        "w4": kaiming(ks[6], HIDDEN, HIDDEN),
        "b4": 0.01 * jax.random.normal(ks[7], (HIDDEN,), jnp.float32),
        "w_out": kaiming(ks[8], D_OUT, HIDDEN),
        "b_out": 0.01 * jax.random.normal(ks[9], (D_OUT,), jnp.float32),
    }

    x = jax.random.normal(ks[10], (B, STATE_DIM - 1, DAYS_PER_YEAR, 3), jnp.float32)
    point_locs = jax.random.bernoulli(ks[11], 0.7, (B, D_OUT))

    y = hyeonuk_candidate_model3_forward((x, point_locs), params)
    y = jax.block_until_ready(y)

    y_ref = _reference_forward(x, point_locs, params)
    assert y.shape == (B, D_OUT)
    assert jnp.allclose(y, y_ref, atol=2e-3, rtol=2e-3), (y, y_ref)
    # Masked positions must be exactly zero.
    assert bool(jnp.all(jnp.where(point_locs, True, y == 0.0)))

    print("KERNEL_OK")
</pallas_src>

<mosaic_0001>
module attributes {stable_mosaic.version = 11 : i64} {
  func.func @_mlp_mask_kernel(%arg0: memref<2x192xf32, #tpu.memory_space<vmem>>, %arg1: memref<2x48xf32, #tpu.memory_space<vmem>>, %arg2: memref<192x1024xf32, #tpu.memory_space<vmem>>, %arg3: memref<1x1024xf32, #tpu.memory_space<vmem>>, %arg4: memref<1024x1024xf32, #tpu.memory_space<vmem>>, %arg5: memref<1x1024xf32, #tpu.memory_space<vmem>>, %arg6: memref<1024x1024xf32, #tpu.memory_space<vmem>>, %arg7: memref<1x1024xf32, #tpu.memory_space<vmem>>, %arg8: memref<1024x1024xf32, #tpu.memory_space<vmem>>, %arg9: memref<1x1024xf32, #tpu.memory_space<vmem>>, %arg10: memref<1024x48xf32, #tpu.memory_space<vmem>>, %arg11: memref<1x48xf32, #tpu.memory_space<vmem>>, %arg12: memref<2x48xf32, #tpu.memory_space<vmem>>) attributes {dimension_semantics = [], scalar_prefetch = 0 : i64, scratch_operands = 0 : i64, tpu.core_type = #tpu.core_type<tc>} {
    %c0 = arith.constant 0 : index
    %c0_0 = arith.constant 0 : index
    %0 = vector.load %arg0[%c0, %c0_0] : memref<2x192xf32, #tpu.memory_space<vmem>>, vector<2x192xf32>
    %c0_1 = arith.constant 0 : index
    %c0_2 = arith.constant 0 : index
    %1 = vector.load %arg2[%c0_1, %c0_2] : memref<192x1024xf32, #tpu.memory_space<vmem>>, vector<192x1024xf32>
    %cst = arith.constant dense<0.000000e+00> : vector<2x1024xf32>
    %2 = tpu.matmul %0, %1, %cst {dimension_numbers = #tpu.dot_dimension_numbers<[1], [0], [0], [1], [0, 0, 1, 1], [], []>} : vector<2x192xf32>, vector<192x1024xf32>, vector<2x1024xf32> -> vector<2x1024xf32>
    %c0_3 = arith.constant 0 : index
    %c0_4 = arith.constant 0 : index
    %3 = vector.load %arg3[%c0_3, %c0_4] : memref<1x1024xf32, #tpu.memory_space<vmem>>, vector<1x1024xf32>
    %4 = vector.broadcast %3 : vector<1x1024xf32> to vector<2x1024xf32>
    %5 = arith.addf %2, %4 : vector<2x1024xf32>
    %cst_5 = arith.constant 0.000000e+00 : f32
    %6 = vector.broadcast %cst_5 : f32 to vector<2x1024xf32>
    %7 = arith.maximumf %5, %6 : vector<2x1024xf32>
    %c0_6 = arith.constant 0 : index
    %c0_7 = arith.constant 0 : index
    %8 = vector.load %arg4[%c0_6, %c0_7] : memref<1024x1024xf32, #tpu.memory_space<vmem>>, vector<1024x1024xf32>
    %cst_8 = arith.constant dense<0.000000e+00> : vector<2x1024xf32>
    %9 = tpu.matmul %7, %8, %cst_8 {dimension_numbers = #tpu.dot_dimension_numbers<[1], [0], [0], [1], [0, 0, 1, 1], [], []>} : vector<2x1024xf32>, vector<1024x1024xf32>, vector<2x1024xf32> -> vector<2x1024xf32>
    %c0_9 = arith.constant 0 : index
    %c0_10 = arith.constant 0 : index
    %10 = vector.load %arg5[%c0_9, %c0_10] : memref<1x1024xf32, #tpu.memory_space<vmem>>, vector<1x1024xf32>
    %11 = vector.broadcast %10 : vector<1x1024xf32> to vector<2x1024xf32>
    %12 = arith.addf %9, %11 : vector<2x1024xf32>
    %cst_11 = arith.constant 0.000000e+00 : f32
    %13 = vector.broadcast %cst_11 : f32 to vector<2x1024xf32>
    %14 = arith.maximumf %12, %13 : vector<2x1024xf32>
    %c0_12 = arith.constant 0 : index
    %c0_13 = arith.constant 0 : index
    %15 = vector.load %arg6[%c0_12, %c0_13] : memref<1024x1024xf32, #tpu.memory_space<vmem>>, vector<1024x1024xf32>
    %cst_14 = arith.constant dense<0.000000e+00> : vector<2x1024xf32>
    %16 = tpu.matmul %14, %15, %cst_14 {dimension_numbers = #tpu.dot_dimension_numbers<[1], [0], [0], [1], [0, 0, 1, 1], [], []>} : vector<2x1024xf32>, vector<1024x1024xf32>, vector<2x1024xf32> -> vector<2x1024xf32>
    %c0_15 = arith.constant 0 : index
    %c0_16 = arith.constant 0 : index
    %17 = vector.load %arg7[%c0_15, %c0_16] : memref<1x1024xf32, #tpu.memory_space<vmem>>, vector<1x1024xf32>
    %18 = vector.broadcast %17 : vector<1x1024xf32> to vector<2x1024xf32>
    %19 = arith.addf %16, %18 : vector<2x1024xf32>
    %cst_17 = arith.constant 0.000000e+00 : f32
    %20 = vector.broadcast %cst_17 : f32 to vector<2x1024xf32>
    %21 = arith.maximumf %19, %20 : vector<2x1024xf32>
    %c0_18 = arith.constant 0 : index
    %c0_19 = arith.constant 0 : index
    %22 = vector.load %arg8[%c0_18, %c0_19] : memref<1024x1024xf32, #tpu.memory_space<vmem>>, vector<1024x1024xf32>
    %cst_20 = arith.constant dense<0.000000e+00> : vector<2x1024xf32>
    %23 = tpu.matmul %21, %22, %cst_20 {dimension_numbers = #tpu.dot_dimension_numbers<[1], [0], [0], [1], [0, 0, 1, 1], [], []>} : vector<2x1024xf32>, vector<1024x1024xf32>, vector<2x1024xf32> -> vector<2x1024xf32>
    %c0_21 = arith.constant 0 : index
    %c0_22 = arith.constant 0 : index
    %24 = vector.load %arg9[%c0_21, %c0_22] : memref<1x1024xf32, #tpu.memory_space<vmem>>, vector<1x1024xf32>
    %25 = vector.broadcast %24 : vector<1x1024xf32> to vector<2x1024xf32>
    %26 = arith.addf %23, %25 : vector<2x1024xf32>
    %cst_23 = arith.constant 0.000000e+00 : f32
    %27 = vector.broadcast %cst_23 : f32 to vector<2x1024xf32>
    %28 = arith.maximumf %26, %27 : vector<2x1024xf32>
    %c0_24 = arith.constant 0 : index
    %c0_25 = arith.constant 0 : index
    %29 = vector.load %arg10[%c0_24, %c0_25] : memref<1024x48xf32, #tpu.memory_space<vmem>>, vector<1024x48xf32>
    %cst_26 = arith.constant dense<0.000000e+00> : vector<2x48xf32>
    %30 = tpu.matmul %28, %29, %cst_26 {dimension_numbers = #tpu.dot_dimension_numbers<[1], [0], [0], [1], [0, 0, 1, 1], [], []>} : vector<2x1024xf32>, vector<1024x48xf32>, vector<2x48xf32> -> vector<2x48xf32>
    %c0_27 = arith.constant 0 : index
    %c0_28 = arith.constant 0 : index
    %31 = vector.load %arg11[%c0_27, %c0_28] : memref<1x48xf32, #tpu.memory_space<vmem>>, vector<1x48xf32>
    %32 = vector.broadcast %31 : vector<1x48xf32> to vector<2x48xf32>
    %33 = arith.addf %30, %32 : vector<2x48xf32>
    %c0_29 = arith.constant 0 : index
    %c0_30 = arith.constant 0 : index
    %34 = vector.load %arg1[%c0_29, %c0_30] : memref<2x48xf32, #tpu.memory_space<vmem>>, vector<2x48xf32>
    %cst_31 = arith.constant 0.000000e+00 : f32
    %35 = vector.broadcast %cst_31 : f32 to vector<2x48xf32>
    %36 = arith.cmpf one, %34, %35 : vector<2x48xf32>
    %cst_32 = arith.constant 0.000000e+00 : f32
    %37 = vector.broadcast %cst_32 : f32 to vector<2x48xf32>
    %38 = arith.select %36, %33, %37 : vector<2x48xi1>, vector<2x48xf32>
    %c0_33 = arith.constant 0 : index
    %c0_34 = arith.constant 0 : index
    %39 = vector.load %arg12[%c0_33, %c0_34] : memref<2x48xf32, #tpu.memory_space<vmem>>, vector<2x48xf32>
    tpu.vector_store %arg12[%c0_33, %c0_34], %38 {strides = array<i32>} : memref<2x48xf32, #tpu.memory_space<vmem>>, vector<2x48xf32>,
    return
  }
}

</mosaic_0001>

<bundles_post_ra>
// kernel: tpu_custom_call.1
= control target key start
LH: loop header
LB: loop body
LE: loop exit
PB: predicated region body
PF: predicated region fallthrough
CT: control target
= control target key end

     0   :  { %17 = vsyncpa [#allocation3], 0  ;;  %s12658_s0 = inlined_call_operand.hbm [shape: f32[2,192], index: 0, kind: input, shape index: {}]   ;;  %s12659_s1 = inlined_call_operand.hbm [shape: f32[2,48], index: 1, kind: input, shape index: {}]   ;;  %s12660_s2 = inlined_call_operand.hbm [shape: f32[192,1024], index: 2, kind: input, shape index: {}]   ;;  %s12661_s3 = inlined_call_operand.hbm [shape: f32[1,1024], index: 3, kind: input, shape index: {}]   ;;  %s12662_s4 = inlined_call_operand.hbm [shape: f32[1024,1024], index: 4, kind: input, shape index: {}]   ;;  %s12663_s5 = inlined_call_operand.hbm [shape: f32[1,1024], index: 5, kind: input, shape index: {}]   ;;  %s12664_s6 = inlined_call_operand.hbm [shape: f32[1024,1024], index: 6, kind: input, shape index: {}]   ;;  %s12665_s7 = inlined_call_operand.hbm [shape: f32[1,1024], index: 7, kind: input, shape index: {}]   ;;  %s12666_s8 = inlined_call_operand.hbm [shape: f32[1024,1024], index: 8, kind: input, shape index: {}]   ;;  %s12667_s9 = inlined_call_operand.hbm [shape: f32[1,1024], index: 9, kind: input, shape index: {}]   ;;  %s12668_s10 = inlined_call_operand.vmem [shape: f32[1024,48], index: 10, kind: input, shape index: {}]   ;;  %s12669_s11 = inlined_call_operand.hbm [shape: f32[1,48], index: 11, kind: input, shape index: {}]   ;;  %s12670_s12 = inlined_call_operand.hbm [shape: f32[2,48], index: 12, kind: output, shape index: {}]  }
   0x1   :  { %18 = vsyncpa [#allocation6], 0 }
   0x2   :  { %19 = vsyncpa [#allocation9], 0 }
   0x3   :  { %20 = vsyncpa [#allocation12], 0 }
   0x4   :  { %21 = vsyncpa [#allocation15], 0 }
   0x5   :  { %22 = vsyncpa [#allocation18], 0 }
   0x6   :  { %23 = vsyncpa [#allocation4], 0  ;;  %s11718_s21 = smov [#allocation5]   ;;  %s11719_s23 = smov [#allocation8]  }
   0x7   :  { %s40_s22 = sshll.u32 %s11718_s21, 4  ;;  %s62_s24 = sshll.u32 %s11719_s23, 4  ;;  %s41_s22 = int_to_ptr.vmem [resolvable:$true] %s40_s22  ;;  %s63_s24 = int_to_ptr.vmem [resolvable:$true] %s62_s24 }
   0x8   :  { %s11440_s27 = scalar_lea.hbm %s12659_s1, 32 }
   0x9   :  { %p11441_p0 = scmp.ne.s32.totalorder %s12659_s1, %s11440_s27  ;;  %p11444_p1 = scmp.lt.u32.totalorder %s11440_s27, %s12659_s1 }
   0xb   :  { %p11446_p2 = pnand %p11444_p1, %p11441_p0 }
   0xd   :  { %11449 = shalt.err (!%p11446_p2)
}
   0xe   :  { %s11450_s14 = scalar_lea.vmem %s41_s22, 32  ;;  %p11455_p4 = scmp.lt.s32.totalorder %s41_s22, %s41_s22 }
   0xf   :  { %p11451_p3 = scmp.ne.s32.totalorder %s41_s22, %s11450_s14  ;;  %p11456_p5 = scmp.lt.s32.totalorder %s11450_s14, %s11450_s14 }
  0x11   :  { %p11457_p6 = por %p11456_p5, %p11455_p4 }
  0x13   :  { %p11458_p7 = pnand %p11457_p6, %p11451_p3 }
  0x15   :  { %11461 = shalt.err (!%p11458_p7)
}
  0x16   :  { %43 = dma.hbm_to_vmem [thread:$0]  %s12659_s1, 32, %s41_s22, [#allocation6]  }
  0x17   :  { %s11462_s19 = scalar_lea.hbm %s12661_s3, 128 }
  0x18   :  { %p11463_p8 = scmp.ne.s32.totalorder %s12661_s3, %s11462_s19  ;;  %p11466_p9 = scmp.lt.u32.totalorder %s11462_s19, %s12661_s3 }
  0x1a   :  { %p11468_p10 = pnand %p11466_p9, %p11463_p8 }
  0x1c   :  { %11471 = shalt.err (!%p11468_p10)
}
  0x1d   :  { %s11472_s26 = scalar_lea.vmem %s63_s24, 128  ;;  %p11477_p12 = scmp.lt.s32.totalorder %s63_s24, %s63_s24 }
  0x1e   :  { %p11473_p11 = scmp.ne.s32.totalorder %s63_s24, %s11472_s26  ;;  %p11478_p13 = scmp.lt.s32.totalorder %s11472_s26, %s11472_s26 }
  0x20   :  { %p11479_p0 = por %p11478_p13, %p11477_p12 }
  0x22   :  { %p11480_p1 = pnand %p11479_p0, %p11473_p11 }
  0x24   :  { %11483 = shalt.err (!%p11480_p1)
}
  0x25   :  { %65 = dma.hbm_to_vmem [thread:$0]  %s12661_s3, 128, %s63_s24, [#allocation9]  }
  0x26   :  { %s11720_s27 = smov [#allocation11]   ;;  %s11721_s29 = smov [#allocation14]  }
  0x27   :  { %s84_s28 = sshll.u32 %s11720_s27, 4  ;;  %s106_s30 = sshll.u32 %s11721_s29, 4  ;;  %s85_s28 = int_to_ptr.vmem [resolvable:$true] %s84_s28  ;;  %s107_s30 = int_to_ptr.vmem [resolvable:$true] %s106_s30 }
  0x28   :  { %s11484_s15 = scalar_lea.hbm %s12663_s5, 128 }
  0x29   :  { %p11485_p2 = scmp.ne.s32.totalorder %s12663_s5, %s11484_s15  ;;  %p11488_p3 = scmp.lt.u32.totalorder %s11484_s15, %s12663_s5 }
  0x2b   :  { %p11490_p4 = pnand %p11488_p3, %p11485_p2 }
  0x2d   :  { %11493 = shalt.err (!%p11490_p4)
}
  0x2e   :  { %s11494_s3 = scalar_lea.vmem %s85_s28, 128  ;;  %p11499_p6 = scmp.lt.s32.totalorder %s85_s28, %s85_s28 }
  0x2f   :  { %p11495_p5 = scmp.ne.s32.totalorder %s85_s28, %s11494_s3  ;;  %p11500_p7 = scmp.lt.s32.totalorder %s11494_s3, %s11494_s3 }
  0x31   :  { %p11501_p8 = por %p11500_p7, %p11499_p6 }
  0x33   :  { %p11502_p9 = pnand %p11501_p8, %p11495_p5 }
  0x35   :  { %11505 = shalt.err (!%p11502_p9)
}
  0x36   :  { %87 = dma.hbm_to_vmem [thread:$0]  %s12663_s5, 128, %s85_s28, [#allocation12]  }
  0x37   :  { %s11506_s25 = scalar_lea.hbm %s12665_s7, 128 }
  0x38   :  { %p11507_p10 = scmp.ne.s32.totalorder %s12665_s7, %s11506_s25  ;;  %p11510_p11 = scmp.lt.u32.totalorder %s11506_s25, %s12665_s7 }
  0x3a   :  { %p11512_p12 = pnand %p11510_p11, %p11507_p10 }
  0x3c   :  { %11515 = shalt.err (!%p11512_p12)
}
  0x3d   :  { %s11516_s29 = scalar_lea.vmem %s107_s30, 128  ;;  %p11521_p0 = scmp.lt.s32.totalorder %s107_s30, %s107_s30 }
  0x3e   :  { %p11517_p13 = scmp.ne.s32.totalorder %s107_s30, %s11516_s29  ;;  %p11522_p1 = scmp.lt.s32.totalorder %s11516_s29, %s11516_s29 }
  0x40   :  { %p11523_p2 = por %p11522_p1, %p11521_p0 }
  0x42   :  { %p11524_p3 = pnand %p11523_p2, %p11517_p13 }
  0x44   :  { %11527 = shalt.err (!%p11524_p3)
}
  0x45   :  { %109 = dma.hbm_to_vmem [thread:$0]  %s12665_s7, 128, %s107_s30, [#allocation15]  }
  0x46   :  { %s11722_s13 = smov [#allocation17]   ;;  %s11723_s15 = smov [#allocation2]  }
  0x47   :  { %s128_s14 = sshll.u32 %s11722_s13, 4  ;;  %s30_s16 = sshll.u32 %s11723_s15, 4  ;;  %s129_s14 = int_to_ptr.vmem [resolvable:$true] %s128_s14  ;;  %s31_s16 = int_to_ptr.vmem [resolvable:$true] %s30_s16 }
  0x48   :  { %s11528_s19 = scalar_lea.hbm %s12667_s9, 128 }
  0x49   :  { %p11529_p4 = scmp.ne.s32.totalorder %s12667_s9, %s11528_s19  ;;  %p11532_p5 = scmp.lt.u32.totalorder %s11528_s19, %s12667_s9 }
  0x4b   :  { %p11534_p6 = pnand %p11532_p5, %p11529_p4 }
  0x4d   :  { %11537 = shalt.err (!%p11534_p6)
}
  0x4e   :  { %s11538_s7 = scalar_lea.vmem %s129_s14, 128  ;;  %p11543_p8 = scmp.lt.s32.totalorder %s129_s14, %s129_s14 }
  0x4f   :  { %p11539_p7 = scmp.ne.s32.totalorder %s129_s14, %s11538_s7  ;;  %p11544_p9 = scmp.lt.s32.totalorder %s11538_s7, %s11538_s7 }
  0x51   :  { %p11545_p10 = por %p11544_p9, %p11543_p8 }
  0x53   :  { %p11546_p11 = pnand %p11545_p10, %p11539_p7 }
  0x55   :  { %11549 = shalt.err (!%p11546_p11)
}
  0x56   :  { %131 = dma.hbm_to_vmem [thread:$0]  %s12667_s9, 128, %s129_s14, [#allocation18]  }
  0x57   :  { %s11550_s1 = scalar_lea.hbm %s12658_s0, 64 }
  0x58   :  { %p11551_p12 = scmp.ne.s32.totalorder %s12658_s0, %s11550_s1  ;;  %p11554_p13 = scmp.lt.u32.totalorder %s11550_s1, %s12658_s0 }
  0x5a   :  { %p11556_p0 = pnand %p11554_p13, %p11551_p12 }
  0x5c   :  { %11559 = shalt.err (!%p11556_p0)
}
  0x5d   :  { %s11560_s28 = scalar_lea.vmem %s31_s16, 64  ;;  %p11565_p2 = scmp.lt.s32.totalorder %s31_s16, %s31_s16 }
  0x5e   :  { %p11561_p1 = scmp.ne.s32.totalorder %s31_s16, %s11560_s28  ;;  %p11566_p3 = scmp.lt.s32.totalorder %s11560_s28, %s11560_s28 }
  0x60   :  { %p11567_p4 = por %p11566_p3, %p11565_p2 }
  0x62   :  { %p11568_p5 = pnand %p11567_p4, %p11561_p1 }
  0x64   :  { %11571 = shalt.err (!%p11568_p5)
}
  0x65   :  { %33 = dma.hbm_to_vmem [thread:$0]  %s12658_s0, 64, %s31_s16, [#allocation3]  }
  0x66   :  { %s11724_s14 = smov [#allocation7]   ;;  %s11572_s19 = scalar_lea.hbm %s12660_s2, 24576 }
  0x67   :  { %s49_s15 = sshll.u32 %s11724_s14, 4  ;;  %p11573_p6 = scmp.ne.s32.totalorder %s12660_s2, %s11572_s19  ;;  %s50_s15 = int_to_ptr.vmem [resolvable:$true] %s49_s15 }
  0x68   :  { %p11576_p7 = scmp.lt.u32.totalorder %s11572_s19, %s12660_s2 }
  0x6a   :  { %p11578_p8 = pnand %p11576_p7, %p11573_p6 }
  0x6c   :  { %11581 = shalt.err (!%p11578_p8)
}
  0x6d   :  { %s11582_s7 = scalar_lea.vmem %s50_s15, 24576  ;;  %p11587_p10 = scmp.lt.s32.totalorder %s50_s15, %s50_s15 }
  0x6e   :  { %p11583_p9 = scmp.ne.s32.totalorder %s50_s15, %s11582_s7  ;;  %p11588_p11 = scmp.lt.s32.totalorder %s11582_s7, %s11582_s7 }
  0x70   :  { %p11589_p12 = por %p11588_p11, %p11587_p10 }
  0x72   :  { %p11590_p13 = pnand %p11589_p12, %p11583_p9 }
  0x74   :  { %11593 = shalt.err (!%p11590_p13)
}
  0x75   :  { %s11725_s0 = smov 1024   ;;  %s11726_s16 = smov 64  }
  0x76   :  { %55 = dma.hbm_to_vmem [thread:$0]  %s12660_s2, 24576, %s50_s15, [#allocation6], %s11725_s0, %s11725_s0, %s11726_s16  }
  0x77   :  { %s11727_s25 = smov [#allocation10]   ;;  %s11728_s1 = smov [#allocation13]  }
  0x78   :  { %s71_s26 = sshll.u32 %s11727_s25, 4  ;;  %s93_s22 = sshll.u32 %s11728_s1, 4  ;;  %s72_s26 = int_to_ptr.vmem [resolvable:$true] %s71_s26  ;;  %s94_s22 = int_to_ptr.vmem [resolvable:$true] %s93_s22 }
  0x79   :  { %s11594_s5 = scalar_lea.hbm %s12662_s4, 131072 }
  0x7a   :  { %p11595_p0 = scmp.ne.s32.totalorder %s12662_s4, %s11594_s5  ;;  %p11598_p1 = scmp.lt.u32.totalorder %s11594_s5, %s12662_s4 }
  0x7c   :  { %p11600_p2 = pnand %p11598_p1, %p11595_p0 }
  0x7e   :  { %11603 = shalt.err (!%p11600_p2)
}
  0x7f   :  { %s11604_s2 = scalar_lea.vmem %s72_s26, 131072  ;;  %p11609_p4 = scmp.lt.s32.totalorder %s72_s26, %s72_s26 }
  0x80   :  { %p11605_p3 = scmp.ne.s32.totalorder %s72_s26, %s11604_s2  ;;  %p11610_p5 = scmp.lt.s32.totalorder %s11604_s2, %s11604_s2 }
  0x82   :  { %p11611_p6 = por %p11610_p5, %p11609_p4 }
  0x84   :  { %p11612_p7 = pnand %p11611_p6, %p11605_p3 }
  0x86   :  { %11615 = shalt.err (!%p11612_p7)
}
  0x87   :  { %77 = dma.hbm_to_vmem [thread:$0]  %s12662_s4, 131072, %s72_s26, [#allocation9], %s11725_s0, %s11725_s0, %s11726_s16  }
  0x88   :  { %s11616_s3 = scalar_lea.hbm %s12664_s6, 131072 }
  0x89   :  { %p11617_p8 = scmp.ne.s32.totalorder %s12664_s6, %s11616_s3  ;;  %p11620_p9 = scmp.lt.u32.totalorder %s11616_s3, %s12664_s6 }
  0x8b   :  { %p11622_p10 = pnand %p11620_p9, %p11617_p8 }
  0x8d   :  { %11625 = shalt.err (!%p11622_p10)
}
  0x8e   :  { %s11626_s30 = scalar_lea.vmem %s94_s22, 131072  ;;  %p11631_p12 = scmp.lt.s32.totalorder %s94_s22, %s94_s22 }
  0x8f   :  { %p11627_p11 = scmp.ne.s32.totalorder %s94_s22, %s11626_s30  ;;  %p11632_p13 = scmp.lt.s32.totalorder %s11626_s30, %s11626_s30 }
  0x91   :  { %p11633_p0 = por %p11632_p13, %p11631_p12 }
  0x93   :  { %p11634_p1 = pnand %p11633_p0, %p11627_p11 }
  0x95   :  { %11637 = shalt.err (!%p11634_p1)
}
  0x96   :  { %99 = dma.hbm_to_vmem [thread:$0]  %s12664_s6, 131072, %s94_s22, [#allocation12], %s11725_s0, %s11725_s0, %s11726_s16  }
  0x97   :  { %s11729_s25 = smov [#allocation16]   ;;  %s11730_s1 = smov [#allocation19]  }
  0x98   :  { %s115_s26 = sshll.u32 %s11729_s25, 4  ;;  %s140_s27 = sshll.u32 %s11730_s1, 4  ;;  %s116_s26 = int_to_ptr.vmem [resolvable:$true] %s115_s26  ;;  %s141_s27 = int_to_ptr.vmem [resolvable:$true] %s140_s27 }
  0x99   :  { %s11638_s28 = scalar_lea.hbm %s12666_s8, 131072 }
  0x9a   :  { %p11639_p2 = scmp.ne.s32.totalorder %s12666_s8, %s11638_s28  ;;  %p11642_p3 = scmp.lt.u32.totalorder %s11638_s28, %s12666_s8 }
  0x9c   :  { %p11644_p4 = pnand %p11642_p3, %p11639_p2 }
  0x9e   :  { %11647 = shalt.err (!%p11644_p4)
}
  0x9f   :  { %s11648_s6 = scalar_lea.vmem %s116_s26, 131072  ;;  %p11653_p6 = scmp.lt.s32.totalorder %s116_s26, %s116_s26 }
  0xa0   :  { %p11649_p5 = scmp.ne.s32.totalorder %s116_s26, %s11648_s6  ;;  %p11654_p7 = scmp.lt.s32.totalorder %s11648_s6, %s11648_s6 }
  0xa2   :  { %p11655_p8 = por %p11654_p7, %p11653_p6 }
  0xa4   :  { %p11656_p9 = pnand %p11655_p8, %p11649_p5 }
  0xa6   :  { %11659 = shalt.err (!%p11656_p9)
}
  0xa7   :  { %121 = dma.hbm_to_vmem [thread:$0]  %s12666_s8, 131072, %s116_s26, [#allocation15], %s11725_s0, %s11725_s0, %s11726_s16  }
  0xa8   :  { %s11660_s19 = scalar_lea.hbm %s12669_s11, 16 }
  0xa9   :  { %p11661_p10 = scmp.ne.s32.totalorder %s12669_s11, %s11660_s19  ;;  %p11664_p11 = scmp.lt.u32.totalorder %s11660_s19, %s12669_s11 }
  0xab   :  { %p11666_p12 = pnand %p11664_p11, %p11661_p10 }
  0xad   :  { %11669 = shalt.err (!%p11666_p12)
}
  0xae   :  { %s11670_s7 = scalar_lea.vmem %s141_s27, 16  ;;  %s11674_s30 = scalar_lea.vmem %s141_s27, 32 }
  0xaf   :  { %p11671_p13 = scmp.ne.s32.totalorder %s141_s27, %s11670_s7  ;;  %p11675_p0 = scmp.lt.s32.totalorder %s141_s27, %s141_s27 }
  0xb0   :  { %p11676_p1 = scmp.lt.s32.totalorder %s11674_s30, %s11670_s7 }
  0xb2   :  { %p11677_p2 = por %p11676_p1, %p11675_p0 }
  0xb4   :  { %p11678_p3 = pnand %p11677_p2, %p11671_p13 }
  0xb6   :  { %11681 = shalt.err (!%p11678_p3)
}
  0xb7   :  { %143 = dma.hbm_to_vmem [thread:$0]  %s12669_s11, 16, %s141_s27, [#allocation18]  }
  0xb8   :  { %11704 = dma.done.wait [#allocation3], 64  }
  0xb9   :  { %11705 = vsyncadd [#allocation3], 4294967232 }
  0xba   :  { %11706 = dma.done.wait [#allocation6], 24608  }
  0xbb   :  { %11707 = vsyncadd [#allocation6], 4294942688 }
  0xbc   :  { %11708 = dma.done.wait [#allocation9], 131200  }
  0xbd   :  { %11709 = vsyncadd [#allocation9], 4294836096 }
  0xbe   :  { %11710 = dma.done.wait [#allocation12], 131200  }
  0xbf   :  { %11711 = vsyncadd [#allocation12], 4294836096 }
  0xc0   :  { %11712 = dma.done.wait [#allocation15], 131200  }
  0xc1   :  { %11713 = vsyncadd [#allocation15], 4294836096 }
  0xc2   :  { %11714 = dma.done.wait [#allocation18], 144  }
  0xc3   :  { %11715 = vsyncadd [#allocation18], 4294967152  ;;  %v179_v0 = vld [vmem:[#allocation7 + $0x8] sm:$0xff]  ;;  %v178_v2 = vld [vmem:[#allocation7] sm:$0xff]  ;;  %vm422_vm0 = vcmask 523264   ;;  %vm7765_vm2 = vcmask 386048  }
  0xc4   :  { %v187_v1 = vld [vmem:[#allocation7 + $0x48] sm:$0xff]  ;;  %v186_v4 = vld [vmem:[#allocation7 + $0x40] sm:$0xff]  ;;  %v11941_v36 = vld.sshfl [vmem:[#allocation2] sm:$0x33 pattern:$0x76325410] }
  0xc5   :  { %v7933_v3 = vpack.c.bf16 %v187_v1, %v179_v0  ;;  %v195_v5 = vld [vmem:[#allocation7 + $0x88] sm:$0xff]  ;;  %v7935_v7 = vpack.c.bf16 %v186_v4, %v178_v2  ;;  %v194_v9 = vld [vmem:[#allocation7 + $0x80] sm:$0xff]  ;;  %v181_v37 = vld [vmem:[#allocation7 + $0x18] sm:$0xff]  ;;  %v11945_v40 = vcombine.high %v11941_v36, %v11941_v36 }
  0xc6   :  { %v203_v6 = vld [vmem:[#allocation7 + $0xc8] sm:$0xff]  ;;  %v202_v10 = vld [vmem:[#allocation7 + $0xc0] sm:$0xff]  ;;  %v189_v38 = vld [vmem:[#allocation7 + $0x58] sm:$0xff] }
  0xc7   :  { %v7937_v8 = vpack.c.bf16 %v203_v6, %v195_v5  ;;  %v211_v11 = vld [vmem:[#allocation7 + $0x108] sm:$0xff]  ;;  %7934 = vmatprep.subr.bf16.mxu0 %v7933_v3  ;;  %v7939_v13 = vpack.c.bf16 %v202_v10, %v194_v9  ;;  %v210_v15 = vld [vmem:[#allocation7 + $0x100] sm:$0xff]  ;;  %v7981_v41 = vpack.c.bf16 %v189_v38, %v181_v37  ;;  %v180_v42 = vld [vmem:[#allocation7 + $0x10] sm:$0xff]  ;;  %7788 = vmatprep.mubr.msk.f32.mxu0 %vm422_vm0, %v11945_v40 }
  0xc8   :  { %v219_v12 = vld [vmem:[#allocation7 + $0x148] sm:$0xff]  ;;  %7936 = vmatpush1.bf16.msra.mxu0 %v7935_v7  ;;  %v218_v16 = vld [vmem:[#allocation7 + $0x140] sm:$0xff]  ;;  %v188_v43 = vld [vmem:[#allocation7 + $0x50] sm:$0xff]  ;;  %7789 = vmatprep.mubr.msk.f32.mxu1 %vm422_vm0, %v11945_v40 }
  0xc9   :  { %7938 = vmatprep.subr.bf16.mxu0 %v7937_v8  ;;  %v7941_v14 = vpack.c.bf16 %v219_v12, %v211_v11  ;;  %v227_v17 = vld [vmem:[#allocation7 + $0x188] sm:$0xff]  ;;  %v7943_v19 = vpack.c.bf16 %v218_v16, %v210_v15  ;;  %v226_v21 = vld [vmem:[#allocation7 + $0x180] sm:$0xff]  ;;  %v197_v44 = vld [vmem:[#allocation7 + $0x98] sm:$0xff]  ;;  %v7983_v45 = vpack.c.bf16 %v188_v43, %v180_v42  ;;  %7982 = vmatprep.subr.bf16.mxu1 %v7981_v41 }
  0xca   :  { %v235_v18 = vld [vmem:[#allocation7 + $0x1c8] sm:$0xff]  ;;  %v234_v22 = vld [vmem:[#allocation7 + $0x1c0] sm:$0xff]  ;;  %v205_v46 = vld [vmem:[#allocation7 + $0xd8] sm:$0xff] }
  0xcb   :  { %v7945_v20 = vpack.c.bf16 %v235_v18, %v227_v17  ;;  %v243_v23 = vld [vmem:[#allocation7 + $0x208] sm:$0xff]  ;;  %v7947_v25 = vpack.c.bf16 %v234_v22, %v226_v21  ;;  %v242_v27 = vld [vmem:[#allocation7 + $0x200] sm:$0xff]  ;;  %v196_v47 = vld [vmem:[#allocation7 + $0x90] sm:$0xff]  ;;  %v7985_v49 = vpack.c.bf16 %v205_v46, %v197_v44  ;;  %7984 = vmatpush1.bf16.msra.mxu1 %v7983_v45 }
  0xcc   :  { %7940 = vmatpush1.bf16.msra.mxu0 %v7939_v13  ;;  %v251_v24 = vld [vmem:[#allocation7 + $0x248] sm:$0xff]  ;;  %v250_v28 = vld [vmem:[#allocation7 + $0x240] sm:$0xff]  ;;  %v204_v48 = vld [vmem:[#allocation7 + $0xd0] sm:$0xff] }
  0xcd   :  { %7942 = vmatprep.subr.bf16.mxu0 %v7941_v14  ;;  %v7949_v26 = vpack.c.bf16 %v251_v24, %v243_v23  ;;  %v259_v29 = vld [vmem:[#allocation7 + $0x288] sm:$0xff]  ;;  %v258_v31 = vld [vmem:[#allocation7 + $0x280] sm:$0xff]  ;;  %v7951_v33 = vpack.c.bf16 %v250_v28, %v242_v27  ;;  %v213_v50 = vld [vmem:[#allocation7 + $0x118] sm:$0xff]  ;;  %v7987_v55 = vpack.c.bf16 %v204_v48, %v196_v47  ;;  %7986 = vmatprep.subr.bf16.mxu1 %v7985_v49 }
  0xce   :  { %v267_v30 = vld [vmem:[#allocation7 + $0x2c8] sm:$0xff]  ;;  %v266_v32 = vld [vmem:[#allocation7 + $0x2c0] sm:$0xff]  ;;  %v221_v51 = vld [vmem:[#allocation7 + $0x158] sm:$0xff] }
  0xcf   :  { %v275_v34 = vld [vmem:[#allocation7 + $0x308] sm:$0xff]  ;;  %v7953_v39 = vpack.c.bf16 %v267_v30, %v259_v29  ;;  %v7955_v52 = vpack.c.bf16 %v266_v32, %v258_v31  ;;  %v274_v53 = vld [vmem:[#allocation7 + $0x300] sm:$0xff]  ;;  %v7989_v58 = vpack.c.bf16 %v221_v51, %v213_v50  ;;  %v212_v59 = vld [vmem:[#allocation7 + $0x110] sm:$0xff]  ;;  %7988 = vmatpush1.bf16.msra.mxu1 %v7987_v55 }
  0xd0   :  { %7944 = vmatpush1.bf16.msra.mxu0 %v7943_v19  ;;  %v283_v35 = vld [vmem:[#allocation7 + $0x348] sm:$0xff]  ;;  %v282_v54 = vld [vmem:[#allocation7 + $0x340] sm:$0xff]  ;;  %v220_v60 = vld [vmem:[#allocation7 + $0x150] sm:$0xff] }
  0xd1   :  { %7946 = vmatprep.subr.bf16.mxu0 %v7945_v20  ;;  %v7957_v56 = vpack.c.bf16 %v283_v35, %v275_v34  ;;  %v291_v57 = vld [vmem:[#allocation7 + $0x388] sm:$0xff]  ;;  %v229_v62 = vld [vmem:[#allocation7 + $0x198] sm:$0xff]  ;;  %v7959_v0 = vpack.c.bf16 %v282_v54, %v274_v53  ;;  %v290_v1 = vld [vmem:[#allocation7 + $0x380] sm:$0xff]  ;;  %v7991_v3 = vpack.c.bf16 %v220_v60, %v212_v59  ;;  %7990 = vmatprep.subr.bf16.mxu1 %v7989_v58 }
  0xd2   :  { %v299_v61 = vld [vmem:[#allocation7 + $0x3c8] sm:$0xff]  ;;  %v237_v63 = vld [vmem:[#allocation7 + $0x1d8] sm:$0xff]  ;;  %v298_v2 = vld [vmem:[#allocation7 + $0x3c0] sm:$0xff] }
  0xd3   :  { %v7961_v4 = vpack.c.bf16 %v299_v61, %v291_v57  ;;  %v307_v5 = vld [vmem:[#allocation7 + $0x408] sm:$0xff]  ;;  %v7993_v6 = vpack.c.bf16 %v237_v63, %v229_v62  ;;  %v228_v7 = vld [vmem:[#allocation7 + $0x190] sm:$0xff]  ;;  %v245_v10 = vld [vmem:[#allocation7 + $0x218] sm:$0xff]  ;;  %v7963_v12 = vpack.c.bf16 %v298_v2, %v290_v1  ;;  %7992 = vmatpush1.bf16.msra.mxu1 %v7991_v3 }
  0xd4   :  { %7948 = vmatpush1.bf16.msra.mxu0 %v7947_v25  ;;  %v236_v8 = vld [vmem:[#allocation7 + $0x1d0] sm:$0xff]  ;;  %v315_v9 = vld [vmem:[#allocation7 + $0x448] sm:$0xff]  ;;  %v253_v11 = vld [vmem:[#allocation7 + $0x258] sm:$0xff] }
  0xd5   :  { %7950 = vmatprep.subr.bf16.mxu0 %v7949_v26  ;;  %v306_v13 = vld [vmem:[#allocation7 + $0x400] sm:$0xff]  ;;  %v7995_v15 = vpack.c.bf16 %v236_v8, %v228_v7  ;;  %v7965_v16 = vpack.c.bf16 %v315_v9, %v307_v5  ;;  %v323_v17 = vld [vmem:[#allocation7 + $0x488] sm:$0xff]  ;;  %7994 = vmatprep.subr.bf16.mxu1 %v7993_v6  ;;  %v7997_v18 = vpack.c.bf16 %v253_v11, %v245_v10  ;;  %v244_v19 = vld [vmem:[#allocation7 + $0x210] sm:$0xff] }
  0xd6   :  { %v314_v14 = vld [vmem:[#allocation7 + $0x440] sm:$0xff]  ;;  %v252_v20 = vld [vmem:[#allocation7 + $0x250] sm:$0xff]  ;;  %v331_v21 = vld [vmem:[#allocation7 + $0x4c8] sm:$0xff] }
  0xd7   :  { %v261_v22 = vld [vmem:[#allocation7 + $0x298] sm:$0xff]  ;;  %v7967_v24 = vpack.c.bf16 %v314_v14, %v306_v13  ;;  %v322_v25 = vld [vmem:[#allocation7 + $0x480] sm:$0xff]  ;;  %7996 = vmatpush1.bf16.msra.mxu1 %v7995_v15  ;;  %v7999_v27 = vpack.c.bf16 %v252_v20, %v244_v19  ;;  %v7969_v28 = vpack.c.bf16 %v331_v21, %v323_v17  ;;  %v339_v29 = vld [vmem:[#allocation7 + $0x508] sm:$0xff] }
  0xd8   :  { %7952 = vmatpush1.bf16.msra.mxu0 %v7951_v33  ;;  %v269_v23 = vld [vmem:[#allocation7 + $0x2d8] sm:$0xff]  ;;  %v330_v26 = vld [vmem:[#allocation7 + $0x4c0] sm:$0xff]  ;;  %7998 = vmatprep.subr.bf16.mxu1 %v7997_v18  ;;  %v260_v31 = vld [vmem:[#allocation7 + $0x290] sm:$0xff] }
  0xd9   :  { %7954 = vmatprep.subr.bf16.mxu0 %v7953_v39  ;;  %v8001_v30 = vpack.c.bf16 %v269_v23, %v261_v22  ;;  %v268_v32 = vld [vmem:[#allocation7 + $0x2d0] sm:$0xff]  ;;  %v347_v33 = vld [vmem:[#allocation7 + $0x548] sm:$0xff]  ;;  %v277_v34 = vld [vmem:[#allocation7 + $0x318] sm:$0xff]  ;;  %v7971_v37 = vpack.c.bf16 %v330_v26, %v322_v25 }
  0xda   :  { %v285_v35 = vld [vmem:[#allocation7 + $0x358] sm:$0xff]  ;;  %v338_v38 = vld [vmem:[#allocation7 + $0x500] sm:$0xff]  ;;  %v8003_v41 = vpack.c.bf16 %v268_v32, %v260_v31  ;;  %v7973_v42 = vpack.c.bf16 %v347_v33, %v339_v29  ;;  %v355_v43 = vld [vmem:[#allocation7 + $0x588] sm:$0xff] }
  0xdb   :  { %v346_v39 = vld [vmem:[#allocation7 + $0x540] sm:$0xff]  ;;  %8000 = vmatpush1.bf16.msra.mxu1 %v7999_v27  ;;  %v8005_v44 = vpack.c.bf16 %v285_v35, %v277_v34  ;;  %v276_v45 = vld [vmem:[#allocation7 + $0x310] sm:$0xff]  ;;  %v363_v47 = vld [vmem:[#allocation7 + $0x5c8] sm:$0xff] }
  0xdc   :  { %7956 = vmatpush1.bf16.msra.mxu0 %v7955_v52  ;;  %8002 = vmatprep.subr.bf16.mxu1 %v8001_v30  ;;  %v284_v46 = vld [vmem:[#allocation7 + $0x350] sm:$0xff]  ;;  %v293_v48 = vld [vmem:[#allocation7 + $0x398] sm:$0xff]  ;;  %v7975_v50 = vpack.c.bf16 %v346_v39, %v338_v38  ;;  %v354_v51 = vld [vmem:[#allocation7 + $0x580] sm:$0xff]  ;;  %v7977_v54 = vpack.c.bf16 %v363_v47, %v355_v43 }
  0xdd   :  { %7958 = vmatprep.subr.bf16.mxu0 %v7957_v56  ;;  %v301_v49 = vld [vmem:[#allocation7 + $0x3d8] sm:$0xff]  ;;  %v362_v52 = vld [vmem:[#allocation7 + $0x5c0] sm:$0xff]  ;;  %v8007_v53 = vpack.c.bf16 %v284_v46, %v276_v45  ;;  %v292_v56 = vld [vmem:[#allocation7 + $0x390] sm:$0xff] }
  0xde   :  { %v8009_v55 = vpack.c.bf16 %v301_v49, %v293_v48  ;;  %v300_v57 = vld [vmem:[#allocation7 + $0x3d0] sm:$0xff]  ;;  %v309_v58 = vld [vmem:[#allocation7 + $0x418] sm:$0xff]  ;;  %v183_v60 = vld [vmem:[#allocation7 + $0x28] sm:$0xff]  ;;  %v7979_v62 = vpack.c.bf16 %v362_v52, %v354_v51 }
  0xdf   :  { %8004 = vmatpush1.bf16.msra.mxu1 %v8003_v41  ;;  %v317_v59 = vld [vmem:[#allocation7 + $0x458] sm:$0xff]  ;;  %v191_v61 = vld [vmem:[#allocation7 + $0x68] sm:$0xff]  ;;  %v8011_v63 = vpack.c.bf16 %v300_v57, %v292_v56  ;;  %v316_v1 = vld [vmem:[#allocation7 + $0x450] sm:$0xff] }
  0xe0   :  { %7960 = vmatpush1.bf16.msra.mxu0 %v7959_v0  ;;  %8006 = vmatprep.subr.bf16.mxu1 %v8005_v44  ;;  %v308_v0 = vld [vmem:[#allocation7 + $0x410] sm:$0xff]  ;;  %v8013_v2 = vpack.c.bf16 %v317_v59, %v309_v58  ;;  %v325_v3 = vld [vmem:[#allocation7 + $0x498] sm:$0xff]  ;;  %v182_v5 = vld [vmem:[#allocation7 + $0x20] sm:$0xff] }
  0xe1   :  { %7962 = vmatprep.subr.bf16.mxu0 %v7961_v4  ;;  %v8029_v4 = vpack.c.bf16 %v191_v61, %v183_v60  ;;  %v190_v6 = vld [vmem:[#allocation7 + $0x60] sm:$0xff]  ;;  %v333_v7 = vld [vmem:[#allocation7 + $0x4d8] sm:$0xff]  ;;  %v199_v8 = vld [vmem:[#allocation7 + $0xa8] sm:$0xff]  ;;  %v8015_v10 = vpack.c.bf16 %v316_v1, %v308_v0 }
  0xe2   :  { %v207_v9 = vld [vmem:[#allocation7 + $0xe8] sm:$0xff]  ;;  %v324_v11 = vld [vmem:[#allocation7 + $0x490] sm:$0xff]  ;;  %v8031_v13 = vpack.c.bf16 %v190_v6, %v182_v5  ;;  %v8017_v14 = vpack.c.bf16 %v333_v7, %v325_v3  ;;  %v341_v15 = vld [vmem:[#allocation7 + $0x518] sm:$0xff] }
  0xe3   :  { %8008 = vmatpush1.bf16.msra.mxu1 %v8007_v53  ;;  %v198_v17 = vld [vmem:[#allocation7 + $0xa0] sm:$0xff]  ;;  %v349_v19 = vld [vmem:[#allocation7 + $0x558] sm:$0xff]  ;;  %v215_v20 = vld [vmem:[#allocation7 + $0x128] sm:$0xff] }
  0xe4   :  { %7964 = vmatpush1.bf16.msra.mxu0 %v7963_v12  ;;  %8010 = vmatprep.subr.bf16.mxu1 %v8009_v55  ;;  %v332_v12 = vld [vmem:[#allocation7 + $0x4d0] sm:$0xff]  ;;  %v206_v18 = vld [vmem:[#allocation7 + $0xe0] sm:$0xff]  ;;  %v223_v21 = vld [vmem:[#allocation7 + $0x168] sm:$0xff]  ;;  %v8021_v26 = vpack.c.bf16 %v349_v19, %v341_v15 }
  0xe5   :  { %7966 = vmatprep.subr.bf16.mxu0 %v7965_v16  ;;  %v8033_v16 = vpack.c.bf16 %v207_v9, %v199_v8  ;;  %v8019_v22 = vpack.c.bf16 %v332_v12, %v324_v11  ;;  %v340_v23 = vld [vmem:[#allocation7 + $0x510] sm:$0xff]  ;;  %v8035_v25 = vpack.c.bf16 %v206_v18, %v198_v17  ;;  %v357_v27 = vld [vmem:[#allocation7 + $0x598] sm:$0xff]  ;;  %v214_v29 = vld [vmem:[#allocation7 + $0x120] sm:$0xff] }
  0xe6   :  { %v222_v30 = vld [vmem:[#allocation7 + $0x160] sm:$0xff]  ;;  %v365_v31 = vld [vmem:[#allocation7 + $0x5d8] sm:$0xff]  ;;  %v231_v32 = vld [vmem:[#allocation7 + $0x1a8] sm:$0xff] }
  0xe7   :  { %8012 = vmatpush1.bf16.msra.mxu1 %v8011_v63  ;;  %v239_v33 = vld [vmem:[#allocation7 + $0x1e8] sm:$0xff]  ;;  %v356_v35 = vld [vmem:[#allocation7 + $0x590] sm:$0xff]  ;;  %v8039_v38 = vpack.c.bf16 %v222_v30, %v214_v29  ;;  %v8025_v39 = vpack.c.bf16 %v365_v31, %v357_v27  ;;  %v238_v43 = vld [vmem:[#allocation7 + $0x1e0] sm:$0xff] }
  0xe8   :  { %7968 = vmatpush1.bf16.msra.mxu0 %v7967_v24  ;;  %8014 = vmatprep.subr.bf16.mxu1 %v8013_v2  ;;  %v348_v24 = vld [vmem:[#allocation7 + $0x550] sm:$0xff]  ;;  %v8041_v41 = vpack.c.bf16 %v239_v33, %v231_v32  ;;  %v247_v44 = vld [vmem:[#allocation7 + $0x228] sm:$0xff]  ;;  %v185_v46 = vld [vmem:[#allocation7 + $0x38] sm:$0xff] }
  0xe9   :  { %7970 = vmatprep.subr.bf16.mxu0 %v7969_v28  ;;  %v8037_v28 = vpack.c.bf16 %v223_v21, %v215_v20  ;;  %v8023_v34 = vpack.c.bf16 %v348_v24, %v340_v23  ;;  %v255_v45 = vld [vmem:[#allocation7 + $0x268] sm:$0xff]  ;;  %v193_v47 = vld [vmem:[#allocation7 + $0x78] sm:$0xff]  ;;  %v254_v51 = vld [vmem:[#allocation7 + $0x260] sm:$0xff] }
  0xea   :  { %v8045_v52 = vpack.c.bf16 %v255_v45, %v247_v44  ;;  %v263_v53 = vld [vmem:[#allocation7 + $0x2a8] sm:$0xff]  ;;  %v184_v55 = vld [vmem:[#allocation7 + $0x30] sm:$0xff]  ;;  %v201_v58 = vld [vmem:[#allocation7 + $0xb8] sm:$0xff] }
  0xeb   :  { %8016 = vmatpush1.bf16.msra.mxu1 %v8015_v10  ;;  %v192_v56 = vld [vmem:[#allocation7 + $0x70] sm:$0xff]  ;;  %v271_v57 = vld [vmem:[#allocation7 + $0x2e8] sm:$0xff]  ;;  %v209_v59 = vld [vmem:[#allocation7 + $0xf8] sm:$0xff] }
  0xec   :  { %7972 = vmatpush1.bf16.msra.mxu0 %v7971_v37  ;;  %8018 = vmatprep.subr.bf16.mxu1 %v8017_v14  ;;  %v364_v37 = vld [vmem:[#allocation7 + $0x5d0] sm:$0xff]  ;;  %v262_v61 = vld [vmem:[#allocation7 + $0x2a0] sm:$0xff]  ;;  %v8079_v63 = vpack.c.bf16 %v192_v56, %v184_v55  ;;  %v8049_v0 = vpack.c.bf16 %v271_v57, %v263_v53  ;;  %v279_v1 = vld [vmem:[#allocation7 + $0x328] sm:$0xff]  ;;  %v8081_v2 = vpack.c.bf16 %v209_v59, %v201_v58 }
  0xed   :  { %7974 = vmatprep.subr.bf16.mxu0 %v7973_v42  ;;  %v230_v42 = vld [vmem:[#allocation7 + $0x1a0] sm:$0xff]  ;;  %v8027_v48 = vpack.c.bf16 %v364_v37, %v356_v35  ;;  %v200_v3 = vld [vmem:[#allocation7 + $0xb0] sm:$0xff]  ;;  %v287_v5 = vld [vmem:[#allocation7 + $0x368] sm:$0xff] }
  0xee   :  { %v8043_v49 = vpack.c.bf16 %v238_v43, %v230_v42  ;;  %v217_v6 = vld [vmem:[#allocation7 + $0x138] sm:$0xff]  ;;  %v278_v9 = vld [vmem:[#allocation7 + $0x320] sm:$0xff]  ;;  %v8053_v12 = vpack.c.bf16 %v287_v5, %v279_v1  ;;  %v216_v15 = vld [vmem:[#allocation7 + $0x130] sm:$0xff] }
  0xef   :  { %8020 = vmatpush1.bf16.msra.mxu1 %v8019_v22  ;;  %v225_v7 = vld [vmem:[#allocation7 + $0x178] sm:$0xff]  ;;  %v286_v10 = vld [vmem:[#allocation7 + $0x360] sm:$0xff]  ;;  %v303_v17 = vld [vmem:[#allocation7 + $0x3e8] sm:$0xff] }
  0xf0   :  { %7976 = vmatpush1.bf16.msra.mxu0 %v7975_v50  ;;  %8022 = vmatprep.subr.bf16.mxu1 %v8021_v26  ;;  %v246_v50 = vld [vmem:[#allocation7 + $0x220] sm:$0xff]  ;;  %v8085_v14 = vpack.c.bf16 %v225_v7, %v217_v6  ;;  %v233_v18 = vld [vmem:[#allocation7 + $0x1b8] sm:$0xff]  ;;  %v8055_v20 = vpack.c.bf16 %v286_v10, %v278_v9  ;;  %v232_v27 = vld [vmem:[#allocation7 + $0x1b0] sm:$0xff] }
  0xf1   :  { %7978 = vmatprep.subr.bf16.mxu0 %v7977_v54  ;;  %v8077_v54 = vpack.c.bf16 %v193_v47, %v185_v46  ;;  %v8047_v60 = vpack.c.bf16 %v254_v51, %v246_v50  ;;  %v241_v19 = vld [vmem:[#allocation7 + $0x1f8] sm:$0xff]  ;;  %v294_v21 = vld [vmem:[#allocation7 + $0x3a0] sm:$0xff]  ;;  %v319_v29 = vld [vmem:[#allocation7 + $0x468] sm:$0xff] }
  0xf2   :  { %v302_v22 = vld [vmem:[#allocation7 + $0x3e0] sm:$0xff]  ;;  %v8089_v26 = vpack.c.bf16 %v241_v19, %v233_v18  ;;  %v249_v30 = vld [vmem:[#allocation7 + $0x238] sm:$0xff]  ;;  %v327_v37 = vld [vmem:[#allocation7 + $0x4a8] sm:$0xff] }
  0xf3   :  { %8024 = vmatpush1.bf16.msra.mxu1 %v8023_v34  ;;  %v257_v31 = vld [vmem:[#allocation7 + $0x278] sm:$0xff]  ;;  %v8059_v32 = vpack.c.bf16 %v302_v22, %v294_v21  ;;  %v310_v33 = vld [vmem:[#allocation7 + $0x420] sm:$0xff]  ;;  %v335_v42 = vld [vmem:[#allocation7 + $0x4e8] sm:$0xff] }
  0xf4   :  { %7980 = vmatpush1.bf16.msra.mxu0 %v7979_v62  ;;  %8026 = vmatprep.subr.bf16.mxu1 %v8025_v39  ;;  %v270_v62 = vld [vmem:[#allocation7 + $0x2e0] sm:$0xff]  ;;  %v248_v39 = vld [vmem:[#allocation7 + $0x230] sm:$0xff]  ;;  %v265_v43 = vld [vmem:[#allocation7 + $0x2b8] sm:$0xff] }
  0xf5   :  { %8030 = vmatprep.subr.bf16.mxu0 %v8029_v4  ;;  %v208_v4 = vld [vmem:[#allocation7 + $0xf0] sm:$0xff]  ;;  %v8051_v8 = vpack.c.bf16 %v270_v62, %v262_v61  ;;  %v273_v44 = vld [vmem:[#allocation7 + $0x2f8] sm:$0xff]  ;;  %v326_v46 = vld [vmem:[#allocation7 + $0x4a0] sm:$0xff] }
  0xf6   :  { %v8083_v11 = vpack.c.bf16 %v208_v4, %v200_v3  ;;  %v334_v47 = vld [vmem:[#allocation7 + $0x4e0] sm:$0xff]  ;;  %v343_v50 = vld [vmem:[#allocation7 + $0x528] sm:$0xff]  ;;  %v8097_v51 = vpack.c.bf16 %v273_v44, %v265_v43  ;;  %v272_v53 = vld [vmem:[#allocation7 + $0x2f0] sm:$0xff] }
  0xf7   :  { %490 = vmatmul.mubr.f32.vlgmr.msra.gmra.mrb[0].mxu0 %v11941_v36  ;;  %8028 = vmatpush1.bf16.msra.mxu1 %v8027_v48  ;;  %v281_v55 = vld [vmem:[#allocation7 + $0x338] sm:$0xff]  ;;  %v8067_v57 = vpack.c.bf16 %v334_v47, %v326_v46  ;;  %v342_v58 = vld [vmem:[#allocation7 + $0x520] sm:$0xff]  ;;  %v359_v62 = vld [vmem:[#allocation7 + $0x5a8] sm:$0xff] }
  0xf8   :  { %8032 = vmatpush1.bf16.msra.mxu0 %v8031_v13  ;;  %7790 = vmatprep.mubr.msk.f32.mxu0 %vm422_vm0, %v11945_v40  ;;  %v295_v13 = vld [vmem:[#allocation7 + $0x3a8] sm:$0xff]  ;;  %v289_v56 = vld [vmem:[#allocation7 + $0x378] sm:$0xff]  ;;  %v350_v59 = vld [vmem:[#allocation7 + $0x560] sm:$0xff] }
  0xf9   :  { %8034 = vmatprep.subr.bf16.mxu0 %v8033_v16  ;;  %8078 = vmatprep.subr.bf16.mxu1 %v8077_v54  ;;  %v224_v16 = vld [vmem:[#allocation7 + $0x170] sm:$0xff]  ;;  %v8057_v24 = vpack.c.bf16 %v303_v17, %v295_v13  ;;  %v351_v54 = vld [vmem:[#allocation7 + $0x568] sm:$0xff]  ;;  %v297_v3 = vld [vmem:[#allocation7 + $0x3b8] sm:$0xff]  ;;  %v8071_v5 = vpack.c.bf16 %v350_v59, %v342_v58 }
  0xfa   :  { %561 = vmatmul.mubr.f32.vlgmr.msra.gmra.mrb[0].mxu1 %v11941_v36  ;;  %v8087_v23 = vpack.c.bf16 %v224_v16, %v216_v15  ;;  %v8069_v61 = vpack.c.bf16 %v351_v54, %v343_v50  ;;  %v288_v1 = vld [vmem:[#allocation7 + $0x370] sm:$0xff]  ;;  %v305_v4 = vld [vmem:[#allocation7 + $0x3f8] sm:$0xff]  ;;  %v358_v6 = vld [vmem:[#allocation7 + $0x5a0] sm:$0xff] }
  0xfb   :  { %8080 = vmatpush1.bf16.msra.mxu1 %v8079_v63  ;;  %7791 = vmatprep.mubr.msk.f32.mxu1 %vm422_vm0, %v11945_v40  ;;  %v318_v40 = vld [vmem:[#allocation7 + $0x460] sm:$0xff]  ;;  %v8101_v63 = vpack.c.bf16 %v289_v56, %v281_v55  ;;  %v8105_v10 = vpack.c.bf16 %v305_v4, %v297_v3  ;;  %v313_v13 = vld [vmem:[#allocation7 + $0x438] sm:$0xff]  ;;  %v718_v15 = vld [vmem:[#allocation10 + $0x8] sm:$0xff] }
  0xfc   :  { %8036 = vmatpush1.bf16.msra.mxu0 %v8035_v25  ;;  %8082 = vmatprep.subr.bf16.mxu1 %v8081_v2  ;;  %v311_v25 = vld [vmem:[#allocation7 + $0x428] sm:$0xff]  ;;  %v8063_v45 = vpack.c.bf16 %v318_v40, %v310_v33  ;;  %v366_v7 = vld [vmem:[#allocation7 + $0x5e0] sm:$0xff]  ;;  %v726_v16 = vld [vmem:[#allocation10 + $0x48] sm:$0xff] }
  0xfd   :  { %8038 = vmatprep.subr.bf16.mxu0 %v8037_v28  ;;  %v240_v28 = vld [vmem:[#allocation7 + $0x1f0] sm:$0xff]  ;;  %v8061_v35 = vpack.c.bf16 %v319_v29, %v311_v25  ;;  %v367_v2 = vld [vmem:[#allocation7 + $0x5e8] sm:$0xff]  ;;  %v8075_v17 = vpack.c.bf16 %v366_v7, %v358_v6  ;;  %v329_v22 = vld [vmem:[#allocation7 + $0x4b8] sm:$0xff] }
  0xfe   :  { %v8091_v34 = vpack.c.bf16 %v240_v28, %v232_v27  ;;  %v8073_v9 = vpack.c.bf16 %v367_v2, %v359_v62  ;;  %v312_v19 = vld [vmem:[#allocation7 + $0x430] sm:$0xff]  ;;  %v725_v25 = vld [vmem:[#allocation10 + $0x40] sm:$0xff]  ;;  %v345_v40 = vld [vmem:[#allocation7 + $0x538] sm:$0xff] }
  0xff   :  { %8084 = vmatpush1.bf16.msra.mxu1 %v8083_v11  ;;  %v296_v11 = vld [vmem:[#allocation7 + $0x3b0] sm:$0xff]  ;;  %v361_v47 = vld [vmem:[#allocation7 + $0x5b8] sm:$0xff]  ;;  %v757_v50 = vld [vmem:[#allocation10 + $0x140] sm:$0xff] }
 0x100   :  { %8040 = vmatpush1.bf16.msra.mxu0 %v8039_v38  ;;  %8086 = vmatprep.subr.bf16.mxu1 %v8085_v14  ;;  %v8093_v38 = vpack.c.bf16 %v257_v31, %v249_v30  ;;  %v321_v14 = vld [vmem:[#allocation7 + $0x478] sm:$0xff]  ;;  %v734_v27 = vld [vmem:[#allocation10 + $0x88] sm:$0xff]  ;;  %v720_v59 = vld [vmem:[#allocation10 + $0x18] sm:$0xff] }
 0x101   :  { %8042 = vmatprep.subr.bf16.mxu0 %v8041_v41  ;;  %v256_v41 = vld [vmem:[#allocation7 + $0x270] sm:$0xff]  ;;  %v8109_v21 = vpack.c.bf16 %v321_v14, %v313_v13  ;;  %v773_v62 = vld [vmem:[#allocation10 + $0x1c0] sm:$0xff]  ;;  %v719_v3 = vld [vmem:[#allocation10 + $0x10] sm:$0xff] }
 0x102   :  { %v8095_v48 = vpack.c.bf16 %v256_v41, %v248_v39  ;;  %v742_v28 = vld [vmem:[#allocation10 + $0xc8] sm:$0xff]  ;;  %v727_v4 = vld [vmem:[#allocation10 + $0x50] sm:$0xff]  ;;  %v736_v7 = vld [vmem:[#allocation10 + $0x98] sm:$0xff] }
 0x103   :  { %8088 = vmatpush1.bf16.msra.mxu1 %v8087_v23  ;;  %v8125_v23 = vpack.c.bf16 %v726_v16, %v718_v15  ;;  %v328_v30 = vld [vmem:[#allocation7 + $0x4b0] sm:$0xff]  ;;  %v8383_v14 = vpack.c.bf16 %v727_v4, %v719_v3  ;;  %v735_v15 = vld [vmem:[#allocation10 + $0x90] sm:$0xff]  ;;  %v816_v3 = vld [vmem:[#allocation10 + $0x318] sm:$0xff] }
 0x104   :  { %8044 = vmatpush1.bf16.msra.mxu0 %v8043_v49  ;;  %8090 = vmatprep.subr.bf16.mxu1 %v8089_v26  ;;  %v8065_v49 = vpack.c.bf16 %v335_v42, %v327_v37  ;;  %v337_v26 = vld [vmem:[#allocation7 + $0x4f8] sm:$0xff]  ;;  %v336_v31 = vld [vmem:[#allocation7 + $0x4f0] sm:$0xff]  ;;  %v741_v37 = vld [vmem:[#allocation10 + $0xc0] sm:$0xff] }
 0x105   :  { %8046 = vmatprep.subr.bf16.mxu0 %v8045_v52  ;;  %v264_v52 = vld [vmem:[#allocation7 + $0x2b0] sm:$0xff]  ;;  %v8113_v33 = vpack.c.bf16 %v337_v26, %v329_v22  ;;  %v8115_v42 = vpack.c.bf16 %v336_v31, %v328_v30  ;;  %v743_v16 = vld [vmem:[#allocation10 + $0xd0] sm:$0xff]  ;;  %v805_v22 = vld [vmem:[#allocation10 + $0x2c0] sm:$0xff] }
 0x106   :  { %v750_v39 = vld [vmem:[#allocation10 + $0x108] sm:$0xff]  ;;  %v8387_v26 = vpack.c.bf16 %v743_v16, %v735_v15  ;;  %v768_v31 = vld [vmem:[#allocation10 + $0x198] sm:$0xff] }
 0x107   :  { %8092 = vmatpush1.bf16.msra.mxu1 %v8091_v34  ;;  %v8129_v34 = vpack.c.bf16 %v742_v28, %v734_v27  ;;  %v758_v41 = vld [vmem:[#allocation10 + $0x148] sm:$0xff]  ;;  %v751_v27 = vld [vmem:[#allocation10 + $0x110] sm:$0xff]  ;;  %v832_v15 = vld [vmem:[#allocation10 + $0x398] sm:$0xff] }
 0x108   :  { %8048 = vmatpush1.bf16.msra.mxu0 %v8047_v60  ;;  %8094 = vmatprep.subr.bf16.mxu1 %v8093_v38  ;;  %v8099_v60 = vpack.c.bf16 %v272_v53, %v264_v52  ;;  %v353_v38 = vld [vmem:[#allocation7 + $0x578] sm:$0xff]  ;;  %v344_v43 = vld [vmem:[#allocation7 + $0x530] sm:$0xff] }
 0x109   :  { %8050 = vmatprep.subr.bf16.mxu0 %v8049_v0  ;;  %v280_v0 = vld [vmem:[#allocation7 + $0x330] sm:$0xff]  ;;  %v8117_v46 = vpack.c.bf16 %v353_v38, %v345_v40  ;;  %v759_v28 = vld [vmem:[#allocation10 + $0x150] sm:$0xff]  ;;  %v821_v40 = vld [vmem:[#allocation10 + $0x340] sm:$0xff] }
 0x10a   :  { %v352_v44 = vld [vmem:[#allocation7 + $0x570] sm:$0xff]  ;;  %v8391_v38 = vpack.c.bf16 %v759_v28, %v751_v27  ;;  %v848_v27 = vld [vmem:[#allocation10 + $0x418] sm:$0xff] }
 0x10b   :  { %8096 = vmatpush1.bf16.msra.mxu1 %v8095_v48  ;;  %v8133_v48 = vpack.c.bf16 %v758_v41, %v750_v39  ;;  %v766_v52 = vld [vmem:[#allocation10 + $0x188] sm:$0xff]  ;;  %v8119_v54 = vpack.c.bf16 %v352_v44, %v344_v43  ;;  %v767_v39 = vld [vmem:[#allocation10 + $0x190] sm:$0xff]  ;;  %v784_v43 = vld [vmem:[#allocation10 + $0x218] sm:$0xff] }
 0x10c   :  { %8052 = vmatpush1.bf16.msra.mxu0 %v8051_v8  ;;  %8098 = vmatprep.subr.bf16.mxu1 %v8097_v51  ;;  %v8103_v8 = vpack.c.bf16 %v288_v1, %v280_v0  ;;  %v369_v51 = vld [vmem:[#allocation7 + $0x5f8] sm:$0xff]  ;;  %v774_v53 = vld [vmem:[#allocation10 + $0x1c8] sm:$0xff] }
 0x10d   :  { %8054 = vmatprep.subr.bf16.mxu0 %v8053_v12  ;;  %v304_v12 = vld [vmem:[#allocation7 + $0x3f0] sm:$0xff]  ;;  %v8121_v58 = vpack.c.bf16 %v369_v51, %v361_v47  ;;  %v792_v47 = vld [vmem:[#allocation10 + $0x258] sm:$0xff]  ;;  %v783_v51 = vld [vmem:[#allocation10 + $0x210] sm:$0xff] }
 0x10e   :  { %v8107_v18 = vpack.c.bf16 %v304_v12, %v296_v11  ;;  %v360_v55 = vld [vmem:[#allocation7 + $0x5b0] sm:$0xff]  ;;  %v744_v11 = vld [vmem:[#allocation10 + $0xd8] sm:$0xff] }
 0x10f   :  { %8100 = vmatpush1.bf16.msra.mxu1 %v8099_v60  ;;  %v368_v56 = vld [vmem:[#allocation7 + $0x5f0] sm:$0xff]  ;;  %v8137_v60 = vpack.c.bf16 %v774_v53, %v766_v52  ;;  %v791_v52 = vld [vmem:[#allocation10 + $0x250] sm:$0xff] }
 0x110   :  { %8056 = vmatpush1.bf16.msra.mxu0 %v8055_v20  ;;  %8102 = vmatprep.subr.bf16.mxu1 %v8101_v63  ;;  %v320_v20 = vld [vmem:[#allocation7 + $0x470] sm:$0xff]  ;;  %v728_v63 = vld [vmem:[#allocation10 + $0x58] sm:$0xff]  ;;  %v8123_v2 = vpack.c.bf16 %v368_v56, %v360_v55 }
 0x111   :  { %8058 = vmatprep.subr.bf16.mxu0 %v8057_v24  ;;  %v717_v24 = vld [vmem:[#allocation10] sm:$0xff]  ;;  %v8111_v29 = vpack.c.bf16 %v320_v20, %v312_v19  ;;  %v782_v0 = vld [vmem:[#allocation10 + $0x208] sm:$0xff]  ;;  %v8381_v6 = vpack.c.bf16 %v728_v63, %v720_v59  ;;  %v752_v19 = vld [vmem:[#allocation10 + $0x118] sm:$0xff] }
 0x112   :  { %v790_v1 = vld [vmem:[#allocation10 + $0x248] sm:$0xff]  ;;  %v800_v55 = vld [vmem:[#allocation10 + $0x298] sm:$0xff]  ;;  %v799_v63 = vld [vmem:[#allocation10 + $0x290] sm:$0xff] }
 0x113   :  { %8104 = vmatpush1.bf16.msra.mxu1 %v8103_v8  ;;  %v8141_v8 = vpack.c.bf16 %v790_v1, %v782_v0  ;;  %v798_v12 = vld [vmem:[#allocation10 + $0x288] sm:$0xff]  ;;  %v808_v59 = vld [vmem:[#allocation10 + $0x2d8] sm:$0xff]  ;;  %v807_v0 = vld [vmem:[#allocation10 + $0x2d0] sm:$0xff] }
 0x114   :  { %8060 = vmatpush1.bf16.msra.mxu0 %v8059_v32  ;;  %8106 = vmatprep.subr.bf16.mxu1 %v8105_v10  ;;  %v8127_v32 = vpack.c.bf16 %v725_v25, %v717_v24  ;;  %v789_v10 = vld [vmem:[#allocation10 + $0x240] sm:$0xff]  ;;  %v806_v13 = vld [vmem:[#allocation10 + $0x2c8] sm:$0xff] }
 0x115   :  { %8062 = vmatprep.subr.bf16.mxu0 %v8061_v35  ;;  %v733_v35 = vld [vmem:[#allocation10 + $0x80] sm:$0xff]  ;;  %v8145_v20 = vpack.c.bf16 %v806_v13, %v798_v12  ;;  %v814_v24 = vld [vmem:[#allocation10 + $0x308] sm:$0xff]  ;;  %v823_v12 = vld [vmem:[#allocation10 + $0x350] sm:$0xff] }
 0x116   :  { %v822_v25 = vld [vmem:[#allocation10 + $0x348] sm:$0xff] }
 0x117   :  { %8108 = vmatpush1.bf16.msra.mxu1 %v8107_v18  ;;  %v8385_v18 = vpack.c.bf16 %v744_v11, %v736_v7  ;;  %v824_v7 = vld [vmem:[#allocation10 + $0x358] sm:$0xff]  ;;  %v815_v11 = vld [vmem:[#allocation10 + $0x310] sm:$0xff] }
 0x118   :  { %8064 = vmatpush1.bf16.msra.mxu0 %v8063_v45  ;;  %8110 = vmatprep.subr.bf16.mxu1 %v8109_v21  ;;  %v8131_v45 = vpack.c.bf16 %v741_v37, %v733_v35  ;;  %v797_v21 = vld [vmem:[#allocation10 + $0x280] sm:$0xff]  ;;  %v830_v35 = vld [vmem:[#allocation10 + $0x388] sm:$0xff] }
 0x119   :  { %8066 = vmatprep.subr.bf16.mxu0 %v8065_v49  ;;  %v749_v49 = vld [vmem:[#allocation10 + $0x100] sm:$0xff]  ;;  %v838_v37 = vld [vmem:[#allocation10 + $0x3c8] sm:$0xff] }
 0x11a   :  { %v8153_v44 = vpack.c.bf16 %v838_v37, %v830_v35  ;;  %v855_v35 = vld [vmem:[#allocation10 + $0x450] sm:$0xff] }
 0x11b   :  { %8112 = vmatpush1.bf16.msra.mxu1 %v8111_v29  ;;  %v8147_v29 = vpack.c.bf16 %v805_v22, %v797_v21  ;;  %v902_v21 = vld [vmem:[#allocation10 + $0x5c8] sm:$0xff]  ;;  %v8407_v22 = vpack.c.bf16 %v823_v12, %v815_v11  ;;  %v912_v11 = vld [vmem:[#allocation10 + $0x618] sm:$0xff] }
 0x11c   :  { %8068 = vmatpush1.bf16.msra.mxu0 %v8067_v57  ;;  %8114 = vmatprep.subr.bf16.mxu1 %v8113_v33  ;;  %v8135_v57 = vpack.c.bf16 %v757_v50, %v749_v49  ;;  %v813_v33 = vld [vmem:[#allocation10 + $0x300] sm:$0xff]  ;;  %v854_v49 = vld [vmem:[#allocation10 + $0x448] sm:$0xff] }
 0x11d   :  { %8070 = vmatprep.subr.bf16.mxu0 %v8069_v61  ;;  %v765_v61 = vld [vmem:[#allocation10 + $0x180] sm:$0xff]  ;;  %v8151_v41 = vpack.c.bf16 %v821_v40, %v813_v33  ;;  %v918_v33 = vld [vmem:[#allocation10 + $0x648] sm:$0xff] }
 0x11f   :  { %8116 = vmatpush1.bf16.msra.mxu1 %v8115_v42 }
 0x120   :  { %8072 = vmatpush1.bf16.msra.mxu0 %v8071_v5  ;;  %8118 = vmatprep.subr.bf16.mxu1 %v8117_v46  ;;  %v8139_v5 = vpack.c.bf16 %v773_v62, %v765_v61  ;;  %v837_v46 = vld [vmem:[#allocation10 + $0x3c0] sm:$0xff]  ;;  %v870_v61 = vld [vmem:[#allocation10 + $0x4c8] sm:$0xff]  ;;  %v8399_v62 = vpack.c.bf16 %v791_v52, %v783_v51  ;;  %v880_v51 = vld [vmem:[#allocation10 + $0x518] sm:$0xff] }
 0x121   :  { %8074 = vmatprep.subr.bf16.mxu0 %v8073_v9  ;;  %v781_v9 = vld [vmem:[#allocation10 + $0x200] sm:$0xff] }
 0x123   :  { %8120 = vmatpush1.bf16.msra.mxu1 %v8119_v54  ;;  %v8397_v54 = vpack.c.bf16 %v792_v47, %v784_v43  ;;  %v872_v43 = vld [vmem:[#allocation10 + $0x4d8] sm:$0xff]  ;;  %v863_v47 = vld [vmem:[#allocation10 + $0x490] sm:$0xff] }
 0x124   :  { %8076 = vmatpush1.bf16.msra.mxu0 %v8075_v17  ;;  %8122 = vmatprep.subr.bf16.mxu1 %v8121_v58  ;;  %v8143_v17 = vpack.c.bf16 %v789_v10, %v781_v9  ;;  %v853_v58 = vld [vmem:[#allocation10 + $0x440] sm:$0xff]  ;;  %v886_v9 = vld [vmem:[#allocation10 + $0x548] sm:$0xff]  ;;  %v8403_v10 = vpack.c.bf16 %v807_v0, %v799_v63  ;;  %v896_v63 = vld [vmem:[#allocation10 + $0x598] sm:$0xff] }
 0x125   :  { %8126 = vmatprep.subr.bf16.mxu0 %v8125_v23  ;;  %v760_v23 = vld [vmem:[#allocation10 + $0x158] sm:$0xff] }
 0x126   :  { %v8389_v30 = vpack.c.bf16 %v760_v23, %v752_v19  ;;  %v840_v19 = vld [vmem:[#allocation10 + $0x3d8] sm:$0xff]  ;;  %v831_v23 = vld [vmem:[#allocation10 + $0x390] sm:$0xff] }
 0x127   :  { %632 = vmatmul.mubr.f32.vlgmr.msra.gmra.mrb[2].mxu0 %v11941_v36  ;;  %8124 = vmatpush1.bf16.msra.mxu1 %v8123_v2  ;;  %v8401_v2 = vpack.c.bf16 %v808_v59, %v800_v55  ;;  %v888_v55 = vld [vmem:[#allocation10 + $0x558] sm:$0xff]  ;;  %v879_v59 = vld [vmem:[#allocation10 + $0x510] sm:$0xff] }
 0x128   :  { %8128 = vmatpush1.bf16.msra.mxu0 %v8127_v32  ;;  %8382 = vmatprep.subr.bf16.mxu1 %v8381_v6  ;;  %v8149_v32 = vpack.c.bf16 %v822_v25, %v814_v24  ;;  %v869_v6 = vld [vmem:[#allocation10 + $0x4c0] sm:$0xff]  ;;  %v839_v24 = vld [vmem:[#allocation10 + $0x3d0] sm:$0xff] }
 0x129   :  { %8130 = vmatprep.subr.bf16.mxu0 %v8129_v34  ;;  %v776_v34 = vld [vmem:[#allocation10 + $0x1d8] sm:$0xff]  ;;  %v8411_v40 = vpack.c.bf16 %v839_v24, %v831_v23 }
 0x12a   :  { %703 = vmatmul.mubr.f32.vlgmr.msra.gmra.mrb[2].mxu1 %v11941_v36  ;;  %v775_v36 = vld [vmem:[#allocation10 + $0x1d0] sm:$0xff]  ;;  %v8393_v42 = vpack.c.bf16 %v776_v34, %v768_v31  ;;  %v856_v31 = vld [vmem:[#allocation10 + $0x458] sm:$0xff] }
 0x12b   :  { %8384 = vmatpush1.bf16.msra.mxu1 %v8383_v14  ;;  %v8395_v50 = vpack.c.bf16 %v775_v36, %v767_v39  ;;  %v8405_v14 = vpack.c.bf16 %v824_v7, %v816_v3  ;;  %v847_v34 = vld [vmem:[#allocation10 + $0x410] sm:$0xff]  ;;  %v864_v39 = vld [vmem:[#allocation10 + $0x498] sm:$0xff] }
 0x12c   :  { %8132 = vmatpush1.bf16.msra.mxu0 %v8131_v45  ;;  %8386 = vmatprep.subr.bf16.mxu1 %v8385_v18  ;;  %v829_v45 = vld [vmem:[#allocation10 + $0x380] sm:$0xff]  ;;  %v904_v3 = vld [vmem:[#allocation10 + $0x5d8] sm:$0xff]  ;;  %v895_v7 = vld [vmem:[#allocation10 + $0x590] sm:$0xff] }
 0x12d   :  { %8134 = vmatprep.subr.bf16.mxu0 %v8133_v48  ;;  %v846_v48 = vld [vmem:[#allocation10 + $0x408] sm:$0xff]  ;;  %v8155_v53 = vpack.c.bf16 %v837_v46, %v829_v45  ;;  %v885_v18 = vld [vmem:[#allocation10 + $0x540] sm:$0xff]  ;;  %v8415_v46 = vpack.c.bf16 %v855_v35, %v847_v34  ;;  %v928_v24 = vld [vmem:[#allocation10 + $0x698] sm:$0xff] }
 0x12e   :  { %v8157_v56 = vpack.c.bf16 %v854_v49, %v846_v48  ;;  %v934_v45 = vld [vmem:[#allocation10 + $0x6c8] sm:$0xff]  ;;  %v871_v48 = vld [vmem:[#allocation10 + $0x4d0] sm:$0xff]  ;;  %v960_v35 = vld [vmem:[#allocation10 + $0x798] sm:$0xff] }
 0x12f   :  { %8388 = vmatpush1.bf16.msra.mxu1 %v8387_v26  ;;  %v8409_v26 = vpack.c.bf16 %v840_v19, %v832_v15  ;;  %v920_v15 = vld [vmem:[#allocation10 + $0x658] sm:$0xff]  ;;  %v951_v34 = vld [vmem:[#allocation10 + $0x750] sm:$0xff] }
 0x130   :  { %8136 = vmatpush1.bf16.msra.mxu0 %v8135_v57  ;;  %8390 = vmatprep.subr.bf16.mxu1 %v8389_v30  ;;  %v845_v57 = vld [vmem:[#allocation10 + $0x400] sm:$0xff] }
 0x131   :  { %8138 = vmatprep.subr.bf16.mxu0 %v8137_v60  ;;  %v862_v60 = vld [vmem:[#allocation10 + $0x488] sm:$0xff]  ;;  %v8159_v1 = vpack.c.bf16 %v853_v58, %v845_v57  ;;  %v901_v30 = vld [vmem:[#allocation10 + $0x5c0] sm:$0xff]  ;;  %v8419_v58 = vpack.c.bf16 %v871_v48, %v863_v47 }
 0x132   :  { %v8161_v4 = vpack.c.bf16 %v870_v61, %v862_v60  ;;  %v950_v57 = vld [vmem:[#allocation10 + $0x748] sm:$0xff]  ;;  %v887_v60 = vld [vmem:[#allocation10 + $0x550] sm:$0xff] }
 0x133   :  { %8392 = vmatpush1.bf16.msra.mxu1 %v8391_v38  ;;  %v8413_v38 = vpack.c.bf16 %v856_v31, %v848_v27  ;;  %v952_v31 = vld [vmem:[#allocation10 + $0x758] sm:$0xff] }
 0x134   :  { %8140 = vmatpush1.bf16.msra.mxu0 %v8139_v5  ;;  %8394 = vmatprep.subr.bf16.mxu1 %v8393_v42  ;;  %v861_v5 = vld [vmem:[#allocation10 + $0x480] sm:$0xff] }
 0x135   :  { %8142 = vmatprep.subr.bf16.mxu0 %v8141_v8  ;;  %v878_v8 = vld [vmem:[#allocation10 + $0x508] sm:$0xff]  ;;  %v8163_v13 = vpack.c.bf16 %v869_v6, %v861_v5  ;;  %v917_v42 = vld [vmem:[#allocation10 + $0x640] sm:$0xff]  ;;  %v8423_v6 = vpack.c.bf16 %v887_v60, %v879_v59  ;;  %v983_v59 = vld [vmem:[#allocation10 + $0x850] sm:$0xff] }
 0x136   :  { %v8165_v16 = vpack.c.bf16 %v886_v9, %v878_v8  ;;  %v966_v5 = vld [vmem:[#allocation10 + $0x7c8] sm:$0xff]  ;;  %v903_v8 = vld [vmem:[#allocation10 + $0x5d0] sm:$0xff] }
 0x137   :  { %8396 = vmatpush1.bf16.msra.mxu1 %v8395_v50  ;;  %v8417_v50 = vpack.c.bf16 %v872_v43, %v864_v39  ;;  %v984_v43 = vld [vmem:[#allocation10 + $0x858] sm:$0xff]  ;;  %v990_v60 = vld [vmem:[#allocation10 + $0x888] sm:$0xff] }
 0x138   :  { %8144 = vmatpush1.bf16.msra.mxu0 %v8143_v17  ;;  %8398 = vmatprep.subr.bf16.mxu1 %v8397_v54  ;;  %v877_v17 = vld [vmem:[#allocation10 + $0x500] sm:$0xff] }
 0x139   :  { %8146 = vmatprep.subr.bf16.mxu0 %v8145_v20  ;;  %v894_v20 = vld [vmem:[#allocation10 + $0x588] sm:$0xff]  ;;  %v8167_v25 = vpack.c.bf16 %v885_v18, %v877_v17  ;;  %v933_v54 = vld [vmem:[#allocation10 + $0x6c0] sm:$0xff]  ;;  %v8427_v18 = vpack.c.bf16 %v903_v8, %v895_v7 }
 0x13a   :  { %v8169_v28 = vpack.c.bf16 %v902_v21, %v894_v20  ;;  %v982_v17 = vld [vmem:[#allocation10 + $0x848] sm:$0xff]  ;;  %v8429_v20 = vpack.c.bf16 %v920_v15, %v912_v11  ;;  %v911_v21 = vld [vmem:[#allocation10 + $0x610] sm:$0xff] }
 0x13b   :  { %8400 = vmatpush1.bf16.msra.mxu1 %v8399_v62  ;;  %v8421_v62 = vpack.c.bf16 %v888_v55, %v880_v51  ;;  %v981_v55 = vld [vmem:[#allocation10 + $0x840] sm:$0xff]  ;;  %v1006_v11 = vld [vmem:[#allocation10 + $0x908] sm:$0xff] }
 0x13c   :  { %8148 = vmatpush1.bf16.msra.mxu0 %v8147_v29  ;;  %8402 = vmatprep.subr.bf16.mxu1 %v8401_v2  ;;  %v893_v29 = vld [vmem:[#allocation10 + $0x580] sm:$0xff] }
 0x13d   :  { %8150 = vmatprep.subr.bf16.mxu0 %v8149_v32  ;;  %v910_v32 = vld [vmem:[#allocation10 + $0x608] sm:$0xff]  ;;  %v8171_v37 = vpack.c.bf16 %v901_v30, %v893_v29  ;;  %v949_v2 = vld [vmem:[#allocation10 + $0x740] sm:$0xff]  ;;  %v935_v29 = vld [vmem:[#allocation10 + $0x6d0] sm:$0xff] }
 0x13e   :  { %v8173_v36 = vpack.c.bf16 %v918_v33, %v910_v32  ;;  %v944_v30 = vld [vmem:[#allocation10 + $0x718] sm:$0xff] }
 0x13f   :  { %8404 = vmatpush1.bf16.msra.mxu1 %v8403_v10  ;;  %v8425_v10 = vpack.c.bf16 %v904_v3, %v896_v63  ;;  %v8437_v33 = vpack.c.bf16 %v952_v31, %v944_v30  ;;  %v992_v63 = vld [vmem:[#allocation10 + $0x898] sm:$0xff]  ;;  %v1021_v30 = vld [vmem:[#allocation10 + $0x980] sm:$0xff] }
 0x140   :  { %8152 = vmatpush1.bf16.msra.mxu0 %v8151_v41  ;;  %8406 = vmatprep.subr.bf16.mxu1 %v8405_v14  ;;  %v909_v41 = vld [vmem:[#allocation10 + $0x600] sm:$0xff] }
 0x141   :  { %8154 = vmatprep.subr.bf16.mxu0 %v8153_v44  ;;  %v926_v44 = vld [vmem:[#allocation10 + $0x688] sm:$0xff]  ;;  %v8175_v49 = vpack.c.bf16 %v917_v42, %v909_v41  ;;  %v965_v14 = vld [vmem:[#allocation10 + $0x7c0] sm:$0xff]  ;;  %v967_v41 = vld [vmem:[#allocation10 + $0x7d0] sm:$0xff] }
 0x142   :  { %v8177_v52 = vpack.c.bf16 %v934_v45, %v926_v44  ;;  %v976_v42 = vld [vmem:[#allocation10 + $0x818] sm:$0xff]  ;;  %v1029_v31 = vld [vmem:[#allocation10 + $0x9c0] sm:$0xff] }
 0x143   :  { %8408 = vmatpush1.bf16.msra.mxu1 %v8407_v22  ;;  %v919_v22 = vld [vmem:[#allocation10 + $0x650] sm:$0xff]  ;;  %v8445_v45 = vpack.c.bf16 %v984_v43, %v976_v42  ;;  %v1037_v43 = vld [vmem:[#allocation10 + $0xa00] sm:$0xff] }
 0x144   :  { %8156 = vmatpush1.bf16.msra.mxu0 %v8155_v53  ;;  %8410 = vmatprep.subr.bf16.mxu1 %v8409_v26  ;;  %v925_v53 = vld [vmem:[#allocation10 + $0x680] sm:$0xff]  ;;  %v8431_v26 = vpack.c.bf16 %v919_v22, %v911_v21  ;;  %v1007_v21 = vld [vmem:[#allocation10 + $0x910] sm:$0xff] }
 0x145   :  { %8158 = vmatprep.subr.bf16.mxu0 %v8157_v56  ;;  %v942_v56 = vld [vmem:[#allocation10 + $0x708] sm:$0xff]  ;;  %v8179_v61 = vpack.c.bf16 %v933_v54, %v925_v53  ;;  %v973_v54 = vld [vmem:[#allocation10 + $0x800] sm:$0xff]  ;;  %v1015_v22 = vld [vmem:[#allocation10 + $0x950] sm:$0xff] }
 0x146   :  { %v8181_v0 = vpack.c.bf16 %v950_v57, %v942_v56 }
 0x147   :  { %8412 = vmatpush1.bf16.msra.mxu1 %v8411_v40  ;;  %v943_v40 = vld [vmem:[#allocation10 + $0x710] sm:$0xff] }
 0x148   :  { %8160 = vmatpush1.bf16.msra.mxu0 %v8159_v1  ;;  %8414 = vmatprep.subr.bf16.mxu1 %v8413_v38  ;;  %v941_v1 = vld [vmem:[#allocation10 + $0x700] sm:$0xff]  ;;  %v8439_v38 = vpack.c.bf16 %v951_v34, %v943_v40  ;;  %v1023_v40 = vld [vmem:[#allocation10 + $0x990] sm:$0xff] }
 0x149   :  { %8162 = vmatprep.subr.bf16.mxu0 %v8161_v4  ;;  %v958_v4 = vld [vmem:[#allocation10 + $0x788] sm:$0xff]  ;;  %v8183_v9 = vpack.c.bf16 %v949_v2, %v941_v1  ;;  %v8191_v2 = vpack.c.bf16 %v981_v55, %v973_v54  ;;  %v1031_v34 = vld [vmem:[#allocation10 + $0x9d0] sm:$0xff] }
 0x14a   :  { %v8185_v12 = vpack.c.bf16 %v966_v5, %v958_v4  ;;  %v989_v4 = vld [vmem:[#allocation10 + $0x880] sm:$0xff]  ;;  %v8459_v42 = vpack.c.bf16 %v1031_v34, %v1023_v40  ;;  %v1054_v54 = vld [vmem:[#allocation10 + $0xa88] sm:$0xff]  ;;  %v1104_v40 = vld [vmem:[#allocation10 + $0xc18] sm:$0xff] }
 0x14b   :  { %8416 = vmatpush1.bf16.msra.mxu1 %v8415_v46  ;;  %v372_v46 = vlaneseq  ;;  %v997_v5 = vld [vmem:[#allocation10 + $0x8c0] sm:$0xff]  ;;  %v1112_v34 = vld [vmem:[#allocation10 + $0xc58] sm:$0xff] }
 0x14c   :  { %8164 = vmatpush1.bf16.msra.mxu0 %v8163_v13  ;;  %8418 = vmatprep.subr.bf16.mxu1 %v8417_v50  ;;  %v957_v13 = vld [vmem:[#allocation10 + $0x780] sm:$0xff]  ;;  %v8195_v15 = vpack.c.bf16 %v997_v5, %v989_v4  ;;  %v1055_v4 = vld [vmem:[#allocation10 + $0xa90] sm:$0xff] }
 0x14d   :  { %8166 = vmatprep.subr.bf16.mxu0 %v8165_v16  ;;  %v974_v16 = vld [vmem:[#allocation10 + $0x808] sm:$0xff]  ;;  %v8187_v19 = vpack.c.bf16 %v965_v14, %v957_v13  ;;  %v11959_v47 = vshrl.u32 %v372_v46, 7  ;;  %v1008_v13 = vld [vmem:[#allocation10 + $0x918] sm:$0xff]  ;;  %v1063_v5 = vld [vmem:[#allocation10 + $0xad0] sm:$0xff] }
 0x14e   :  { %v8189_v23 = vpack.c.bf16 %v982_v17, %v974_v16  ;;  %v1016_v14 = vld [vmem:[#allocation10 + $0x958] sm:$0xff]  ;;  %v1005_v17 = vld [vmem:[#allocation10 + $0x900] sm:$0xff] }
 0x14f   :  { %8420 = vmatpush1.bf16.msra.mxu1 %v8419_v58  ;;  %v11962_v48 = vsub.s32 0, %v11959_v47  ;;  %v11967_v50 = vsub.s32 1, %v11959_v47  ;;  %v975_v58 = vld [vmem:[#allocation10 + $0x810] sm:$0xff] }
 0x150   :  { %8168 = vmatpush1.bf16.msra.mxu0 %v8167_v25  ;;  %8422 = vmatprep.subr.bf16.mxu1 %v8421_v62  ;;  %v936_v25 = vld [vmem:[#allocation10 + $0x6d8] sm:$0xff]  ;;  %v998_v62 = vld [vmem:[#allocation10 + $0x8c8] sm:$0xff]  ;;  %v8447_v3 = vpack.c.bf16 %v983_v59, %v975_v58 }
 0x151   :  { %8170 = vmatprep.subr.bf16.mxu0 %v8169_v28  ;;  %v8433_v27 = vpack.c.bf16 %v936_v25, %v928_v24  ;;  %v927_v28 = vld [vmem:[#allocation10 + $0x690] sm:$0xff]  ;;  %v8193_v7 = vpack.c.bf16 %v998_v62, %v990_v60  ;;  %v1030_v24 = vld [vmem:[#allocation10 + $0x9c8] sm:$0xff]  ;;  %v1024_v25 = vld [vmem:[#allocation10 + $0x998] sm:$0xff] }
 0x152   :  { %v8435_v32 = vpack.c.bf16 %v935_v29, %v927_v28  ;;  %v8455_v29 = vpack.c.bf16 %v1015_v22, %v1007_v21  ;;  %v1064_v58 = vld [vmem:[#allocation10 + $0xad8] sm:$0xff]  ;;  %v1053_v62 = vld [vmem:[#allocation10 + $0xa80] sm:$0xff] }
 0x153   :  { %8424 = vmatpush1.bf16.msra.mxu1 %v8423_v6  ;;  %v1088_v21 = vld [vmem:[#allocation10 + $0xb98] sm:$0xff] }
 0x154   :  { %8172 = vmatpush1.bf16.msra.mxu0 %v8171_v37  ;;  %8426 = vmatprep.subr.bf16.mxu1 %v8425_v10  ;;  %v968_v37 = vld [vmem:[#allocation10 + $0x7d8] sm:$0xff]  ;;  %v999_v10 = vld [vmem:[#allocation10 + $0x8d0] sm:$0xff] }
 0x155   :  { %8174 = vmatprep.subr.bf16.mxu0 %v8173_v36  ;;  %v8441_v39 = vpack.c.bf16 %v968_v37, %v960_v35  ;;  %v959_v36 = vld [vmem:[#allocation10 + $0x790] sm:$0xff]  ;;  %v1038_v35 = vld [vmem:[#allocation10 + $0xa08] sm:$0xff]  ;;  %v1096_v22 = vld [vmem:[#allocation10 + $0xbd8] sm:$0xff] }
 0x156   :  { %v8443_v44 = vpack.c.bf16 %v967_v41, %v959_v36  ;;  %v1046_v37 = vld [vmem:[#allocation10 + $0xa48] sm:$0xff]  ;;  %v8203_v41 = vpack.c.bf16 %v1029_v31, %v1021_v30  ;;  %v1087_v30 = vld [vmem:[#allocation10 + $0xb90] sm:$0xff] }
 0x157   :  { %8428 = vmatpush1.bf16.msra.mxu1 %v8427_v18  ;;  %v1013_v18 = vld [vmem:[#allocation10 + $0x940] sm:$0xff]  ;;  %v8205_v46 = vpack.c.bf16 %v1046_v37, %v1038_v35  ;;  %v1095_v31 = vld [vmem:[#allocation10 + $0xbd0] sm:$0xff] }
 0x158   :  { %8176 = vmatpush1.bf16.msra.mxu0 %v8175_v49  ;;  %8430 = vmatprep.subr.bf16.mxu1 %v8429_v20  ;;  %v11964_v49 = vld [vmem:[#allocation8] sm:$0xff]  ;;  %v8453_v20 = vpack.c.bf16 %v1016_v14, %v1008_v13  ;;  %v8199_v28 = vpack.c.bf16 %v1013_v18, %v1005_v17  ;;  %v1069_v13 = vld [vmem:[#allocation10 + $0xb00] sm:$0xff]  ;;  %v1071_v17 = vld [vmem:[#allocation10 + $0xb10] sm:$0xff]  ;;  %v8475_v37 = vpack.c.bf16 %v1095_v31, %v1087_v30 }
 0x159   :  { %8178 = vmatprep.subr.bf16.mxu0 %v8177_v52  ;;  %v375_v51 = vrot.slane %v11964_v49, %v11962_v48  ;;  %v379_v52 = vrot.slane %v11964_v49, %v11967_v50  ;;  %v1077_v14 = vld [vmem:[#allocation10 + $0xb40] sm:$0xff]  ;;  %v1079_v18 = vld [vmem:[#allocation10 + $0xb50] sm:$0xff] }
 0x15a   :  { %v1165_v31 = vld [vmem:[#allocation10 + $0xe00] sm:$0xff] }
 0x15b   :  { %8432 = vmatpush1.bf16.msra.mxu1 %v8431_v26  ;;  %v1032_v26 = vld [vmem:[#allocation10 + $0x9d8] sm:$0xff] }
 0x15c   :  { %8180 = vmatpush1.bf16.msra.mxu0 %v8179_v61  ;;  %8434 = vmatprep.subr.bf16.mxu1 %v8433_v27  ;;  %v11982_v27 = vsub.s32 3, %v11959_v47 }
 0x15d   :  { %8182 = vmatprep.subr.bf16.mxu0 %v8181_v0  ;;  %v1000_v0 = vld [vmem:[#allocation10 + $0x8d8] sm:$0xff] }
 0x15e   :  { %v8449_v8 = vpack.c.bf16 %v1000_v0, %v992_v63  ;;  %v387_v36 = vrot.slane %v11964_v49, %v11982_v27  ;;  %v1061_v63 = vld [vmem:[#allocation10 + $0xac0] sm:$0xff] }
 0x15f   :  { %8436 = vmatpush1.bf16.msra.mxu1 %v8435_v32 }
 0x160   :  { %8184 = vmatpush1.bf16.msra.mxu0 %v8183_v9  ;;  %8438 = vmatprep.subr.bf16.mxu1 %v8437_v33  ;;  %v991_v9 = vld [vmem:[#allocation10 + $0x890] sm:$0xff]  ;;  %v8457_v33 = vpack.c.bf16 %v1032_v26, %v1024_v25  ;;  %v1085_v25 = vld [vmem:[#allocation10 + $0xb80] sm:$0xff] }
 0x161   :  { %8186 = vmatprep.subr.bf16.mxu0 %v8185_v12  ;;  %v1014_v12 = vld [vmem:[#allocation10 + $0x948] sm:$0xff]  ;;  %v8451_v16 = vpack.c.bf16 %v999_v10, %v991_v9  ;;  %v1072_v9 = vld [vmem:[#allocation10 + $0xb18] sm:$0xff]  ;;  %v1093_v26 = vld [vmem:[#allocation10 + $0xbc0] sm:$0xff] }
 0x162   :  { %v1080_v10 = vld [vmem:[#allocation10 + $0xb58] sm:$0xff]  ;;  %v8219_v35 = vpack.c.bf16 %v1093_v26, %v1085_v25  ;;  %v1174_v25 = vld [vmem:[#allocation10 + $0xe48] sm:$0xff] }
 0x163   :  { %8440 = vmatpush1.bf16.msra.mxu1 %v8439_v38  ;;  %v1040_v38 = vld [vmem:[#allocation10 + $0xa18] sm:$0xff] }
 0x164   :  { %8188 = vmatpush1.bf16.msra.mxu0 %v8187_v19  ;;  %8442 = vmatprep.subr.bf16.mxu1 %v8441_v39  ;;  %v8197_v19 = vpack.c.bf16 %v1014_v12, %v1006_v11  ;;  %v1048_v39 = vld [vmem:[#allocation10 + $0xa58] sm:$0xff]  ;;  %v8211_v11 = vpack.c.bf16 %v1061_v63, %v1053_v62  ;;  %v8467_v12 = vpack.c.bf16 %v1063_v5, %v1055_v4  ;;  %v1142_v62 = vld [vmem:[#allocation10 + $0xd48] sm:$0xff]  ;;  %v1133_v5 = vld [vmem:[#allocation10 + $0xd00] sm:$0xff] }
 0x165   :  { %8190 = vmatprep.subr.bf16.mxu0 %v8189_v23  ;;  %v1022_v23 = vld [vmem:[#allocation10 + $0x988] sm:$0xff]  ;;  %v1136_v63 = vld [vmem:[#allocation10 + $0xd18] sm:$0xff] }
 0x166   :  { %v8201_v32 = vpack.c.bf16 %v1030_v24, %v1022_v23  ;;  %v8215_v23 = vpack.c.bf16 %v1077_v14, %v1069_v13  ;;  %v8471_v24 = vpack.c.bf16 %v1079_v18, %v1071_v17  ;;  %v1158_v13 = vld [vmem:[#allocation10 + $0xdc8] sm:$0xff]  ;;  %v1152_v14 = vld [vmem:[#allocation10 + $0xd98] sm:$0xff]  ;;  %v1149_v18 = vld [vmem:[#allocation10 + $0xd80] sm:$0xff] }
 0x167   :  { %8444 = vmatpush1.bf16.msra.mxu1 %v8443_v44  ;;  %v1045_v44 = vld [vmem:[#allocation10 + $0xa40] sm:$0xff]  ;;  %v1168_v26 = vld [vmem:[#allocation10 + $0xe18] sm:$0xff] }
 0x168   :  { %8446 = vmatprep.subr.bf16.mxu1 %v8445_v45  ;;  %v8207_v60 = vpack.c.bf16 %v1045_v44, %v1037_v43  ;;  %v1111_v43 = vld [vmem:[#allocation10 + $0xc50] sm:$0xff]  ;;  %v1118_v44 = vld [vmem:[#allocation10 + $0xc88] sm:$0xff] }
 0x1ca   :  { %v491_v53 = vpop.f32.mrb[0].mxu0 }
 0x1cb   :  { %v492_v56 = vadd.f32 %v491_v53, %v375_v51  ;;  %v493_v57 = vpop.f32.mrb[1].mxu0  ;;  %v8461_v51 = vpack.c.bf16 %v1048_v39, %v1040_v38  ;;  %v1047_v53 = vld [vmem:[#allocation10 + $0xa50] sm:$0xff]  ;;  %v1101_v38 = vld [vmem:[#allocation10 + $0xc00] sm:$0xff] }
 0x1cc   :  { %v494_v61 = vadd.f32 %v493_v57, %v379_v52  ;;  %v1039_v52 = vld [vmem:[#allocation10 + $0xa10] sm:$0xff]  ;;  %v1056_v57 = vld [vmem:[#allocation10 + $0xa98] sm:$0xff]  ;;  %v1109_v39 = vld [vmem:[#allocation10 + $0xc40] sm:$0xff] }
 0x1cd   :  { %v11975_v6 = vmax.f32 %v492_v56, 0.0  ;;  %v11986_v45 = vpop.f32.mrb[0].mxu1  ;;  %v1062_v56 = vld [vmem:[#allocation10 + $0xac8] sm:$0xff] }
 0x1ce   :  { %v11973_v1 = vmax.f32 %v494_v61, 0.0  ;;  %v564_v55 = vpop.f32.mrb[1].mxu1  ;;  %v8463_v61 = vpack.c.bf16 %v1047_v53, %v1039_v52  ;;  %v1128_v52 = vld [vmem:[#allocation10 + $0xcd8] sm:$0xff]  ;;  %v8223_v53 = vpack.c.bf16 %v1109_v39, %v1101_v38  ;;  %v1182_v38 = vld [vmem:[#allocation10 + $0xe88] sm:$0xff] }
 0x1cf   :  { %v565_v59 = vadd.f32 %v564_v55, %v387_v36  ;;  %v1117_v55 = vld [vmem:[#allocation10 + $0xc80] sm:$0xff] }
 0x1d0   :  { %1847 = vmatprep.mubr.f32.mxu0 %v11973_v1  ;;  %2131 = vmatprep.mubr.f32.mxu1 %v11973_v1 }
 0x1d1   :  { %1848 = vmatmul.mubr.f32.vlgmr.msra.gmra.mrb[4].mxu0 %v11975_v6  ;;  %2132 = vmatmul.mubr.f32.vlgmr.msra.gmra.mrb[4].mxu1 %v11975_v6  ;;  %v11988_v0 = vmax.f32 %v565_v59, 0.0  ;;  %v1119_v59 = vld [vmem:[#allocation10 + $0xc90] sm:$0xff] }
 0x1d2   :  { %8192 = vmatpush1.bf16.msra.mxu0 %v8191_v2  ;;  %8448 = vmatpush1.bf16.msra.mxu1 %v8447_v3  ;;  %v8209_v2 = vpack.c.bf16 %v1062_v56, %v1054_v54  ;;  %v8465_v3 = vpack.c.bf16 %v1064_v58, %v1056_v57  ;;  %v1125_v56 = vld [vmem:[#allocation10 + $0xcc0] sm:$0xff] }
 0x1d3   :  { %8194 = vmatprep.subr.bf16.mxu0 %v8193_v7  ;;  %8450 = vmatprep.subr.bf16.mxu1 %v8449_v8  ;;  %v1070_v7 = vld [vmem:[#allocation10 + $0xb08] sm:$0xff] }
 0x1d4   :  { %v1078_v8 = vld [vmem:[#allocation10 + $0xb48] sm:$0xff]  ;;  %1918 = vmatprep.mubr.f32.mxu0 %v11988_v0  ;;  %2202 = vmatprep.mubr.f32.mxu1 %v11988_v0 }
 0x1d6   :  { %8196 = vmatpush1.bf16.msra.mxu0 %v8195_v15  ;;  %8452 = vmatpush1.bf16.msra.mxu1 %v8451_v16  ;;  %v8213_v15 = vpack.c.bf16 %v1078_v8, %v1070_v7  ;;  %v8469_v16 = vpack.c.bf16 %v1080_v10, %v1072_v9  ;;  %v1141_v7 = vld [vmem:[#allocation10 + $0xd40] sm:$0xff]  ;;  %v1135_v10 = vld [vmem:[#allocation10 + $0xd10] sm:$0xff] }
 0x1d7   :  { %8198 = vmatprep.subr.bf16.mxu0 %v8197_v19  ;;  %8454 = vmatprep.subr.bf16.mxu1 %v8453_v20  ;;  %v1086_v19 = vld [vmem:[#allocation10 + $0xb88] sm:$0xff] }
 0x1d8   :  { %v1094_v20 = vld [vmem:[#allocation10 + $0xbc8] sm:$0xff] }
 0x1da   :  { %8200 = vmatpush1.bf16.msra.mxu0 %v8199_v28  ;;  %8456 = vmatpush1.bf16.msra.mxu1 %v8455_v29  ;;  %v8217_v28 = vpack.c.bf16 %v1094_v20, %v1086_v19  ;;  %v8473_v29 = vpack.c.bf16 %v1096_v22, %v1088_v21  ;;  %v1157_v19 = vld [vmem:[#allocation10 + $0xdc0] sm:$0xff]  ;;  %v1151_v22 = vld [vmem:[#allocation10 + $0xd90] sm:$0xff] }
 0x1db   :  { %8202 = vmatprep.subr.bf16.mxu0 %v8201_v32  ;;  %8458 = vmatprep.subr.bf16.mxu1 %v8457_v33  ;;  %v1102_v32 = vld [vmem:[#allocation10 + $0xc08] sm:$0xff] }
 0x1dc   :  { %v1110_v33 = vld [vmem:[#allocation10 + $0xc48] sm:$0xff] }
 0x1dd   :  { %v8221_v36 = vpack.c.bf16 %v1110_v33, %v1102_v32  ;;  %v1173_v32 = vld [vmem:[#allocation10 + $0xe40] sm:$0xff] }
 0x1de   :  { %8204 = vmatpush1.bf16.msra.mxu0 %v8203_v41  ;;  %8460 = vmatpush1.bf16.msra.mxu1 %v8459_v42  ;;  %v8477_v41 = vpack.c.bf16 %v1112_v34, %v1104_v40  ;;  %v1103_v42 = vld [vmem:[#allocation10 + $0xc10] sm:$0xff] }
 0x1df   :  { %8206 = vmatprep.subr.bf16.mxu0 %v8205_v46  ;;  %8462 = vmatprep.subr.bf16.mxu1 %v8461_v51  ;;  %v1126_v46 = vld [vmem:[#allocation10 + $0xcc8] sm:$0xff]  ;;  %v1120_v51 = vld [vmem:[#allocation10 + $0xc98] sm:$0xff]  ;;  %v8479_v54 = vpack.c.bf16 %v1111_v43, %v1103_v42  ;;  %v8239_v43 = vpack.c.bf16 %v1173_v32, %v1165_v31  ;;  %v1229_v31 = vld [vmem:[#allocation10 + $0x1000] sm:$0xff] }
 0x1e0   :  { %v8225_v57 = vpack.c.bf16 %v1126_v46, %v1118_v44  ;;  %v8481_v58 = vpack.c.bf16 %v1128_v52, %v1120_v51  ;;  %v1192_v42 = vld [vmem:[#allocation10 + $0xed8] sm:$0xff]  ;;  %v1181_v46 = vld [vmem:[#allocation10 + $0xe80] sm:$0xff] }
 0x1e1   :  { %v1189_v51 = vld [vmem:[#allocation10 + $0xec0] sm:$0xff] }
 0x1e2   :  { %8208 = vmatpush1.bf16.msra.mxu0 %v8207_v60  ;;  %8464 = vmatpush1.bf16.msra.mxu1 %v8463_v61  ;;  %v1127_v60 = vld [vmem:[#allocation10 + $0xcd0] sm:$0xff]  ;;  %v1134_v61 = vld [vmem:[#allocation10 + $0xd08] sm:$0xff]  ;;  %v1237_v32 = vld [vmem:[#allocation10 + $0x1040] sm:$0xff] }
 0x1e3   :  { %8210 = vmatprep.subr.bf16.mxu0 %v8209_v2  ;;  %8466 = vmatprep.subr.bf16.mxu1 %v8465_v3  ;;  %v1144_v2 = vld [vmem:[#allocation10 + $0xd58] sm:$0xff]  ;;  %v8227_v3 = vpack.c.bf16 %v1125_v56, %v1117_v55  ;;  %v8483_v4 = vpack.c.bf16 %v1127_v60, %v1119_v59  ;;  %v8229_v8 = vpack.c.bf16 %v1142_v62, %v1134_v61  ;;  %v1191_v55 = vld [vmem:[#allocation10 + $0xed0] sm:$0xff]  ;;  %v1198_v56 = vld [vmem:[#allocation10 + $0xf08] sm:$0xff]  ;;  %v11997_v60 = vsub.s32 2, %v11959_v47 }
 0x1e4   :  { %v8485_v9 = vpack.c.bf16 %v1144_v2, %v1136_v63  ;;  %v1208_v59 = vld [vmem:[#allocation10 + $0xf58] sm:$0xff]  ;;  %v8243_v61 = vpack.c.bf16 %v1189_v51, %v1181_v46  ;;  %v1197_v63 = vld [vmem:[#allocation10 + $0xf00] sm:$0xff]  ;;  %v8255_v46 = vpack.c.bf16 %v1237_v32, %v1229_v31 }
 0x1e5   :  { %v1205_v2 = vld [vmem:[#allocation10 + $0xf40] sm:$0xff] }
 0x1e6   :  { %8212 = vmatpush1.bf16.msra.mxu0 %v8211_v11  ;;  %8468 = vmatpush1.bf16.msra.mxu1 %v8467_v12  ;;  %v1143_v11 = vld [vmem:[#allocation10 + $0xd50] sm:$0xff]  ;;  %v1150_v12 = vld [vmem:[#allocation10 + $0xd88] sm:$0xff]  ;;  %v1301_v31 = vld [vmem:[#allocation10 + $0x1240] sm:$0xff] }
 0x1e7   :  { %8214 = vmatprep.subr.bf16.mxu0 %v8213_v15  ;;  %8470 = vmatprep.subr.bf16.mxu1 %v8469_v16  ;;  %v1160_v15 = vld [vmem:[#allocation10 + $0xdd8] sm:$0xff]  ;;  %v8231_v16 = vpack.c.bf16 %v1141_v7, %v1133_v5  ;;  %v8487_v17 = vpack.c.bf16 %v1143_v11, %v1135_v10  ;;  %v8233_v20 = vpack.c.bf16 %v1158_v13, %v1150_v12  ;;  %v1199_v5 = vld [vmem:[#allocation10 + $0xf10] sm:$0xff]  ;;  %v12000_v12 = vsub.s32 5, %v11959_v47 }
 0x1e8   :  { %v8489_v21 = vpack.c.bf16 %v1160_v15, %v1152_v14  ;;  %v1207_v7 = vld [vmem:[#allocation10 + $0xf50] sm:$0xff]  ;;  %v1216_v10 = vld [vmem:[#allocation10 + $0xf98] sm:$0xff]  ;;  %v383_v13 = vrot.slane %v11964_v49, %v11997_v60  ;;  %v8247_v14 = vpack.c.bf16 %v1205_v2, %v1197_v63 }
 0x1e9   :  { %v1224_v11 = vld [vmem:[#allocation10 + $0xfd8] sm:$0xff]  ;;  %v8503_v15 = vpack.c.bf16 %v1207_v7, %v1199_v5 }
 0x1ea   :  { %8216 = vmatpush1.bf16.msra.mxu0 %v8215_v23  ;;  %8472 = vmatpush1.bf16.msra.mxu1 %v8471_v24  ;;  %v1159_v23 = vld [vmem:[#allocation10 + $0xdd0] sm:$0xff]  ;;  %v1166_v24 = vld [vmem:[#allocation10 + $0xe08] sm:$0xff] }
 0x1eb   :  { %8218 = vmatprep.subr.bf16.mxu0 %v8217_v28  ;;  %8474 = vmatprep.subr.bf16.mxu1 %v8473_v29  ;;  %v1176_v28 = vld [vmem:[#allocation10 + $0xe58] sm:$0xff]  ;;  %v8235_v29 = vpack.c.bf16 %v1157_v19, %v1149_v18  ;;  %v8491_v30 = vpack.c.bf16 %v1159_v23, %v1151_v22  ;;  %v8237_v40 = vpack.c.bf16 %v1174_v25, %v1166_v24  ;;  %v1230_v22 = vld [vmem:[#allocation10 + $0x1008] sm:$0xff] }
 0x1ec   :  { %v8493_v34 = vpack.c.bf16 %v1176_v28, %v1168_v26  ;;  %v8505_v19 = vpack.c.bf16 %v1224_v11, %v1216_v10  ;;  %v1238_v23 = vld [vmem:[#allocation10 + $0x1048] sm:$0xff]  ;;  %v1232_v24 = vld [vmem:[#allocation10 + $0x1018] sm:$0xff]  ;;  %v395_v26 = vrot.slane %v11964_v49, %v12000_v12  ;;  %v563_v28 = vadd.f32 %v11986_v45, %v383_v13 }
 0x1ed   :  { %v1240_v25 = vld [vmem:[#allocation10 + $0x1058] sm:$0xff]  ;;  %v1254_v49 = vld [vmem:[#allocation10 + $0x10c8] sm:$0xff] }
 0x1ee   :  { %8220 = vmatpush1.bf16.msra.mxu0 %v8219_v35  ;;  %8476 = vmatpush1.bf16.msra.mxu1 %v8475_v37  ;;  %v1167_v35 = vld [vmem:[#allocation10 + $0xe10] sm:$0xff]  ;;  %v1256_v45 = vld [vmem:[#allocation10 + $0x10d8] sm:$0xff]  ;;  %v1278_v10 = vld [vmem:[#allocation10 + $0x1188] sm:$0xff] }
 0x1ef   :  { %8222 = vmatprep.subr.bf16.mxu0 %v8221_v36  ;;  %8478 = vmatprep.subr.bf16.mxu1 %v8477_v41  ;;  %v1175_v37 = vld [vmem:[#allocation10 + $0xe50] sm:$0xff]  ;;  %v1190_v36 = vld [vmem:[#allocation10 + $0xec8] sm:$0xff]  ;;  %v1184_v41 = vld [vmem:[#allocation10 + $0xe98] sm:$0xff] }
 0x1f0   :  { %v8495_v44 = vpack.c.bf16 %v1175_v37, %v1167_v35  ;;  %v8241_v52 = vpack.c.bf16 %v1190_v36, %v1182_v38  ;;  %v8509_v35 = vpack.c.bf16 %v1240_v25, %v1232_v24  ;;  %v1231_v37 = vld [vmem:[#allocation10 + $0x1010] sm:$0xff]  ;;  %v1246_v36 = vld [vmem:[#allocation10 + $0x1088] sm:$0xff]  ;;  %v1280_v13 = vld [vmem:[#allocation10 + $0x1198] sm:$0xff] }
 0x1f1   :  { %v1239_v38 = vld [vmem:[#allocation10 + $0x1050] sm:$0xff]  ;;  %v1286_v11 = vld [vmem:[#allocation10 + $0x11c8] sm:$0xff]  ;;  %v1296_v25 = vld [vmem:[#allocation10 + $0x1218] sm:$0xff] }
 0x1f2   :  { %8224 = vmatpush1.bf16.msra.mxu0 %v8223_v53  ;;  %8480 = vmatpush1.bf16.msra.mxu1 %v8479_v54  ;;  %v8497_v53 = vpack.c.bf16 %v1192_v42, %v1184_v41  ;;  %v1183_v54 = vld [vmem:[#allocation10 + $0xe90] sm:$0xff]  ;;  %v1248_v42 = vld [vmem:[#allocation10 + $0x1098] sm:$0xff]  ;;  %v8511_v51 = vpack.c.bf16 %v1239_v38, %v1231_v37  ;;  %v1302_v24 = vld [vmem:[#allocation10 + $0x1248] sm:$0xff] }
 0x1f3   :  { %8226 = vmatprep.subr.bf16.mxu0 %v8225_v57  ;;  %8482 = vmatprep.subr.bf16.mxu1 %v8481_v58  ;;  %v1206_v57 = vld [vmem:[#allocation10 + $0xf48] sm:$0xff]  ;;  %v1200_v58 = vld [vmem:[#allocation10 + $0xf18] sm:$0xff]  ;;  %v8499_v62 = vpack.c.bf16 %v1191_v55, %v1183_v54  ;;  %v8257_v54 = vpack.c.bf16 %v1254_v49, %v1246_v36  ;;  %v8513_v55 = vpack.c.bf16 %v1256_v45, %v1248_v42  ;;  %v1303_v37 = vld [vmem:[#allocation10 + $0x1250] sm:$0xff] }
 0x1f4   :  { %v1310_v38 = vld [vmem:[#allocation10 + $0x1288] sm:$0xff]  ;;  %v1312_v49 = vld [vmem:[#allocation10 + $0x1298] sm:$0xff] }
 0x1f5   :  { %v1318_v36 = vld [vmem:[#allocation10 + $0x12c8] sm:$0xff]  ;;  %v1320_v42 = vld [vmem:[#allocation10 + $0x12d8] sm:$0xff] }
 0x1f6   :  { %8228 = vmatpush1.bf16.msra.mxu0 %v8227_v3  ;;  %8484 = vmatpush1.bf16.msra.mxu1 %v8483_v4  ;;  %v8245_v3 = vpack.c.bf16 %v1206_v57, %v1198_v56  ;;  %v8501_v4 = vpack.c.bf16 %v1208_v59, %v1200_v58  ;;  %v1247_v56 = vld [vmem:[#allocation10 + $0x1090] sm:$0xff]  ;;  %v1262_v58 = vld [vmem:[#allocation10 + $0x1108] sm:$0xff] }
 0x1f7   :  { %8230 = vmatprep.subr.bf16.mxu0 %v8229_v8  ;;  %8486 = vmatprep.subr.bf16.mxu1 %v8485_v9  ;;  %v1214_v8 = vld [vmem:[#allocation10 + $0xf88] sm:$0xff]  ;;  %v1255_v57 = vld [vmem:[#allocation10 + $0x10d0] sm:$0xff] }
 0x1f8   :  { %v1222_v9 = vld [vmem:[#allocation10 + $0xfc8] sm:$0xff]  ;;  %v8515_v2 = vpack.c.bf16 %v1255_v57, %v1247_v56 }
 0x1f9   :  { %v8249_v18 = vpack.c.bf16 %v1222_v9, %v1214_v8  ;;  %v1270_v59 = vld [vmem:[#allocation10 + $0x1148] sm:$0xff]  ;;  %v1263_v8 = vld [vmem:[#allocation10 + $0x1110] sm:$0xff] }
 0x1fa   :  { %8232 = vmatpush1.bf16.msra.mxu0 %v8231_v16  ;;  %8488 = vmatpush1.bf16.msra.mxu1 %v8487_v17  ;;  %v11992_v33 = vpop.f32.mrb[2].mxu0  ;;  %v1213_v16 = vld [vmem:[#allocation10 + $0xf80] sm:$0xff]  ;;  %v8261_v5 = vpack.c.bf16 %v1270_v59, %v1262_v58  ;;  %v1271_v9 = vld [vmem:[#allocation10 + $0x1150] sm:$0xff]  ;;  %v1326_v56 = vld [vmem:[#allocation10 + $0x1308] sm:$0xff] }
 0x1fb   :  { %8234 = vmatprep.subr.bf16.mxu0 %v8233_v20  ;;  %8490 = vmatprep.subr.bf16.mxu1 %v8489_v21  ;;  %v11994_v39 = vpop.f32.mrb[3].mxu0  ;;  %v1221_v17 = vld [vmem:[#allocation10 + $0xfc0] sm:$0xff]  ;;  %v1215_v20 = vld [vmem:[#allocation10 + $0xf90] sm:$0xff]  ;;  %v1334_v57 = vld [vmem:[#allocation10 + $0x1348] sm:$0xff] }
 0x1fc   :  { %v1223_v21 = vld [vmem:[#allocation10 + $0xfd0] sm:$0xff]  ;;  %v1328_v58 = vld [vmem:[#allocation10 + $0x1318] sm:$0xff] }
 0x1fd   :  { %v1336_v59 = vld [vmem:[#allocation10 + $0x1358] sm:$0xff] }
 0x1fe   :  { %8236 = vmatpush1.bf16.msra.mxu0 %v8235_v29  ;;  %8492 = vmatpush1.bf16.msra.mxu1 %v8491_v30  ;;  %v8251_v29 = vpack.c.bf16 %v1221_v17, %v1213_v16  ;;  %v8507_v30 = vpack.c.bf16 %v1223_v21, %v1215_v20  ;;  %v8519_v16 = vpack.c.bf16 %v1271_v9, %v1263_v8  ;;  %v1277_v17 = vld [vmem:[#allocation10 + $0x1180] sm:$0xff]  ;;  %v1279_v21 = vld [vmem:[#allocation10 + $0x1190] sm:$0xff]  ;;  %v1342_v8 = vld [vmem:[#allocation10 + $0x1388] sm:$0xff] }
 0x1ff   :  { %8238 = vmatprep.subr.bf16.mxu0 %v8237_v40  ;;  %8494 = vmatprep.subr.bf16.mxu1 %v8493_v34  ;;  %v12007_v40 = vpop.f32.mrb[2].mxu1  ;;  %v8253_v34 = vpack.c.bf16 %v1238_v23, %v1230_v22  ;;  %v1287_v22 = vld [vmem:[#allocation10 + $0x11d0] sm:$0xff]  ;;  %v1294_v23 = vld [vmem:[#allocation10 + $0x1208] sm:$0xff] }
 0x200   :  { %v12009_v41 = vpop.f32.mrb[3].mxu1  ;;  %v8269_v32 = vpack.c.bf16 %v1302_v24, %v1294_v23  ;;  %v1350_v9 = vld [vmem:[#allocation10 + $0x13c8] sm:$0xff]  ;;  %v1360_v23 = vld [vmem:[#allocation10 + $0x1418] sm:$0xff] }
 0x201   :  { %v1368_v24 = vld [vmem:[#allocation10 + $0x1458] sm:$0xff] }
 0x202   :  { %8240 = vmatpush1.bf16.msra.mxu0 %v8239_v43  ;;  %8496 = vmatpush1.bf16.msra.mxu1 %v8495_v44  ;;  %v636_v43 = vadd.f32 %v11994_v39, %v395_v26  ;;  %v12012_v44 = vmax.f32 %v563_v28, 0.0  ;;  %v1304_v26 = vld [vmem:[#allocation10 + $0x1258] sm:$0xff] }
 0x203   :  { %8242 = vmatprep.subr.bf16.mxu0 %v8241_v52  ;;  %8498 = vmatprep.subr.bf16.mxu1 %v8497_v53  ;;  %v1245_v52 = vld [vmem:[#allocation10 + $0x1080] sm:$0xff] }
 0x204   :  { %v1253_v53 = vld [vmem:[#allocation10 + $0x10c0] sm:$0xff]  ;;  %v12014_v63 = vmax.f32 %v636_v43, 0.0 }
 0x205   :  { %v8259_v39 = vpack.c.bf16 %v1253_v53, %v1245_v52  ;;  %v8273_v52 = vpack.c.bf16 %v1318_v36, %v1310_v38  ;;  %v8529_v53 = vpack.c.bf16 %v1320_v42, %v1312_v49  ;;  %v1376_v38 = vld [vmem:[#allocation10 + $0x1498] sm:$0xff] }
 0x206   :  { %8244 = vmatpush1.bf16.msra.mxu0 %v8243_v61  ;;  %8500 = vmatpush1.bf16.msra.mxu1 %v8499_v62  ;;  %v1264_v61 = vld [vmem:[#allocation10 + $0x1118] sm:$0xff] }
 0x207   :  { %8246 = vmatprep.subr.bf16.mxu0 %v8245_v3  ;;  %8502 = vmatprep.subr.bf16.mxu1 %v8501_v4  ;;  %v1272_v62 = vld [vmem:[#allocation10 + $0x1158] sm:$0xff]  ;;  %v1261_v3 = vld [vmem:[#allocation10 + $0x1100] sm:$0xff] }
 0x208   :  { %v1269_v4 = vld [vmem:[#allocation10 + $0x1140] sm:$0xff]  ;;  %v8517_v7 = vpack.c.bf16 %v1272_v62, %v1264_v61  ;;  %v1384_v36 = vld [vmem:[#allocation10 + $0x14d8] sm:$0xff] }
 0x20a   :  { %8248 = vmatpush1.bf16.msra.mxu0 %v8247_v14  ;;  %8504 = vmatpush1.bf16.msra.mxu1 %v8503_v15  ;;  %v1288_v14 = vld [vmem:[#allocation10 + $0x11d8] sm:$0xff]  ;;  %v8263_v15 = vpack.c.bf16 %v1269_v4, %v1261_v3  ;;  %v8277_v3 = vpack.c.bf16 %v1334_v57, %v1326_v56  ;;  %v8533_v4 = vpack.c.bf16 %v1336_v59, %v1328_v58 }
 0x20b   :  { %8250 = vmatprep.subr.bf16.mxu0 %v8249_v18  ;;  %8506 = vmatprep.subr.bf16.mxu1 %v8505_v19  ;;  %v1285_v18 = vld [vmem:[#allocation10 + $0x11c0] sm:$0xff]  ;;  %v8265_v19 = vpack.c.bf16 %v1286_v11, %v1278_v10  ;;  %v8521_v20 = vpack.c.bf16 %v1288_v14, %v1280_v13  ;;  %v1344_v10 = vld [vmem:[#allocation10 + $0x1398] sm:$0xff] }
 0x20c   :  { %v8267_v28 = vpack.c.bf16 %v1285_v18, %v1277_v17  ;;  %v1352_v11 = vld [vmem:[#allocation10 + $0x13d8] sm:$0xff]  ;;  %v8281_v17 = vpack.c.bf16 %v1350_v9, %v1342_v8 }
 0x20d   :  { %v8537_v18 = vpack.c.bf16 %v1352_v11, %v1344_v10  ;;  %v1392_v56 = vld [vmem:[#allocation10 + $0x1518] sm:$0xff] }
 0x20e   :  { %8252 = vmatpush1.bf16.msra.mxu0 %v8251_v29  ;;  %8508 = vmatpush1.bf16.msra.mxu1 %v8507_v30  ;;  %v8523_v29 = vpack.c.bf16 %v1287_v22, %v1279_v21  ;;  %v1293_v30 = vld [vmem:[#allocation10 + $0x1200] sm:$0xff]  ;;  %v1358_v21 = vld [vmem:[#allocation10 + $0x1408] sm:$0xff]  ;;  %v1400_v57 = vld [vmem:[#allocation10 + $0x1558] sm:$0xff] }
 0x20f   :  { %8254 = vmatprep.subr.bf16.mxu0 %v8253_v34  ;;  %8510 = vmatprep.subr.bf16.mxu1 %v8509_v35  ;;  %v8525_v34 = vpack.c.bf16 %v1304_v26, %v1296_v25  ;;  %v1295_v35 = vld [vmem:[#allocation10 + $0x1210] sm:$0xff]  ;;  %v8271_v45 = vpack.c.bf16 %v1301_v31, %v1293_v30  ;;  %v1366_v22 = vld [vmem:[#allocation10 + $0x1448] sm:$0xff]  ;;  %v8541_v31 = vpack.c.bf16 %v1368_v24, %v1360_v23  ;;  %v1408_v8 = vld [vmem:[#allocation10 + $0x1598] sm:$0xff] }
 0x210   :  { %v8527_v43 = vpack.c.bf16 %v1303_v37, %v1295_v35  ;;  %v8285_v30 = vpack.c.bf16 %v1366_v22, %v1358_v21  ;;  %v1374_v35 = vld [vmem:[#allocation10 + $0x1488] sm:$0xff]  ;;  %v1416_v9 = vld [vmem:[#allocation10 + $0x15d8] sm:$0xff] }
 0x211   :  { %1919 = vmatmul.mubr.f32.vlgmr.msra.gmra.mrb[4].mxu0 %v12012_v44  ;;  %2203 = vmatmul.mubr.f32.vlgmr.msra.gmra.mrb[4].mxu1 %v12012_v44  ;;  %v1382_v37 = vld [vmem:[#allocation10 + $0x14c8] sm:$0xff]  ;;  %v1424_v21 = vld [vmem:[#allocation10 + $0x1618] sm:$0xff] }
 0x212   :  { %8256 = vmatpush1.bf16.msra.mxu0 %v8255_v46  ;;  %8512 = vmatpush1.bf16.msra.mxu1 %v8511_v51  ;;  %v1309_v46 = vld [vmem:[#allocation10 + $0x1280] sm:$0xff]  ;;  %v1432_v22 = vld [vmem:[#allocation10 + $0x1658] sm:$0xff] }
 0x213   :  { %8258 = vmatprep.subr.bf16.mxu0 %v8257_v54  ;;  %8514 = vmatprep.subr.bf16.mxu1 %v8513_v55  ;;  %v1317_v51 = vld [vmem:[#allocation10 + $0x12c0] sm:$0xff]  ;;  %v1311_v54 = vld [vmem:[#allocation10 + $0x1290] sm:$0xff] }
 0x214   :  { %1989 = vmatprep.mubr.f32.mxu0 %v12014_v63  ;;  %2273 = vmatprep.mubr.f32.mxu1 %v12014_v63  ;;  %v1319_v55 = vld [vmem:[#allocation10 + $0x12d0] sm:$0xff]  ;;  %v8275_v61 = vpack.c.bf16 %v1317_v51, %v1309_v46  ;;  %v8289_v46 = vpack.c.bf16 %v1382_v37, %v1374_v35  ;;  %v8545_v51 = vpack.c.bf16 %v1384_v36, %v1376_v38  ;;  %v1440_v35 = vld [vmem:[#allocation10 + $0x1698] sm:$0xff] }
 0x215   :  { %v8531_v62 = vpack.c.bf16 %v1319_v55, %v1311_v54  ;;  %v1390_v54 = vld [vmem:[#allocation10 + $0x1508] sm:$0xff]  ;;  %v1448_v37 = vld [vmem:[#allocation10 + $0x16d8] sm:$0xff] }
 0x216   :  { %8260 = vmatpush1.bf16.msra.mxu0 %v8259_v39  ;;  %8516 = vmatpush1.bf16.msra.mxu1 %v8515_v2  ;;  %v1325_v39 = vld [vmem:[#allocation10 + $0x1300] sm:$0xff]  ;;  %v1398_v55 = vld [vmem:[#allocation10 + $0x1548] sm:$0xff] }
 0x217   :  { %8262 = vmatprep.subr.bf16.mxu0 %v8261_v5  ;;  %8518 = vmatprep.subr.bf16.mxu1 %v8517_v7  ;;  %v1333_v2 = vld [vmem:[#allocation10 + $0x1340] sm:$0xff]  ;;  %v1327_v5 = vld [vmem:[#allocation10 + $0x1310] sm:$0xff] }
 0x218   :  { %v1335_v7 = vld [vmem:[#allocation10 + $0x1350] sm:$0xff]  ;;  %v8279_v13 = vpack.c.bf16 %v1333_v2, %v1325_v39  ;;  %v8293_v39 = vpack.c.bf16 %v1398_v55, %v1390_v54  ;;  %v8549_v2 = vpack.c.bf16 %v1400_v57, %v1392_v56  ;;  %v1456_v54 = vld [vmem:[#allocation10 + $0x1718] sm:$0xff]  ;;  %v12021_v56 = vsub.s32 4, %v11959_v47 }
 0x219   :  { %v8535_v14 = vpack.c.bf16 %v1335_v7, %v1327_v5  ;;  %v1406_v5 = vld [vmem:[#allocation10 + $0x1588] sm:$0xff]  ;;  %v1464_v55 = vld [vmem:[#allocation10 + $0x1758] sm:$0xff] }
 0x21a   :  { %8264 = vmatpush1.bf16.msra.mxu0 %v8263_v15  ;;  %8520 = vmatpush1.bf16.msra.mxu1 %v8519_v16  ;;  %v1341_v15 = vld [vmem:[#allocation10 + $0x1380] sm:$0xff]  ;;  %v1414_v7 = vld [vmem:[#allocation10 + $0x15c8] sm:$0xff] }
 0x21b   :  { %8266 = vmatprep.subr.bf16.mxu0 %v8265_v19  ;;  %8522 = vmatprep.subr.bf16.mxu1 %v8521_v20  ;;  %v1349_v16 = vld [vmem:[#allocation10 + $0x13c0] sm:$0xff]  ;;  %v1343_v19 = vld [vmem:[#allocation10 + $0x1390] sm:$0xff] }
 0x21c   :  { %v1351_v20 = vld [vmem:[#allocation10 + $0x13d0] sm:$0xff]  ;;  %v8283_v25 = vpack.c.bf16 %v1349_v16, %v1341_v15  ;;  %v8297_v15 = vpack.c.bf16 %v1414_v7, %v1406_v5  ;;  %v8553_v16 = vpack.c.bf16 %v1416_v9, %v1408_v8  ;;  %v1478_v5 = vld [vmem:[#allocation10 + $0x17c8] sm:$0xff]  ;;  %v1472_v7 = vld [vmem:[#allocation10 + $0x1798] sm:$0xff]  ;;  %v12024_v9 = vsub.s32 7, %v11959_v47 }
 0x21d   :  { %v8539_v26 = vpack.c.bf16 %v1351_v20, %v1343_v19  ;;  %v1422_v19 = vld [vmem:[#allocation10 + $0x1608] sm:$0xff]  ;;  %v1480_v8 = vld [vmem:[#allocation10 + $0x17d8] sm:$0xff] }
 0x21e   :  { %8268 = vmatpush1.bf16.msra.mxu0 %v8267_v28  ;;  %8524 = vmatpush1.bf16.msra.mxu1 %v8523_v29  ;;  %v1357_v28 = vld [vmem:[#allocation10 + $0x1400] sm:$0xff]  ;;  %v1430_v20 = vld [vmem:[#allocation10 + $0x1648] sm:$0xff] }
 0x21f   :  { %8270 = vmatprep.subr.bf16.mxu0 %v8269_v32  ;;  %8526 = vmatprep.subr.bf16.mxu1 %v8525_v34  ;;  %v1365_v29 = vld [vmem:[#allocation10 + $0x1440] sm:$0xff]  ;;  %v1359_v32 = vld [vmem:[#allocation10 + $0x1410] sm:$0xff] }
 0x220   :  { %v1367_v34 = vld [vmem:[#allocation10 + $0x1450] sm:$0xff]  ;;  %v8287_v49 = vpack.c.bf16 %v1365_v29, %v1357_v28  ;;  %v8301_v28 = vpack.c.bf16 %v1430_v20, %v1422_v19  ;;  %v8557_v29 = vpack.c.bf16 %v1432_v22, %v1424_v21  ;;  %v1486_v21 = vld [vmem:[#allocation10 + $0x1808] sm:$0xff] }
 0x221   :  { %v8543_v42 = vpack.c.bf16 %v1367_v34, %v1359_v32  ;;  %v1438_v32 = vld [vmem:[#allocation10 + $0x1688] sm:$0xff]  ;;  %v1471_v19 = vld [vmem:[#allocation10 + $0x1790] sm:$0xff] }
 0x222   :  { %8272 = vmatpush1.bf16.msra.mxu0 %v8271_v45  ;;  %8528 = vmatpush1.bf16.msra.mxu1 %v8527_v43  ;;  %v1373_v45 = vld [vmem:[#allocation10 + $0x1480] sm:$0xff]  ;;  %v1446_v34 = vld [vmem:[#allocation10 + $0x16c8] sm:$0xff]  ;;  %v1479_v20 = vld [vmem:[#allocation10 + $0x17d0] sm:$0xff] }
 0x223   :  { %8274 = vmatprep.subr.bf16.mxu0 %v8273_v52  ;;  %8530 = vmatprep.subr.bf16.mxu1 %v8529_v53  ;;  %v1381_v43 = vld [vmem:[#allocation10 + $0x14c0] sm:$0xff]  ;;  %v1375_v52 = vld [vmem:[#allocation10 + $0x1490] sm:$0xff]  ;;  %v1494_v22 = vld [vmem:[#allocation10 + $0x1848] sm:$0xff] }
 0x224   :  { %v1383_v53 = vld [vmem:[#allocation10 + $0x14d0] sm:$0xff]  ;;  %v8291_v58 = vpack.c.bf16 %v1381_v43, %v1373_v45  ;;  %v8305_v45 = vpack.c.bf16 %v1446_v34, %v1438_v32  ;;  %v8561_v43 = vpack.c.bf16 %v1448_v37, %v1440_v35  ;;  %v8317_v32 = vpack.c.bf16 %v1494_v22, %v1486_v21 }
 0x225   :  { %v8547_v59 = vpack.c.bf16 %v1383_v53, %v1375_v52  ;;  %v1454_v52 = vld [vmem:[#allocation10 + $0x1708] sm:$0xff]  ;;  %v1487_v35 = vld [vmem:[#allocation10 + $0x1810] sm:$0xff] }
 0x226   :  { %8276 = vmatpush1.bf16.msra.mxu0 %v8275_v61  ;;  %8532 = vmatpush1.bf16.msra.mxu1 %v8531_v62  ;;  %v1389_v61 = vld [vmem:[#allocation10 + $0x1500] sm:$0xff]  ;;  %v1462_v53 = vld [vmem:[#allocation10 + $0x1748] sm:$0xff]  ;;  %v1495_v37 = vld [vmem:[#allocation10 + $0x1850] sm:$0xff] }
 0x227   :  { %8278 = vmatprep.subr.bf16.mxu0 %v8277_v3  ;;  %8534 = vmatprep.subr.bf16.mxu1 %v8533_v4  ;;  %v1397_v62 = vld [vmem:[#allocation10 + $0x1540] sm:$0xff]  ;;  %v1391_v3 = vld [vmem:[#allocation10 + $0x1510] sm:$0xff] }
 0x228   :  { %v1399_v4 = vld [vmem:[#allocation10 + $0x1550] sm:$0xff]  ;;  %v8295_v10 = vpack.c.bf16 %v1397_v62, %v1389_v61  ;;  %v1461_v61 = vld [vmem:[#allocation10 + $0x1740] sm:$0xff]  ;;  %v8309_v62 = vpack.c.bf16 %v1462_v53, %v1454_v52 }
 0x229   :  { %v8551_v11 = vpack.c.bf16 %v1399_v4, %v1391_v3  ;;  %v1463_v3 = vld [vmem:[#allocation10 + $0x1750] sm:$0xff]  ;;  %v1470_v4 = vld [vmem:[#allocation10 + $0x1788] sm:$0xff]  ;;  %v1509_v52 = vld [vmem:[#allocation10 + $0x18c0] sm:$0xff] }
 0x22a   :  { %8280 = vmatpush1.bf16.msra.mxu0 %v8279_v13  ;;  %8536 = vmatpush1.bf16.msra.mxu1 %v8535_v14  ;;  %v1405_v13 = vld [vmem:[#allocation10 + $0x1580] sm:$0xff] }
 0x22b   :  { %8282 = vmatprep.subr.bf16.mxu0 %v8281_v17  ;;  %8538 = vmatprep.subr.bf16.mxu1 %v8537_v18  ;;  %v1413_v14 = vld [vmem:[#allocation10 + $0x15c0] sm:$0xff]  ;;  %v1407_v17 = vld [vmem:[#allocation10 + $0x1590] sm:$0xff] }
 0x22c   :  { %v1415_v18 = vld [vmem:[#allocation10 + $0x15d0] sm:$0xff]  ;;  %v8299_v23 = vpack.c.bf16 %v1413_v14, %v1405_v13 }
 0x22d   :  { %v8555_v24 = vpack.c.bf16 %v1415_v18, %v1407_v17  ;;  %v8313_v17 = vpack.c.bf16 %v1478_v5, %v1470_v4  ;;  %v8569_v18 = vpack.c.bf16 %v1480_v8, %v1472_v7  ;;  %v1525_v4 = vld [vmem:[#allocation10 + $0x1940] sm:$0xff]  ;;  %v1519_v8 = vld [vmem:[#allocation10 + $0x1910] sm:$0xff] }
 0x22e   :  { %8284 = vmatpush1.bf16.msra.mxu0 %v8283_v25  ;;  %8540 = vmatpush1.bf16.msra.mxu1 %v8539_v26  ;;  %v1421_v25 = vld [vmem:[#allocation10 + $0x1600] sm:$0xff] }
 0x22f   :  { %8286 = vmatprep.subr.bf16.mxu0 %v8285_v30  ;;  %8542 = vmatprep.subr.bf16.mxu1 %v8541_v31  ;;  %v1429_v26 = vld [vmem:[#allocation10 + $0x1640] sm:$0xff]  ;;  %v1423_v30 = vld [vmem:[#allocation10 + $0x1610] sm:$0xff] }
 0x230   :  { %v1431_v31 = vld [vmem:[#allocation10 + $0x1650] sm:$0xff]  ;;  %v8303_v38 = vpack.c.bf16 %v1429_v26, %v1421_v25 }
 0x231   :  { %v8559_v36 = vpack.c.bf16 %v1431_v31, %v1423_v30  ;;  %v1485_v30 = vld [vmem:[#allocation10 + $0x1800] sm:$0xff] }
 0x232   :  { %8288 = vmatpush1.bf16.msra.mxu0 %v8287_v49  ;;  %8544 = vmatpush1.bf16.msra.mxu1 %v8543_v42  ;;  %v1437_v49 = vld [vmem:[#allocation10 + $0x1680] sm:$0xff] }
 0x233   :  { %8290 = vmatprep.subr.bf16.mxu0 %v8289_v46  ;;  %8546 = vmatprep.subr.bf16.mxu1 %v8545_v51  ;;  %v1445_v42 = vld [vmem:[#allocation10 + $0x16c0] sm:$0xff]  ;;  %v1439_v46 = vld [vmem:[#allocation10 + $0x1690] sm:$0xff] }
 0x234   :  { %v1447_v51 = vld [vmem:[#allocation10 + $0x16d0] sm:$0xff]  ;;  %v8307_v57 = vpack.c.bf16 %v1445_v42, %v1437_v49  ;;  %v1493_v31 = vld [vmem:[#allocation10 + $0x1840] sm:$0xff]  ;;  %v1504_v49 = vld [vmem:[#allocation10 + $0x1898] sm:$0xff] }
 0x235   :  { %v1512_v42 = vld [vmem:[#allocation10 + $0x18d8] sm:$0xff] }
 0x236   :  { %8292 = vmatpush1.bf16.msra.mxu0 %v8291_v58  ;;  %8548 = vmatpush1.bf16.msra.mxu1 %v8547_v59  ;;  %v8563_v58 = vpack.c.bf16 %v1447_v51, %v1439_v46  ;;  %v1453_v59 = vld [vmem:[#allocation10 + $0x1700] sm:$0xff]  ;;  %v8575_v46 = vpack.c.bf16 %v1495_v37, %v1487_v35 }
 0x237   :  { %8294 = vmatprep.subr.bf16.mxu0 %v8293_v39  ;;  %8550 = vmatprep.subr.bf16.mxu1 %v8549_v2  ;;  %v8565_v39 = vpack.c.bf16 %v1464_v55, %v1456_v54  ;;  %v1455_v2 = vld [vmem:[#allocation10 + $0x1710] sm:$0xff]  ;;  %v8311_v13 = vpack.c.bf16 %v1461_v61, %v1453_v59  ;;  %v1501_v51 = vld [vmem:[#allocation10 + $0x1880] sm:$0xff]  ;;  %v8577_v54 = vpack.c.bf16 %v1512_v42, %v1504_v49  ;;  %v1526_v59 = vld [vmem:[#allocation10 + $0x1948] sm:$0xff] }
 0x238   :  { %v8567_v14 = vpack.c.bf16 %v1463_v3, %v1455_v2  ;;  %v1503_v55 = vld [vmem:[#allocation10 + $0x1890] sm:$0xff]  ;;  %v1520_v61 = vld [vmem:[#allocation10 + $0x1918] sm:$0xff]  ;;  %v1517_v3 = vld [vmem:[#allocation10 + $0x1900] sm:$0xff] }
 0x239   :  { %v1566_v49 = vld [vmem:[#allocation10 + $0x1a88] sm:$0xff] }
 0x23a   :  { %8296 = vmatpush1.bf16.msra.mxu0 %v8295_v10  ;;  %8552 = vmatpush1.bf16.msra.mxu1 %v8551_v11  ;;  %v12026_v10 = vld [vmem:[#allocation8] sm:$0xff]  ;;  %v1574_v42 = vld [vmem:[#allocation10 + $0x1ac8] sm:$0xff] }
 0x23b   :  { %8298 = vmatprep.subr.bf16.mxu0 %v8297_v15  ;;  %8554 = vmatprep.subr.bf16.mxu1 %v8553_v16  ;;  %v391_v11 = vrot.slane %v12026_v10, %v12021_v56  ;;  %v1469_v15 = vld [vmem:[#allocation10 + $0x1780] sm:$0xff]  ;;  %v403_v25 = vrot.slane %v12026_v10, %v12024_v9 }
 0x23c   :  { %v1477_v16 = vld [vmem:[#allocation10 + $0x17c0] sm:$0xff] }
 0x23d   :  { %v634_v26 = vadd.f32 %v11992_v33, %v391_v11  ;;  %v8319_v33 = vpack.c.bf16 %v1493_v31, %v1485_v30  ;;  %v1527_v11 = vld [vmem:[#allocation10 + $0x1950] sm:$0xff] }
 0x23e   :  { %8300 = vmatpush1.bf16.msra.mxu0 %v8299_v23  ;;  %8556 = vmatpush1.bf16.msra.mxu1 %v8555_v24  ;;  %v1488_v23 = vld [vmem:[#allocation10 + $0x1818] sm:$0xff] }
 0x23f   :  { %8302 = vmatprep.subr.bf16.mxu0 %v8301_v28  ;;  %8558 = vmatprep.subr.bf16.mxu1 %v8557_v29  ;;  %v1496_v24 = vld [vmem:[#allocation10 + $0x1858] sm:$0xff]  ;;  %v8315_v28 = vpack.c.bf16 %v1477_v16, %v1469_v15  ;;  %v8571_v29 = vpack.c.bf16 %v1479_v20, %v1471_v19  ;;  %v1533_v19 = vld [vmem:[#allocation10 + $0x1980] sm:$0xff] }
 0x240   :  { %v8573_v34 = vpack.c.bf16 %v1496_v24, %v1488_v23  ;;  %v1536_v15 = vld [vmem:[#allocation10 + $0x1998] sm:$0xff]  ;;  %v1541_v20 = vld [vmem:[#allocation10 + $0x19c0] sm:$0xff]  ;;  %v1535_v23 = vld [vmem:[#allocation10 + $0x1990] sm:$0xff] }
 0x241   :  { %v1544_v16 = vld [vmem:[#allocation10 + $0x19d8] sm:$0xff]  ;;  %v1543_v24 = vld [vmem:[#allocation10 + $0x19d0] sm:$0xff]  ;;  %v8331_v30 = vpack.c.bf16 %v1541_v20, %v1533_v19  ;;  %v1597_v20 = vld [vmem:[#allocation10 + $0x1b80] sm:$0xff] }
 0x242   :  { %8304 = vmatpush1.bf16.msra.mxu0 %v8303_v38  ;;  %8560 = vmatpush1.bf16.msra.mxu1 %v8559_v36  ;;  %v1502_v38 = vld [vmem:[#allocation10 + $0x1888] sm:$0xff]  ;;  %v8585_v22 = vpack.c.bf16 %v1544_v16, %v1536_v15  ;;  %v8587_v31 = vpack.c.bf16 %v1543_v24, %v1535_v23  ;;  %v1600_v16 = vld [vmem:[#allocation10 + $0x1b98] sm:$0xff]  ;;  %v1599_v24 = vld [vmem:[#allocation10 + $0x1b90] sm:$0xff] }
 0x243   :  { %8306 = vmatprep.subr.bf16.mxu0 %v8305_v45  ;;  %8562 = vmatprep.subr.bf16.mxu1 %v8561_v43  ;;  %v1510_v36 = vld [vmem:[#allocation10 + $0x18c8] sm:$0xff]  ;;  %v707_v45 = vadd.f32 %v12009_v41, %v403_v25  ;;  %v12034_v43 = vmax.f32 %v634_v26, 0.0  ;;  %v8323_v41 = vpack.c.bf16 %v1509_v52, %v1501_v51  ;;  %v1565_v52 = vld [vmem:[#allocation10 + $0x1a80] sm:$0xff] }
 0x244   :  { %v8321_v53 = vpack.c.bf16 %v1510_v36, %v1502_v38  ;;  %v1550_v25 = vld [vmem:[#allocation10 + $0x1a08] sm:$0xff]  ;;  %v1551_v38 = vld [vmem:[#allocation10 + $0x1a10] sm:$0xff] }
 0x245   :  { %v1558_v26 = vld [vmem:[#allocation10 + $0x1a48] sm:$0xff]  ;;  %v1559_v36 = vld [vmem:[#allocation10 + $0x1a50] sm:$0xff] }
 0x246   :  { %8308 = vmatpush1.bf16.msra.mxu0 %v8307_v57  ;;  %8564 = vmatpush1.bf16.msra.mxu1 %v8563_v58  ;;  %v1511_v57 = vld [vmem:[#allocation10 + $0x18d0] sm:$0xff]  ;;  %v1518_v58 = vld [vmem:[#allocation10 + $0x1908] sm:$0xff]  ;;  %v8333_v35 = vpack.c.bf16 %v1558_v26, %v1550_v25  ;;  %v8591_v51 = vpack.c.bf16 %v1559_v36, %v1551_v38 }
 0x247   :  { %8310 = vmatprep.subr.bf16.mxu0 %v8309_v62  ;;  %8566 = vmatprep.subr.bf16.mxu1 %v8565_v39  ;;  %v1528_v62 = vld [vmem:[#allocation10 + $0x1958] sm:$0xff]  ;;  %v12036_v39 = vmax.f32 %v707_v45, 0.0  ;;  %v8579_v2 = vpack.c.bf16 %v1511_v57, %v1503_v55  ;;  %v8325_v5 = vpack.c.bf16 %v1526_v59, %v1518_v58  ;;  %v1567_v57 = vld [vmem:[#allocation10 + $0x1a90] sm:$0xff]  ;;  %v1582_v59 = vld [vmem:[#allocation10 + $0x1b08] sm:$0xff] }
 0x248   :  { %v8581_v7 = vpack.c.bf16 %v1528_v62, %v1520_v61  ;;  %v1568_v45 = vld [vmem:[#allocation10 + $0x1a98] sm:$0xff]  ;;  %v1575_v58 = vld [vmem:[#allocation10 + $0x1ad0] sm:$0xff]  ;;  %v1590_v61 = vld [vmem:[#allocation10 + $0x1b48] sm:$0xff] }
 0x249   :  { %v1584_v62 = vld [vmem:[#allocation10 + $0x1b18] sm:$0xff]  ;;  %v1606_v15 = vld [vmem:[#allocation10 + $0x1bc8] sm:$0xff]  ;;  %v1607_v25 = vld [vmem:[#allocation10 + $0x1bd0] sm:$0xff] }
 0x24a   :  { %8312 = vmatpush1.bf16.msra.mxu0 %v8311_v13  ;;  %8568 = vmatpush1.bf16.msra.mxu1 %v8567_v14  ;;  %v1534_v13 = vld [vmem:[#allocation10 + $0x1988] sm:$0xff]  ;;  %v1615_v36 = vld [vmem:[#allocation10 + $0x1c10] sm:$0xff] }
 0x24b   :  { %8314 = vmatprep.subr.bf16.mxu0 %v8313_v17  ;;  %8570 = vmatprep.subr.bf16.mxu1 %v8569_v18  ;;  %v1542_v14 = vld [vmem:[#allocation10 + $0x19c8] sm:$0xff]  ;;  %v8327_v17 = vpack.c.bf16 %v1525_v4, %v1517_v3  ;;  %v8583_v18 = vpack.c.bf16 %v1527_v11, %v1519_v8  ;;  %v8595_v3 = vpack.c.bf16 %v1575_v58, %v1567_v57  ;;  %v1581_v4 = vld [vmem:[#allocation10 + $0x1b00] sm:$0xff]  ;;  %v1583_v11 = vld [vmem:[#allocation10 + $0x1b10] sm:$0xff] }
 0x24c   :  { %v8329_v21 = vpack.c.bf16 %v1542_v14, %v1534_v13  ;;  %v1591_v13 = vld [vmem:[#allocation10 + $0x1b50] sm:$0xff]  ;;  %v1598_v14 = vld [vmem:[#allocation10 + $0x1b88] sm:$0xff] }
 0x24d   :  { %v8599_v19 = vpack.c.bf16 %v1591_v13, %v1583_v11  ;;  %v1614_v26 = vld [vmem:[#allocation10 + $0x1c08] sm:$0xff]  ;;  %v1631_v58 = vld [vmem:[#allocation10 + $0x1c90] sm:$0xff] }
 0x24e   :  { %8316 = vmatpush1.bf16.msra.mxu0 %v8315_v28  ;;  %8572 = vmatpush1.bf16.msra.mxu1 %v8571_v29  ;;  %v1552_v28 = vld [vmem:[#allocation10 + $0x1a18] sm:$0xff]  ;;  %v1647_v13 = vld [vmem:[#allocation10 + $0x1d10] sm:$0xff] }
 0x24f   :  { %8318 = vmatprep.subr.bf16.mxu0 %v8317_v32  ;;  %8574 = vmatprep.subr.bf16.mxu1 %v8573_v34  ;;  %v1560_v29 = vld [vmem:[#allocation10 + $0x1a58] sm:$0xff]  ;;  %v1549_v32 = vld [vmem:[#allocation10 + $0x1a00] sm:$0xff] }
 0x250   :  { %v1557_v34 = vld [vmem:[#allocation10 + $0x1a40] sm:$0xff]  ;;  %v8589_v37 = vpack.c.bf16 %v1560_v29, %v1552_v28  ;;  %v1622_v28 = vld [vmem:[#allocation10 + $0x1c48] sm:$0xff]  ;;  %v1616_v29 = vld [vmem:[#allocation10 + $0x1c18] sm:$0xff] }
 0x251   :  { %1990 = vmatmul.mubr.f32.vlgmr.msra.gmra.mrb[4].mxu0 %v12034_v43  ;;  %2274 = vmatmul.mubr.f32.vlgmr.msra.gmra.mrb[4].mxu1 %v12034_v43 }
 0x252   :  { %8320 = vmatpush1.bf16.msra.mxu0 %v8319_v33  ;;  %8576 = vmatpush1.bf16.msra.mxu1 %v8575_v46  ;;  %v1576_v33 = vld [vmem:[#allocation10 + $0x1ad8] sm:$0xff]  ;;  %v8335_v46 = vpack.c.bf16 %v1557_v34, %v1549_v32  ;;  %v8603_v32 = vpack.c.bf16 %v1607_v25, %v1599_v24  ;;  %v1613_v34 = vld [vmem:[#allocation10 + $0x1c00] sm:$0xff]  ;;  %v1663_v25 = vld [vmem:[#allocation10 + $0x1d90] sm:$0xff] }
 0x253   :  { %8322 = vmatprep.subr.bf16.mxu0 %v8321_v53  ;;  %8578 = vmatprep.subr.bf16.mxu1 %v8577_v54  ;;  %v1573_v53 = vld [vmem:[#allocation10 + $0x1ac0] sm:$0xff]  ;;  %v8337_v54 = vpack.c.bf16 %v1574_v42, %v1566_v49  ;;  %v8593_v55 = vpack.c.bf16 %v1576_v33, %v1568_v45  ;;  %v1623_v49 = vld [vmem:[#allocation10 + $0x1c50] sm:$0xff]  ;;  %v1630_v42 = vld [vmem:[#allocation10 + $0x1c88] sm:$0xff] }
 0x254   :  { %2060 = vmatprep.mubr.f32.mxu0 %v12036_v39  ;;  %2344 = vmatprep.mubr.f32.mxu1 %v12036_v39  ;;  %v1638_v45 = vld [vmem:[#allocation10 + $0x1cc8] sm:$0xff]  ;;  %v1632_v33 = vld [vmem:[#allocation10 + $0x1c98] sm:$0xff] }
 0x256   :  { %8324 = vmatpush1.bf16.msra.mxu0 %v8323_v41  ;;  %8580 = vmatpush1.bf16.msra.mxu1 %v8579_v2  ;;  %v1592_v41 = vld [vmem:[#allocation10 + $0x1b58] sm:$0xff]  ;;  %v8339_v2 = vpack.c.bf16 %v1573_v53, %v1565_v52  ;;  %v8607_v52 = vpack.c.bf16 %v1623_v49, %v1615_v36  ;;  %v1629_v53 = vld [vmem:[#allocation10 + $0x1c80] sm:$0xff]  ;;  %v1679_v49 = vld [vmem:[#allocation10 + $0x1e10] sm:$0xff] }
 0x257   :  { %8326 = vmatprep.subr.bf16.mxu0 %v8325_v5  ;;  %8582 = vmatprep.subr.bf16.mxu1 %v8581_v7  ;;  %v1589_v5 = vld [vmem:[#allocation10 + $0x1b40] sm:$0xff]  ;;  %v8341_v7 = vpack.c.bf16 %v1590_v61, %v1582_v59  ;;  %v8597_v8 = vpack.c.bf16 %v1592_v41, %v1584_v62  ;;  %v1639_v59 = vld [vmem:[#allocation10 + $0x1cd0] sm:$0xff]  ;;  %v1646_v61 = vld [vmem:[#allocation10 + $0x1d08] sm:$0xff] }
 0x258   :  { %v1654_v62 = vld [vmem:[#allocation10 + $0x1d48] sm:$0xff]  ;;  %v1648_v41 = vld [vmem:[#allocation10 + $0x1d18] sm:$0xff] }
 0x25a   :  { %8328 = vmatpush1.bf16.msra.mxu0 %v8327_v17  ;;  %8584 = vmatpush1.bf16.msra.mxu1 %v8583_v18  ;;  %v1608_v17 = vld [vmem:[#allocation10 + $0x1bd8] sm:$0xff]  ;;  %v8343_v18 = vpack.c.bf16 %v1589_v5, %v1581_v4  ;;  %v8611_v4 = vpack.c.bf16 %v1639_v59, %v1631_v58  ;;  %v1645_v5 = vld [vmem:[#allocation10 + $0x1d00] sm:$0xff]  ;;  %v1695_v59 = vld [vmem:[#allocation10 + $0x1e90] sm:$0xff] }
 0x25b   :  { %8330 = vmatprep.subr.bf16.mxu0 %v8329_v21  ;;  %8586 = vmatprep.subr.bf16.mxu1 %v8585_v22  ;;  %v1605_v21 = vld [vmem:[#allocation10 + $0x1bc0] sm:$0xff]  ;;  %v8345_v22 = vpack.c.bf16 %v1606_v15, %v1598_v14  ;;  %v8601_v23 = vpack.c.bf16 %v1608_v17, %v1600_v16  ;;  %v1655_v14 = vld [vmem:[#allocation10 + $0x1d50] sm:$0xff]  ;;  %v1662_v15 = vld [vmem:[#allocation10 + $0x1d88] sm:$0xff] }
 0x25c   :  { %v1670_v16 = vld [vmem:[#allocation10 + $0x1dc8] sm:$0xff]  ;;  %v1664_v17 = vld [vmem:[#allocation10 + $0x1d98] sm:$0xff] }
 0x25e   :  { %8332 = vmatpush1.bf16.msra.mxu0 %v8331_v30  ;;  %8588 = vmatpush1.bf16.msra.mxu1 %v8587_v31  ;;  %v1624_v30 = vld [vmem:[#allocation10 + $0x1c58] sm:$0xff]  ;;  %v8347_v31 = vpack.c.bf16 %v1605_v21, %v1597_v20  ;;  %v8615_v20 = vpack.c.bf16 %v1655_v14, %v1647_v13  ;;  %v1661_v21 = vld [vmem:[#allocation10 + $0x1d80] sm:$0xff] }
 0x25f   :  { %8334 = vmatprep.subr.bf16.mxu0 %v8333_v35  ;;  %8590 = vmatprep.subr.bf16.mxu1 %v8589_v37  ;;  %v1621_v35 = vld [vmem:[#allocation10 + $0x1c40] sm:$0xff]  ;;  %v8349_v37 = vpack.c.bf16 %v1622_v28, %v1614_v26  ;;  %v8605_v38 = vpack.c.bf16 %v1624_v30, %v1616_v29  ;;  %v1671_v26 = vld [vmem:[#allocation10 + $0x1dd0] sm:$0xff]  ;;  %v1678_v28 = vld [vmem:[#allocation10 + $0x1e08] sm:$0xff] }
 0x260   :  { %v1686_v29 = vld [vmem:[#allocation10 + $0x1e48] sm:$0xff]  ;;  %v1680_v30 = vld [vmem:[#allocation10 + $0x1e18] sm:$0xff] }
 0x262   :  { %8336 = vmatpush1.bf16.msra.mxu0 %v8335_v46  ;;  %8592 = vmatpush1.bf16.msra.mxu1 %v8591_v51  ;;  %v1640_v46 = vld [vmem:[#allocation10 + $0x1cd8] sm:$0xff]  ;;  %v8351_v51 = vpack.c.bf16 %v1621_v35, %v1613_v34  ;;  %v8619_v34 = vpack.c.bf16 %v1671_v26, %v1663_v25  ;;  %v1677_v35 = vld [vmem:[#allocation10 + $0x1e00] sm:$0xff] }
 0x263   :  { %8338 = vmatprep.subr.bf16.mxu0 %v8337_v54  ;;  %8594 = vmatprep.subr.bf16.mxu1 %v8593_v55  ;;  %v1637_v54 = vld [vmem:[#allocation10 + $0x1cc0] sm:$0xff]  ;;  %v8353_v55 = vpack.c.bf16 %v1638_v45, %v1630_v42  ;;  %v8609_v57 = vpack.c.bf16 %v1640_v46, %v1632_v33  ;;  %v1687_v42 = vld [vmem:[#allocation10 + $0x1e50] sm:$0xff]  ;;  %v1694_v45 = vld [vmem:[#allocation10 + $0x1e88] sm:$0xff] }
 0x264   :  { %v1702_v33 = vld [vmem:[#allocation10 + $0x1ec8] sm:$0xff]  ;;  %v1696_v46 = vld [vmem:[#allocation10 + $0x1e98] sm:$0xff] }
 0x266   :  { %8340 = vmatpush1.bf16.msra.mxu0 %v8339_v2  ;;  %8596 = vmatpush1.bf16.msra.mxu1 %v8595_v3  ;;  %v1656_v2 = vld [vmem:[#allocation10 + $0x1d58] sm:$0xff]  ;;  %v8355_v3 = vpack.c.bf16 %v1637_v54, %v1629_v53  ;;  %v8623_v53 = vpack.c.bf16 %v1687_v42, %v1679_v49  ;;  %v1693_v54 = vld [vmem:[#allocation10 + $0x1e80] sm:$0xff] }
 0x267   :  { %8342 = vmatprep.subr.bf16.mxu0 %v8341_v7  ;;  %8598 = vmatprep.subr.bf16.mxu1 %v8597_v8  ;;  %v1653_v7 = vld [vmem:[#allocation10 + $0x1d40] sm:$0xff]  ;;  %v8357_v8 = vpack.c.bf16 %v1654_v62, %v1646_v61  ;;  %v8613_v11 = vpack.c.bf16 %v1656_v2, %v1648_v41  ;;  %v1703_v61 = vld [vmem:[#allocation10 + $0x1ed0] sm:$0xff]  ;;  %v1710_v62 = vld [vmem:[#allocation10 + $0x1f08] sm:$0xff] }
 0x268   :  { %v1718_v41 = vld [vmem:[#allocation10 + $0x1f48] sm:$0xff]  ;;  %v1712_v2 = vld [vmem:[#allocation10 + $0x1f18] sm:$0xff]  ;;  %v721_v49 = vld [vmem:[#allocation10 + $0x20] sm:$0xff] }
 0x269   :  { %v8373_v13 = vpack.c.bf16 %v1718_v41, %v1710_v62  ;;  %v729_v42 = vld [vmem:[#allocation10 + $0x60] sm:$0xff]  ;;  %v747_v41 = vld [vmem:[#allocation10 + $0xf0] sm:$0xff] }
 0x26a   :  { %8344 = vmatpush1.bf16.msra.mxu0 %v8343_v18  ;;  %8600 = vmatpush1.bf16.msra.mxu1 %v8599_v19  ;;  %v1672_v18 = vld [vmem:[#allocation10 + $0x1dd8] sm:$0xff]  ;;  %v8359_v19 = vpack.c.bf16 %v1653_v7, %v1645_v5  ;;  %v8627_v7 = vpack.c.bf16 %v1703_v61, %v1695_v59  ;;  %v739_v59 = vld [vmem:[#allocation10 + $0xb0] sm:$0xff] }
 0x26b   :  { %8346 = vmatprep.subr.bf16.mxu0 %v8345_v22  ;;  %8602 = vmatprep.subr.bf16.mxu1 %v8601_v23  ;;  %v1669_v22 = vld [vmem:[#allocation10 + $0x1dc0] sm:$0xff]  ;;  %v8361_v23 = vpack.c.bf16 %v1670_v16, %v1662_v15  ;;  %v8617_v24 = vpack.c.bf16 %v1672_v18, %v1664_v17  ;;  %v1711_v15 = vld [vmem:[#allocation10 + $0x1f10] sm:$0xff]  ;;  %v1726_v17 = vld [vmem:[#allocation10 + $0x1f88] sm:$0xff] }
 0x26c   :  { %v1719_v16 = vld [vmem:[#allocation10 + $0x1f50] sm:$0xff]  ;;  %v1734_v18 = vld [vmem:[#allocation10 + $0x1fc8] sm:$0xff] }
 0x26d   :  { %v8377_v25 = vpack.c.bf16 %v1734_v18, %v1726_v17  ;;  %v763_v18 = vld [vmem:[#allocation10 + $0x170] sm:$0xff] }
 0x26e   :  { %8348 = vmatpush1.bf16.msra.mxu0 %v8347_v31  ;;  %8604 = vmatpush1.bf16.msra.mxu1 %v8603_v32  ;;  %v1688_v31 = vld [vmem:[#allocation10 + $0x1e58] sm:$0xff]  ;;  %v8363_v32 = vpack.c.bf16 %v1669_v22, %v1661_v21  ;;  %v8631_v22 = vpack.c.bf16 %v1719_v16, %v1711_v15  ;;  %v761_v15 = vld [vmem:[#allocation10 + $0x160] sm:$0xff]  ;;  %v755_v16 = vld [vmem:[#allocation10 + $0x130] sm:$0xff] }
 0x26f   :  { %8350 = vmatprep.subr.bf16.mxu0 %v8349_v37  ;;  %8606 = vmatprep.subr.bf16.mxu1 %v8605_v38  ;;  %v1685_v37 = vld [vmem:[#allocation10 + $0x1e40] sm:$0xff]  ;;  %v8365_v38 = vpack.c.bf16 %v1686_v29, %v1678_v28  ;;  %v8621_v36 = vpack.c.bf16 %v1688_v31, %v1680_v30  ;;  %v1727_v28 = vld [vmem:[#allocation10 + $0x1f90] sm:$0xff]  ;;  %v722_v30 = vld [vmem:[#allocation10 + $0x28] sm:$0xff] }
 0x270   :  { %v1735_v29 = vld [vmem:[#allocation10 + $0x1fd0] sm:$0xff]  ;;  %v730_v31 = vld [vmem:[#allocation10 + $0x68] sm:$0xff] }
 0x272   :  { %8352 = vmatpush1.bf16.msra.mxu0 %v8351_v51  ;;  %8608 = vmatpush1.bf16.msra.mxu1 %v8607_v52  ;;  %v1704_v51 = vld [vmem:[#allocation10 + $0x1ed8] sm:$0xff]  ;;  %v8367_v52 = vpack.c.bf16 %v1685_v37, %v1677_v35  ;;  %v8635_v37 = vpack.c.bf16 %v1735_v29, %v1727_v28  ;;  %v779_v29 = vld [vmem:[#allocation10 + $0x1f0] sm:$0xff] }
 0x273   :  { %8354 = vmatprep.subr.bf16.mxu0 %v8353_v55  ;;  %8610 = vmatprep.subr.bf16.mxu1 %v8609_v57  ;;  %v1701_v55 = vld [vmem:[#allocation10 + $0x1ec0] sm:$0xff]  ;;  %v8369_v57 = vpack.c.bf16 %v1702_v33, %v1694_v45  ;;  %v8625_v58 = vpack.c.bf16 %v1704_v51, %v1696_v46  ;;  %v723_v45 = vld [vmem:[#allocation10 + $0x30] sm:$0xff]  ;;  %v738_v46 = vld [vmem:[#allocation10 + $0xa8] sm:$0xff] }
 0x274   :  { %v8371_v5 = vpack.c.bf16 %v1701_v55, %v1693_v54  ;;  %v731_v33 = vld [vmem:[#allocation10 + $0x70] sm:$0xff]  ;;  %v748_v54 = vld [vmem:[#allocation10 + $0xf8] sm:$0xff] }
 0x275   :  { %v8895_v55 = vpack.c.bf16 %v731_v33, %v723_v45  ;;  %v795_v45 = vld [vmem:[#allocation10 + $0x270] sm:$0xff]  ;;  %v802_v33 = vld [vmem:[#allocation10 + $0x2a8] sm:$0xff] }
 0x276   :  { %8356 = vmatpush1.bf16.msra.mxu0 %v8355_v3  ;;  %8612 = vmatpush1.bf16.msra.mxu1 %v8611_v4  ;;  %v1720_v3 = vld [vmem:[#allocation10 + $0x1f58] sm:$0xff]  ;;  %v12043_v4 = vsub.s32 6, %v11959_v47 }
 0x277   :  { %8358 = vmatprep.subr.bf16.mxu0 %v8357_v8  ;;  %8614 = vmatprep.subr.bf16.mxu1 %v8613_v11  ;;  %v1709_v8 = vld [vmem:[#allocation10 + $0x1f00] sm:$0xff]  ;;  %v8629_v14 = vpack.c.bf16 %v1720_v3, %v1712_v2  ;;  %v754_v2 = vld [vmem:[#allocation10 + $0x128] sm:$0xff] }
 0x278   :  { %v1717_v11 = vld [vmem:[#allocation10 + $0x1f40] sm:$0xff]  ;;  %v399_v47 = vrot.slane %v12026_v10, %v12043_v4  ;;  %v762_v3 = vld [vmem:[#allocation10 + $0x168] sm:$0xff] }
 0x279   :  { %v8375_v21 = vpack.c.bf16 %v1717_v11, %v1709_v8  ;;  %v8899_v11 = vpack.c.bf16 %v747_v41, %v739_v59  ;;  %v803_v59 = vld [vmem:[#allocation10 + $0x2b0] sm:$0xff]  ;;  %v818_v41 = vld [vmem:[#allocation10 + $0x328] sm:$0xff] }
 0x27a   :  { %8360 = vmatpush1.bf16.msra.mxu0 %v8359_v19  ;;  %8616 = vmatpush1.bf16.msra.mxu1 %v8615_v20  ;;  %v1728_v19 = vld [vmem:[#allocation10 + $0x1f98] sm:$0xff]  ;;  %v705_v35 = vadd.f32 %v12007_v40, %v399_v47  ;;  %v8639_v40 = vpack.c.bf16 %v729_v42, %v721_v49  ;;  %v787_v49 = vld [vmem:[#allocation10 + $0x230] sm:$0xff] }
 0x27b   :  { %8362 = vmatprep.subr.bf16.mxu0 %v8361_v23  ;;  %8618 = vmatprep.subr.bf16.mxu1 %v8617_v24  ;;  %v1736_v20 = vld [vmem:[#allocation10 + $0x1fd8] sm:$0xff]  ;;  %v1725_v23 = vld [vmem:[#allocation10 + $0x1f80] sm:$0xff] }
 0x27c   :  { %v1733_v24 = vld [vmem:[#allocation10 + $0x1fc0] sm:$0xff]  ;;  %v8633_v26 = vpack.c.bf16 %v1736_v20, %v1728_v19  ;;  %v12048_v51 = vmax.f32 %v705_v35, 0.0  ;;  %v770_v19 = vld [vmem:[#allocation10 + $0x1a8] sm:$0xff]  ;;  %v772_v47 = vld [vmem:[#allocation10 + $0x1b8] sm:$0xff] }
 0x27d   :  { %v8379_v10 = vpack.c.bf16 %v1733_v24, %v1725_v23  ;;  %v778_v20 = vld [vmem:[#allocation10 + $0x1e8] sm:$0xff]  ;;  %v8903_v23 = vpack.c.bf16 %v763_v18, %v755_v16 }
 0x27e   :  { %8364 = vmatpush1.bf16.msra.mxu0 %v8363_v32  ;;  %8620 = vmatpush1.bf16.msra.mxu1 %v8619_v34  ;;  %v724_v32 = vld [vmem:[#allocation10 + $0x38] sm:$0xff]  ;;  %v8649_v24 = vpack.c.bf16 %v778_v20, %v770_v19  ;;  %v834_v18 = vld [vmem:[#allocation10 + $0x3a8] sm:$0xff] }
 0x27f   :  { %8366 = vmatprep.subr.bf16.mxu0 %v8365_v38  ;;  %8622 = vmatprep.subr.bf16.mxu1 %v8621_v36  ;;  %v732_v34 = vld [vmem:[#allocation10 + $0x78] sm:$0xff]  ;;  %v8637_v38 = vpack.c.bf16 %v730_v31, %v722_v30  ;;  %v786_v30 = vld [vmem:[#allocation10 + $0x228] sm:$0xff] }
 0x280   :  { %v8893_v36 = vpack.c.bf16 %v732_v34, %v724_v32  ;;  %v794_v31 = vld [vmem:[#allocation10 + $0x268] sm:$0xff]  ;;  %v788_v32 = vld [vmem:[#allocation10 + $0x238] sm:$0xff] }
 0x281   :  { %v796_v34 = vld [vmem:[#allocation10 + $0x278] sm:$0xff]  ;;  %v842_v19 = vld [vmem:[#allocation10 + $0x3e8] sm:$0xff] }
 0x282   :  { %8368 = vmatpush1.bf16.msra.mxu0 %v8367_v52  ;;  %8624 = vmatpush1.bf16.msra.mxu1 %v8623_v53  ;;  %v746_v52 = vld [vmem:[#allocation10 + $0xe8] sm:$0xff]  ;;  %v740_v53 = vld [vmem:[#allocation10 + $0xb8] sm:$0xff]  ;;  %v8909_v42 = vpack.c.bf16 %v796_v34, %v788_v32 }
 0x283   :  { %8370 = vmatprep.subr.bf16.mxu0 %v8369_v57  ;;  %8626 = vmatprep.subr.bf16.mxu1 %v8625_v58  ;;  %v737_v57 = vld [vmem:[#allocation10 + $0xa0] sm:$0xff]  ;;  %v8641_v61 = vpack.c.bf16 %v746_v52, %v738_v46  ;;  %v8897_v62 = vpack.c.bf16 %v748_v54, %v740_v53  ;;  %v810_v46 = vld [vmem:[#allocation10 + $0x2e8] sm:$0xff]  ;;  %v804_v52 = vld [vmem:[#allocation10 + $0x2b8] sm:$0xff] }
 0x284   :  { %v745_v58 = vld [vmem:[#allocation10 + $0xe0] sm:$0xff]  ;;  %v812_v53 = vld [vmem:[#allocation10 + $0x2f8] sm:$0xff] }
 0x285   :  { %v8643_v8 = vpack.c.bf16 %v745_v58, %v737_v57  ;;  %v801_v57 = vld [vmem:[#allocation10 + $0x2a0] sm:$0xff]  ;;  %v836_v20 = vld [vmem:[#allocation10 + $0x3b8] sm:$0xff] }
 0x286   :  { %8372 = vmatpush1.bf16.msra.mxu0 %v8371_v5  ;;  %8628 = vmatpush1.bf16.msra.mxu1 %v8627_v7  ;;  %v756_v5 = vld [vmem:[#allocation10 + $0x138] sm:$0xff]  ;;  %v809_v58 = vld [vmem:[#allocation10 + $0x2e0] sm:$0xff] }
 0x287   :  { %8374 = vmatprep.subr.bf16.mxu0 %v8373_v13  ;;  %8630 = vmatprep.subr.bf16.mxu1 %v8629_v14  ;;  %v764_v7 = vld [vmem:[#allocation10 + $0x178] sm:$0xff]  ;;  %v8645_v13 = vpack.c.bf16 %v762_v3, %v754_v2  ;;  %v753_v14 = vld [vmem:[#allocation10 + $0x120] sm:$0xff]  ;;  %v826_v2 = vld [vmem:[#allocation10 + $0x368] sm:$0xff] }
 0x288   :  { %v8901_v17 = vpack.c.bf16 %v764_v7, %v756_v5  ;;  %v820_v3 = vld [vmem:[#allocation10 + $0x338] sm:$0xff]  ;;  %v8659_v7 = vpack.c.bf16 %v809_v58, %v801_v57  ;;  %v873_v57 = vld [vmem:[#allocation10 + $0x4e0] sm:$0xff]  ;;  %v867_v58 = vld [vmem:[#allocation10 + $0x4b0] sm:$0xff] }
 0x289   :  { %v828_v5 = vld [vmem:[#allocation10 + $0x378] sm:$0xff] }
 0x28a   :  { %8376 = vmatpush1.bf16.msra.mxu0 %v8375_v21  ;;  %8632 = vmatpush1.bf16.msra.mxu1 %v8631_v22  ;;  %v780_v21 = vld [vmem:[#allocation10 + $0x1f8] sm:$0xff]  ;;  %v8647_v22 = vpack.c.bf16 %v761_v15, %v753_v14  ;;  %v825_v14 = vld [vmem:[#allocation10 + $0x360] sm:$0xff]  ;;  %v819_v15 = vld [vmem:[#allocation10 + $0x330] sm:$0xff]  ;;  %v8917_v16 = vpack.c.bf16 %v828_v5, %v820_v3 }
 0x28b   :  { %8378 = vmatprep.subr.bf16.mxu0 %v8377_v25  ;;  %8634 = vmatprep.subr.bf16.mxu1 %v8633_v26  ;;  %v777_v25 = vld [vmem:[#allocation10 + $0x1e0] sm:$0xff]  ;;  %v771_v26 = vld [vmem:[#allocation10 + $0x1b0] sm:$0xff]  ;;  %v8905_v28 = vpack.c.bf16 %v780_v21, %v772_v47  ;;  %v844_v47 = vld [vmem:[#allocation10 + $0x3f8] sm:$0xff] }
 0x28c   :  { %v860_v32 = vld [vmem:[#allocation10 + $0x478] sm:$0xff] }
 0x28d   :  { %v892_v3 = vld [vmem:[#allocation10 + $0x578] sm:$0xff] }
 0x28e   :  { %8380 = vmatpush1.bf16.msra.mxu0 %v8379_v10  ;;  %8636 = vmatpush1.bf16.msra.mxu1 %v8635_v37  ;;  %v8907_v10 = vpack.c.bf16 %v779_v29, %v771_v26  ;;  %v8653_v37 = vpack.c.bf16 %v794_v31, %v786_v30  ;;  %v8921_v26 = vpack.c.bf16 %v844_v47, %v836_v20  ;;  %v850_v29 = vld [vmem:[#allocation10 + $0x428] sm:$0xff]  ;;  %v852_v31 = vld [vmem:[#allocation10 + $0x438] sm:$0xff] }
 0x28f   :  { %8638 = vmatprep.subr.bf16.mxu0 %v8637_v38  ;;  %8894 = vmatprep.subr.bf16.mxu1 %v8893_v36  ;;  %v785_v38 = vld [vmem:[#allocation10 + $0x220] sm:$0xff]  ;;  %v858_v30 = vld [vmem:[#allocation10 + $0x468] sm:$0xff]  ;;  %v908_v20 = vld [vmem:[#allocation10 + $0x5f8] sm:$0xff] }
 0x290   :  { %v793_v36 = vld [vmem:[#allocation10 + $0x260] sm:$0xff] }
 0x291   :  { %2061 = vmatmul.mubr.f32.vlgmr.msra.gmra.mrb[4].mxu0 %v12048_v51  ;;  %2345 = vmatmul.mubr.f32.vlgmr.msra.gmra.mrb[4].mxu1 %v12048_v51  ;;  %v8655_v54 = vpack.c.bf16 %v793_v36, %v785_v38  ;;  %v857_v38 = vld [vmem:[#allocation10 + $0x460] sm:$0xff]  ;;  %v851_v36 = vld [vmem:[#allocation10 + $0x430] sm:$0xff] }
 0x292   :  { %8640 = vmatpush1.bf16.msra.mxu0 %v8639_v40  ;;  %2415 = vmatprep.mubr.f32.mxu0 %v11973_v1  ;;  %v8911_v40 = vpack.c.bf16 %v795_v45, %v787_v49  ;;  %v8925_v49 = vpack.c.bf16 %v860_v32, %v852_v31  ;;  %v866_v45 = vld [vmem:[#allocation10 + $0x4a8] sm:$0xff]  ;;  %v924_v31 = vld [vmem:[#allocation10 + $0x678] sm:$0xff] }
 0x293   :  { %8896 = vmatpush1.bf16.msra.mxu1 %v8895_v55  ;;  %2699 = vmatprep.mubr.f32.mxu1 %v11973_v1  ;;  %v769_v1 = vld [vmem:[#allocation10 + $0x1a0] sm:$0xff]  ;;  %v8657_v55 = vpack.c.bf16 %v810_v46, %v802_v33  ;;  %v874_v33 = vld [vmem:[#allocation10 + $0x4e8] sm:$0xff]  ;;  %v868_v46 = vld [vmem:[#allocation10 + $0x4b8] sm:$0xff] }
 0x294   :  { %8642 = vmatprep.subr.bf16.mxu0 %v8641_v61  ;;  %8898 = vmatprep.subr.bf16.mxu1 %v8897_v62  ;;  %v8651_v35 = vpack.c.bf16 %v777_v25, %v769_v1  ;;  %v8913_v61 = vpack.c.bf16 %v812_v53, %v804_v52  ;;  %v811_v62 = vld [vmem:[#allocation10 + $0x2f0] sm:$0xff]  ;;  %v841_v1 = vld [vmem:[#allocation10 + $0x3e0] sm:$0xff]  ;;  %v876_v52 = vld [vmem:[#allocation10 + $0x4f8] sm:$0xff] }
 0x295   :  { %v835_v25 = vld [vmem:[#allocation10 + $0x3b0] sm:$0xff] }
 0x296   :  { %8644 = vmatpush1.bf16.msra.mxu0 %v8643_v8  ;;  %v8915_v8 = vpack.c.bf16 %v811_v62, %v803_v59  ;;  %v8929_v59 = vpack.c.bf16 %v876_v52, %v868_v46  ;;  %v882_v62 = vld [vmem:[#allocation10 + $0x528] sm:$0xff]  ;;  %v940_v46 = vld [vmem:[#allocation10 + $0x6f8] sm:$0xff] }
 0x297   :  { %8900 = vmatpush1.bf16.msra.mxu1 %v8899_v11  ;;  %8646 = vmatprep.subr.bf16.mxu0 %v8645_v13  ;;  %v8661_v11 = vpack.c.bf16 %v826_v2, %v818_v41  ;;  %v817_v13 = vld [vmem:[#allocation10 + $0x320] sm:$0xff]  ;;  %v890_v41 = vld [vmem:[#allocation10 + $0x568] sm:$0xff]  ;;  %v884_v2 = vld [vmem:[#allocation10 + $0x538] sm:$0xff] }
 0x298   :  { %8902 = vmatprep.subr.bf16.mxu1 %v8901_v17  ;;  %v827_v17 = vld [vmem:[#allocation10 + $0x370] sm:$0xff]  ;;  %v8663_v21 = vpack.c.bf16 %v825_v14, %v817_v13  ;;  %v889_v13 = vld [vmem:[#allocation10 + $0x560] sm:$0xff] }
 0x299   :  { %v883_v14 = vld [vmem:[#allocation10 + $0x530] sm:$0xff] }
 0x29a   :  { %8648 = vmatpush1.bf16.msra.mxu0 %v8647_v22  ;;  %v8919_v22 = vpack.c.bf16 %v827_v17, %v819_v15  ;;  %v8933_v15 = vpack.c.bf16 %v892_v3, %v884_v2  ;;  %v898_v17 = vld [vmem:[#allocation10 + $0x5a8] sm:$0xff]  ;;  %v956_v2 = vld [vmem:[#allocation10 + $0x778] sm:$0xff] }
 0x29b   :  { %8904 = vmatpush1.bf16.msra.mxu1 %v8903_v23  ;;  %8650 = vmatprep.subr.bf16.mxu0 %v8649_v24  ;;  %v8665_v23 = vpack.c.bf16 %v842_v19, %v834_v18  ;;  %v833_v24 = vld [vmem:[#allocation10 + $0x3a0] sm:$0xff]  ;;  %v906_v18 = vld [vmem:[#allocation10 + $0x5e8] sm:$0xff]  ;;  %v900_v19 = vld [vmem:[#allocation10 + $0x5b8] sm:$0xff] }
 0x29c   :  { %8906 = vmatprep.subr.bf16.mxu1 %v8905_v28  ;;  %v843_v28 = vld [vmem:[#allocation10 + $0x3f0] sm:$0xff]  ;;  %v8667_v34 = vpack.c.bf16 %v841_v1, %v833_v24  ;;  %v905_v24 = vld [vmem:[#allocation10 + $0x5e0] sm:$0xff] }
 0x29d   :  { %v899_v1 = vld [vmem:[#allocation10 + $0x5b0] sm:$0xff] }
 0x29e   :  { %8652 = vmatpush1.bf16.msra.mxu0 %v8651_v35  ;;  %v8923_v35 = vpack.c.bf16 %v843_v28, %v835_v25  ;;  %v8937_v25 = vpack.c.bf16 %v908_v20, %v900_v19  ;;  %v914_v28 = vld [vmem:[#allocation10 + $0x628] sm:$0xff]  ;;  %v972_v19 = vld [vmem:[#allocation10 + $0x7f8] sm:$0xff] }
 0x29f   :  { %8908 = vmatpush1.bf16.msra.mxu1 %v8907_v10  ;;  %8654 = vmatprep.subr.bf16.mxu0 %v8653_v37  ;;  %v8669_v10 = vpack.c.bf16 %v858_v30, %v850_v29  ;;  %v849_v37 = vld [vmem:[#allocation10 + $0x420] sm:$0xff]  ;;  %v922_v29 = vld [vmem:[#allocation10 + $0x668] sm:$0xff]  ;;  %v916_v30 = vld [vmem:[#allocation10 + $0x638] sm:$0xff] }
 0x2a0   :  { %8910 = vmatprep.subr.bf16.mxu1 %v8909_v42  ;;  %v859_v42 = vld [vmem:[#allocation10 + $0x470] sm:$0xff]  ;;  %v8671_v53 = vpack.c.bf16 %v857_v38, %v849_v37  ;;  %v921_v37 = vld [vmem:[#allocation10 + $0x660] sm:$0xff] }
 0x2a1   :  { %v915_v38 = vld [vmem:[#allocation10 + $0x630] sm:$0xff] }
 0x2a2   :  { %8656 = vmatpush1.bf16.msra.mxu0 %v8655_v54  ;;  %v8927_v54 = vpack.c.bf16 %v859_v42, %v851_v36  ;;  %v8941_v36 = vpack.c.bf16 %v924_v31, %v916_v30  ;;  %v930_v42 = vld [vmem:[#allocation10 + $0x6a8] sm:$0xff]  ;;  %v988_v30 = vld [vmem:[#allocation10 + $0x878] sm:$0xff] }
 0x2a3   :  { %8912 = vmatpush1.bf16.msra.mxu1 %v8911_v40  ;;  %8658 = vmatprep.subr.bf16.mxu0 %v8657_v55  ;;  %v8673_v40 = vpack.c.bf16 %v874_v33, %v866_v45  ;;  %v865_v55 = vld [vmem:[#allocation10 + $0x4a0] sm:$0xff]  ;;  %v938_v45 = vld [vmem:[#allocation10 + $0x6e8] sm:$0xff]  ;;  %v932_v33 = vld [vmem:[#allocation10 + $0x6b8] sm:$0xff] }
 0x2a4   :  { %8914 = vmatprep.subr.bf16.mxu1 %v8913_v61  ;;  %v875_v61 = vld [vmem:[#allocation10 + $0x4f0] sm:$0xff]  ;;  %v8675_v5 = vpack.c.bf16 %v873_v57, %v865_v55  ;;  %v937_v55 = vld [vmem:[#allocation10 + $0x6e0] sm:$0xff] }
 0x2a5   :  { %v931_v57 = vld [vmem:[#allocation10 + $0x6b0] sm:$0xff] }
 0x2a6   :  { %8660 = vmatpush1.bf16.msra.mxu0 %v8659_v7  ;;  %v8931_v7 = vpack.c.bf16 %v875_v61, %v867_v58  ;;  %v8945_v58 = vpack.c.bf16 %v940_v46, %v932_v33  ;;  %v946_v61 = vld [vmem:[#allocation10 + $0x728] sm:$0xff]  ;;  %v996_v33 = vld [vmem:[#allocation10 + $0x8b8] sm:$0xff] }
 0x2a7   :  { %8916 = vmatpush1.bf16.msra.mxu1 %v8915_v8  ;;  %8662 = vmatprep.subr.bf16.mxu0 %v8661_v11  ;;  %v8677_v8 = vpack.c.bf16 %v890_v41, %v882_v62  ;;  %v881_v11 = vld [vmem:[#allocation10 + $0x520] sm:$0xff]  ;;  %v954_v62 = vld [vmem:[#allocation10 + $0x768] sm:$0xff]  ;;  %v948_v41 = vld [vmem:[#allocation10 + $0x738] sm:$0xff] }
 0x2a8   :  { %8918 = vmatprep.subr.bf16.mxu1 %v8917_v16  ;;  %v891_v16 = vld [vmem:[#allocation10 + $0x570] sm:$0xff]  ;;  %v8679_v47 = vpack.c.bf16 %v889_v13, %v881_v11  ;;  %v953_v11 = vld [vmem:[#allocation10 + $0x760] sm:$0xff]  ;;  %v1004_v46 = vld [vmem:[#allocation10 + $0x8f8] sm:$0xff] }
 0x2a9   :  { %v947_v13 = vld [vmem:[#allocation10 + $0x730] sm:$0xff] }
 0x2aa   :  { %8664 = vmatpush1.bf16.msra.mxu0 %v8663_v21  ;;  %v8935_v21 = vpack.c.bf16 %v891_v16, %v883_v14  ;;  %v8949_v14 = vpack.c.bf16 %v956_v2, %v948_v41  ;;  %v962_v16 = vld [vmem:[#allocation10 + $0x7a8] sm:$0xff]  ;;  %v1020_v41 = vld [vmem:[#allocation10 + $0x978] sm:$0xff] }
 0x2ab   :  { %8920 = vmatpush1.bf16.msra.mxu1 %v8919_v22  ;;  %8666 = vmatprep.subr.bf16.mxu0 %v8665_v23  ;;  %v8681_v22 = vpack.c.bf16 %v906_v18, %v898_v17  ;;  %v897_v23 = vld [vmem:[#allocation10 + $0x5a0] sm:$0xff]  ;;  %v970_v17 = vld [vmem:[#allocation10 + $0x7e8] sm:$0xff]  ;;  %v964_v18 = vld [vmem:[#allocation10 + $0x7b8] sm:$0xff] }
 0x2ac   :  { %8922 = vmatprep.subr.bf16.mxu1 %v8921_v26  ;;  %v907_v26 = vld [vmem:[#allocation10 + $0x5f0] sm:$0xff]  ;;  %v8683_v32 = vpack.c.bf16 %v905_v24, %v897_v23  ;;  %v969_v23 = vld [vmem:[#allocation10 + $0x7e0] sm:$0xff] }
 0x2ad   :  { %v963_v24 = vld [vmem:[#allocation10 + $0x7b0] sm:$0xff] }
 0x2ae   :  { %8668 = vmatpush1.bf16.msra.mxu0 %v8667_v34  ;;  %v8939_v34 = vpack.c.bf16 %v907_v26, %v899_v1  ;;  %v8953_v1 = vpack.c.bf16 %v972_v19, %v964_v18  ;;  %v978_v26 = vld [vmem:[#allocation10 + $0x828] sm:$0xff] }
 0x2af   :  { %8924 = vmatpush1.bf16.msra.mxu1 %v8923_v35  ;;  %8670 = vmatprep.subr.bf16.mxu0 %v8669_v10  ;;  %v8685_v35 = vpack.c.bf16 %v922_v29, %v914_v28  ;;  %v913_v10 = vld [vmem:[#allocation10 + $0x620] sm:$0xff]  ;;  %v986_v28 = vld [vmem:[#allocation10 + $0x868] sm:$0xff]  ;;  %v980_v29 = vld [vmem:[#allocation10 + $0x838] sm:$0xff] }
 0x2b0   :  { %8926 = vmatprep.subr.bf16.mxu1 %v8925_v49  ;;  %v923_v49 = vld [vmem:[#allocation10 + $0x670] sm:$0xff]  ;;  %v8687_v52 = vpack.c.bf16 %v921_v37, %v913_v10  ;;  %v985_v10 = vld [vmem:[#allocation10 + $0x860] sm:$0xff]  ;;  %v8957_v37 = vpack.c.bf16 %v988_v30, %v980_v29 }
 0x2b2   :  { %8672 = vmatpush1.bf16.msra.mxu0 %v8671_v53  ;;  %v8943_v53 = vpack.c.bf16 %v923_v49, %v915_v38  ;;  %v979_v38 = vld [vmem:[#allocation10 + $0x830] sm:$0xff]  ;;  %v994_v49 = vld [vmem:[#allocation10 + $0x8a8] sm:$0xff] }
 0x2b3   :  { %8928 = vmatpush1.bf16.msra.mxu1 %v8927_v54  ;;  %8674 = vmatprep.subr.bf16.mxu0 %v8673_v40  ;;  %v8689_v54 = vpack.c.bf16 %v938_v45, %v930_v42  ;;  %v929_v40 = vld [vmem:[#allocation10 + $0x6a0] sm:$0xff]  ;;  %v1002_v42 = vld [vmem:[#allocation10 + $0x8e8] sm:$0xff] }
 0x2b4   :  { %8930 = vmatprep.subr.bf16.mxu1 %v8929_v59  ;;  %v939_v59 = vld [vmem:[#allocation10 + $0x6f0] sm:$0xff]  ;;  %v8691_v3 = vpack.c.bf16 %v937_v55, %v929_v40  ;;  %v8705_v55 = vpack.c.bf16 %v1002_v42, %v994_v49  ;;  %v1068_v49 = vld [vmem:[#allocation10 + $0xaf8] sm:$0xff] }
 0x2b5   :  { %v995_v40 = vld [vmem:[#allocation10 + $0x8b0] sm:$0xff] }
 0x2b6   :  { %8676 = vmatpush1.bf16.msra.mxu0 %v8675_v5  ;;  %v8947_v5 = vpack.c.bf16 %v939_v59, %v931_v57  ;;  %v1003_v57 = vld [vmem:[#allocation10 + $0x8f0] sm:$0xff]  ;;  %v1018_v59 = vld [vmem:[#allocation10 + $0x968] sm:$0xff] }
 0x2b7   :  { %8932 = vmatpush1.bf16.msra.mxu1 %v8931_v7  ;;  %8678 = vmatprep.subr.bf16.mxu0 %v8677_v8  ;;  %v8693_v7 = vpack.c.bf16 %v954_v62, %v946_v61  ;;  %v945_v8 = vld [vmem:[#allocation10 + $0x720] sm:$0xff]  ;;  %v8961_v61 = vpack.c.bf16 %v1004_v46, %v996_v33  ;;  %v1012_v62 = vld [vmem:[#allocation10 + $0x938] sm:$0xff] }
 0x2b8   :  { %8934 = vmatprep.subr.bf16.mxu1 %v8933_v15  ;;  %v955_v15 = vld [vmem:[#allocation10 + $0x770] sm:$0xff]  ;;  %v8695_v20 = vpack.c.bf16 %v953_v11, %v945_v8  ;;  %v1017_v8 = vld [vmem:[#allocation10 + $0x960] sm:$0xff] }
 0x2b9   :  { %v1011_v11 = vld [vmem:[#allocation10 + $0x930] sm:$0xff]  ;;  %v1057_v46 = vld [vmem:[#allocation10 + $0xaa0] sm:$0xff] }
 0x2ba   :  { %8680 = vmatpush1.bf16.msra.mxu0 %v8679_v47  ;;  %v8951_v47 = vpack.c.bf16 %v955_v15, %v947_v13  ;;  %v8965_v13 = vpack.c.bf16 %v1020_v41, %v1012_v62  ;;  %v1026_v15 = vld [vmem:[#allocation10 + $0x9a8] sm:$0xff] }
 0x2bb   :  { %8936 = vmatpush1.bf16.msra.mxu1 %v8935_v21  ;;  %8682 = vmatprep.subr.bf16.mxu0 %v8681_v22  ;;  %v8697_v21 = vpack.c.bf16 %v970_v17, %v962_v16  ;;  %v961_v22 = vld [vmem:[#allocation10 + $0x7a0] sm:$0xff]  ;;  %v1034_v16 = vld [vmem:[#allocation10 + $0x9e8] sm:$0xff]  ;;  %v1028_v17 = vld [vmem:[#allocation10 + $0x9b8] sm:$0xff] }
 0x2bc   :  { %8938 = vmatprep.subr.bf16.mxu1 %v8937_v25  ;;  %v971_v25 = vld [vmem:[#allocation10 + $0x7f0] sm:$0xff]  ;;  %v8699_v31 = vpack.c.bf16 %v969_v23, %v961_v22 }
 0x2bd   :  { %v1027_v22 = vld [vmem:[#allocation10 + $0x9b0] sm:$0xff] }
 0x2be   :  { %8684 = vmatpush1.bf16.msra.mxu0 %v8683_v32  ;;  %v8955_v32 = vpack.c.bf16 %v971_v25, %v963_v24  ;;  %v1042_v24 = vld [vmem:[#allocation10 + $0xa28] sm:$0xff]  ;;  %v1044_v25 = vld [vmem:[#allocation10 + $0xa38] sm:$0xff] }
 0x2bf   :  { %8940 = vmatpush1.bf16.msra.mxu1 %v8939_v34  ;;  %8686 = vmatprep.subr.bf16.mxu0 %v8685_v35  ;;  %v8701_v34 = vpack.c.bf16 %v986_v28, %v978_v26  ;;  %v977_v35 = vld [vmem:[#allocation10 + $0x820] sm:$0xff]  ;;  %v1052_v26 = vld [vmem:[#allocation10 + $0xa78] sm:$0xff] }
 0x2c0   :  { %8942 = vmatprep.subr.bf16.mxu1 %v8941_v36  ;;  %v987_v36 = vld [vmem:[#allocation10 + $0x870] sm:$0xff]  ;;  %v8703_v45 = vpack.c.bf16 %v985_v10, %v977_v35  ;;  %v8973_v35 = vpack.c.bf16 %v1052_v26, %v1044_v25 }
 0x2c1   :  { %v1051_v10 = vld [vmem:[#allocation10 + $0xa70] sm:$0xff] }
 0x2c2   :  { %8688 = vmatpush1.bf16.msra.mxu0 %v8687_v52  ;;  %v8959_v52 = vpack.c.bf16 %v987_v36, %v979_v38  ;;  %v1066_v38 = vld [vmem:[#allocation10 + $0xae8] sm:$0xff]  ;;  %v1060_v36 = vld [vmem:[#allocation10 + $0xab8] sm:$0xff] }
 0x2c3   :  { %8944 = vmatpush1.bf16.msra.mxu1 %v8943_v53  ;;  %8690 = vmatprep.subr.bf16.mxu0 %v8689_v54  ;;  %v993_v53 = vld [vmem:[#allocation10 + $0x8a0] sm:$0xff] }
 0x2c4   :  { %8946 = vmatprep.subr.bf16.mxu1 %v8945_v58  ;;  %v1001_v54 = vld [vmem:[#allocation10 + $0x8e0] sm:$0xff]  ;;  %v1010_v58 = vld [vmem:[#allocation10 + $0x928] sm:$0xff] }
 0x2c5   :  { %v8707_v2 = vpack.c.bf16 %v1001_v54, %v993_v53  ;;  %v1059_v53 = vld [vmem:[#allocation10 + $0xab0] sm:$0xff]  ;;  %v8977_v54 = vpack.c.bf16 %v1068_v49, %v1060_v36 }
 0x2c6   :  { %8692 = vmatpush1.bf16.msra.mxu0 %v8691_v3  ;;  %v8963_v3 = vpack.c.bf16 %v1003_v57, %v995_v40  ;;  %v1067_v40 = vld [vmem:[#allocation10 + $0xaf0] sm:$0xff]  ;;  %v1082_v57 = vld [vmem:[#allocation10 + $0xb68] sm:$0xff] }
 0x2c7   :  { %8948 = vmatpush1.bf16.msra.mxu1 %v8947_v5  ;;  %8694 = vmatprep.subr.bf16.mxu0 %v8693_v7  ;;  %v8709_v5 = vpack.c.bf16 %v1018_v59, %v1010_v58  ;;  %v1009_v7 = vld [vmem:[#allocation10 + $0x920] sm:$0xff]  ;;  %v1076_v58 = vld [vmem:[#allocation10 + $0xb38] sm:$0xff]  ;;  %v8979_v62 = vpack.c.bf16 %v1067_v40, %v1059_v53  ;;  %v1138_v53 = vld [vmem:[#allocation10 + $0xd28] sm:$0xff] }
 0x2c8   :  { %8950 = vmatprep.subr.bf16.mxu1 %v8949_v14  ;;  %v1019_v14 = vld [vmem:[#allocation10 + $0x970] sm:$0xff]  ;;  %v8711_v18 = vpack.c.bf16 %v1017_v8, %v1009_v7  ;;  %v1084_v59 = vld [vmem:[#allocation10 + $0xb78] sm:$0xff] }
 0x2c9   :  { %v8967_v19 = vpack.c.bf16 %v1019_v14, %v1011_v11  ;;  %v8981_v7 = vpack.c.bf16 %v1084_v59, %v1076_v58  ;;  %v1083_v8 = vld [vmem:[#allocation10 + $0xb70] sm:$0xff]  ;;  %v1090_v11 = vld [vmem:[#allocation10 + $0xba8] sm:$0xff]  ;;  %v1092_v14 = vld [vmem:[#allocation10 + $0xbb8] sm:$0xff] }
 0x2ca   :  { %8696 = vmatpush1.bf16.msra.mxu0 %v8695_v20  ;;  %v8713_v20 = vpack.c.bf16 %v1034_v16, %v1026_v15  ;;  %v1100_v15 = vld [vmem:[#allocation10 + $0xbf8] sm:$0xff] }
 0x2cb   :  { %8952 = vmatpush1.bf16.msra.mxu1 %v8951_v47  ;;  %8698 = vmatprep.subr.bf16.mxu0 %v8697_v21  ;;  %v1025_v47 = vld [vmem:[#allocation10 + $0x9a0] sm:$0xff]  ;;  %v1140_v40 = vld [vmem:[#allocation10 + $0xd38] sm:$0xff] }
 0x2cc   :  { %8954 = vmatprep.subr.bf16.mxu1 %v8953_v1  ;;  %v1033_v21 = vld [vmem:[#allocation10 + $0x9e0] sm:$0xff]  ;;  %v1050_v1 = vld [vmem:[#allocation10 + $0xa68] sm:$0xff] }
 0x2cd   :  { %v8715_v28 = vpack.c.bf16 %v1033_v21, %v1025_v47  ;;  %v8717_v30 = vpack.c.bf16 %v1050_v1, %v1042_v24  ;;  %v8985_v47 = vpack.c.bf16 %v1100_v15, %v1092_v14  ;;  %v1099_v21 = vld [vmem:[#allocation10 + $0xbf0] sm:$0xff]  ;;  %v1116_v24 = vld [vmem:[#allocation10 + $0xc78] sm:$0xff] }
 0x2ce   :  { %8700 = vmatpush1.bf16.msra.mxu0 %v8699_v31  ;;  %v1041_v31 = vld [vmem:[#allocation10 + $0xa20] sm:$0xff] }
 0x2cf   :  { %8956 = vmatpush1.bf16.msra.mxu1 %v8955_v32  ;;  %8702 = vmatprep.subr.bf16.mxu0 %v8701_v34  ;;  %v1049_v32 = vld [vmem:[#allocation10 + $0xa60] sm:$0xff]  ;;  %v1043_v34 = vld [vmem:[#allocation10 + $0xa30] sm:$0xff] }
 0x2d0   :  { %8958 = vmatprep.subr.bf16.mxu1 %v8957_v37  ;;  %v1058_v37 = vld [vmem:[#allocation10 + $0xaa8] sm:$0xff]  ;;  %v8719_v42 = vpack.c.bf16 %v1049_v32, %v1041_v31  ;;  %v1115_v32 = vld [vmem:[#allocation10 + $0xc70] sm:$0xff] }
 0x2d1   :  { %2416 = vmatmul.mubr.f32.vlgmr.msra.gmra.mrb[6].mxu0 %v11975_v6  ;;  %v8721_v33 = vpack.c.bf16 %v1066_v38, %v1058_v37  ;;  %v1132_v37 = vld [vmem:[#allocation10 + $0xcf8] sm:$0xff] }
 0x2d2   :  { %2700 = vmatmul.mubr.f32.vlgmr.msra.gmra.mrb[6].mxu1 %v11975_v6  ;;  %8704 = vmatpush1.bf16.msra.mxu0 %v8703_v45  ;;  %v1036_v6 = vld [vmem:[#allocation10 + $0x9f8] sm:$0xff]  ;;  %v8975_v45 = vpack.c.bf16 %v1051_v10, %v1043_v34  ;;  %v1122_v34 = vld [vmem:[#allocation10 + $0xca8] sm:$0xff] }
 0x2d3   :  { %2486 = vmatprep.mubr.f32.mxu0 %v11988_v0  ;;  %8960 = vmatpush1.bf16.msra.mxu1 %v8959_v52  ;;  %v8969_v23 = vpack.c.bf16 %v1036_v6, %v1028_v17  ;;  %v1065_v52 = vld [vmem:[#allocation10 + $0xae0] sm:$0xff]  ;;  %v1124_v10 = vld [vmem:[#allocation10 + $0xcb8] sm:$0xff] }
 0x2d4   :  { %2770 = vmatprep.mubr.f32.mxu1 %v11988_v0  ;;  %8706 = vmatprep.subr.bf16.mxu0 %v8705_v55  ;;  %v1035_v0 = vld [vmem:[#allocation10 + $0x9f0] sm:$0xff]  ;;  %v1074_v55 = vld [vmem:[#allocation10 + $0xb28] sm:$0xff] }
 0x2d5   :  { %8962 = vmatprep.subr.bf16.mxu1 %v8961_v61  ;;  %v8971_v29 = vpack.c.bf16 %v1035_v0, %v1027_v22  ;;  %v8723_v61 = vpack.c.bf16 %v1065_v52, %v1057_v46  ;;  %v8725_v41 = vpack.c.bf16 %v1082_v57, %v1074_v55  ;;  %v1106_v22 = vld [vmem:[#allocation10 + $0xc28] sm:$0xff]  ;;  %v1108_v0 = vld [vmem:[#allocation10 + $0xc38] sm:$0xff]  ;;  %v8993_v46 = vpack.c.bf16 %v1132_v37, %v1124_v10  ;;  %v1131_v52 = vld [vmem:[#allocation10 + $0xcf0] sm:$0xff] }
 0x2d6   :  { %8708 = vmatpush1.bf16.msra.mxu0 %v8707_v2  ;;  %v1073_v2 = vld [vmem:[#allocation10 + $0xb20] sm:$0xff]  ;;  %v8989_v31 = vpack.c.bf16 %v1116_v24, %v1108_v0  ;;  %v1148_v55 = vld [vmem:[#allocation10 + $0xd78] sm:$0xff] }
 0x2d7   :  { %8964 = vmatpush1.bf16.msra.mxu1 %v8963_v3  ;;  %8710 = vmatprep.subr.bf16.mxu0 %v8709_v5  ;;  %v1081_v3 = vld [vmem:[#allocation10 + $0xb60] sm:$0xff]  ;;  %v1075_v5 = vld [vmem:[#allocation10 + $0xb30] sm:$0xff] }
 0x2d8   :  { %8966 = vmatprep.subr.bf16.mxu1 %v8965_v13  ;;  %v1098_v13 = vld [vmem:[#allocation10 + $0xbe8] sm:$0xff]  ;;  %v8727_v16 = vpack.c.bf16 %v1081_v3, %v1073_v2  ;;  %v8983_v17 = vpack.c.bf16 %v1083_v8, %v1075_v5  ;;  %v8997_v2 = vpack.c.bf16 %v1148_v55, %v1140_v40  ;;  %v1147_v3 = vld [vmem:[#allocation10 + $0xd70] sm:$0xff]  ;;  %v1156_v8 = vld [vmem:[#allocation10 + $0xdb8] sm:$0xff] }
 0x2d9   :  { %v8729_v6 = vpack.c.bf16 %v1098_v13, %v1090_v11  ;;  %v1154_v5 = vld [vmem:[#allocation10 + $0xda8] sm:$0xff]  ;;  %v1164_v11 = vld [vmem:[#allocation10 + $0xdf8] sm:$0xff] }
 0x2da   :  { %8712 = vmatpush1.bf16.msra.mxu0 %v8711_v18  ;;  %v1089_v18 = vld [vmem:[#allocation10 + $0xba0] sm:$0xff] }
 0x2db   :  { %8968 = vmatpush1.bf16.msra.mxu1 %v8967_v19  ;;  %8714 = vmatprep.subr.bf16.mxu0 %v8713_v20  ;;  %v1097_v19 = vld [vmem:[#allocation10 + $0xbe0] sm:$0xff]  ;;  %v1091_v20 = vld [vmem:[#allocation10 + $0xbb0] sm:$0xff] }
 0x2dc   :  { %8970 = vmatprep.subr.bf16.mxu1 %v8969_v23  ;;  %v1114_v23 = vld [vmem:[#allocation10 + $0xc68] sm:$0xff]  ;;  %v8731_v1 = vpack.c.bf16 %v1097_v19, %v1089_v18  ;;  %v8987_v25 = vpack.c.bf16 %v1099_v21, %v1091_v20  ;;  %v9001_v18 = vpack.c.bf16 %v1164_v11, %v1156_v8  ;;  %v1163_v19 = vld [vmem:[#allocation10 + $0xdf0] sm:$0xff]  ;;  %v1172_v21 = vld [vmem:[#allocation10 + $0xe38] sm:$0xff] }
 0x2dd   :  { %v8733_v26 = vpack.c.bf16 %v1114_v23, %v1106_v22  ;;  %v1170_v20 = vld [vmem:[#allocation10 + $0xe28] sm:$0xff]  ;;  %v1180_v22 = vld [vmem:[#allocation10 + $0xe78] sm:$0xff] }
 0x2de   :  { %8716 = vmatpush1.bf16.msra.mxu0 %v8715_v28  ;;  %v1105_v28 = vld [vmem:[#allocation10 + $0xc20] sm:$0xff] }
 0x2df   :  { %8972 = vmatpush1.bf16.msra.mxu1 %v8971_v29  ;;  %8718 = vmatprep.subr.bf16.mxu0 %v8717_v30  ;;  %v1113_v29 = vld [vmem:[#allocation10 + $0xc60] sm:$0xff]  ;;  %v1107_v30 = vld [vmem:[#allocation10 + $0xc30] sm:$0xff] }
 0x2e0   :  { %8974 = vmatprep.subr.bf16.mxu1 %v8973_v35  ;;  %v1130_v35 = vld [vmem:[#allocation10 + $0xce8] sm:$0xff]  ;;  %v8735_v38 = vpack.c.bf16 %v1113_v29, %v1105_v28  ;;  %v8991_v36 = vpack.c.bf16 %v1115_v32, %v1107_v30  ;;  %v9005_v28 = vpack.c.bf16 %v1180_v22, %v1172_v21  ;;  %v1179_v29 = vld [vmem:[#allocation10 + $0xe70] sm:$0xff]  ;;  %v1188_v32 = vld [vmem:[#allocation10 + $0xeb8] sm:$0xff] }
 0x2e1   :  { %v8737_v49 = vpack.c.bf16 %v1130_v35, %v1122_v34  ;;  %v1186_v30 = vld [vmem:[#allocation10 + $0xea8] sm:$0xff]  ;;  %v1196_v34 = vld [vmem:[#allocation10 + $0xef8] sm:$0xff] }
 0x2e2   :  { %8720 = vmatpush1.bf16.msra.mxu0 %v8719_v42  ;;  %v1121_v42 = vld [vmem:[#allocation10 + $0xca0] sm:$0xff] }
 0x2e3   :  { %8976 = vmatpush1.bf16.msra.mxu1 %v8975_v45  ;;  %8722 = vmatprep.subr.bf16.mxu0 %v8721_v33  ;;  %v1129_v45 = vld [vmem:[#allocation10 + $0xce0] sm:$0xff]  ;;  %v1123_v33 = vld [vmem:[#allocation10 + $0xcb0] sm:$0xff] }
 0x2e4   :  { %8978 = vmatprep.subr.bf16.mxu1 %v8977_v54  ;;  %v1146_v54 = vld [vmem:[#allocation10 + $0xd68] sm:$0xff]  ;;  %v8739_v57 = vpack.c.bf16 %v1129_v45, %v1121_v42  ;;  %v8995_v58 = vpack.c.bf16 %v1131_v52, %v1123_v33  ;;  %v9009_v42 = vpack.c.bf16 %v1196_v34, %v1188_v32  ;;  %v1195_v45 = vld [vmem:[#allocation10 + $0xef0] sm:$0xff]  ;;  %v1204_v52 = vld [vmem:[#allocation10 + $0xf38] sm:$0xff] }
 0x2e5   :  { %v8741_v59 = vpack.c.bf16 %v1146_v54, %v1138_v53  ;;  %v1202_v33 = vld [vmem:[#allocation10 + $0xf28] sm:$0xff]  ;;  %v1212_v53 = vld [vmem:[#allocation10 + $0xf78] sm:$0xff]  ;;  %v1249_v34 = vld [vmem:[#allocation10 + $0x10a0] sm:$0xff] }
 0x2e6   :  { %8724 = vmatpush1.bf16.msra.mxu0 %v8723_v61  ;;  %v1137_v61 = vld [vmem:[#allocation10 + $0xd20] sm:$0xff] }
 0x2e7   :  { %8980 = vmatpush1.bf16.msra.mxu1 %v8979_v62  ;;  %8726 = vmatprep.subr.bf16.mxu0 %v8725_v41  ;;  %v1145_v62 = vld [vmem:[#allocation10 + $0xd60] sm:$0xff]  ;;  %v1139_v41 = vld [vmem:[#allocation10 + $0xd30] sm:$0xff] }
 0x2e8   :  { %8982 = vmatprep.subr.bf16.mxu1 %v8981_v7  ;;  %v1162_v7 = vld [vmem:[#allocation10 + $0xde8] sm:$0xff]  ;;  %v8743_v13 = vpack.c.bf16 %v1145_v62, %v1137_v61  ;;  %v8999_v14 = vpack.c.bf16 %v1147_v3, %v1139_v41  ;;  %v9013_v61 = vpack.c.bf16 %v1212_v53, %v1204_v52  ;;  %v1211_v62 = vld [vmem:[#allocation10 + $0xf70] sm:$0xff]  ;;  %v1220_v3 = vld [vmem:[#allocation10 + $0xfb8] sm:$0xff] }
 0x2e9   :  { %v8745_v15 = vpack.c.bf16 %v1162_v7, %v1154_v5  ;;  %v1218_v41 = vld [vmem:[#allocation10 + $0xfa8] sm:$0xff]  ;;  %v1228_v5 = vld [vmem:[#allocation10 + $0xff8] sm:$0xff] }
 0x2ea   :  { %8728 = vmatpush1.bf16.msra.mxu0 %v8727_v16  ;;  %v1153_v16 = vld [vmem:[#allocation10 + $0xda0] sm:$0xff] }
 0x2eb   :  { %8984 = vmatpush1.bf16.msra.mxu1 %v8983_v17  ;;  %8730 = vmatprep.subr.bf16.mxu0 %v8729_v6  ;;  %v1161_v17 = vld [vmem:[#allocation10 + $0xde0] sm:$0xff]  ;;  %v1155_v6 = vld [vmem:[#allocation10 + $0xdb0] sm:$0xff] }
 0x2ec   :  { %8986 = vmatprep.subr.bf16.mxu1 %v8985_v47  ;;  %v1178_v47 = vld [vmem:[#allocation10 + $0xe68] sm:$0xff]  ;;  %v8747_v23 = vpack.c.bf16 %v1161_v17, %v1153_v16  ;;  %v9003_v0 = vpack.c.bf16 %v1163_v19, %v1155_v6  ;;  %v9017_v16 = vpack.c.bf16 %v1228_v5, %v1220_v3  ;;  %v1227_v17 = vld [vmem:[#allocation10 + $0xff0] sm:$0xff]  ;;  %v1236_v19 = vld [vmem:[#allocation10 + $0x1038] sm:$0xff] }
 0x2ed   :  { %v8749_v24 = vpack.c.bf16 %v1178_v47, %v1170_v20  ;;  %v1234_v6 = vld [vmem:[#allocation10 + $0x1028] sm:$0xff]  ;;  %v1244_v20 = vld [vmem:[#allocation10 + $0x1078] sm:$0xff]  ;;  %v1281_v5 = vld [vmem:[#allocation10 + $0x11a0] sm:$0xff] }
 0x2ee   :  { %8732 = vmatpush1.bf16.msra.mxu0 %v8731_v1  ;;  %v1169_v1 = vld [vmem:[#allocation10 + $0xe20] sm:$0xff] }
 0x2ef   :  { %8988 = vmatpush1.bf16.msra.mxu1 %v8987_v25  ;;  %8734 = vmatprep.subr.bf16.mxu0 %v8733_v26  ;;  %v1177_v25 = vld [vmem:[#allocation10 + $0xe60] sm:$0xff]  ;;  %v1171_v26 = vld [vmem:[#allocation10 + $0xe30] sm:$0xff] }
 0x2f0   :  { %8990 = vmatprep.subr.bf16.mxu1 %v8989_v31  ;;  %v1194_v31 = vld [vmem:[#allocation10 + $0xee8] sm:$0xff]  ;;  %v8751_v35 = vpack.c.bf16 %v1177_v25, %v1169_v1  ;;  %v9007_v10 = vpack.c.bf16 %v1179_v29, %v1171_v26  ;;  %v1235_v1 = vld [vmem:[#allocation10 + $0x1030] sm:$0xff] }
 0x2f1   :  { %v8753_v37 = vpack.c.bf16 %v1194_v31, %v1186_v30  ;;  %v1243_v25 = vld [vmem:[#allocation10 + $0x1070] sm:$0xff]  ;;  %v1250_v26 = vld [vmem:[#allocation10 + $0x10a8] sm:$0xff]  ;;  %v1252_v30 = vld [vmem:[#allocation10 + $0x10b8] sm:$0xff] }
 0x2f2   :  { %8736 = vmatpush1.bf16.msra.mxu0 %v8735_v38  ;;  %v1185_v38 = vld [vmem:[#allocation10 + $0xea0] sm:$0xff]  ;;  %v1260_v31 = vld [vmem:[#allocation10 + $0x10f8] sm:$0xff]  ;;  %v9023_v32 = vpack.c.bf16 %v1243_v25, %v1235_v1 }
 0x2f3   :  { %8992 = vmatpush1.bf16.msra.mxu1 %v8991_v36  ;;  %8738 = vmatprep.subr.bf16.mxu0 %v8737_v49  ;;  %v1193_v36 = vld [vmem:[#allocation10 + $0xee0] sm:$0xff]  ;;  %v1187_v49 = vld [vmem:[#allocation10 + $0xeb0] sm:$0xff]  ;;  %v1324_v1 = vld [vmem:[#allocation10 + $0x12f8] sm:$0xff] }
 0x2f4   :  { %8994 = vmatprep.subr.bf16.mxu1 %v8993_v46  ;;  %v1210_v46 = vld [vmem:[#allocation10 + $0xf68] sm:$0xff]  ;;  %v8755_v54 = vpack.c.bf16 %v1193_v36, %v1185_v38  ;;  %v9011_v40 = vpack.c.bf16 %v1195_v45, %v1187_v49  ;;  %v1259_v38 = vld [vmem:[#allocation10 + $0x10f0] sm:$0xff]  ;;  %v1268_v45 = vld [vmem:[#allocation10 + $0x1138] sm:$0xff] }
 0x2f5   :  { %v8757_v55 = vpack.c.bf16 %v1210_v46, %v1202_v33  ;;  %v1266_v36 = vld [vmem:[#allocation10 + $0x1128] sm:$0xff]  ;;  %v1276_v33 = vld [vmem:[#allocation10 + $0x1178] sm:$0xff] }
 0x2f6   :  { %8740 = vmatpush1.bf16.msra.mxu0 %v8739_v57  ;;  %v1201_v57 = vld [vmem:[#allocation10 + $0xf20] sm:$0xff]  ;;  %v1274_v49 = vld [vmem:[#allocation10 + $0x1168] sm:$0xff] }
 0x2f7   :  { %8996 = vmatpush1.bf16.msra.mxu1 %v8995_v58  ;;  %8742 = vmatprep.subr.bf16.mxu0 %v8741_v59  ;;  %v1209_v58 = vld [vmem:[#allocation10 + $0xf60] sm:$0xff]  ;;  %v1203_v59 = vld [vmem:[#allocation10 + $0xf30] sm:$0xff]  ;;  %v8773_v53 = vpack.c.bf16 %v1274_v49, %v1266_v36 }
 0x2f8   :  { %8998 = vmatprep.subr.bf16.mxu1 %v8997_v2  ;;  %v1226_v2 = vld [vmem:[#allocation10 + $0xfe8] sm:$0xff]  ;;  %v8759_v7 = vpack.c.bf16 %v1209_v58, %v1201_v57  ;;  %v9015_v8 = vpack.c.bf16 %v1211_v62, %v1203_v59  ;;  %v9029_v57 = vpack.c.bf16 %v1276_v33, %v1268_v45  ;;  %v1275_v58 = vld [vmem:[#allocation10 + $0x1170] sm:$0xff]  ;;  %v1284_v62 = vld [vmem:[#allocation10 + $0x11b8] sm:$0xff] }
 0x2f9   :  { %v8761_v11 = vpack.c.bf16 %v1226_v2, %v1218_v41  ;;  %v1282_v59 = vld [vmem:[#allocation10 + $0x11a8] sm:$0xff]  ;;  %v1329_v45 = vld [vmem:[#allocation10 + $0x1320] sm:$0xff] }
 0x2fa   :  { %8744 = vmatpush1.bf16.msra.mxu0 %v8743_v13  ;;  %v1217_v13 = vld [vmem:[#allocation10 + $0xfa0] sm:$0xff] }
 0x2fb   :  { %9000 = vmatpush1.bf16.msra.mxu1 %v8999_v14  ;;  %8746 = vmatprep.subr.bf16.mxu0 %v8745_v15  ;;  %v1225_v14 = vld [vmem:[#allocation10 + $0xfe0] sm:$0xff]  ;;  %v1219_v15 = vld [vmem:[#allocation10 + $0xfb0] sm:$0xff] }
 0x2fc   :  { %9002 = vmatprep.subr.bf16.mxu1 %v9001_v18  ;;  %v1242_v18 = vld [vmem:[#allocation10 + $0x1068] sm:$0xff]  ;;  %v8763_v47 = vpack.c.bf16 %v1225_v14, %v1217_v13  ;;  %v9019_v21 = vpack.c.bf16 %v1227_v17, %v1219_v15  ;;  %v1300_v15 = vld [vmem:[#allocation10 + $0x1238] sm:$0xff]  ;;  %v1337_v33 = vld [vmem:[#allocation10 + $0x1360] sm:$0xff] }
 0x2fd   :  { %v8765_v22 = vpack.c.bf16 %v1242_v18, %v1234_v6  ;;  %v1298_v13 = vld [vmem:[#allocation10 + $0x1228] sm:$0xff] }
 0x2fe   :  { %8748 = vmatpush1.bf16.msra.mxu0 %v8747_v23  ;;  %v1233_v23 = vld [vmem:[#allocation10 + $0x1020] sm:$0xff]  ;;  %v1306_v14 = vld [vmem:[#allocation10 + $0x1268] sm:$0xff] }
 0x2ff   :  { %9004 = vmatpush1.bf16.msra.mxu1 %v9003_v0  ;;  %8750 = vmatprep.subr.bf16.mxu0 %v8749_v24  ;;  %v1241_v0 = vld [vmem:[#allocation10 + $0x1060] sm:$0xff]  ;;  %v9021_v24 = vpack.c.bf16 %v1244_v20, %v1236_v19  ;;  %v8781_v18 = vpack.c.bf16 %v1306_v14, %v1298_v13 }
 0x300   :  { %9006 = vmatprep.subr.bf16.mxu1 %v9005_v28  ;;  %v1258_v28 = vld [vmem:[#allocation10 + $0x10e8] sm:$0xff]  ;;  %v8767_v29 = vpack.c.bf16 %v1241_v0, %v1233_v23  ;;  %v1297_v19 = vld [vmem:[#allocation10 + $0x1220] sm:$0xff] }
 0x301   :  { %v1305_v20 = vld [vmem:[#allocation10 + $0x1260] sm:$0xff]  ;;  %v1314_v23 = vld [vmem:[#allocation10 + $0x12a8] sm:$0xff] }
 0x302   :  { %8752 = vmatpush1.bf16.msra.mxu0 %v8751_v35  ;;  %v1257_v35 = vld [vmem:[#allocation10 + $0x10e0] sm:$0xff]  ;;  %v1322_v0 = vld [vmem:[#allocation10 + $0x12e8] sm:$0xff]  ;;  %v8783_v25 = vpack.c.bf16 %v1305_v20, %v1297_v19 }
 0x303   :  { %9008 = vmatpush1.bf16.msra.mxu1 %v9007_v10  ;;  %8754 = vmatprep.subr.bf16.mxu0 %v8753_v37  ;;  %v1251_v10 = vld [vmem:[#allocation10 + $0x10b0] sm:$0xff]  ;;  %v8769_v37 = vpack.c.bf16 %v1258_v28, %v1250_v26  ;;  %v8771_v46 = vpack.c.bf16 %v1257_v35, %v1249_v34  ;;  %v8785_v28 = vpack.c.bf16 %v1322_v0, %v1314_v23  ;;  %v1330_v35 = vld [vmem:[#allocation10 + $0x1328] sm:$0xff] }
 0x304   :  { %9010 = vmatprep.subr.bf16.mxu1 %v9009_v42  ;;  %v9025_v42 = vpack.c.bf16 %v1260_v31, %v1252_v30  ;;  %v9027_v52 = vpack.c.bf16 %v1259_v38, %v1251_v10  ;;  %v1321_v30 = vld [vmem:[#allocation10 + $0x12e0] sm:$0xff]  ;;  %v1315_v31 = vld [vmem:[#allocation10 + $0x12b0] sm:$0xff]  ;;  %v1338_v10 = vld [vmem:[#allocation10 + $0x1368] sm:$0xff] }
 0x305   :  { %v1323_v34 = vld [vmem:[#allocation10 + $0x12f0] sm:$0xff]  ;;  %v1340_v38 = vld [vmem:[#allocation10 + $0x1378] sm:$0xff]  ;;  %v1378_v19 = vld [vmem:[#allocation10 + $0x14a8] sm:$0xff] }
 0x306   :  { %8756 = vmatpush1.bf16.msra.mxu0 %v8755_v54  ;;  %v1265_v54 = vld [vmem:[#allocation10 + $0x1120] sm:$0xff]  ;;  %v9043_v49 = vpack.c.bf16 %v1323_v34, %v1315_v31  ;;  %v1386_v20 = vld [vmem:[#allocation10 + $0x14e8] sm:$0xff]  ;;  %v1396_v31 = vld [vmem:[#allocation10 + $0x1538] sm:$0xff] }
 0x307   :  { %9012 = vmatpush1.bf16.msra.mxu1 %v9011_v40  ;;  %8758 = vmatprep.subr.bf16.mxu0 %v8757_v55  ;;  %v1273_v40 = vld [vmem:[#allocation10 + $0x1160] sm:$0xff]  ;;  %v1267_v55 = vld [vmem:[#allocation10 + $0x1130] sm:$0xff]  ;;  %v8801_v0 = vpack.c.bf16 %v1386_v20, %v1378_v19 }
 0x308   :  { %9014 = vmatprep.subr.bf16.mxu1 %v9013_v61  ;;  %v1290_v61 = vld [vmem:[#allocation10 + $0x11e8] sm:$0xff]  ;;  %v8775_v41 = vpack.c.bf16 %v1273_v40, %v1265_v54  ;;  %v9031_v2 = vpack.c.bf16 %v1275_v58, %v1267_v55  ;;  %v1348_v55 = vld [vmem:[#allocation10 + $0x13b8] sm:$0xff]  ;;  %v8791_v58 = vpack.c.bf16 %v1337_v33, %v1329_v45 }
 0x309   :  { %v8777_v3 = vpack.c.bf16 %v1290_v61, %v1282_v59  ;;  %v1346_v54 = vld [vmem:[#allocation10 + $0x13a8] sm:$0xff] }
 0x30a   :  { %8760 = vmatpush1.bf16.msra.mxu0 %v8759_v7  ;;  %v1289_v7 = vld [vmem:[#allocation10 + $0x11e0] sm:$0xff]  ;;  %v1354_v40 = vld [vmem:[#allocation10 + $0x13e8] sm:$0xff] }
 0x30b   :  { %9016 = vmatpush1.bf16.msra.mxu1 %v9015_v8  ;;  %8762 = vmatprep.subr.bf16.mxu0 %v8761_v11  ;;  %v1283_v8 = vld [vmem:[#allocation10 + $0x11b0] sm:$0xff]  ;;  %v8779_v17 = vpack.c.bf16 %v1289_v7, %v1281_v5  ;;  %v8793_v61 = vpack.c.bf16 %v1354_v40, %v1346_v54  ;;  %v1362_v5 = vld [vmem:[#allocation10 + $0x1428] sm:$0xff] }
 0x30c   :  { %9018 = vmatprep.subr.bf16.mxu1 %v9017_v16  ;;  %v1308_v16 = vld [vmem:[#allocation10 + $0x1278] sm:$0xff]  ;;  %v1370_v7 = vld [vmem:[#allocation10 + $0x1468] sm:$0xff] }
 0x30d   :  { %v8797_v14 = vpack.c.bf16 %v1370_v7, %v1362_v5  ;;  %v1410_v45 = vld [vmem:[#allocation10 + $0x15a8] sm:$0xff] }
 0x30e   :  { %8764 = vmatpush1.bf16.msra.mxu0 %v8763_v47  ;;  %v1299_v47 = vld [vmem:[#allocation10 + $0x1230] sm:$0xff]  ;;  %v1418_v33 = vld [vmem:[#allocation10 + $0x15e8] sm:$0xff] }
 0x30f   :  { %9020 = vmatpush1.bf16.msra.mxu1 %v9019_v21  ;;  %8766 = vmatprep.subr.bf16.mxu0 %v8765_v22  ;;  %v9037_v21 = vpack.c.bf16 %v1308_v16, %v1300_v15  ;;  %v1307_v22 = vld [vmem:[#allocation10 + $0x1270] sm:$0xff]  ;;  %v1361_v15 = vld [vmem:[#allocation10 + $0x1420] sm:$0xff]  ;;  %v8809_v40 = vpack.c.bf16 %v1418_v33, %v1410_v45 }
 0x310   :  { %9022 = vmatprep.subr.bf16.mxu1 %v9021_v24  ;;  %v1316_v24 = vld [vmem:[#allocation10 + $0x12b8] sm:$0xff]  ;;  %v9039_v26 = vpack.c.bf16 %v1307_v22, %v1299_v47  ;;  %v1369_v16 = vld [vmem:[#allocation10 + $0x1460] sm:$0xff] }
 0x311   :  { %2487 = vmatmul.mubr.f32.vlgmr.msra.gmra.mrb[6].mxu0 %v12012_v44  ;;  %v1380_v47 = vld [vmem:[#allocation10 + $0x14b8] sm:$0xff]  ;;  %v8799_v22 = vpack.c.bf16 %v1369_v16, %v1361_v15  ;;  %v1442_v15 = vld [vmem:[#allocation10 + $0x16a8] sm:$0xff] }
 0x312   :  { %2771 = vmatmul.mubr.f32.vlgmr.msra.gmra.mrb[6].mxu1 %v12012_v44  ;;  %8768 = vmatpush1.bf16.msra.mxu0 %v8767_v29  ;;  %v1292_v44 = vld [vmem:[#allocation10 + $0x11f8] sm:$0xff]  ;;  %v1313_v29 = vld [vmem:[#allocation10 + $0x12a0] sm:$0xff]  ;;  %v1450_v16 = vld [vmem:[#allocation10 + $0x16e8] sm:$0xff] }
 0x313   :  { %2557 = vmatprep.mubr.f32.mxu0 %v12014_v63  ;;  %9024 = vmatpush1.bf16.msra.mxu1 %v9023_v32  ;;  %v9033_v11 = vpack.c.bf16 %v1292_v44, %v1284_v62  ;;  %v9041_v32 = vpack.c.bf16 %v1324_v1, %v1316_v24  ;;  %v8787_v36 = vpack.c.bf16 %v1321_v30, %v1313_v29  ;;  %v1345_v62 = vld [vmem:[#allocation10 + $0x13a0] sm:$0xff]  ;;  %v1394_v29 = vld [vmem:[#allocation10 + $0x1528] sm:$0xff] }
 0x314   :  { %2841 = vmatprep.mubr.f32.mxu1 %v12014_v63  ;;  %8770 = vmatprep.subr.bf16.mxu0 %v8769_v37  ;;  %v1291_v63 = vld [vmem:[#allocation10 + $0x11f0] sm:$0xff]  ;;  %v1332_v37 = vld [vmem:[#allocation10 + $0x1338] sm:$0xff]  ;;  %v1353_v44 = vld [vmem:[#allocation10 + $0x13e0] sm:$0xff]  ;;  %v8817_v20 = vpack.c.bf16 %v1450_v16, %v1442_v15 }
 0x315   :  { %9026 = vmatprep.subr.bf16.mxu1 %v9025_v42  ;;  %v9035_v6 = vpack.c.bf16 %v1291_v63, %v1283_v8  ;;  %v8789_v42 = vpack.c.bf16 %v1338_v10, %v1330_v35  ;;  %v1364_v8 = vld [vmem:[#allocation10 + $0x1438] sm:$0xff]  ;;  %v8795_v63 = vpack.c.bf16 %v1353_v44, %v1345_v62  ;;  %v1377_v24 = vld [vmem:[#allocation10 + $0x14a0] sm:$0xff]  ;;  %v1402_v30 = vld [vmem:[#allocation10 + $0x1568] sm:$0xff] }
 0x316   :  { %8772 = vmatpush1.bf16.msra.mxu0 %v8771_v46  ;;  %v1331_v46 = vld [vmem:[#allocation10 + $0x1330] sm:$0xff]  ;;  %v1385_v1 = vld [vmem:[#allocation10 + $0x14e0] sm:$0xff]  ;;  %v8805_v10 = vpack.c.bf16 %v1402_v30, %v1394_v29  ;;  %v1426_v62 = vld [vmem:[#allocation10 + $0x1628] sm:$0xff] }
 0x317   :  { %9028 = vmatpush1.bf16.msra.mxu1 %v9027_v52  ;;  %8774 = vmatprep.subr.bf16.mxu0 %v8773_v53  ;;  %v9045_v52 = vpack.c.bf16 %v1340_v38, %v1332_v37  ;;  %v1339_v53 = vld [vmem:[#allocation10 + $0x1370] sm:$0xff]  ;;  %v8803_v34 = vpack.c.bf16 %v1385_v1, %v1377_v24  ;;  %v1393_v37 = vld [vmem:[#allocation10 + $0x1520] sm:$0xff]  ;;  %v1434_v44 = vld [vmem:[#allocation10 + $0x1668] sm:$0xff] }
 0x318   :  { %9030 = vmatprep.subr.bf16.mxu1 %v9029_v57  ;;  %v1356_v57 = vld [vmem:[#allocation10 + $0x13f8] sm:$0xff]  ;;  %v9047_v59 = vpack.c.bf16 %v1339_v53, %v1331_v46  ;;  %v1401_v38 = vld [vmem:[#allocation10 + $0x1560] sm:$0xff]  ;;  %v8813_v7 = vpack.c.bf16 %v1434_v44, %v1426_v62  ;;  %v1458_v24 = vld [vmem:[#allocation10 + $0x1728] sm:$0xff] }
 0x319   :  { %v1412_v46 = vld [vmem:[#allocation10 + $0x15b8] sm:$0xff]  ;;  %v8807_v53 = vpack.c.bf16 %v1401_v38, %v1393_v37  ;;  %v1466_v1 = vld [vmem:[#allocation10 + $0x1768] sm:$0xff]  ;;  %v1505_v16 = vld [vmem:[#allocation10 + $0x18a0] sm:$0xff] }
 0x31a   :  { %8776 = vmatpush1.bf16.msra.mxu0 %v8775_v41  ;;  %v1347_v41 = vld [vmem:[#allocation10 + $0x13b0] sm:$0xff]  ;;  %v8821_v30 = vpack.c.bf16 %v1466_v1, %v1458_v24  ;;  %v1474_v37 = vld [vmem:[#allocation10 + $0x17a8] sm:$0xff] }
 0x31b   :  { %9032 = vmatpush1.bf16.msra.mxu1 %v9031_v2  ;;  %8778 = vmatprep.subr.bf16.mxu0 %v8777_v3  ;;  %v9049_v2 = vpack.c.bf16 %v1356_v57, %v1348_v55  ;;  %v1355_v3 = vld [vmem:[#allocation10 + $0x13f0] sm:$0xff]  ;;  %v1409_v55 = vld [vmem:[#allocation10 + $0x15a0] sm:$0xff]  ;;  %v1482_v38 = vld [vmem:[#allocation10 + $0x17e8] sm:$0xff] }
 0x31c   :  { %9034 = vmatprep.subr.bf16.mxu1 %v9033_v11  ;;  %v1372_v11 = vld [vmem:[#allocation10 + $0x1478] sm:$0xff]  ;;  %v9051_v13 = vpack.c.bf16 %v1355_v3, %v1347_v41  ;;  %v1417_v57 = vld [vmem:[#allocation10 + $0x15e0] sm:$0xff]  ;;  %v8825_v33 = vpack.c.bf16 %v1482_v38, %v1474_v37 }
 0x31d   :  { %v1428_v41 = vld [vmem:[#allocation10 + $0x1638] sm:$0xff]  ;;  %v8811_v3 = vpack.c.bf16 %v1417_v57, %v1409_v55  ;;  %v1490_v55 = vld [vmem:[#allocation10 + $0x1828] sm:$0xff]  ;;  %v1537_v38 = vld [vmem:[#allocation10 + $0x19a0] sm:$0xff] }
 0x31e   :  { %8780 = vmatpush1.bf16.msra.mxu0 %v8779_v17  ;;  %v1363_v17 = vld [vmem:[#allocation10 + $0x1430] sm:$0xff]  ;;  %v1498_v57 = vld [vmem:[#allocation10 + $0x1868] sm:$0xff] }
 0x31f   :  { %9036 = vmatpush1.bf16.msra.mxu1 %v9035_v6  ;;  %8782 = vmatprep.subr.bf16.mxu0 %v8781_v18  ;;  %v9053_v6 = vpack.c.bf16 %v1372_v11, %v1364_v8  ;;  %v1371_v18 = vld [vmem:[#allocation10 + $0x1470] sm:$0xff]  ;;  %v1425_v8 = vld [vmem:[#allocation10 + $0x1620] sm:$0xff]  ;;  %v8829_v44 = vpack.c.bf16 %v1498_v57, %v1490_v55 }
 0x320   :  { %9038 = vmatprep.subr.bf16.mxu1 %v9037_v21  ;;  %v1388_v21 = vld [vmem:[#allocation10 + $0x14f8] sm:$0xff]  ;;  %v9055_v23 = vpack.c.bf16 %v1371_v18, %v1363_v17  ;;  %v1433_v11 = vld [vmem:[#allocation10 + $0x1660] sm:$0xff] }
 0x321   :  { %v1444_v17 = vld [vmem:[#allocation10 + $0x16b8] sm:$0xff]  ;;  %v8815_v18 = vpack.c.bf16 %v1433_v11, %v1425_v8  ;;  %v1506_v8 = vld [vmem:[#allocation10 + $0x18a8] sm:$0xff]  ;;  %v1553_v55 = vld [vmem:[#allocation10 + $0x1a20] sm:$0xff] }
 0x322   :  { %8784 = vmatpush1.bf16.msra.mxu0 %v8783_v25  ;;  %v1379_v25 = vld [vmem:[#allocation10 + $0x14b0] sm:$0xff]  ;;  %v1514_v11 = vld [vmem:[#allocation10 + $0x18e8] sm:$0xff]  ;;  %v1561_v57 = vld [vmem:[#allocation10 + $0x1a60] sm:$0xff] }
 0x323   :  { %9040 = vmatpush1.bf16.msra.mxu1 %v9039_v26  ;;  %8786 = vmatprep.subr.bf16.mxu0 %v8785_v28  ;;  %v9057_v26 = vpack.c.bf16 %v1388_v21, %v1380_v47  ;;  %v1387_v28 = vld [vmem:[#allocation10 + $0x14f0] sm:$0xff]  ;;  %v1441_v47 = vld [vmem:[#allocation10 + $0x16a0] sm:$0xff] }
 0x324   :  { %9042 = vmatprep.subr.bf16.mxu1 %v9041_v32  ;;  %v1404_v32 = vld [vmem:[#allocation10 + $0x1578] sm:$0xff]  ;;  %v9059_v35 = vpack.c.bf16 %v1387_v28, %v1379_v25  ;;  %v1449_v21 = vld [vmem:[#allocation10 + $0x16e0] sm:$0xff] }
 0x325   :  { %v1460_v25 = vld [vmem:[#allocation10 + $0x1738] sm:$0xff]  ;;  %v8819_v28 = vpack.c.bf16 %v1449_v21, %v1441_v47  ;;  %v1530_v47 = vld [vmem:[#allocation10 + $0x1968] sm:$0xff] }
 0x326   :  { %8788 = vmatpush1.bf16.msra.mxu0 %v8787_v36  ;;  %v1395_v36 = vld [vmem:[#allocation10 + $0x1530] sm:$0xff] }
 0x327   :  { %9044 = vmatpush1.bf16.msra.mxu1 %v9043_v49  ;;  %8790 = vmatprep.subr.bf16.mxu0 %v8789_v42  ;;  %v9061_v49 = vpack.c.bf16 %v1404_v32, %v1396_v31  ;;  %v1403_v42 = vld [vmem:[#allocation10 + $0x1570] sm:$0xff]  ;;  %v1457_v31 = vld [vmem:[#allocation10 + $0x1720] sm:$0xff] }
 0x328   :  { %9046 = vmatprep.subr.bf16.mxu1 %v9045_v52  ;;  %v1420_v52 = vld [vmem:[#allocation10 + $0x15f8] sm:$0xff]  ;;  %v9063_v54 = vpack.c.bf16 %v1403_v42, %v1395_v36  ;;  %v1465_v32 = vld [vmem:[#allocation10 + $0x1760] sm:$0xff] }
 0x329   :  { %v1476_v36 = vld [vmem:[#allocation10 + $0x17b8] sm:$0xff]  ;;  %v8823_v42 = vpack.c.bf16 %v1465_v32, %v1457_v31  ;;  %v1538_v31 = vld [vmem:[#allocation10 + $0x19a8] sm:$0xff] }
 0x32a   :  { %8792 = vmatpush1.bf16.msra.mxu0 %v8791_v58  ;;  %v1411_v58 = vld [vmem:[#allocation10 + $0x15b0] sm:$0xff]  ;;  %v1546_v32 = vld [vmem:[#allocation10 + $0x19e8] sm:$0xff] }
 0x32b   :  { %9048 = vmatpush1.bf16.msra.mxu1 %v9047_v59  ;;  %8794 = vmatprep.subr.bf16.mxu0 %v8793_v61  ;;  %v9065_v59 = vpack.c.bf16 %v1420_v52, %v1412_v46  ;;  %v1419_v61 = vld [vmem:[#allocation10 + $0x15f0] sm:$0xff]  ;;  %v1473_v46 = vld [vmem:[#allocation10 + $0x17a0] sm:$0xff]  ;;  %v8841_v37 = vpack.c.bf16 %v1546_v32, %v1538_v31  ;;  %v1612_v31 = vld [vmem:[#allocation10 + $0x1bf8] sm:$0xff] }
 0x32c   :  { %9050 = vmatprep.subr.bf16.mxu1 %v9049_v2  ;;  %v1436_v2 = vld [vmem:[#allocation10 + $0x1678] sm:$0xff]  ;;  %v9067_v5 = vpack.c.bf16 %v1419_v61, %v1411_v58  ;;  %v1481_v52 = vld [vmem:[#allocation10 + $0x17e0] sm:$0xff] }
 0x32d   :  { %v1492_v58 = vld [vmem:[#allocation10 + $0x1838] sm:$0xff]  ;;  %v8827_v61 = vpack.c.bf16 %v1481_v52, %v1473_v46 }
 0x32e   :  { %8796 = vmatpush1.bf16.msra.mxu0 %v8795_v63  ;;  %v1427_v63 = vld [vmem:[#allocation10 + $0x1630] sm:$0xff]  ;;  %v1556_v46 = vld [vmem:[#allocation10 + $0x1a38] sm:$0xff] }
 0x32f   :  { %9052 = vmatpush1.bf16.msra.mxu1 %v9051_v13  ;;  %8798 = vmatprep.subr.bf16.mxu0 %v8797_v14  ;;  %v9069_v13 = vpack.c.bf16 %v1436_v2, %v1428_v41  ;;  %v1435_v14 = vld [vmem:[#allocation10 + $0x1670] sm:$0xff]  ;;  %v1489_v41 = vld [vmem:[#allocation10 + $0x1820] sm:$0xff]  ;;  %v1564_v52 = vld [vmem:[#allocation10 + $0x1a78] sm:$0xff] }
 0x330   :  { %9054 = vmatprep.subr.bf16.mxu1 %v9053_v6  ;;  %v1452_v6 = vld [vmem:[#allocation10 + $0x16f8] sm:$0xff]  ;;  %v9071_v19 = vpack.c.bf16 %v1435_v14, %v1427_v63  ;;  %v1497_v2 = vld [vmem:[#allocation10 + $0x1860] sm:$0xff] }
 0x331   :  { %v8831_v63 = vpack.c.bf16 %v1497_v2, %v1489_v41  ;;  %v1516_v14 = vld [vmem:[#allocation10 + $0x18f8] sm:$0xff] }
 0x332   :  { %8800 = vmatpush1.bf16.msra.mxu0 %v8799_v22  ;;  %v1443_v22 = vld [vmem:[#allocation10 + $0x16b0] sm:$0xff]  ;;  %v1572_v41 = vld [vmem:[#allocation10 + $0x1ab8] sm:$0xff] }
 0x333   :  { %9056 = vmatpush1.bf16.msra.mxu1 %v9055_v23  ;;  %8802 = vmatprep.subr.bf16.mxu0 %v8801_v0  ;;  %v9073_v23 = vpack.c.bf16 %v1452_v6, %v1444_v17  ;;  %v1451_v0 = vld [vmem:[#allocation10 + $0x16f0] sm:$0xff]  ;;  %v1513_v17 = vld [vmem:[#allocation10 + $0x18e0] sm:$0xff]  ;;  %v1580_v2 = vld [vmem:[#allocation10 + $0x1af8] sm:$0xff] }
 0x334   :  { %9058 = vmatprep.subr.bf16.mxu1 %v9057_v26  ;;  %v1468_v26 = vld [vmem:[#allocation10 + $0x1778] sm:$0xff]  ;;  %v9075_v29 = vpack.c.bf16 %v1451_v0, %v1443_v22  ;;  %v1507_v6 = vld [vmem:[#allocation10 + $0x18b0] sm:$0xff]  ;;  %v8835_v0 = vpack.c.bf16 %v1513_v17, %v1505_v16  ;;  %v1594_v16 = vld [vmem:[#allocation10 + $0x1b68] sm:$0xff] }
 0x335   :  { %v1524_v22 = vld [vmem:[#allocation10 + $0x1938] sm:$0xff] }
 0x336   :  { %8804 = vmatpush1.bf16.msra.mxu0 %v8803_v34  ;;  %v1459_v34 = vld [vmem:[#allocation10 + $0x1730] sm:$0xff]  ;;  %v1588_v17 = vld [vmem:[#allocation10 + $0x1b38] sm:$0xff] }
 0x337   :  { %9060 = vmatpush1.bf16.msra.mxu1 %v9059_v35  ;;  %8806 = vmatprep.subr.bf16.mxu0 %v8805_v10  ;;  %v9077_v35 = vpack.c.bf16 %v1468_v26, %v1460_v25  ;;  %v1467_v10 = vld [vmem:[#allocation10 + $0x1770] sm:$0xff]  ;;  %v1521_v25 = vld [vmem:[#allocation10 + $0x1920] sm:$0xff] }
 0x338   :  { %9062 = vmatprep.subr.bf16.mxu1 %v9061_v49  ;;  %v1484_v49 = vld [vmem:[#allocation10 + $0x17f8] sm:$0xff]  ;;  %v9079_v45 = vpack.c.bf16 %v1467_v10, %v1459_v34  ;;  %v1529_v26 = vld [vmem:[#allocation10 + $0x1960] sm:$0xff] }
 0x339   :  { %v1540_v34 = vld [vmem:[#allocation10 + $0x19b8] sm:$0xff] }
 0x33a   :  { %8808 = vmatpush1.bf16.msra.mxu0 %v8807_v53  ;;  %v1475_v53 = vld [vmem:[#allocation10 + $0x17b0] sm:$0xff] }
 0x33b   :  { %9064 = vmatpush1.bf16.msra.mxu1 %v9063_v54  ;;  %8810 = vmatprep.subr.bf16.mxu0 %v8809_v40  ;;  %v9081_v54 = vpack.c.bf16 %v1484_v49, %v1476_v36  ;;  %v1483_v40 = vld [vmem:[#allocation10 + $0x17f0] sm:$0xff]  ;;  %v1545_v36 = vld [vmem:[#allocation10 + $0x19e0] sm:$0xff] }
 0x33c   :  { %9066 = vmatprep.subr.bf16.mxu1 %v9065_v59  ;;  %v1500_v59 = vld [vmem:[#allocation10 + $0x1878] sm:$0xff]  ;;  %v9083_v62 = vpack.c.bf16 %v1483_v40, %v1475_v53  ;;  %v1539_v49 = vld [vmem:[#allocation10 + $0x19b0] sm:$0xff]  ;;  %v8843_v53 = vpack.c.bf16 %v1545_v36, %v1537_v38 }
 0x33d   :  { %v1611_v36 = vld [vmem:[#allocation10 + $0x1bf0] sm:$0xff] }
 0x33e   :  { %8812 = vmatpush1.bf16.msra.mxu0 %v8811_v3  ;;  %v9085_v3 = vpack.c.bf16 %v1500_v59, %v1492_v58  ;;  %v1555_v58 = vld [vmem:[#allocation10 + $0x1a30] sm:$0xff]  ;;  %v9101_v59 = vpack.c.bf16 %v1564_v52, %v1556_v46 }
 0x33f   :  { %9068 = vmatpush1.bf16.msra.mxu1 %v9067_v5  ;;  %8814 = vmatprep.subr.bf16.mxu0 %v8813_v7  ;;  %v1491_v5 = vld [vmem:[#allocation10 + $0x1830] sm:$0xff] }
 0x340   :  { %9070 = vmatprep.subr.bf16.mxu1 %v9069_v13  ;;  %v1499_v7 = vld [vmem:[#allocation10 + $0x1870] sm:$0xff]  ;;  %v1508_v13 = vld [vmem:[#allocation10 + $0x18b8] sm:$0xff] }
 0x341   :  { %v9087_v15 = vpack.c.bf16 %v1499_v7, %v1491_v5  ;;  %v9089_v21 = vpack.c.bf16 %v1516_v14, %v1508_v13  ;;  %v9105_v13 = vpack.c.bf16 %v1580_v2, %v1572_v41  ;;  %v1579_v14 = vld [vmem:[#allocation10 + $0x1af0] sm:$0xff] }
 0x342   :  { %8816 = vmatpush1.bf16.msra.mxu0 %v8815_v18  ;;  %v8833_v18 = vpack.c.bf16 %v1514_v11, %v1506_v8  ;;  %v1569_v8 = vld [vmem:[#allocation10 + $0x1aa0] sm:$0xff] }
 0x343   :  { %9072 = vmatpush1.bf16.msra.mxu1 %v9071_v19  ;;  %8818 = vmatprep.subr.bf16.mxu0 %v8817_v20  ;;  %v1515_v19 = vld [vmem:[#allocation10 + $0x18f0] sm:$0xff]  ;;  %v1522_v20 = vld [vmem:[#allocation10 + $0x1928] sm:$0xff]  ;;  %v1577_v11 = vld [vmem:[#allocation10 + $0x1ae0] sm:$0xff] }
 0x344   :  { %9074 = vmatprep.subr.bf16.mxu1 %v9073_v23  ;;  %v1532_v23 = vld [vmem:[#allocation10 + $0x1978] sm:$0xff]  ;;  %v9091_v24 = vpack.c.bf16 %v1515_v19, %v1507_v6  ;;  %v8837_v1 = vpack.c.bf16 %v1530_v47, %v1522_v20  ;;  %v1585_v47 = vld [vmem:[#allocation10 + $0x1b20] sm:$0xff] }
 0x345   :  { %v1596_v6 = vld [vmem:[#allocation10 + $0x1b78] sm:$0xff] }
 0x346   :  { %8820 = vmatpush1.bf16.msra.mxu0 %v8819_v28  ;;  %v1523_v28 = vld [vmem:[#allocation10 + $0x1930] sm:$0xff] }
 0x347   :  { %9076 = vmatpush1.bf16.msra.mxu1 %v9075_v29  ;;  %8822 = vmatprep.subr.bf16.mxu0 %v8821_v30  ;;  %v9093_v29 = vpack.c.bf16 %v1532_v23, %v1524_v22  ;;  %v1531_v30 = vld [vmem:[#allocation10 + $0x1970] sm:$0xff] }
 0x348   :  { %9078 = vmatprep.subr.bf16.mxu1 %v9077_v35  ;;  %v8839_v35 = vpack.c.bf16 %v1529_v26, %v1521_v25  ;;  %v9095_v10 = vpack.c.bf16 %v1531_v30, %v1523_v28  ;;  %v1587_v22 = vld [vmem:[#allocation10 + $0x1b30] sm:$0xff]  ;;  %v1602_v25 = vld [vmem:[#allocation10 + $0x1ba8] sm:$0xff]  ;;  %v1604_v30 = vld [vmem:[#allocation10 + $0x1bb8] sm:$0xff] }
 0x349   :  { %v1610_v26 = vld [vmem:[#allocation10 + $0x1be8] sm:$0xff]  ;;  %v9113_v38 = vpack.c.bf16 %v1612_v31, %v1604_v30 }
 0x34a   :  { %8824 = vmatpush1.bf16.msra.mxu0 %v8823_v42 }
 0x34b   :  { %9080 = vmatpush1.bf16.msra.mxu1 %v9079_v45  ;;  %8826 = vmatprep.subr.bf16.mxu0 %v8825_v33  ;;  %v1554_v45 = vld [vmem:[#allocation10 + $0x1a28] sm:$0xff] }
 0x34c   :  { %9082 = vmatprep.subr.bf16.mxu1 %v9081_v54  ;;  %v1562_v33 = vld [vmem:[#allocation10 + $0x1a68] sm:$0xff] }
 0x34d   :  { %v8845_v40 = vpack.c.bf16 %v1562_v33, %v1554_v45  ;;  %v1628_v45 = vld [vmem:[#allocation10 + $0x1c78] sm:$0xff] }
 0x34e   :  { %8828 = vmatpush1.bf16.msra.mxu0 %v8827_v61  ;;  %v1563_v61 = vld [vmem:[#allocation10 + $0x1a70] sm:$0xff] }
 0x34f   :  { %9084 = vmatpush1.bf16.msra.mxu1 %v9083_v62  ;;  %8830 = vmatprep.subr.bf16.mxu0 %v8829_v44  ;;  %v1570_v62 = vld [vmem:[#allocation10 + $0x1aa8] sm:$0xff]  ;;  %v9103_v5 = vpack.c.bf16 %v1563_v61, %v1555_v58  ;;  %v1636_v61 = vld [vmem:[#allocation10 + $0x1cb8] sm:$0xff] }
 0x350   :  { %9086 = vmatprep.subr.bf16.mxu1 %v9085_v3  ;;  %v1578_v44 = vld [vmem:[#allocation10 + $0x1ae8] sm:$0xff]  ;;  %v8847_v3 = vpack.c.bf16 %v1561_v57, %v1553_v55  ;;  %v1627_v57 = vld [vmem:[#allocation10 + $0x1c70] sm:$0xff] }
 0x351   :  { %2558 = vmatmul.mubr.f32.vlgmr.msra.gmra.mrb[6].mxu0 %v12034_v43  ;;  %v8849_v7 = vpack.c.bf16 %v1578_v44, %v1570_v62  ;;  %v1634_v58 = vld [vmem:[#allocation10 + $0x1ca8] sm:$0xff]  ;;  %v1644_v62 = vld [vmem:[#allocation10 + $0x1cf8] sm:$0xff] }
 0x352   :  { %2842 = vmatmul.mubr.f32.vlgmr.msra.gmra.mrb[6].mxu1 %v12034_v43  ;;  %8832 = vmatpush1.bf16.msra.mxu0 %v8831_v63  ;;  %v1548_v43 = vld [vmem:[#allocation10 + $0x19f8] sm:$0xff]  ;;  %v1571_v63 = vld [vmem:[#allocation10 + $0x1ab0] sm:$0xff] }
 0x353   :  { %2628 = vmatprep.mubr.f32.mxu0 %v12036_v39  ;;  %9088 = vmatpush1.bf16.msra.mxu1 %v9087_v15  ;;  %v9097_v42 = vpack.c.bf16 %v1548_v43, %v1540_v34  ;;  %v1586_v15 = vld [vmem:[#allocation10 + $0x1b28] sm:$0xff]  ;;  %v9107_v19 = vpack.c.bf16 %v1579_v14, %v1571_v63  ;;  %v8857_v43 = vpack.c.bf16 %v1610_v26, %v1602_v25  ;;  %v1652_v14 = vld [vmem:[#allocation10 + $0x1d38] sm:$0xff] }
 0x354   :  { %2912 = vmatprep.mubr.f32.mxu1 %v12036_v39  ;;  %8834 = vmatprep.subr.bf16.mxu0 %v8833_v18  ;;  %v1547_v39 = vld [vmem:[#allocation10 + $0x19f0] sm:$0xff]  ;;  %v8851_v18 = vpack.c.bf16 %v1577_v11, %v1569_v8  ;;  %v8853_v20 = vpack.c.bf16 %v1594_v16, %v1586_v15  ;;  %v9121_v8 = vpack.c.bf16 %v1644_v62, %v1636_v61  ;;  %v1650_v63 = vld [vmem:[#allocation10 + $0x1d28] sm:$0xff]  ;;  %v1660_v15 = vld [vmem:[#allocation10 + $0x1d78] sm:$0xff] }
 0x355   :  { %9090 = vmatprep.subr.bf16.mxu1 %v9089_v21  ;;  %v9099_v54 = vpack.c.bf16 %v1547_v39, %v1539_v49  ;;  %v1593_v21 = vld [vmem:[#allocation10 + $0x1b60] sm:$0xff]  ;;  %v1618_v49 = vld [vmem:[#allocation10 + $0x1c28] sm:$0xff]  ;;  %v1620_v39 = vld [vmem:[#allocation10 + $0x1c38] sm:$0xff] }
 0x356   :  { %8836 = vmatpush1.bf16.msra.mxu0 %v8835_v0  ;;  %v8855_v32 = vpack.c.bf16 %v1593_v21, %v1585_v47  ;;  %v9117_v55 = vpack.c.bf16 %v1628_v45, %v1620_v39  ;;  %v1643_v11 = vld [vmem:[#allocation10 + $0x1cf0] sm:$0xff]  ;;  %v9125_v47 = vpack.c.bf16 %v1660_v15, %v1652_v14  ;;  %v1676_v25 = vld [vmem:[#allocation10 + $0x1df8] sm:$0xff] }
 0x357   :  { %9092 = vmatpush1.bf16.msra.mxu1 %v9091_v24  ;;  %8838 = vmatprep.subr.bf16.mxu0 %v8837_v1  ;;  %v9109_v24 = vpack.c.bf16 %v1596_v6, %v1588_v17  ;;  %v1595_v1 = vld [vmem:[#allocation10 + $0x1b70] sm:$0xff] }
 0x358   :  { %9094 = vmatprep.subr.bf16.mxu1 %v9093_v29  ;;  %v9111_v34 = vpack.c.bf16 %v1595_v1, %v1587_v22  ;;  %v1659_v21 = vld [vmem:[#allocation10 + $0x1d70] sm:$0xff]  ;;  %v1666_v22 = vld [vmem:[#allocation10 + $0x1da8] sm:$0xff]  ;;  %v1668_v1 = vld [vmem:[#allocation10 + $0x1db8] sm:$0xff] }
 0x35a   :  { %8840 = vmatpush1.bf16.msra.mxu0 %v8839_v35  ;;  %v1601_v35 = vld [vmem:[#allocation10 + $0x1ba0] sm:$0xff] }
 0x35b   :  { %9096 = vmatpush1.bf16.msra.mxu1 %v9095_v10  ;;  %8842 = vmatprep.subr.bf16.mxu0 %v8841_v37  ;;  %v1609_v10 = vld [vmem:[#allocation10 + $0x1be0] sm:$0xff]  ;;  %v1603_v37 = vld [vmem:[#allocation10 + $0x1bb0] sm:$0xff] }
 0x35c   :  { %9098 = vmatprep.subr.bf16.mxu1 %v9097_v42  ;;  %v1626_v42 = vld [vmem:[#allocation10 + $0x1c68] sm:$0xff]  ;;  %v8859_v33 = vpack.c.bf16 %v1609_v10, %v1601_v35  ;;  %v9115_v46 = vpack.c.bf16 %v1611_v36, %v1603_v37  ;;  %v9129_v35 = vpack.c.bf16 %v1676_v25, %v1668_v1  ;;  %v1675_v10 = vld [vmem:[#allocation10 + $0x1df0] sm:$0xff]  ;;  %v1684_v36 = vld [vmem:[#allocation10 + $0x1e38] sm:$0xff] }
 0x35d   :  { %v8861_v52 = vpack.c.bf16 %v1626_v42, %v1618_v49  ;;  %v1682_v37 = vld [vmem:[#allocation10 + $0x1e28] sm:$0xff]  ;;  %v1692_v49 = vld [vmem:[#allocation10 + $0x1e78] sm:$0xff] }
 0x35e   :  { %8844 = vmatpush1.bf16.msra.mxu0 %v8843_v53  ;;  %v1617_v53 = vld [vmem:[#allocation10 + $0x1c20] sm:$0xff] }
 0x35f   :  { %9100 = vmatpush1.bf16.msra.mxu1 %v9099_v54  ;;  %8846 = vmatprep.subr.bf16.mxu0 %v8845_v40  ;;  %v1625_v54 = vld [vmem:[#allocation10 + $0x1c60] sm:$0xff]  ;;  %v1619_v40 = vld [vmem:[#allocation10 + $0x1c30] sm:$0xff] }
 0x360   :  { %9102 = vmatprep.subr.bf16.mxu1 %v9101_v59  ;;  %v1642_v59 = vld [vmem:[#allocation10 + $0x1ce8] sm:$0xff]  ;;  %v8863_v44 = vpack.c.bf16 %v1625_v54, %v1617_v53  ;;  %v9119_v41 = vpack.c.bf16 %v1627_v57, %v1619_v40  ;;  %v9133_v53 = vpack.c.bf16 %v1692_v49, %v1684_v36  ;;  %v1691_v54 = vld [vmem:[#allocation10 + $0x1e70] sm:$0xff]  ;;  %v1700_v57 = vld [vmem:[#allocation10 + $0x1eb8] sm:$0xff] }
 0x361   :  { %v8865_v2 = vpack.c.bf16 %v1642_v59, %v1634_v58  ;;  %v1698_v40 = vld [vmem:[#allocation10 + $0x1ea8] sm:$0xff]  ;;  %v1708_v58 = vld [vmem:[#allocation10 + $0x1ef8] sm:$0xff]  ;;  %v2938_v36 = vld [vmem:[#allocation13 + $0x58] sm:$0xff] }
 0x362   :  { %8848 = vmatpush1.bf16.msra.mxu0 %v8847_v3  ;;  %v1633_v3 = vld [vmem:[#allocation10 + $0x1ca0] sm:$0xff] }
 0x363   :  { %9104 = vmatpush1.bf16.msra.mxu1 %v9103_v5  ;;  %8850 = vmatprep.subr.bf16.mxu0 %v8849_v7  ;;  %v1641_v5 = vld [vmem:[#allocation10 + $0x1ce0] sm:$0xff]  ;;  %v1635_v7 = vld [vmem:[#allocation10 + $0x1cb0] sm:$0xff] }
 0x364   :  { %v12066_v23 = vpop.f32.mrb[4].mxu0  ;;  %v12068_v0 = vpop.f32.mrb[4].mxu1  ;;  %9106 = vmatprep.subr.bf16.mxu1 %v9105_v13  ;;  %v1658_v13 = vld [vmem:[#allocation10 + $0x1d68] sm:$0xff]  ;;  %v8867_v16 = vpack.c.bf16 %v1641_v5, %v1633_v3  ;;  %v9123_v17 = vpack.c.bf16 %v1643_v11, %v1635_v7  ;;  %v9137_v3 = vpack.c.bf16 %v1708_v58, %v1700_v57  ;;  %v1707_v5 = vld [vmem:[#allocation10 + $0x1ef0] sm:$0xff]  ;;  %v1716_v11 = vld [vmem:[#allocation10 + $0x1f38] sm:$0xff] }
 0x365   :  { %v12070_v28 = vpop.f32.mrb[5].mxu0  ;;  %v12072_v29 = vpop.f32.mrb[5].mxu1  ;;  %v8869_v6 = vpack.c.bf16 %v1658_v13, %v1650_v63  ;;  %v1714_v7 = vld [vmem:[#allocation10 + $0x1f28] sm:$0xff]  ;;  %v1724_v63 = vld [vmem:[#allocation10 + $0x1f78] sm:$0xff]  ;;  %v2946_v58 = vld [vmem:[#allocation13 + $0x98] sm:$0xff] }
 0x366   :  { %8852 = vmatpush1.bf16.msra.mxu0 %v8851_v18  ;;  %v1649_v18 = vld [vmem:[#allocation10 + $0x1d20] sm:$0xff] }
 0x367   :  { %9108 = vmatpush1.bf16.msra.mxu1 %v9107_v19  ;;  %8854 = vmatprep.subr.bf16.mxu0 %v8853_v20  ;;  %v1657_v19 = vld [vmem:[#allocation10 + $0x1d60] sm:$0xff]  ;;  %v1651_v20 = vld [vmem:[#allocation10 + $0x1d30] sm:$0xff] }
 0x368   :  { %9110 = vmatprep.subr.bf16.mxu1 %v9109_v24  ;;  %v1674_v24 = vld [vmem:[#allocation10 + $0x1de8] sm:$0xff]  ;;  %v8871_v26 = vpack.c.bf16 %v1657_v19, %v1649_v18  ;;  %v9127_v30 = vpack.c.bf16 %v1659_v21, %v1651_v20  ;;  %v9141_v18 = vpack.c.bf16 %v1724_v63, %v1716_v11  ;;  %v1723_v19 = vld [vmem:[#allocation10 + $0x1f70] sm:$0xff]  ;;  %v1732_v21 = vld [vmem:[#allocation10 + $0x1fb8] sm:$0xff] }
 0x369   :  { %v8873_v31 = vpack.c.bf16 %v1674_v24, %v1666_v22  ;;  %v1730_v20 = vld [vmem:[#allocation10 + $0x1fa8] sm:$0xff]  ;;  %v1740_v22 = vld [vmem:[#allocation10 + $0x1ff8] sm:$0xff]  ;;  %v12074_v24 = vld [vmem:[#allocation11] sm:$0xff] }
 0x36a   :  { %8856 = vmatpush1.bf16.msra.mxu0 %v8855_v32  ;;  %v1665_v32 = vld [vmem:[#allocation10 + $0x1da0] sm:$0xff] }
 0x36b   :  { %9112 = vmatpush1.bf16.msra.mxu1 %v9111_v34  ;;  %8858 = vmatprep.subr.bf16.mxu0 %v8857_v43  ;;  %v1673_v34 = vld [vmem:[#allocation10 + $0x1de0] sm:$0xff]  ;;  %v1667_v43 = vld [vmem:[#allocation10 + $0x1db0] sm:$0xff] }
 0x36c   :  { %9114 = vmatprep.subr.bf16.mxu1 %v9113_v38  ;;  %v1690_v38 = vld [vmem:[#allocation10 + $0x1e68] sm:$0xff]  ;;  %v8875_v42 = vpack.c.bf16 %v1673_v34, %v1665_v32  ;;  %v9131_v39 = vpack.c.bf16 %v1675_v10, %v1667_v43  ;;  %v1731_v32 = vld [vmem:[#allocation10 + $0x1fb0] sm:$0xff]  ;;  %v9145_v34 = vpack.c.bf16 %v1740_v22, %v1732_v21  ;;  %v2962_v11 = vld [vmem:[#allocation13 + $0x118] sm:$0xff] }
 0x36d   :  { %v8877_v45 = vpack.c.bf16 %v1690_v38, %v1682_v37  ;;  %v1739_v43 = vld [vmem:[#allocation10 + $0x1ff0] sm:$0xff]  ;;  %v1750_v37 = vrot.slane %v12074_v24, %v11967_v50  ;;  %v2930_v38 = vld [vmem:[#allocation13 + $0x18] sm:$0xff] }
 0x36e   :  { %8860 = vmatpush1.bf16.msra.mxu0 %v8859_v33  ;;  %v1681_v33 = vld [vmem:[#allocation10 + $0x1e20] sm:$0xff]  ;;  %v2936_v10 = vld [vmem:[#allocation13 + $0x48] sm:$0xff] }
 0x36f   :  { %9116 = vmatpush1.bf16.msra.mxu1 %v9115_v46  ;;  %8862 = vmatprep.subr.bf16.mxu0 %v8861_v52  ;;  %v1689_v46 = vld [vmem:[#allocation10 + $0x1e60] sm:$0xff]  ;;  %v1683_v52 = vld [vmem:[#allocation10 + $0x1e30] sm:$0xff] }
 0x370   :  { %9118 = vmatprep.subr.bf16.mxu1 %v9117_v55  ;;  %v1706_v55 = vld [vmem:[#allocation10 + $0x1ee8] sm:$0xff]  ;;  %v8879_v59 = vpack.c.bf16 %v1689_v46, %v1681_v33  ;;  %v9135_v61 = vpack.c.bf16 %v1691_v54, %v1683_v52  ;;  %v9405_v46 = vpack.c.bf16 %v2938_v36, %v2930_v38  ;;  %v2929_v52 = vld [vmem:[#allocation13 + $0x10] sm:$0xff]  ;;  %v11326_v54 = vadd.f32 %v12070_v28, %v1750_v37  ;;  %v2970_v63 = vld [vmem:[#allocation13 + $0x158] sm:$0xff] }
 0x371   :  { %v8881_v62 = vpack.c.bf16 %v1706_v55, %v1698_v40  ;;  %v2935_v33 = vld [vmem:[#allocation13 + $0x40] sm:$0xff]  ;;  %v2944_v40 = vld [vmem:[#allocation13 + $0x88] sm:$0xff]  ;;  %v2978_v21 = vld [vmem:[#allocation13 + $0x198] sm:$0xff] }
 0x372   :  { %8864 = vmatpush1.bf16.msra.mxu0 %v8863_v44  ;;  %v1697_v44 = vld [vmem:[#allocation10 + $0x1ea0] sm:$0xff]  ;;  %v2952_v55 = vld [vmem:[#allocation13 + $0xc8] sm:$0xff] }
 0x373   :  { %9120 = vmatpush1.bf16.msra.mxu1 %v9119_v41  ;;  %8866 = vmatprep.subr.bf16.mxu0 %v8865_v2  ;;  %v1705_v41 = vld [vmem:[#allocation10 + $0x1ee0] sm:$0xff]  ;;  %v1699_v2 = vld [vmem:[#allocation10 + $0x1eb0] sm:$0xff] }
 0x374   :  { %9122 = vmatprep.subr.bf16.mxu1 %v9121_v8  ;;  %v1722_v8 = vld [vmem:[#allocation10 + $0x1f68] sm:$0xff]  ;;  %v8883_v13 = vpack.c.bf16 %v1705_v41, %v1697_v44  ;;  %v9139_v14 = vpack.c.bf16 %v1707_v5, %v1699_v2  ;;  %v2945_v41 = vld [vmem:[#allocation13 + $0x90] sm:$0xff]  ;;  %v9153_v2 = vpack.c.bf16 %v2952_v55, %v2944_v40  ;;  %v2960_v5 = vld [vmem:[#allocation13 + $0x108] sm:$0xff] }
 0x375   :  { %v8885_v15 = vpack.c.bf16 %v1722_v8, %v1714_v7  ;;  %v2951_v44 = vld [vmem:[#allocation13 + $0xc0] sm:$0xff]  ;;  %v2968_v7 = vld [vmem:[#allocation13 + $0x148] sm:$0xff]  ;;  %v12079_v8 = vmax.f32 %v11326_v54, 0.0  ;;  %v3002_v37 = vld [vmem:[#allocation13 + $0x258] sm:$0xff] }
 0x376   :  { %8868 = vmatpush1.bf16.msra.mxu0 %v8867_v16  ;;  %v1713_v16 = vld [vmem:[#allocation10 + $0x1f20] sm:$0xff] }
 0x377   :  { %9124 = vmatpush1.bf16.msra.mxu1 %v9123_v17  ;;  %8870 = vmatprep.subr.bf16.mxu0 %v8869_v6  ;;  %v1721_v17 = vld [vmem:[#allocation10 + $0x1f60] sm:$0xff]  ;;  %v1715_v6 = vld [vmem:[#allocation10 + $0x1f30] sm:$0xff] }
 0x378   :  { %9126 = vmatprep.subr.bf16.mxu1 %v9125_v47  ;;  %v1738_v47 = vld [vmem:[#allocation10 + $0x1fe8] sm:$0xff]  ;;  %v8887_v1 = vpack.c.bf16 %v1721_v17, %v1713_v16  ;;  %v9143_v25 = vpack.c.bf16 %v1723_v19, %v1715_v6  ;;  %v2961_v6 = vld [vmem:[#allocation13 + $0x110] sm:$0xff]  ;;  %v3010_v54 = vld [vmem:[#allocation13 + $0x298] sm:$0xff] }
 0x379   :  { %v2959_v16 = vld [vmem:[#allocation13 + $0x100] sm:$0xff]  ;;  %v2969_v19 = vld [vmem:[#allocation13 + $0x150] sm:$0xff]  ;;  %v3018_v40 = vld [vmem:[#allocation13 + $0x2d8] sm:$0xff] }
 0x37a   :  { %8872 = vmatpush1.bf16.msra.mxu0 %v8871_v26  ;;  %v8889_v26 = vpack.c.bf16 %v1738_v47, %v1730_v20  ;;  %v2967_v17 = vld [vmem:[#allocation13 + $0x140] sm:$0xff]  ;;  %v2976_v20 = vld [vmem:[#allocation13 + $0x188] sm:$0xff] }
 0x37b   :  { %9128 = vmatpush1.bf16.msra.mxu1 %v9127_v30  ;;  %8874 = vmatprep.subr.bf16.mxu0 %v8873_v31  ;;  %v1729_v30 = vld [vmem:[#allocation10 + $0x1fa0] sm:$0xff]  ;;  %v2984_v47 = vld [vmem:[#allocation13 + $0x1c8] sm:$0xff]  ;;  %v9159_v22 = vpack.c.bf16 %v2967_v17, %v2959_v16  ;;  %v3033_v17 = vld [vmem:[#allocation13 + $0x350] sm:$0xff] }
 0x37c   :  { %9130 = vmatprep.subr.bf16.mxu1 %v9129_v35  ;;  %v1737_v31 = vld [vmem:[#allocation10 + $0x1fe0] sm:$0xff]  ;;  %v2928_v35 = vld [vmem:[#allocation13 + $0x8] sm:$0xff] }
 0x37d   :  { %v8891_v49 = vpack.c.bf16 %v1737_v31, %v1729_v30  ;;  %v2983_v30 = vld [vmem:[#allocation13 + $0x1c0] sm:$0xff]  ;;  %v2977_v31 = vld [vmem:[#allocation13 + $0x190] sm:$0xff] }
 0x37e   :  { %8876 = vmatpush1.bf16.msra.mxu0 %v8875_v42  ;;  %v9147_v42 = vpack.c.bf16 %v1739_v43, %v1731_v32  ;;  %v2992_v43 = vld [vmem:[#allocation13 + $0x208] sm:$0xff] }
 0x37f   :  { %9132 = vmatpush1.bf16.msra.mxu1 %v9131_v39  ;;  %8878 = vmatprep.subr.bf16.mxu0 %v8877_v45  ;;  %v9149_v39 = vpack.c.bf16 %v2936_v10, %v2928_v35  ;;  %v2927_v45 = vld [vmem:[#allocation13] sm:$0xff]  ;;  %v3000_v35 = vld [vmem:[#allocation13 + $0x248] sm:$0xff]  ;;  %v2994_v10 = vld [vmem:[#allocation13 + $0x218] sm:$0xff] }
 0x380   :  { %9134 = vmatprep.subr.bf16.mxu1 %v9133_v53  ;;  %v2937_v53 = vld [vmem:[#allocation13 + $0x50] sm:$0xff]  ;;  %v9151_v57 = vpack.c.bf16 %v2935_v33, %v2927_v45  ;;  %v9421_v33 = vpack.c.bf16 %v3002_v37, %v2994_v10 }
 0x381   :  { %v2993_v45 = vld [vmem:[#allocation13 + $0x210] sm:$0xff] }
 0x382   :  { %8880 = vmatpush1.bf16.msra.mxu0 %v8879_v59  ;;  %v2954_v59 = vld [vmem:[#allocation13 + $0xd8] sm:$0xff] }
 0x383   :  { %9136 = vmatpush1.bf16.msra.mxu1 %v9135_v61  ;;  %8882 = vmatprep.subr.bf16.mxu0 %v8881_v62  ;;  %v9407_v61 = vpack.c.bf16 %v2937_v53, %v2929_v52  ;;  %v2943_v62 = vld [vmem:[#allocation13 + $0x80] sm:$0xff]  ;;  %v9409_v28 = vpack.c.bf16 %v2954_v59, %v2946_v58  ;;  %v3008_v52 = vld [vmem:[#allocation13 + $0x288] sm:$0xff] }
 0x384   :  { %9138 = vmatprep.subr.bf16.mxu1 %v9137_v3  ;;  %v2953_v3 = vld [vmem:[#allocation13 + $0xd0] sm:$0xff]  ;;  %v3016_v53 = vld [vmem:[#allocation13 + $0x2c8] sm:$0xff]  ;;  %v3007_v59 = vld [vmem:[#allocation13 + $0x280] sm:$0xff] }
 0x385   :  { %v9169_v58 = vpack.c.bf16 %v3016_v53, %v3008_v52  ;;  %v3082_v52 = vld [vmem:[#allocation13 + $0x4d8] sm:$0xff] }
 0x386   :  { %8884 = vmatpush1.bf16.msra.mxu0 %v8883_v13  ;;  %v9155_v13 = vpack.c.bf16 %v2951_v44, %v2943_v62  ;;  %v3009_v62 = vld [vmem:[#allocation13 + $0x290] sm:$0xff]  ;;  %v9425_v44 = vpack.c.bf16 %v3018_v40, %v3010_v54 }
 0x387   :  { %9140 = vmatpush1.bf16.msra.mxu1 %v9139_v14  ;;  %8886 = vmatprep.subr.bf16.mxu0 %v8885_v15  ;;  %v9411_v14 = vpack.c.bf16 %v2953_v3, %v2945_v41  ;;  %v9157_v15 = vpack.c.bf16 %v2968_v7, %v2960_v5  ;;  %v3017_v41 = vld [vmem:[#allocation13 + $0x2d0] sm:$0xff]  ;;  %v3032_v3 = vld [vmem:[#allocation13 + $0x348] sm:$0xff]  ;;  %v3026_v5 = vld [vmem:[#allocation13 + $0x318] sm:$0xff] }
 0x388   :  { %9142 = vmatprep.subr.bf16.mxu1 %v9141_v18  ;;  %v9413_v18 = vpack.c.bf16 %v2970_v63, %v2962_v11  ;;  %v3034_v7 = vld [vmem:[#allocation13 + $0x358] sm:$0xff]  ;;  %v9427_v11 = vpack.c.bf16 %v3017_v41, %v3009_v62  ;;  %v3088_v62 = vld [vmem:[#allocation13 + $0x508] sm:$0xff] }
 0x389   :  { %v9429_v16 = vpack.c.bf16 %v3034_v7, %v3026_v5  ;;  %v3090_v41 = vld [vmem:[#allocation13 + $0x518] sm:$0xff] }
 0x38a   :  { %8888 = vmatpush1.bf16.msra.mxu0 %v8887_v1  ;;  %v9415_v1 = vpack.c.bf16 %v2969_v19, %v2961_v6  ;;  %v3040_v6 = vld [vmem:[#allocation13 + $0x388] sm:$0xff]  ;;  %v3042_v19 = vld [vmem:[#allocation13 + $0x398] sm:$0xff] }
 0x38b   :  { %9144 = vmatpush1.bf16.msra.mxu1 %v9143_v25  ;;  %8890 = vmatprep.subr.bf16.mxu0 %v8889_v26  ;;  %v9161_v25 = vpack.c.bf16 %v2984_v47, %v2976_v20  ;;  %v2975_v26 = vld [vmem:[#allocation13 + $0x180] sm:$0xff]  ;;  %v3050_v20 = vld [vmem:[#allocation13 + $0x3d8] sm:$0xff] }
 0x38c   :  { %9146 = vmatprep.subr.bf16.mxu1 %v9145_v34  ;;  %v2985_v34 = vld [vmem:[#allocation13 + $0x1d0] sm:$0xff]  ;;  %v9163_v38 = vpack.c.bf16 %v2983_v30, %v2975_v26  ;;  %v9433_v26 = vpack.c.bf16 %v3050_v20, %v3042_v19 }
 0x38d   :  { %v9419_v36 = vpack.c.bf16 %v2985_v34, %v2977_v31  ;;  %v3049_v30 = vld [vmem:[#allocation13 + $0x3d0] sm:$0xff]  ;;  %v3056_v31 = vld [vmem:[#allocation13 + $0x408] sm:$0xff]  ;;  %v3058_v34 = vld [vmem:[#allocation13 + $0x418] sm:$0xff] }
 0x38e   :  { %8892 = vmatpush1.bf16.msra.mxu0 %v8891_v49  ;;  %v9165_v49 = vpack.c.bf16 %v3000_v35, %v2992_v43  ;;  %v3066_v43 = vld [vmem:[#allocation13 + $0x458] sm:$0xff] }
 0x38f   :  { %9148 = vmatpush1.bf16.msra.mxu1 %v9147_v42  ;;  %9150 = vmatprep.subr.bf16.mxu0 %v9149_v39  ;;  %v2991_v42 = vld [vmem:[#allocation13 + $0x200] sm:$0xff] }
 0x390   :  { %9406 = vmatprep.subr.bf16.mxu1 %v9405_v46  ;;  %v2999_v39 = vld [vmem:[#allocation13 + $0x240] sm:$0xff]  ;;  %v3001_v46 = vld [vmem:[#allocation13 + $0x250] sm:$0xff] }
 0x391   :  { %2629 = vmatmul.mubr.f32.vlgmr.msra.gmra.mrb[6].mxu0 %v12048_v51  ;;  %v9167_v55 = vpack.c.bf16 %v2999_v39, %v2991_v42  ;;  %v9437_v42 = vpack.c.bf16 %v3066_v43, %v3058_v34  ;;  %v3065_v39 = vld [vmem:[#allocation13 + $0x450] sm:$0xff] }
 0x392   :  { %2913 = vmatmul.mubr.f32.vlgmr.msra.gmra.mrb[6].mxu1 %v12048_v51  ;;  %9152 = vmatpush1.bf16.msra.mxu0 %v9151_v57  ;;  %v2986_v51 = vld [vmem:[#allocation13 + $0x1d8] sm:$0xff]  ;;  %v9423_v57 = vpack.c.bf16 %v3001_v46, %v2993_v45  ;;  %v3072_v45 = vld [vmem:[#allocation13 + $0x488] sm:$0xff] }
 0x393   :  { %4057 = vmatprep.mubr.f32.mxu0 %v12079_v8  ;;  %9408 = vmatpush1.bf16.msra.mxu1 %v9407_v61  ;;  %v9417_v32 = vpack.c.bf16 %v2986_v51, %v2978_v21  ;;  %v3015_v61 = vld [vmem:[#allocation13 + $0x2c0] sm:$0xff]  ;;  %v3074_v46 = vld [vmem:[#allocation13 + $0x498] sm:$0xff] }
 0x394   :  { %4341 = vmatprep.mubr.f32.mxu1 %v12079_v8  ;;  %9154 = vmatprep.subr.bf16.mxu0 %v9153_v2  ;;  %v3024_v2 = vld [vmem:[#allocation13 + $0x308] sm:$0xff] }
 0x395   :  { %9410 = vmatprep.subr.bf16.mxu1 %v9409_v28  ;;  %v9171_v28 = vpack.c.bf16 %v3015_v61, %v3007_v59  ;;  %v9173_v63 = vpack.c.bf16 %v3032_v3, %v3024_v2  ;;  %v9441_v59 = vpack.c.bf16 %v3082_v52, %v3074_v46  ;;  %v3081_v61 = vld [vmem:[#allocation13 + $0x4d0] sm:$0xff]  ;;  %v3098_v2 = vld [vmem:[#allocation13 + $0x558] sm:$0xff] }
 0x396   :  { %9156 = vmatpush1.bf16.msra.mxu0 %v9155_v13  ;;  %v3023_v13 = vld [vmem:[#allocation13 + $0x300] sm:$0xff] }
 0x397   :  { %9412 = vmatpush1.bf16.msra.mxu1 %v9411_v14  ;;  %9158 = vmatprep.subr.bf16.mxu0 %v9157_v15  ;;  %v3031_v14 = vld [vmem:[#allocation13 + $0x340] sm:$0xff]  ;;  %v3025_v15 = vld [vmem:[#allocation13 + $0x310] sm:$0xff] }
 0x398   :  { %9414 = vmatprep.subr.bf16.mxu1 %v9413_v18  ;;  %v3048_v18 = vld [vmem:[#allocation13 + $0x3c8] sm:$0xff]  ;;  %v9175_v47 = vpack.c.bf16 %v3031_v14, %v3023_v13  ;;  %v9431_v21 = vpack.c.bf16 %v3033_v17, %v3025_v15  ;;  %v9445_v13 = vpack.c.bf16 %v3098_v2, %v3090_v41  ;;  %v3097_v14 = vld [vmem:[#allocation13 + $0x550] sm:$0xff]  ;;  %v3106_v17 = vld [vmem:[#allocation13 + $0x598] sm:$0xff] }
 0x399   :  { %v9177_v51 = vpack.c.bf16 %v3048_v18, %v3040_v6  ;;  %v3104_v15 = vld [vmem:[#allocation13 + $0x588] sm:$0xff]  ;;  %v3114_v6 = vld [vmem:[#allocation13 + $0x5d8] sm:$0xff] }
 0x39a   :  { %9160 = vmatpush1.bf16.msra.mxu0 %v9159_v22  ;;  %v3039_v22 = vld [vmem:[#allocation13 + $0x380] sm:$0xff] }
 0x39b   :  { %9416 = vmatpush1.bf16.msra.mxu1 %v9415_v1  ;;  %9162 = vmatprep.subr.bf16.mxu0 %v9161_v25  ;;  %v3047_v1 = vld [vmem:[#allocation13 + $0x3c0] sm:$0xff]  ;;  %v3041_v25 = vld [vmem:[#allocation13 + $0x390] sm:$0xff] }
 0x39c   :  { %9418 = vmatprep.subr.bf16.mxu1 %v9417_v32  ;;  %v3064_v32 = vld [vmem:[#allocation13 + $0x448] sm:$0xff]  ;;  %v9179_v35 = vpack.c.bf16 %v3047_v1, %v3039_v22  ;;  %v9435_v10 = vpack.c.bf16 %v3049_v30, %v3041_v25  ;;  %v9449_v22 = vpack.c.bf16 %v3114_v6, %v3106_v17  ;;  %v3113_v1 = vld [vmem:[#allocation13 + $0x5d0] sm:$0xff]  ;;  %v3122_v30 = vld [vmem:[#allocation13 + $0x618] sm:$0xff]  ;;  %v1746_v17 = vrot.slane %v12074_v24, %v11962_v48 }
 0x39d   :  { %v9181_v37 = vpack.c.bf16 %v3064_v32, %v3056_v31  ;;  %v3120_v25 = vld [vmem:[#allocation13 + $0x608] sm:$0xff]  ;;  %v3130_v31 = vld [vmem:[#allocation13 + $0x658] sm:$0xff] }
 0x39e   :  { %9164 = vmatpush1.bf16.msra.mxu0 %v9163_v38  ;;  %v3055_v38 = vld [vmem:[#allocation13 + $0x400] sm:$0xff] }
 0x39f   :  { %9420 = vmatpush1.bf16.msra.mxu1 %v9419_v36  ;;  %9166 = vmatprep.subr.bf16.mxu0 %v9165_v49  ;;  %v3063_v36 = vld [vmem:[#allocation13 + $0x440] sm:$0xff]  ;;  %v3057_v49 = vld [vmem:[#allocation13 + $0x410] sm:$0xff] }
 0x3a0   :  { %9422 = vmatprep.subr.bf16.mxu1 %v9421_v33  ;;  %v3080_v33 = vld [vmem:[#allocation13 + $0x4c8] sm:$0xff]  ;;  %v9183_v53 = vpack.c.bf16 %v3063_v36, %v3055_v38  ;;  %v9439_v54 = vpack.c.bf16 %v3065_v39, %v3057_v49  ;;  %v9453_v38 = vpack.c.bf16 %v3130_v31, %v3122_v30  ;;  %v3129_v36 = vld [vmem:[#allocation13 + $0x650] sm:$0xff]  ;;  %v3138_v39 = vld [vmem:[#allocation13 + $0x698] sm:$0xff] }
 0x3a1   :  { %v9185_v40 = vpack.c.bf16 %v3080_v33, %v3072_v45  ;;  %v3136_v49 = vld [vmem:[#allocation13 + $0x688] sm:$0xff]  ;;  %v3146_v45 = vld [vmem:[#allocation13 + $0x6d8] sm:$0xff] }
 0x3a2   :  { %9168 = vmatpush1.bf16.msra.mxu0 %v9167_v55  ;;  %v3071_v55 = vld [vmem:[#allocation13 + $0x480] sm:$0xff]  ;;  %v3194_v30 = vld [vmem:[#allocation13 + $0x858] sm:$0xff] }
 0x3a3   :  { %9424 = vmatpush1.bf16.msra.mxu1 %v9423_v57  ;;  %9170 = vmatprep.subr.bf16.mxu0 %v9169_v58  ;;  %v3079_v57 = vld [vmem:[#allocation13 + $0x4c0] sm:$0xff]  ;;  %v3073_v58 = vld [vmem:[#allocation13 + $0x490] sm:$0xff] }
 0x3a4   :  { %9426 = vmatprep.subr.bf16.mxu1 %v9425_v44  ;;  %v3096_v44 = vld [vmem:[#allocation13 + $0x548] sm:$0xff]  ;;  %v9187_v3 = vpack.c.bf16 %v3079_v57, %v3071_v55  ;;  %v9443_v5 = vpack.c.bf16 %v3081_v61, %v3073_v58  ;;  %v9457_v55 = vpack.c.bf16 %v3146_v45, %v3138_v39  ;;  %v3145_v57 = vld [vmem:[#allocation13 + $0x6d0] sm:$0xff]  ;;  %v3154_v61 = vld [vmem:[#allocation13 + $0x718] sm:$0xff] }
 0x3a5   :  { %v9189_v7 = vpack.c.bf16 %v3096_v44, %v3088_v62  ;;  %v3152_v58 = vld [vmem:[#allocation13 + $0x708] sm:$0xff]  ;;  %v3162_v62 = vld [vmem:[#allocation13 + $0x758] sm:$0xff] }
 0x3a6   :  { %9172 = vmatpush1.bf16.msra.mxu0 %v9171_v28  ;;  %v3087_v28 = vld [vmem:[#allocation13 + $0x500] sm:$0xff]  ;;  %v3202_v45 = vld [vmem:[#allocation13 + $0x898] sm:$0xff] }
 0x3a7   :  { %9428 = vmatpush1.bf16.msra.mxu1 %v9427_v11  ;;  %9174 = vmatprep.subr.bf16.mxu0 %v9173_v63  ;;  %v3095_v11 = vld [vmem:[#allocation13 + $0x540] sm:$0xff]  ;;  %v3089_v63 = vld [vmem:[#allocation13 + $0x510] sm:$0xff] }
 0x3a8   :  { %9430 = vmatprep.subr.bf16.mxu1 %v9429_v16  ;;  %v3112_v16 = vld [vmem:[#allocation13 + $0x5c8] sm:$0xff]  ;;  %v9191_v18 = vpack.c.bf16 %v3095_v11, %v3087_v28  ;;  %v9447_v19 = vpack.c.bf16 %v3097_v14, %v3089_v63  ;;  %v9461_v28 = vpack.c.bf16 %v3162_v62, %v3154_v61  ;;  %v3161_v11 = vld [vmem:[#allocation13 + $0x750] sm:$0xff]  ;;  %v3170_v14 = vld [vmem:[#allocation13 + $0x798] sm:$0xff] }
 0x3a9   :  { %v9193_v20 = vpack.c.bf16 %v3112_v16, %v3104_v15  ;;  %v3168_v63 = vld [vmem:[#allocation13 + $0x788] sm:$0xff]  ;;  %v3178_v15 = vld [vmem:[#allocation13 + $0x7d8] sm:$0xff] }
 0x3aa   :  { %9176 = vmatpush1.bf16.msra.mxu0 %v9175_v47  ;;  %v3103_v47 = vld [vmem:[#allocation13 + $0x580] sm:$0xff]  ;;  %v3218_v61 = vld [vmem:[#allocation13 + $0x918] sm:$0xff] }
 0x3ab   :  { %9432 = vmatpush1.bf16.msra.mxu1 %v9431_v21  ;;  %9178 = vmatprep.subr.bf16.mxu0 %v9177_v51  ;;  %v3111_v21 = vld [vmem:[#allocation13 + $0x5c0] sm:$0xff]  ;;  %v3105_v51 = vld [vmem:[#allocation13 + $0x590] sm:$0xff]  ;;  %v3226_v62 = vld [vmem:[#allocation13 + $0x958] sm:$0xff] }
 0x3ac   :  { %9434 = vmatprep.subr.bf16.mxu1 %v9433_v26  ;;  %v3128_v26 = vld [vmem:[#allocation13 + $0x648] sm:$0xff]  ;;  %v9195_v32 = vpack.c.bf16 %v3111_v21, %v3103_v47  ;;  %v9451_v34 = vpack.c.bf16 %v3113_v1, %v3105_v51  ;;  %v3169_v47 = vld [vmem:[#allocation13 + $0x790] sm:$0xff]  ;;  %v9465_v21 = vpack.c.bf16 %v3178_v15, %v3170_v14  ;;  %v3234_v14 = vld [vmem:[#allocation13 + $0x998] sm:$0xff] }
 0x3ad   :  { %v9197_v43 = vpack.c.bf16 %v3128_v26, %v3120_v25  ;;  %v3177_v51 = vld [vmem:[#allocation13 + $0x7d0] sm:$0xff]  ;;  %v3192_v1 = vld [vmem:[#allocation13 + $0x848] sm:$0xff]  ;;  %v1758_v25 = vrot.slane %v12074_v24, %v11982_v27  ;;  %v3186_v26 = vld [vmem:[#allocation13 + $0x818] sm:$0xff] }
 0x3ae   :  { %9180 = vmatpush1.bf16.msra.mxu0 %v9179_v35  ;;  %v3119_v35 = vld [vmem:[#allocation13 + $0x600] sm:$0xff]  ;;  %v3208_v24 = vld [vmem:[#allocation13 + $0x8c8] sm:$0xff]  ;;  %v3242_v15 = vld [vmem:[#allocation13 + $0x9d8] sm:$0xff] }
 0x3af   :  { %9436 = vmatpush1.bf16.msra.mxu1 %v9435_v10  ;;  %9182 = vmatprep.subr.bf16.mxu0 %v9181_v37  ;;  %v3127_v10 = vld [vmem:[#allocation13 + $0x640] sm:$0xff]  ;;  %v3121_v37 = vld [vmem:[#allocation13 + $0x610] sm:$0xff] }
 0x3b0   :  { %9438 = vmatprep.subr.bf16.mxu1 %v9437_v42  ;;  %v3144_v42 = vld [vmem:[#allocation13 + $0x6c8] sm:$0xff]  ;;  %v9199_v33 = vpack.c.bf16 %v3127_v10, %v3119_v35  ;;  %v9455_v46 = vpack.c.bf16 %v3129_v36, %v3121_v37  ;;  %v3183_v35 = vld [vmem:[#allocation13 + $0x800] sm:$0xff]  ;;  %v9469_v37 = vpack.c.bf16 %v3194_v30, %v3186_v26  ;;  %v3193_v36 = vld [vmem:[#allocation13 + $0x850] sm:$0xff] }
 0x3b1   :  { %v9201_v52 = vpack.c.bf16 %v3144_v42, %v3136_v49  ;;  %v3191_v10 = vld [vmem:[#allocation13 + $0x840] sm:$0xff]  ;;  %v11328_v49 = vadd.f32 %v12072_v29, %v1758_v25  ;;  %v3200_v42 = vld [vmem:[#allocation13 + $0x888] sm:$0xff]  ;;  %v3258_v25 = vld [vmem:[#allocation13 + $0xa58] sm:$0xff] }
 0x3b2   :  { %9184 = vmatpush1.bf16.msra.mxu0 %v9183_v53  ;;  %v3135_v53 = vld [vmem:[#allocation13 + $0x680] sm:$0xff]  ;;  %v9215_v39 = vpack.c.bf16 %v3191_v10, %v3183_v35  ;;  %v3257_v10 = vld [vmem:[#allocation13 + $0xa50] sm:$0xff] }
 0x3b3   :  { %9440 = vmatpush1.bf16.msra.mxu1 %v9439_v54  ;;  %9186 = vmatprep.subr.bf16.mxu0 %v9185_v40  ;;  %v3143_v54 = vld [vmem:[#allocation13 + $0x6c0] sm:$0xff]  ;;  %v3137_v40 = vld [vmem:[#allocation13 + $0x690] sm:$0xff]  ;;  %v12093_v29 = vmax.f32 %v11328_v49, 0.0  ;;  %v3274_v49 = vld [vmem:[#allocation13 + $0xad8] sm:$0xff] }
 0x3b4   :  { %9442 = vmatprep.subr.bf16.mxu1 %v9441_v59  ;;  %v3160_v59 = vld [vmem:[#allocation13 + $0x748] sm:$0xff]  ;;  %v9203_v44 = vpack.c.bf16 %v3143_v54, %v3135_v53  ;;  %v9459_v41 = vpack.c.bf16 %v3145_v57, %v3137_v40  ;;  %v3207_v53 = vld [vmem:[#allocation13 + $0x8c0] sm:$0xff]  ;;  %v3201_v54 = vld [vmem:[#allocation13 + $0x890] sm:$0xff]  ;;  %v9217_v40 = vpack.c.bf16 %v3208_v24, %v3200_v42 }
 0x3b5   :  { %v9205_v2 = vpack.c.bf16 %v3160_v59, %v3152_v58  ;;  %v3216_v57 = vld [vmem:[#allocation13 + $0x908] sm:$0xff] }
 0x3b6   :  { %9188 = vmatpush1.bf16.msra.mxu0 %v9187_v3  ;;  %v3151_v3 = vld [vmem:[#allocation13 + $0x700] sm:$0xff]  ;;  %v3224_v58 = vld [vmem:[#allocation13 + $0x948] sm:$0xff] }
 0x3b7   :  { %9444 = vmatpush1.bf16.msra.mxu1 %v9443_v5  ;;  %9190 = vmatprep.subr.bf16.mxu0 %v9189_v7  ;;  %v3159_v5 = vld [vmem:[#allocation13 + $0x740] sm:$0xff]  ;;  %v3153_v7 = vld [vmem:[#allocation13 + $0x710] sm:$0xff] }
 0x3b8   :  { %9446 = vmatprep.subr.bf16.mxu1 %v9445_v13  ;;  %v3176_v13 = vld [vmem:[#allocation13 + $0x7c8] sm:$0xff]  ;;  %v9207_v16 = vpack.c.bf16 %v3159_v5, %v3151_v3  ;;  %v9463_v6 = vpack.c.bf16 %v3161_v11, %v3153_v7  ;;  %v3215_v3 = vld [vmem:[#allocation13 + $0x900] sm:$0xff]  ;;  %v3217_v7 = vld [vmem:[#allocation13 + $0x910] sm:$0xff] }
 0x3b9   :  { %v3223_v5 = vld [vmem:[#allocation13 + $0x940] sm:$0xff]  ;;  %v3225_v11 = vld [vmem:[#allocation13 + $0x950] sm:$0xff] }
 0x3ba   :  { %9192 = vmatpush1.bf16.msra.mxu0 %v9191_v18  ;;  %v9209_v18 = vpack.c.bf16 %v3176_v13, %v3168_v63  ;;  %v3232_v63 = vld [vmem:[#allocation13 + $0x988] sm:$0xff] }
 0x3bb   :  { %9448 = vmatpush1.bf16.msra.mxu1 %v9447_v19  ;;  %9194 = vmatprep.subr.bf16.mxu0 %v9193_v20  ;;  %v3167_v19 = vld [vmem:[#allocation13 + $0x780] sm:$0xff]  ;;  %v3240_v13 = vld [vmem:[#allocation13 + $0x9c8] sm:$0xff] }
 0x3bc   :  { %9450 = vmatprep.subr.bf16.mxu1 %v9449_v22  ;;  %v3175_v20 = vld [vmem:[#allocation13 + $0x7c0] sm:$0xff]  ;;  %v3184_v22 = vld [vmem:[#allocation13 + $0x808] sm:$0xff] }
 0x3bd   :  { %v9211_v31 = vpack.c.bf16 %v3175_v20, %v3167_v19  ;;  %v3239_v19 = vld [vmem:[#allocation13 + $0x9c0] sm:$0xff]  ;;  %v3233_v20 = vld [vmem:[#allocation13 + $0x990] sm:$0xff] }
 0x3be   :  { %9196 = vmatpush1.bf16.msra.mxu0 %v9195_v32  ;;  %v11325_v32 = vadd.f32 %v12066_v23, %v1746_v17  ;;  %v9479_v17 = vpack.c.bf16 %v3225_v11, %v3217_v7  ;;  %v3304_v7 = vld [vmem:[#allocation13 + $0xbc8] sm:$0xff]  ;;  %v3306_v11 = vld [vmem:[#allocation13 + $0xbd8] sm:$0xff] }
 0x3bf   :  { %9452 = vmatpush1.bf16.msra.mxu1 %v9451_v34  ;;  %9198 = vmatprep.subr.bf16.mxu0 %v9197_v43  ;;  %v9467_v34 = vpack.c.bf16 %v3177_v51, %v3169_v47  ;;  %v9213_v43 = vpack.c.bf16 %v3192_v1, %v3184_v22  ;;  %v9481_v47 = vpack.c.bf16 %v3242_v15, %v3234_v14  ;;  %v3248_v51 = vld [vmem:[#allocation13 + $0xa08] sm:$0xff]  ;;  %v3250_v1 = vld [vmem:[#allocation13 + $0xa18] sm:$0xff]  ;;  %v3295_v15 = vld [vmem:[#allocation13 + $0xb80] sm:$0xff] }
 0x3c0   :  { %9454 = vmatprep.subr.bf16.mxu1 %v9453_v38  ;;  %v3185_v38 = vld [vmem:[#allocation13 + $0x810] sm:$0xff]  ;;  %v3256_v22 = vld [vmem:[#allocation13 + $0xa48] sm:$0xff]  ;;  %v9485_v35 = vpack.c.bf16 %v3258_v25, %v3250_v1  ;;  %v3311_v25 = vld [vmem:[#allocation13 + $0xc00] sm:$0xff] }
 0x3c1   :  { %v9471_v23 = vpack.c.bf16 %v3193_v36, %v3185_v38  ;;  %v3272_v38 = vld [vmem:[#allocation13 + $0xac8] sm:$0xff]  ;;  %v3266_v36 = vld [vmem:[#allocation13 + $0xa98] sm:$0xff] }
 0x3c2   :  { %9200 = vmatpush1.bf16.msra.mxu0 %v9199_v33  ;;  %v3210_v33 = vld [vmem:[#allocation13 + $0x8d8] sm:$0xff] }
 0x3c3   :  { %9456 = vmatpush1.bf16.msra.mxu1 %v9455_v46  ;;  %9202 = vmatprep.subr.bf16.mxu0 %v9201_v52  ;;  %v12091_v46 = vmax.f32 %v11325_v32, 0.0  ;;  %v3199_v52 = vld [vmem:[#allocation13 + $0x880] sm:$0xff]  ;;  %v9473_v59 = vpack.c.bf16 %v3210_v33, %v3202_v45 }
 0x3c4   :  { %9458 = vmatprep.subr.bf16.mxu1 %v9457_v55  ;;  %v3209_v55 = vld [vmem:[#allocation13 + $0x8d0] sm:$0xff]  ;;  %v3247_v32 = vld [vmem:[#allocation13 + $0xa00] sm:$0xff] }
 0x3c5   :  { %v3263_v45 = vld [vmem:[#allocation13 + $0xa80] sm:$0xff] }
 0x3c6   :  { %9204 = vmatpush1.bf16.msra.mxu0 %v9203_v44  ;;  %v9219_v44 = vpack.c.bf16 %v3207_v53, %v3199_v52  ;;  %v3271_v33 = vld [vmem:[#allocation13 + $0xac0] sm:$0xff]  ;;  %v9489_v52 = vpack.c.bf16 %v3274_v49, %v3266_v36  ;;  %v3273_v53 = vld [vmem:[#allocation13 + $0xad0] sm:$0xff] }
 0x3c7   :  { %9460 = vmatpush1.bf16.msra.mxu1 %v9459_v41  ;;  %9206 = vmatprep.subr.bf16.mxu0 %v9205_v2  ;;  %v9475_v41 = vpack.c.bf16 %v3209_v55, %v3201_v54  ;;  %v9221_v2 = vpack.c.bf16 %v3224_v58, %v3216_v57  ;;  %v3280_v54 = vld [vmem:[#allocation13 + $0xb08] sm:$0xff]  ;;  %v3282_v55 = vld [vmem:[#allocation13 + $0xb18] sm:$0xff]  ;;  %v9235_v58 = vpack.c.bf16 %v3271_v33, %v3263_v45  ;;  %v3327_v49 = vld [vmem:[#allocation13 + $0xc80] sm:$0xff] }
 0x3c8   :  { %9462 = vmatprep.subr.bf16.mxu1 %v9461_v28  ;;  %v9477_v28 = vpack.c.bf16 %v3226_v62, %v3218_v61  ;;  %v3290_v57 = vld [vmem:[#allocation13 + $0xb58] sm:$0xff]  ;;  %v3279_v62 = vld [vmem:[#allocation13 + $0xb00] sm:$0xff]  ;;  %v3337_v45 = vld [vmem:[#allocation13 + $0xcd0] sm:$0xff] }
 0x3c9   :  { %v3344_v33 = vld [vmem:[#allocation13 + $0xd08] sm:$0xff] }
 0x3ca   :  { %9208 = vmatpush1.bf16.msra.mxu0 %v9207_v16  ;;  %v9223_v16 = vpack.c.bf16 %v3223_v5, %v3215_v3  ;;  %v3289_v3 = vld [vmem:[#allocation13 + $0xb50] sm:$0xff]  ;;  %v3296_v5 = vld [vmem:[#allocation13 + $0xb88] sm:$0xff] }
 0x3cb   :  { %9464 = vmatpush1.bf16.msra.mxu1 %v9463_v6  ;;  %9210 = vmatprep.subr.bf16.mxu0 %v9209_v18  ;;  %v9225_v6 = vpack.c.bf16 %v3240_v13, %v3232_v63  ;;  %v3231_v18 = vld [vmem:[#allocation13 + $0x980] sm:$0xff]  ;;  %v9241_v14 = vpack.c.bf16 %v3304_v7, %v3296_v5 }
 0x3cc   :  { %9466 = vmatprep.subr.bf16.mxu1 %v9465_v21  ;;  %v3241_v21 = vld [vmem:[#allocation13 + $0x9d0] sm:$0xff]  ;;  %v9227_v26 = vpack.c.bf16 %v3239_v19, %v3231_v18  ;;  %v3312_v19 = vld [vmem:[#allocation13 + $0xc08] sm:$0xff] }
 0x3cd   :  { %v9483_v30 = vpack.c.bf16 %v3241_v21, %v3233_v20  ;;  %v3305_v18 = vld [vmem:[#allocation13 + $0xbd0] sm:$0xff]  ;;  %v3320_v20 = vld [vmem:[#allocation13 + $0xc48] sm:$0xff]  ;;  %v3322_v21 = vld [vmem:[#allocation13 + $0xc58] sm:$0xff] }
 0x3ce   :  { %9212 = vmatpush1.bf16.msra.mxu0 %v9211_v31  ;;  %v9229_v31 = vpack.c.bf16 %v3256_v22, %v3248_v51  ;;  %v9245_v1 = vpack.c.bf16 %v3320_v20, %v3312_v19 }
 0x3cf   :  { %9468 = vmatpush1.bf16.msra.mxu1 %v9467_v34  ;;  %9214 = vmatprep.subr.bf16.mxu0 %v9213_v43  ;;  %v3255_v34 = vld [vmem:[#allocation13 + $0xa40] sm:$0xff]  ;;  %v3249_v43 = vld [vmem:[#allocation13 + $0xa10] sm:$0xff] }
 0x3d0   :  { %9470 = vmatprep.subr.bf16.mxu1 %v9469_v37  ;;  %v3264_v37 = vld [vmem:[#allocation13 + $0xa88] sm:$0xff]  ;;  %v9231_v42 = vpack.c.bf16 %v3255_v34, %v3247_v32  ;;  %v9487_v24 = vpack.c.bf16 %v3257_v10, %v3249_v43  ;;  %v3321_v32 = vld [vmem:[#allocation13 + $0xc50] sm:$0xff]  ;;  %v3338_v10 = vld [vmem:[#allocation13 + $0xcd8] sm:$0xff] }
 0x3d1   :  { %4058 = vmatmul.mubr.f32.vlgmr.msra.gmra.mrb[8].mxu0 %v12091_v46  ;;  %v3328_v34 = vld [vmem:[#allocation13 + $0xc88] sm:$0xff] }
 0x3d2   :  { %4342 = vmatmul.mubr.f32.vlgmr.msra.gmra.mrb[8].mxu1 %v12091_v46  ;;  %9216 = vmatpush1.bf16.msra.mxu0 %v9215_v39  ;;  %v9233_v39 = vpack.c.bf16 %v3272_v38, %v3264_v37  ;;  %v3336_v43 = vld [vmem:[#allocation13 + $0xcc8] sm:$0xff] }
 0x3d3   :  { %4128 = vmatprep.mubr.f32.mxu0 %v12093_v29  ;;  %9472 = vmatpush1.bf16.msra.mxu1 %v9471_v23  ;;  %v3265_v23 = vld [vmem:[#allocation13 + $0xa90] sm:$0xff]  ;;  %v9249_v36 = vpack.c.bf16 %v3336_v43, %v3328_v34 }
 0x3d4   :  { %4412 = vmatprep.mubr.f32.mxu1 %v12093_v29  ;;  %9218 = vmatprep.subr.bf16.mxu0 %v9217_v40  ;;  %v3288_v40 = vld [vmem:[#allocation13 + $0xb48] sm:$0xff] }
 0x3d5   :  { %9474 = vmatprep.subr.bf16.mxu1 %v9473_v59  ;;  %v9491_v59 = vpack.c.bf16 %v3273_v53, %v3265_v23  ;;  %v9237_v61 = vpack.c.bf16 %v3288_v40, %v3280_v54  ;;  %v3352_v23 = vld [vmem:[#allocation13 + $0xd48] sm:$0xff]  ;;  %v3354_v53 = vld [vmem:[#allocation13 + $0xd58] sm:$0xff] }
 0x3d6   :  { %9220 = vmatpush1.bf16.msra.mxu0 %v9219_v44  ;;  %v3287_v44 = vld [vmem:[#allocation13 + $0xb40] sm:$0xff] }
 0x3d7   :  { %9476 = vmatpush1.bf16.msra.mxu1 %v9475_v41  ;;  %9222 = vmatprep.subr.bf16.mxu0 %v9221_v2  ;;  %v3281_v41 = vld [vmem:[#allocation13 + $0xb10] sm:$0xff]  ;;  %v9493_v2 = vpack.c.bf16 %v3290_v57, %v3282_v55  ;;  %v9239_v63 = vpack.c.bf16 %v3287_v44, %v3279_v62  ;;  %v9253_v55 = vpack.c.bf16 %v3352_v23, %v3344_v33  ;;  %v3343_v57 = vld [vmem:[#allocation13 + $0xd00] sm:$0xff]  ;;  %v3360_v44 = vld [vmem:[#allocation13 + $0xd88] sm:$0xff] }
 0x3d8   :  { %9478 = vmatprep.subr.bf16.mxu1 %v9477_v28  ;;  %v3298_v28 = vld [vmem:[#allocation13 + $0xb98] sm:$0xff]  ;;  %v9495_v13 = vpack.c.bf16 %v3289_v3, %v3281_v41  ;;  %v3353_v62 = vld [vmem:[#allocation13 + $0xd50] sm:$0xff]  ;;  %v3368_v41 = vld [vmem:[#allocation13 + $0xdc8] sm:$0xff] }
 0x3d9   :  { %v3370_v3 = vld [vmem:[#allocation13 + $0xdd8] sm:$0xff] }
 0x3da   :  { %9224 = vmatpush1.bf16.msra.mxu0 %v9223_v16  ;;  %v3303_v16 = vld [vmem:[#allocation13 + $0xbc0] sm:$0xff] }
 0x3db   :  { %9480 = vmatpush1.bf16.msra.mxu1 %v9479_v17  ;;  %9226 = vmatprep.subr.bf16.mxu0 %v9225_v6  ;;  %v3297_v17 = vld [vmem:[#allocation13 + $0xb90] sm:$0xff]  ;;  %v9497_v6 = vpack.c.bf16 %v3306_v11, %v3298_v28  ;;  %v9243_v51 = vpack.c.bf16 %v3303_v16, %v3295_v15  ;;  %v9257_v28 = vpack.c.bf16 %v3368_v41, %v3360_v44  ;;  %v3359_v11 = vld [vmem:[#allocation13 + $0xd80] sm:$0xff]  ;;  %v3376_v16 = vld [vmem:[#allocation13 + $0xe08] sm:$0xff] }
 0x3dc   :  { %9482 = vmatprep.subr.bf16.mxu1 %v9481_v47  ;;  %v3314_v47 = vld [vmem:[#allocation13 + $0xc18] sm:$0xff]  ;;  %v9499_v22 = vpack.c.bf16 %v3305_v18, %v3297_v17  ;;  %v3369_v15 = vld [vmem:[#allocation13 + $0xdd0] sm:$0xff]  ;;  %v3384_v17 = vld [vmem:[#allocation13 + $0xe48] sm:$0xff] }
 0x3dd   :  { %v3386_v18 = vld [vmem:[#allocation13 + $0xe58] sm:$0xff] }
 0x3de   :  { %9228 = vmatpush1.bf16.msra.mxu0 %v9227_v26  ;;  %v3319_v26 = vld [vmem:[#allocation13 + $0xc40] sm:$0xff]  ;;  %v12099_v41 = vld [vmem:[#allocation11] sm:$0xff] }
 0x3df   :  { %9484 = vmatpush1.bf16.msra.mxu1 %v9483_v30  ;;  %9230 = vmatprep.subr.bf16.mxu0 %v9229_v31  ;;  %v3313_v30 = vld [vmem:[#allocation13 + $0xc10] sm:$0xff]  ;;  %v9501_v31 = vpack.c.bf16 %v3322_v21, %v3314_v47  ;;  %v9247_v37 = vpack.c.bf16 %v3319_v26, %v3311_v25  ;;  %v9261_v47 = vpack.c.bf16 %v3384_v17, %v3376_v16  ;;  %v3375_v21 = vld [vmem:[#allocation13 + $0xe00] sm:$0xff]  ;;  %v3392_v26 = vld [vmem:[#allocation13 + $0xe88] sm:$0xff] }
 0x3e0   :  { %9486 = vmatprep.subr.bf16.mxu1 %v9485_v35  ;;  %v3330_v35 = vld [vmem:[#allocation13 + $0xc98] sm:$0xff]  ;;  %v9503_v38 = vpack.c.bf16 %v3321_v32, %v3313_v30  ;;  %v3385_v25 = vld [vmem:[#allocation13 + $0xe50] sm:$0xff]  ;;  %v3400_v30 = vld [vmem:[#allocation13 + $0xec8] sm:$0xff] }
 0x3e1   :  { %v3402_v32 = vld [vmem:[#allocation13 + $0xed8] sm:$0xff] }
 0x3e2   :  { %9232 = vmatpush1.bf16.msra.mxu0 %v9231_v42  ;;  %v3335_v42 = vld [vmem:[#allocation13 + $0xcc0] sm:$0xff]  ;;  %v3442_v16 = vld [vmem:[#allocation13 + $0x1018] sm:$0xff] }
 0x3e3   :  { %9488 = vmatpush1.bf16.msra.mxu1 %v9487_v24  ;;  %9234 = vmatprep.subr.bf16.mxu0 %v9233_v39  ;;  %v3329_v24 = vld [vmem:[#allocation13 + $0xc90] sm:$0xff]  ;;  %v9505_v39 = vpack.c.bf16 %v3338_v10, %v3330_v35  ;;  %v9251_v54 = vpack.c.bf16 %v3335_v42, %v3327_v49  ;;  %v9265_v35 = vpack.c.bf16 %v3400_v30, %v3392_v26  ;;  %v3391_v10 = vld [vmem:[#allocation13 + $0xe80] sm:$0xff]  ;;  %v3408_v42 = vld [vmem:[#allocation13 + $0xf08] sm:$0xff] }
 0x3e4   :  { %9490 = vmatprep.subr.bf16.mxu1 %v9489_v52  ;;  %v3346_v52 = vld [vmem:[#allocation13 + $0xd18] sm:$0xff]  ;;  %v9507_v40 = vpack.c.bf16 %v3337_v45, %v3329_v24  ;;  %v3401_v49 = vld [vmem:[#allocation13 + $0xed0] sm:$0xff]  ;;  %v3416_v24 = vld [vmem:[#allocation13 + $0xf48] sm:$0xff] }
 0x3e5   :  { %v3418_v45 = vld [vmem:[#allocation13 + $0xf58] sm:$0xff]  ;;  %v3464_v26 = vld [vmem:[#allocation13 + $0x10c8] sm:$0xff] }
 0x3e6   :  { %9236 = vmatpush1.bf16.msra.mxu0 %v9235_v58  ;;  %v3351_v58 = vld [vmem:[#allocation13 + $0xd40] sm:$0xff]  ;;  %v3450_v17 = vld [vmem:[#allocation13 + $0x1058] sm:$0xff] }
 0x3e7   :  { %9492 = vmatpush1.bf16.msra.mxu1 %v9491_v59  ;;  %9238 = vmatprep.subr.bf16.mxu0 %v9237_v61  ;;  %v3345_v59 = vld [vmem:[#allocation13 + $0xd10] sm:$0xff]  ;;  %v9509_v61 = vpack.c.bf16 %v3354_v53, %v3346_v52  ;;  %v9255_v5 = vpack.c.bf16 %v3351_v58, %v3343_v57  ;;  %v9269_v52 = vpack.c.bf16 %v3416_v24, %v3408_v42  ;;  %v3407_v53 = vld [vmem:[#allocation13 + $0xf00] sm:$0xff]  ;;  %v3424_v58 = vld [vmem:[#allocation13 + $0xf88] sm:$0xff] }
 0x3e8   :  { %9494 = vmatprep.subr.bf16.mxu1 %v9493_v2  ;;  %v3362_v2 = vld [vmem:[#allocation13 + $0xd98] sm:$0xff]  ;;  %v9511_v7 = vpack.c.bf16 %v3353_v62, %v3345_v59  ;;  %v3417_v57 = vld [vmem:[#allocation13 + $0xf50] sm:$0xff]  ;;  %v3432_v59 = vld [vmem:[#allocation13 + $0xfc8] sm:$0xff] }
 0x3e9   :  { %v3434_v62 = vld [vmem:[#allocation13 + $0xfd8] sm:$0xff]  ;;  %v3480_v42 = vld [vmem:[#allocation13 + $0x1148] sm:$0xff] }
 0x3ea   :  { %9240 = vmatpush1.bf16.msra.mxu0 %v9239_v63  ;;  %v3367_v63 = vld [vmem:[#allocation13 + $0xdc0] sm:$0xff]  ;;  %v3458_v30 = vld [vmem:[#allocation13 + $0x1098] sm:$0xff] }
 0x3eb   :  { %9496 = vmatpush1.bf16.msra.mxu1 %v9495_v13  ;;  %9242 = vmatprep.subr.bf16.mxu0 %v9241_v14  ;;  %v3361_v13 = vld [vmem:[#allocation13 + $0xd90] sm:$0xff]  ;;  %v9513_v14 = vpack.c.bf16 %v3370_v3, %v3362_v2  ;;  %v9259_v19 = vpack.c.bf16 %v3367_v63, %v3359_v11  ;;  %v1754_v2 = vrot.slane %v12099_v41, %v11997_v60  ;;  %v3474_v24 = vld [vmem:[#allocation13 + $0x1118] sm:$0xff] }
 0x3ec   :  { %9498 = vmatprep.subr.bf16.mxu1 %v9497_v6  ;;  %v3378_v6 = vld [vmem:[#allocation13 + $0xe18] sm:$0xff]  ;;  %v9515_v20 = vpack.c.bf16 %v3369_v15, %v3361_v13  ;;  %v3425_v11 = vld [vmem:[#allocation13 + $0xf90] sm:$0xff]  ;;  %v3448_v15 = vld [vmem:[#allocation13 + $0x1048] sm:$0xff] }
 0x3ed   :  { %v3433_v13 = vld [vmem:[#allocation13 + $0xfd0] sm:$0xff] }
 0x3ee   :  { %9244 = vmatpush1.bf16.msra.mxu0 %v9243_v51  ;;  %v3383_v51 = vld [vmem:[#allocation13 + $0xe40] sm:$0xff] }
 0x3ef   :  { %9500 = vmatpush1.bf16.msra.mxu1 %v9499_v22  ;;  %9246 = vmatprep.subr.bf16.mxu0 %v9245_v1  ;;  %v3377_v22 = vld [vmem:[#allocation13 + $0xe10] sm:$0xff]  ;;  %v9517_v1 = vpack.c.bf16 %v3386_v18, %v3378_v6  ;;  %v9263_v34 = vpack.c.bf16 %v3383_v51, %v3375_v21  ;;  %v11327_v18 = vadd.f32 %v12068_v0, %v1754_v2  ;;  %v3447_v21 = vld [vmem:[#allocation13 + $0x1040] sm:$0xff] }
 0x3f0   :  { %9502 = vmatprep.subr.bf16.mxu1 %v9501_v31  ;;  %v3394_v31 = vld [vmem:[#allocation13 + $0xe98] sm:$0xff]  ;;  %v9519_v43 = vpack.c.bf16 %v3385_v25, %v3377_v22  ;;  %v3441_v51 = vld [vmem:[#allocation13 + $0x1010] sm:$0xff]  ;;  %v9533_v22 = vpack.c.bf16 %v3450_v17, %v3442_v16  ;;  %v3456_v25 = vld [vmem:[#allocation13 + $0x1088] sm:$0xff] }
 0x3f2   :  { %9248 = vmatpush1.bf16.msra.mxu0 %v9247_v37  ;;  %v3399_v37 = vld [vmem:[#allocation13 + $0xec0] sm:$0xff] }
 0x3f3   :  { %9504 = vmatpush1.bf16.msra.mxu1 %v9503_v38  ;;  %9250 = vmatprep.subr.bf16.mxu0 %v9249_v36  ;;  %v3393_v38 = vld [vmem:[#allocation13 + $0xe90] sm:$0xff]  ;;  %v9521_v36 = vpack.c.bf16 %v3402_v32, %v3394_v31  ;;  %v9267_v33 = vpack.c.bf16 %v3399_v37, %v3391_v10  ;;  %v3466_v31 = vld [vmem:[#allocation13 + $0x10d8] sm:$0xff]  ;;  %v3463_v10 = vld [vmem:[#allocation13 + $0x10c0] sm:$0xff] }
 0x3f4   :  { %9506 = vmatprep.subr.bf16.mxu1 %v9505_v39  ;;  %v3410_v39 = vld [vmem:[#allocation13 + $0xf18] sm:$0xff]  ;;  %v9523_v23 = vpack.c.bf16 %v3401_v49, %v3393_v38  ;;  %v3457_v37 = vld [vmem:[#allocation13 + $0x1090] sm:$0xff]  ;;  %v9537_v38 = vpack.c.bf16 %v3466_v31, %v3458_v30  ;;  %v3472_v49 = vld [vmem:[#allocation13 + $0x1108] sm:$0xff] }
 0x3f6   :  { %9252 = vmatpush1.bf16.msra.mxu0 %v9251_v54  ;;  %v3415_v54 = vld [vmem:[#allocation13 + $0xf40] sm:$0xff] }
 0x3f7   :  { %9508 = vmatpush1.bf16.msra.mxu1 %v9507_v40  ;;  %9254 = vmatprep.subr.bf16.mxu0 %v9253_v55  ;;  %v3409_v40 = vld [vmem:[#allocation13 + $0xf10] sm:$0xff]  ;;  %v9525_v55 = vpack.c.bf16 %v3418_v45, %v3410_v39  ;;  %v9271_v44 = vpack.c.bf16 %v3415_v54, %v3407_v53  ;;  %v3482_v39 = vld [vmem:[#allocation13 + $0x1158] sm:$0xff]  ;;  %v3479_v53 = vld [vmem:[#allocation13 + $0x1140] sm:$0xff] }
 0x3f8   :  { %9510 = vmatprep.subr.bf16.mxu1 %v9509_v61  ;;  %v3426_v61 = vld [vmem:[#allocation13 + $0xf98] sm:$0xff]  ;;  %v9527_v3 = vpack.c.bf16 %v3417_v57, %v3409_v40  ;;  %v3473_v54 = vld [vmem:[#allocation13 + $0x1110] sm:$0xff]  ;;  %v9541_v40 = vpack.c.bf16 %v3482_v39, %v3474_v24  ;;  %v3488_v57 = vld [vmem:[#allocation13 + $0x1188] sm:$0xff] }
 0x3f9   :  { %v9529_v63 = vpack.c.bf16 %v3434_v62, %v3426_v61  ;;  %v3498_v61 = vld [vmem:[#allocation13 + $0x11d8] sm:$0xff] }
 0x3fa   :  { %9256 = vmatpush1.bf16.msra.mxu0 %v9255_v5  ;;  %v9273_v5 = vpack.c.bf16 %v3432_v59, %v3424_v58  ;;  %v3496_v58 = vld [vmem:[#allocation13 + $0x11c8] sm:$0xff]  ;;  %v3490_v59 = vld [vmem:[#allocation13 + $0x1198] sm:$0xff] }
 0x3fb   :  { %9512 = vmatpush1.bf16.msra.mxu1 %v9511_v7  ;;  %9258 = vmatprep.subr.bf16.mxu0 %v9257_v28  ;;  %v3423_v7 = vld [vmem:[#allocation13 + $0xf80] sm:$0xff]  ;;  %v9289_v2 = vpack.c.bf16 %v3496_v58, %v3488_v57  ;;  %v3562_v57 = vld [vmem:[#allocation13 + $0x13d8] sm:$0xff] }
 0x3fc   :  { %9514 = vmatprep.subr.bf16.mxu1 %v9513_v14  ;;  %v3431_v28 = vld [vmem:[#allocation13 + $0xfc0] sm:$0xff]  ;;  %v3440_v14 = vld [vmem:[#allocation13 + $0x1008] sm:$0xff] }
 0x3fd   :  { %v9275_v6 = vpack.c.bf16 %v3431_v28, %v3423_v7  ;;  %v3489_v7 = vld [vmem:[#allocation13 + $0x1190] sm:$0xff]  ;;  %v9545_v28 = vpack.c.bf16 %v3498_v61, %v3490_v59 }
 0x3fe   :  { %9260 = vmatpush1.bf16.msra.mxu0 %v9259_v19  ;;  %v9531_v19 = vpack.c.bf16 %v3433_v13, %v3425_v11  ;;  %v3497_v11 = vld [vmem:[#allocation13 + $0x11d0] sm:$0xff]  ;;  %v3512_v13 = vld [vmem:[#allocation13 + $0x1248] sm:$0xff] }
 0x3ff   :  { %9516 = vmatpush1.bf16.msra.mxu1 %v9515_v20  ;;  %9262 = vmatprep.subr.bf16.mxu0 %v9261_v47  ;;  %v9277_v20 = vpack.c.bf16 %v3448_v15, %v3440_v14  ;;  %v3439_v47 = vld [vmem:[#allocation13 + $0x1000] sm:$0xff]  ;;  %v3506_v14 = vld [vmem:[#allocation13 + $0x1218] sm:$0xff]  ;;  %v9547_v17 = vpack.c.bf16 %v3497_v11, %v3489_v7  ;;  %v3568_v7 = vld [vmem:[#allocation13 + $0x1408] sm:$0xff] }
 0x400   :  { %9518 = vmatprep.subr.bf16.mxu1 %v9517_v1  ;;  %v3449_v1 = vld [vmem:[#allocation13 + $0x1050] sm:$0xff]  ;;  %v9279_v32 = vpack.c.bf16 %v3447_v21, %v3439_v47  ;;  %v3514_v15 = vld [vmem:[#allocation13 + $0x1258] sm:$0xff] }
 0x401   :  { %v9535_v0 = vpack.c.bf16 %v3449_v1, %v3441_v51  ;;  %v9549_v47 = vpack.c.bf16 %v3514_v15, %v3506_v14  ;;  %v3513_v21 = vld [vmem:[#allocation13 + $0x1250] sm:$0xff]  ;;  %v3520_v51 = vld [vmem:[#allocation13 + $0x1288] sm:$0xff]  ;;  %v3522_v1 = vld [vmem:[#allocation13 + $0x1298] sm:$0xff] }
 0x402   :  { %9264 = vmatpush1.bf16.msra.mxu0 %v9263_v34  ;;  %v12104_v34 = vmax.f32 %v11327_v18, 0.0  ;;  %v3503_v18 = vld [vmem:[#allocation13 + $0x1200] sm:$0xff]  ;;  %v3570_v11 = vld [vmem:[#allocation13 + $0x1418] sm:$0xff] }
 0x403   :  { %9520 = vmatpush1.bf16.msra.mxu1 %v9519_v43  ;;  %9266 = vmatprep.subr.bf16.mxu0 %v9265_v35  ;;  %v9281_v43 = vpack.c.bf16 %v3464_v26, %v3456_v25  ;;  %v3455_v35 = vld [vmem:[#allocation13 + $0x1080] sm:$0xff]  ;;  %v3530_v25 = vld [vmem:[#allocation13 + $0x12d8] sm:$0xff] }
 0x404   :  { %9522 = vmatprep.subr.bf16.mxu1 %v9521_v36  ;;  %v3465_v36 = vld [vmem:[#allocation13 + $0x10d0] sm:$0xff]  ;;  %v9283_v45 = vpack.c.bf16 %v3463_v10, %v3455_v35  ;;  %v9553_v35 = vpack.c.bf16 %v3530_v25, %v3522_v1 }
 0x405   :  { %v3529_v10 = vld [vmem:[#allocation13 + $0x12d0] sm:$0xff] }
 0x406   :  { %9268 = vmatpush1.bf16.msra.mxu0 %v9267_v33  ;;  %v9539_v33 = vpack.c.bf16 %v3465_v36, %v3457_v37  ;;  %v3536_v37 = vld [vmem:[#allocation13 + $0x1308] sm:$0xff]  ;;  %v3538_v36 = vld [vmem:[#allocation13 + $0x1318] sm:$0xff] }
 0x407   :  { %9524 = vmatpush1.bf16.msra.mxu1 %v9523_v23  ;;  %9270 = vmatprep.subr.bf16.mxu0 %v9269_v52  ;;  %v9285_v23 = vpack.c.bf16 %v3480_v42, %v3472_v49  ;;  %v3471_v52 = vld [vmem:[#allocation13 + $0x1100] sm:$0xff]  ;;  %v3546_v49 = vld [vmem:[#allocation13 + $0x1358] sm:$0xff] }
 0x408   :  { %9526 = vmatprep.subr.bf16.mxu1 %v9525_v55  ;;  %v3481_v55 = vld [vmem:[#allocation13 + $0x1150] sm:$0xff]  ;;  %v9287_v62 = vpack.c.bf16 %v3479_v53, %v3471_v52  ;;  %v9557_v52 = vpack.c.bf16 %v3546_v49, %v3538_v36 }
 0x409   :  { %v3545_v53 = vld [vmem:[#allocation13 + $0x1350] sm:$0xff] }
 0x40a   :  { %9272 = vmatpush1.bf16.msra.mxu0 %v9271_v44  ;;  %v9543_v44 = vpack.c.bf16 %v3481_v55, %v3473_v54  ;;  %v3552_v54 = vld [vmem:[#allocation13 + $0x1388] sm:$0xff]  ;;  %v3554_v55 = vld [vmem:[#allocation13 + $0x1398] sm:$0xff] }
 0x40b   :  { %9528 = vmatpush1.bf16.msra.mxu1 %v9527_v3  ;;  %9274 = vmatprep.subr.bf16.mxu0 %v9273_v5  ;;  %v3487_v3 = vld [vmem:[#allocation13 + $0x1180] sm:$0xff] }
 0x40c   :  { %9530 = vmatprep.subr.bf16.mxu1 %v9529_v63  ;;  %v3495_v5 = vld [vmem:[#allocation13 + $0x11c0] sm:$0xff]  ;;  %v3504_v63 = vld [vmem:[#allocation13 + $0x1208] sm:$0xff] }
 0x40d   :  { %v9291_v16 = vpack.c.bf16 %v3495_v5, %v3487_v3  ;;  %v9561_v3 = vpack.c.bf16 %v3562_v57, %v3554_v55  ;;  %v3561_v5 = vld [vmem:[#allocation13 + $0x13d0] sm:$0xff] }
 0x40e   :  { %9276 = vmatpush1.bf16.msra.mxu0 %v9275_v6  ;;  %v9293_v6 = vpack.c.bf16 %v3512_v13, %v3504_v63  ;;  %v3578_v63 = vld [vmem:[#allocation13 + $0x1458] sm:$0xff] }
 0x40f   :  { %9532 = vmatpush1.bf16.msra.mxu1 %v9531_v19  ;;  %9278 = vmatprep.subr.bf16.mxu0 %v9277_v20  ;;  %v3511_v19 = vld [vmem:[#allocation13 + $0x1240] sm:$0xff]  ;;  %v3505_v20 = vld [vmem:[#allocation13 + $0x1210] sm:$0xff] }
 0x410   :  { %9534 = vmatprep.subr.bf16.mxu1 %v9533_v22  ;;  %v3528_v22 = vld [vmem:[#allocation13 + $0x12c8] sm:$0xff]  ;;  %v9295_v26 = vpack.c.bf16 %v3511_v19, %v3503_v18  ;;  %v9551_v30 = vpack.c.bf16 %v3513_v21, %v3505_v20  ;;  %v9565_v18 = vpack.c.bf16 %v3578_v63, %v3570_v11  ;;  %v3577_v19 = vld [vmem:[#allocation13 + $0x1450] sm:$0xff]  ;;  %v3586_v21 = vld [vmem:[#allocation13 + $0x1498] sm:$0xff] }
 0x411   :  { %4129 = vmatmul.mubr.f32.vlgmr.msra.gmra.mrb[8].mxu0 %v12104_v34  ;;  %v9297_v31 = vpack.c.bf16 %v3528_v22, %v3520_v51  ;;  %v3584_v20 = vld [vmem:[#allocation13 + $0x1488] sm:$0xff]  ;;  %v3594_v51 = vld [vmem:[#allocation13 + $0x14d8] sm:$0xff] }
 0x412   :  { %4413 = vmatmul.mubr.f32.vlgmr.msra.gmra.mrb[8].mxu1 %v12104_v34  ;;  %9280 = vmatpush1.bf16.msra.mxu0 %v9279_v32  ;;  %v3519_v32 = vld [vmem:[#allocation13 + $0x1280] sm:$0xff] }
 0x413   :  { %9536 = vmatpush1.bf16.msra.mxu1 %v9535_v0  ;;  %9282 = vmatprep.subr.bf16.mxu0 %v9281_v43  ;;  %v3527_v0 = vld [vmem:[#allocation13 + $0x12c0] sm:$0xff]  ;;  %v3521_v43 = vld [vmem:[#allocation13 + $0x1290] sm:$0xff] }
 0x414   :  { %9538 = vmatprep.subr.bf16.mxu1 %v9537_v38  ;;  %v3544_v38 = vld [vmem:[#allocation13 + $0x1348] sm:$0xff]  ;;  %v9299_v42 = vpack.c.bf16 %v3527_v0, %v3519_v32  ;;  %v9555_v24 = vpack.c.bf16 %v3529_v10, %v3521_v43  ;;  %v9569_v32 = vpack.c.bf16 %v3594_v51, %v3586_v21  ;;  %v3593_v0 = vld [vmem:[#allocation13 + $0x14d0] sm:$0xff]  ;;  %v3602_v10 = vld [vmem:[#allocation13 + $0x1518] sm:$0xff] }
 0x415   :  { %v9301_v39 = vpack.c.bf16 %v3544_v38, %v3536_v37  ;;  %v3600_v43 = vld [vmem:[#allocation13 + $0x1508] sm:$0xff]  ;;  %v3610_v37 = vld [vmem:[#allocation13 + $0x1558] sm:$0xff] }
 0x416   :  { %9284 = vmatpush1.bf16.msra.mxu0 %v9283_v45  ;;  %v3535_v45 = vld [vmem:[#allocation13 + $0x1300] sm:$0xff] }
 0x417   :  { %9540 = vmatpush1.bf16.msra.mxu1 %v9539_v33  ;;  %9286 = vmatprep.subr.bf16.mxu0 %v9285_v23  ;;  %v3543_v33 = vld [vmem:[#allocation13 + $0x1340] sm:$0xff]  ;;  %v3537_v23 = vld [vmem:[#allocation13 + $0x1310] sm:$0xff] }
 0x418   :  { %9542 = vmatprep.subr.bf16.mxu1 %v9541_v40  ;;  %v3560_v40 = vld [vmem:[#allocation13 + $0x13c8] sm:$0xff]  ;;  %v9303_v58 = vpack.c.bf16 %v3543_v33, %v3535_v45  ;;  %v9559_v59 = vpack.c.bf16 %v3545_v53, %v3537_v23  ;;  %v9573_v45 = vpack.c.bf16 %v3610_v37, %v3602_v10  ;;  %v3609_v33 = vld [vmem:[#allocation13 + $0x1550] sm:$0xff]  ;;  %v3618_v53 = vld [vmem:[#allocation13 + $0x1598] sm:$0xff] }
 0x419   :  { %v9305_v61 = vpack.c.bf16 %v3560_v40, %v3552_v54  ;;  %v3616_v23 = vld [vmem:[#allocation13 + $0x1588] sm:$0xff]  ;;  %v3626_v54 = vld [vmem:[#allocation13 + $0x15d8] sm:$0xff] }
 0x41a   :  { %9288 = vmatpush1.bf16.msra.mxu0 %v9287_v62  ;;  %v3551_v62 = vld [vmem:[#allocation13 + $0x1380] sm:$0xff] }
 0x41b   :  { %9544 = vmatpush1.bf16.msra.mxu1 %v9543_v44  ;;  %9290 = vmatprep.subr.bf16.mxu0 %v9289_v2  ;;  %v3559_v44 = vld [vmem:[#allocation13 + $0x13c0] sm:$0xff]  ;;  %v3553_v2 = vld [vmem:[#allocation13 + $0x1390] sm:$0xff] }
 0x41c   :  { %9546 = vmatprep.subr.bf16.mxu1 %v9545_v28  ;;  %v3576_v28 = vld [vmem:[#allocation13 + $0x1448] sm:$0xff]  ;;  %v9307_v13 = vpack.c.bf16 %v3559_v44, %v3551_v62  ;;  %v9563_v14 = vpack.c.bf16 %v3561_v5, %v3553_v2  ;;  %v9577_v62 = vpack.c.bf16 %v3626_v54, %v3618_v53  ;;  %v3625_v44 = vld [vmem:[#allocation13 + $0x15d0] sm:$0xff]  ;;  %v3634_v5 = vld [vmem:[#allocation13 + $0x1618] sm:$0xff] }
 0x41d   :  { %v9309_v15 = vpack.c.bf16 %v3576_v28, %v3568_v7  ;;  %v3632_v2 = vld [vmem:[#allocation13 + $0x1608] sm:$0xff]  ;;  %v3642_v7 = vld [vmem:[#allocation13 + $0x1658] sm:$0xff] }
 0x41e   :  { %9292 = vmatpush1.bf16.msra.mxu0 %v9291_v16  ;;  %v3567_v16 = vld [vmem:[#allocation13 + $0x1400] sm:$0xff] }
 0x41f   :  { %9548 = vmatpush1.bf16.msra.mxu1 %v9547_v17  ;;  %9294 = vmatprep.subr.bf16.mxu0 %v9293_v6  ;;  %v3575_v17 = vld [vmem:[#allocation13 + $0x1440] sm:$0xff]  ;;  %v3569_v6 = vld [vmem:[#allocation13 + $0x1410] sm:$0xff] }
 0x420   :  { %9550 = vmatprep.subr.bf16.mxu1 %v9549_v47  ;;  %v3592_v47 = vld [vmem:[#allocation13 + $0x14c8] sm:$0xff]  ;;  %v9311_v22 = vpack.c.bf16 %v3575_v17, %v3567_v16  ;;  %v9567_v1 = vpack.c.bf16 %v3577_v19, %v3569_v6  ;;  %v9581_v16 = vpack.c.bf16 %v3642_v7, %v3634_v5  ;;  %v3641_v17 = vld [vmem:[#allocation13 + $0x1650] sm:$0xff]  ;;  %v3650_v19 = vld [vmem:[#allocation13 + $0x1698] sm:$0xff] }
 0x421   :  { %v9313_v25 = vpack.c.bf16 %v3592_v47, %v3584_v20  ;;  %v3648_v6 = vld [vmem:[#allocation13 + $0x1688] sm:$0xff]  ;;  %v3658_v20 = vld [vmem:[#allocation13 + $0x16d8] sm:$0xff] }
 0x422   :  { %9296 = vmatpush1.bf16.msra.mxu0 %v9295_v26  ;;  %v3583_v26 = vld [vmem:[#allocation13 + $0x1480] sm:$0xff] }
 0x423   :  { %9552 = vmatpush1.bf16.msra.mxu1 %v9551_v30  ;;  %9298 = vmatprep.subr.bf16.mxu0 %v9297_v31  ;;  %v3591_v30 = vld [vmem:[#allocation13 + $0x14c0] sm:$0xff]  ;;  %v3585_v31 = vld [vmem:[#allocation13 + $0x1490] sm:$0xff] }
 0x424   :  { %9554 = vmatprep.subr.bf16.mxu1 %v9553_v35  ;;  %v3608_v35 = vld [vmem:[#allocation13 + $0x1548] sm:$0xff]  ;;  %v9315_v38 = vpack.c.bf16 %v3591_v30, %v3583_v26  ;;  %v9571_v36 = vpack.c.bf16 %v3593_v0, %v3585_v31  ;;  %v9585_v26 = vpack.c.bf16 %v3658_v20, %v3650_v19  ;;  %v3657_v30 = vld [vmem:[#allocation13 + $0x16d0] sm:$0xff]  ;;  %v3666_v0 = vld [vmem:[#allocation13 + $0x1718] sm:$0xff] }
 0x425   :  { %v9317_v49 = vpack.c.bf16 %v3608_v35, %v3600_v43  ;;  %v3664_v31 = vld [vmem:[#allocation13 + $0x1708] sm:$0xff]  ;;  %v3674_v43 = vld [vmem:[#allocation13 + $0x1758] sm:$0xff]  ;;  %v3697_v19 = vld [vmem:[#allocation13 + $0x1810] sm:$0xff] }
 0x426   :  { %9300 = vmatpush1.bf16.msra.mxu0 %v9299_v42  ;;  %v3599_v42 = vld [vmem:[#allocation13 + $0x1500] sm:$0xff]  ;;  %v3705_v20 = vld [vmem:[#allocation13 + $0x1850] sm:$0xff] }
 0x427   :  { %9556 = vmatpush1.bf16.msra.mxu1 %v9555_v24  ;;  %9302 = vmatprep.subr.bf16.mxu0 %v9301_v39  ;;  %v3607_v24 = vld [vmem:[#allocation13 + $0x1540] sm:$0xff]  ;;  %v3601_v39 = vld [vmem:[#allocation13 + $0x1510] sm:$0xff] }
 0x428   :  { %9558 = vmatprep.subr.bf16.mxu1 %v9557_v52  ;;  %v3624_v52 = vld [vmem:[#allocation13 + $0x15c8] sm:$0xff]  ;;  %v9319_v40 = vpack.c.bf16 %v3607_v24, %v3599_v42  ;;  %v9575_v55 = vpack.c.bf16 %v3609_v33, %v3601_v39  ;;  %v9589_v42 = vpack.c.bf16 %v3674_v43, %v3666_v0  ;;  %v3673_v24 = vld [vmem:[#allocation13 + $0x1750] sm:$0xff]  ;;  %v3682_v33 = vld [vmem:[#allocation13 + $0x1798] sm:$0xff] }
 0x429   :  { %v9321_v57 = vpack.c.bf16 %v3624_v52, %v3616_v23  ;;  %v3680_v39 = vld [vmem:[#allocation13 + $0x1788] sm:$0xff]  ;;  %v3690_v23 = vld [vmem:[#allocation13 + $0x17d8] sm:$0xff]  ;;  %v3719_v0 = vld [vmem:[#allocation13 + $0x18c0] sm:$0xff] }
 0x42a   :  { %9304 = vmatpush1.bf16.msra.mxu0 %v9303_v58  ;;  %v3615_v58 = vld [vmem:[#allocation13 + $0x1580] sm:$0xff] }
 0x42b   :  { %9560 = vmatpush1.bf16.msra.mxu1 %v9559_v59  ;;  %9306 = vmatprep.subr.bf16.mxu0 %v9305_v61  ;;  %v3623_v59 = vld [vmem:[#allocation13 + $0x15c0] sm:$0xff]  ;;  %v3617_v61 = vld [vmem:[#allocation13 + $0x1590] sm:$0xff] }
 0x42c   :  { %9562 = vmatprep.subr.bf16.mxu1 %v9561_v3  ;;  %v3640_v3 = vld [vmem:[#allocation13 + $0x1648] sm:$0xff]  ;;  %v9323_v28 = vpack.c.bf16 %v3623_v59, %v3615_v58  ;;  %v9579_v11 = vpack.c.bf16 %v3625_v44, %v3617_v61  ;;  %v9593_v58 = vpack.c.bf16 %v3690_v23, %v3682_v33  ;;  %v3689_v59 = vld [vmem:[#allocation13 + $0x17d0] sm:$0xff]  ;;  %v3698_v44 = vld [vmem:[#allocation13 + $0x1818] sm:$0xff] }
 0x42d   :  { %v9325_v63 = vpack.c.bf16 %v3640_v3, %v3632_v2  ;;  %v3696_v61 = vld [vmem:[#allocation13 + $0x1808] sm:$0xff]  ;;  %v3706_v2 = vld [vmem:[#allocation13 + $0x1858] sm:$0xff]  ;;  %v3727_v23 = vld [vmem:[#allocation13 + $0x1900] sm:$0xff] }
 0x42e   :  { %9308 = vmatpush1.bf16.msra.mxu0 %v9307_v13  ;;  %v3631_v13 = vld [vmem:[#allocation13 + $0x1600] sm:$0xff] }
 0x42f   :  { %9564 = vmatpush1.bf16.msra.mxu1 %v9563_v14  ;;  %9310 = vmatprep.subr.bf16.mxu0 %v9309_v15  ;;  %v3639_v14 = vld [vmem:[#allocation13 + $0x1640] sm:$0xff]  ;;  %v3633_v15 = vld [vmem:[#allocation13 + $0x1610] sm:$0xff] }
 0x430   :  { %9566 = vmatprep.subr.bf16.mxu1 %v9565_v18  ;;  %v3656_v18 = vld [vmem:[#allocation13 + $0x16c8] sm:$0xff]  ;;  %v9327_v47 = vpack.c.bf16 %v3639_v14, %v3631_v13  ;;  %v9583_v21 = vpack.c.bf16 %v3641_v17, %v3633_v15  ;;  %v1774_v13 = vrot.slane %v12099_v41, %v12024_v9  ;;  %v3695_v15 = vld [vmem:[#allocation13 + $0x1800] sm:$0xff] }
 0x431   :  { %v9329_v51 = vpack.c.bf16 %v3656_v18, %v3648_v6  ;;  %v3703_v18 = vld [vmem:[#allocation13 + $0x1840] sm:$0xff] }
 0x432   :  { %9312 = vmatpush1.bf16.msra.mxu0 %v9311_v22  ;;  %v3647_v22 = vld [vmem:[#allocation13 + $0x1680] sm:$0xff] }
 0x433   :  { %9568 = vmatpush1.bf16.msra.mxu1 %v9567_v1  ;;  %9314 = vmatprep.subr.bf16.mxu0 %v9313_v25  ;;  %v3655_v1 = vld [vmem:[#allocation13 + $0x16c0] sm:$0xff]  ;;  %v3649_v25 = vld [vmem:[#allocation13 + $0x1690] sm:$0xff] }
 0x434   :  { %9570 = vmatprep.subr.bf16.mxu1 %v9569_v32  ;;  %v3672_v32 = vld [vmem:[#allocation13 + $0x1748] sm:$0xff]  ;;  %v9331_v35 = vpack.c.bf16 %v3655_v1, %v3647_v22  ;;  %v9587_v10 = vpack.c.bf16 %v3657_v30, %v3649_v25  ;;  %v3714_v25 = vld [vmem:[#allocation13 + $0x1898] sm:$0xff] }
 0x435   :  { %v9333_v37 = vpack.c.bf16 %v3672_v32, %v3664_v31  ;;  %v3720_v1 = vld [vmem:[#allocation13 + $0x18c8] sm:$0xff]  ;;  %v9343_v31 = vpack.c.bf16 %v3703_v18, %v3695_v15  ;;  %v3711_v32 = vld [vmem:[#allocation13 + $0x1880] sm:$0xff]  ;;  %v3770_v15 = vld [vmem:[#allocation13 + $0x1a58] sm:$0xff] }
 0x436   :  { %9316 = vmatpush1.bf16.msra.mxu0 %v9315_v38  ;;  %v3663_v38 = vld [vmem:[#allocation13 + $0x1700] sm:$0xff] }
 0x437   :  { %9572 = vmatpush1.bf16.msra.mxu1 %v9571_v36  ;;  %9318 = vmatprep.subr.bf16.mxu0 %v9317_v49  ;;  %v3671_v36 = vld [vmem:[#allocation13 + $0x1740] sm:$0xff]  ;;  %v3665_v49 = vld [vmem:[#allocation13 + $0x1710] sm:$0xff] }
 0x438   :  { %9574 = vmatprep.subr.bf16.mxu1 %v9573_v45  ;;  %v3688_v45 = vld [vmem:[#allocation13 + $0x17c8] sm:$0xff]  ;;  %v9335_v52 = vpack.c.bf16 %v3671_v36, %v3663_v38  ;;  %v9591_v53 = vpack.c.bf16 %v3673_v24, %v3665_v49  ;;  %v3738_v24 = vld [vmem:[#allocation13 + $0x1958] sm:$0xff]  ;;  %v3759_v18 = vld [vmem:[#allocation13 + $0x1a00] sm:$0xff] }
 0x439   :  { %v9337_v54 = vpack.c.bf16 %v3688_v45, %v3680_v39  ;;  %v3736_v49 = vld [vmem:[#allocation13 + $0x1948] sm:$0xff]  ;;  %v9347_v45 = vpack.c.bf16 %v3719_v0, %v3711_v32  ;;  %v3775_v32 = vld [vmem:[#allocation13 + $0x1a80] sm:$0xff] }
 0x43a   :  { %9320 = vmatpush1.bf16.msra.mxu0 %v9319_v40  ;;  %v3679_v40 = vld [vmem:[#allocation13 + $0x1780] sm:$0xff] }
 0x43b   :  { %9576 = vmatpush1.bf16.msra.mxu1 %v9575_v55  ;;  %9322 = vmatprep.subr.bf16.mxu0 %v9321_v57  ;;  %v3687_v55 = vld [vmem:[#allocation13 + $0x17c0] sm:$0xff]  ;;  %v3681_v57 = vld [vmem:[#allocation13 + $0x1790] sm:$0xff] }
 0x43c   :  { %9578 = vmatprep.subr.bf16.mxu1 %v9577_v62  ;;  %v3704_v62 = vld [vmem:[#allocation13 + $0x1848] sm:$0xff]  ;;  %v9339_v3 = vpack.c.bf16 %v3687_v55, %v3679_v40  ;;  %v9595_v5 = vpack.c.bf16 %v3689_v59, %v3681_v57  ;;  %v3729_v40 = vld [vmem:[#allocation13 + $0x1910] sm:$0xff]  ;;  %v3746_v59 = vld [vmem:[#allocation13 + $0x1998] sm:$0xff] }
 0x43d   :  { %v9341_v7 = vpack.c.bf16 %v3704_v62, %v3696_v61  ;;  %v3737_v55 = vld [vmem:[#allocation13 + $0x1950] sm:$0xff]  ;;  %v3744_v57 = vld [vmem:[#allocation13 + $0x1988] sm:$0xff]  ;;  %v3754_v61 = vld [vmem:[#allocation13 + $0x19d8] sm:$0xff] }
 0x43e   :  { %9324 = vmatpush1.bf16.msra.mxu0 %v9323_v28  ;;  %v9597_v28 = vpack.c.bf16 %v3706_v2, %v3698_v44  ;;  %v9607_v44 = vpack.c.bf16 %v3737_v55, %v3729_v40  ;;  %v3743_v2 = vld [vmem:[#allocation13 + $0x1980] sm:$0xff]  ;;  %v3793_v40 = vld [vmem:[#allocation13 + $0x1b10] sm:$0xff] }
 0x43f   :  { %9580 = vmatpush1.bf16.msra.mxu1 %v9579_v11  ;;  %9326 = vmatprep.subr.bf16.mxu0 %v9325_v63  ;;  %v1762_v11 = vrot.slane %v12099_v41, %v12021_v56  ;;  %v1766_v63 = vrot.slane %v12099_v41, %v12000_v12  ;;  %v9599_v41 = vpack.c.bf16 %v3705_v20, %v3697_v19  ;;  %v3767_v19 = vld [vmem:[#allocation13 + $0x1a40] sm:$0xff]  ;;  %v3801_v55 = vld [vmem:[#allocation13 + $0x1b50] sm:$0xff] }
 0x440   :  { %9582 = vmatprep.subr.bf16.mxu1 %v9581_v16  ;;  %v3783_v0 = vld [vmem:[#allocation13 + $0x1ac0] sm:$0xff] }
 0x442   :  { %9328 = vmatpush1.bf16.msra.mxu0 %v9327_v47 }
 0x443   :  { %9584 = vmatpush1.bf16.msra.mxu1 %v9583_v21  ;;  %9330 = vmatprep.subr.bf16.mxu0 %v9329_v51  ;;  %v3712_v51 = vld [vmem:[#allocation13 + $0x1888] sm:$0xff] }
 0x444   :  { %9586 = vmatprep.subr.bf16.mxu1 %v9585_v26  ;;  %v3722_v26 = vld [vmem:[#allocation13 + $0x18d8] sm:$0xff]  ;;  %v9345_v38 = vpack.c.bf16 %v3720_v1, %v3712_v51  ;;  %v3769_v51 = vld [vmem:[#allocation13 + $0x1a50] sm:$0xff]  ;;  %v3784_v1 = vld [vmem:[#allocation13 + $0x1ac8] sm:$0xff] }
 0x445   :  { %v9601_v36 = vpack.c.bf16 %v3722_v26, %v3714_v25  ;;  %v3778_v25 = vld [vmem:[#allocation13 + $0x1a98] sm:$0xff] }
 0x446   :  { %9332 = vmatpush1.bf16.msra.mxu0 %v9331_v35  ;;  %v3713_v35 = vld [vmem:[#allocation13 + $0x1890] sm:$0xff]  ;;  %v3786_v26 = vld [vmem:[#allocation13 + $0x1ad8] sm:$0xff] }
 0x447   :  { %9588 = vmatpush1.bf16.msra.mxu1 %v9587_v10  ;;  %9334 = vmatprep.subr.bf16.mxu0 %v9333_v37  ;;  %v3721_v10 = vld [vmem:[#allocation13 + $0x18d0] sm:$0xff]  ;;  %v3728_v37 = vld [vmem:[#allocation13 + $0x1908] sm:$0xff] }
 0x448   :  { %9590 = vmatprep.subr.bf16.mxu1 %v9589_v42  ;;  %v3730_v42 = vld [vmem:[#allocation13 + $0x1918] sm:$0xff]  ;;  %v9603_v33 = vpack.c.bf16 %v3721_v10, %v3713_v35  ;;  %v9617_v10 = vpack.c.bf16 %v3786_v26, %v3778_v25 }
 0x449   :  { %v3842_v25 = vld [vmem:[#allocation13 + $0x1c98] sm:$0xff] }
 0x44a   :  { %9336 = vmatpush1.bf16.msra.mxu0 %v9335_v52  ;;  %v3735_v52 = vld [vmem:[#allocation13 + $0x1940] sm:$0xff]  ;;  %v3850_v26 = vld [vmem:[#allocation13 + $0x1cd8] sm:$0xff] }
 0x44b   :  { %9592 = vmatpush1.bf16.msra.mxu1 %v9591_v53  ;;  %9338 = vmatprep.subr.bf16.mxu0 %v9337_v54  ;;  %v9349_v53 = vpack.c.bf16 %v3736_v49, %v3728_v37  ;;  %v9605_v54 = vpack.c.bf16 %v3738_v24, %v3730_v42  ;;  %v9351_v62 = vpack.c.bf16 %v3735_v52, %v3727_v23  ;;  %v3777_v37 = vld [vmem:[#allocation13 + $0x1a90] sm:$0xff]  ;;  %v3800_v49 = vld [vmem:[#allocation13 + $0x1b48] sm:$0xff]  ;;  %v3794_v42 = vld [vmem:[#allocation13 + $0x1b18] sm:$0xff] }
 0x44c   :  { %9594 = vmatprep.subr.bf16.mxu1 %v9593_v58  ;;  %v3752_v58 = vld [vmem:[#allocation13 + $0x19c8] sm:$0xff]  ;;  %v3802_v24 = vld [vmem:[#allocation13 + $0x1b58] sm:$0xff]  ;;  %v3791_v23 = vld [vmem:[#allocation13 + $0x1b00] sm:$0xff] }
 0x44d   :  { %v3799_v52 = vld [vmem:[#allocation13 + $0x1b40] sm:$0xff] }
 0x44e   :  { %9340 = vmatpush1.bf16.msra.mxu0 %v9339_v3  ;;  %v3751_v3 = vld [vmem:[#allocation13 + $0x19c0] sm:$0xff] }
 0x44f   :  { %9596 = vmatpush1.bf16.msra.mxu1 %v9595_v5  ;;  %9342 = vmatprep.subr.bf16.mxu0 %v9341_v7  ;;  %v9353_v5 = vpack.c.bf16 %v3752_v58, %v3744_v57  ;;  %v9609_v7 = vpack.c.bf16 %v3754_v61, %v3746_v59  ;;  %v3808_v57 = vld [vmem:[#allocation13 + $0x1b88] sm:$0xff]  ;;  %v3810_v59 = vld [vmem:[#allocation13 + $0x1b98] sm:$0xff] }
 0x450   :  { %9598 = vmatprep.subr.bf16.mxu1 %v9597_v28  ;;  %v3745_v28 = vld [vmem:[#allocation13 + $0x1990] sm:$0xff]  ;;  %v3816_v58 = vld [vmem:[#allocation13 + $0x1bc8] sm:$0xff]  ;;  %v3818_v61 = vld [vmem:[#allocation13 + $0x1bd8] sm:$0xff] }
 0x464   :  { %v2630_v14 = vpop.f32.mrb[6].mxu0 }
 0x465   :  { %v11329_v16 = vadd.f32 %v2630_v14, %v1762_v11  ;;  %v12114_v17 = vpop.f32.mrb[6].mxu1  ;;  %v2632_v6 = vpop.f32.mrb[7].mxu0  ;;  %v3753_v11 = vld [vmem:[#allocation13 + $0x19d0] sm:$0xff]  ;;  %v3762_v14 = vld [vmem:[#allocation13 + $0x1a18] sm:$0xff] }
 0x466   :  { %v11330_v47 = vadd.f32 %v2632_v6, %v1766_v63  ;;  %v2916_v21 = vpop.f32.mrb[7].mxu1  ;;  %v3760_v63 = vld [vmem:[#allocation13 + $0x1a08] sm:$0xff]  ;;  %v9611_v6 = vpack.c.bf16 %v3753_v11, %v3745_v28  ;;  %v3809_v28 = vld [vmem:[#allocation13 + $0x1b90] sm:$0xff] }
 0x467   :  { %v11332_v22 = vadd.f32 %v2916_v21, %v1774_v13  ;;  %v12118_v43 = vmax.f32 %v11329_v16, 0.0  ;;  %v3768_v13 = vld [vmem:[#allocation13 + $0x1a48] sm:$0xff]  ;;  %v9355_v16 = vpack.c.bf16 %v3751_v3, %v3743_v2  ;;  %v3761_v21 = vld [vmem:[#allocation13 + $0x1a10] sm:$0xff]  ;;  %v3807_v2 = vld [vmem:[#allocation13 + $0x1b80] sm:$0xff] }
 0x468   :  { %v12116_v30 = vmax.f32 %v11330_v47, 0.0  ;;  %v9357_v20 = vpack.c.bf16 %v3768_v13, %v3760_v63  ;;  %v9613_v47 = vpack.c.bf16 %v3770_v15, %v3762_v14  ;;  %v3815_v3 = vld [vmem:[#allocation13 + $0x1bc0] sm:$0xff]  ;;  %v3817_v11 = vld [vmem:[#allocation13 + $0x1bd0] sm:$0xff]  ;;  %v3824_v63 = vld [vmem:[#allocation13 + $0x1c08] sm:$0xff] }
 0x469   :  { %v12122_v39 = vmax.f32 %v11332_v22, 0.0  ;;  %v3776_v22 = vld [vmem:[#allocation13 + $0x1a88] sm:$0xff]  ;;  %v3826_v14 = vld [vmem:[#allocation13 + $0x1c18] sm:$0xff] }
 0x46a   :  { %4199 = vmatprep.mubr.f32.mxu0 %v12116_v30  ;;  %4483 = vmatprep.mubr.f32.mxu1 %v12116_v30  ;;  %v9361_v35 = vpack.c.bf16 %v3784_v1, %v3776_v22  ;;  %v3832_v13 = vld [vmem:[#allocation13 + $0x1c48] sm:$0xff]  ;;  %v3834_v15 = vld [vmem:[#allocation13 + $0x1c58] sm:$0xff] }
 0x46b   :  { %4200 = vmatmul.mubr.f32.vlgmr.msra.gmra.mrb[8].mxu0 %v12118_v43  ;;  %4484 = vmatmul.mubr.f32.vlgmr.msra.gmra.mrb[8].mxu1 %v12118_v43  ;;  %v3840_v22 = vld [vmem:[#allocation13 + $0x1c88] sm:$0xff] }
 0x46c   :  { %9344 = vmatpush1.bf16.msra.mxu0 %v9343_v31  ;;  %9600 = vmatpush1.bf16.msra.mxu1 %v9599_v41  ;;  %v9359_v31 = vpack.c.bf16 %v3767_v19, %v3759_v18  ;;  %v9615_v41 = vpack.c.bf16 %v3769_v51, %v3761_v21  ;;  %v3823_v18 = vld [vmem:[#allocation13 + $0x1c00] sm:$0xff]  ;;  %v3825_v21 = vld [vmem:[#allocation13 + $0x1c10] sm:$0xff]  ;;  %v3848_v1 = vld [vmem:[#allocation13 + $0x1cc8] sm:$0xff] }
 0x46d   :  { %4270 = vmatprep.mubr.f32.mxu0 %v12122_v39  ;;  %4554 = vmatprep.mubr.f32.mxu1 %v12122_v39  ;;  %v3831_v19 = vld [vmem:[#allocation13 + $0x1c40] sm:$0xff]  ;;  %v3833_v51 = vld [vmem:[#allocation13 + $0x1c50] sm:$0xff] }
 0x46e   :  { %9346 = vmatprep.subr.bf16.mxu0 %v9345_v38  ;;  %9602 = vmatprep.subr.bf16.mxu1 %v9601_v36  ;;  %v3785_v38 = vld [vmem:[#allocation13 + $0x1ad0] sm:$0xff]  ;;  %v3792_v36 = vld [vmem:[#allocation13 + $0x1b08] sm:$0xff] }
 0x470   :  { %9348 = vmatpush1.bf16.msra.mxu0 %v9347_v45  ;;  %9604 = vmatpush1.bf16.msra.mxu1 %v9603_v33  ;;  %v9363_v45 = vpack.c.bf16 %v3783_v0, %v3775_v32  ;;  %v9619_v33 = vpack.c.bf16 %v3785_v38, %v3777_v37  ;;  %v3839_v32 = vld [vmem:[#allocation13 + $0x1c80] sm:$0xff]  ;;  %v3841_v37 = vld [vmem:[#allocation13 + $0x1c90] sm:$0xff] }
 0x471   :  { %9350 = vmatprep.subr.bf16.mxu0 %v9349_v53  ;;  %9606 = vmatprep.subr.bf16.mxu1 %v9605_v54  ;;  %v9365_v53 = vpack.c.bf16 %v3800_v49, %v3792_v36  ;;  %v9621_v54 = vpack.c.bf16 %v3802_v24, %v3794_v42  ;;  %v3847_v0 = vld [vmem:[#allocation13 + $0x1cc0] sm:$0xff]  ;;  %v3849_v38 = vld [vmem:[#allocation13 + $0x1cd0] sm:$0xff]  ;;  %v3856_v36 = vld [vmem:[#allocation13 + $0x1d08] sm:$0xff] }
 0x472   :  { %v3864_v49 = vld [vmem:[#allocation13 + $0x1d48] sm:$0xff]  ;;  %v3858_v42 = vld [vmem:[#allocation13 + $0x1d18] sm:$0xff] }
 0x473   :  { %v3866_v24 = vld [vmem:[#allocation13 + $0x1d58] sm:$0xff] }
 0x474   :  { %9352 = vmatpush1.bf16.msra.mxu0 %v9351_v62  ;;  %9608 = vmatpush1.bf16.msra.mxu1 %v9607_v44  ;;  %v9367_v62 = vpack.c.bf16 %v3799_v52, %v3791_v23  ;;  %v9623_v44 = vpack.c.bf16 %v3801_v55, %v3793_v40  ;;  %v3855_v23 = vld [vmem:[#allocation13 + $0x1d00] sm:$0xff]  ;;  %v3857_v40 = vld [vmem:[#allocation13 + $0x1d10] sm:$0xff] }
 0x475   :  { %9354 = vmatprep.subr.bf16.mxu0 %v9353_v5  ;;  %9610 = vmatprep.subr.bf16.mxu1 %v9609_v7  ;;  %v9369_v5 = vpack.c.bf16 %v3816_v58, %v3808_v57  ;;  %v9625_v7 = vpack.c.bf16 %v3818_v61, %v3810_v59  ;;  %v3863_v52 = vld [vmem:[#allocation13 + $0x1d40] sm:$0xff]  ;;  %v3865_v55 = vld [vmem:[#allocation13 + $0x1d50] sm:$0xff]  ;;  %v3872_v57 = vld [vmem:[#allocation13 + $0x1d88] sm:$0xff] }
 0x476   :  { %v3880_v58 = vld [vmem:[#allocation13 + $0x1dc8] sm:$0xff]  ;;  %v3874_v59 = vld [vmem:[#allocation13 + $0x1d98] sm:$0xff] }
 0x477   :  { %v3882_v61 = vld [vmem:[#allocation13 + $0x1dd8] sm:$0xff] }
 0x478   :  { %9356 = vmatpush1.bf16.msra.mxu0 %v9355_v16  ;;  %9612 = vmatpush1.bf16.msra.mxu1 %v9611_v6  ;;  %v9371_v16 = vpack.c.bf16 %v3815_v3, %v3807_v2  ;;  %v9627_v6 = vpack.c.bf16 %v3817_v11, %v3809_v28  ;;  %v3871_v2 = vld [vmem:[#allocation13 + $0x1d80] sm:$0xff]  ;;  %v3873_v28 = vld [vmem:[#allocation13 + $0x1d90] sm:$0xff] }
 0x479   :  { %9358 = vmatprep.subr.bf16.mxu0 %v9357_v20  ;;  %9614 = vmatprep.subr.bf16.mxu1 %v9613_v47  ;;  %v9373_v20 = vpack.c.bf16 %v3832_v13, %v3824_v63  ;;  %v9629_v47 = vpack.c.bf16 %v3834_v15, %v3826_v14  ;;  %v3879_v3 = vld [vmem:[#allocation13 + $0x1dc0] sm:$0xff]  ;;  %v3881_v11 = vld [vmem:[#allocation13 + $0x1dd0] sm:$0xff]  ;;  %v3888_v63 = vld [vmem:[#allocation13 + $0x1e08] sm:$0xff] }
 0x47a   :  { %v3896_v13 = vld [vmem:[#allocation13 + $0x1e48] sm:$0xff]  ;;  %v3890_v14 = vld [vmem:[#allocation13 + $0x1e18] sm:$0xff] }
 0x47b   :  { %v3898_v15 = vld [vmem:[#allocation13 + $0x1e58] sm:$0xff] }
 0x47c   :  { %9360 = vmatpush1.bf16.msra.mxu0 %v9359_v31  ;;  %9616 = vmatpush1.bf16.msra.mxu1 %v9615_v41  ;;  %v9375_v31 = vpack.c.bf16 %v3831_v19, %v3823_v18  ;;  %v9631_v41 = vpack.c.bf16 %v3833_v51, %v3825_v21  ;;  %v3887_v18 = vld [vmem:[#allocation13 + $0x1e00] sm:$0xff]  ;;  %v3889_v21 = vld [vmem:[#allocation13 + $0x1e10] sm:$0xff] }
 0x47d   :  { %9362 = vmatprep.subr.bf16.mxu0 %v9361_v35  ;;  %9618 = vmatprep.subr.bf16.mxu1 %v9617_v10  ;;  %v9377_v35 = vpack.c.bf16 %v3848_v1, %v3840_v22  ;;  %v9633_v10 = vpack.c.bf16 %v3850_v26, %v3842_v25  ;;  %v3895_v19 = vld [vmem:[#allocation13 + $0x1e40] sm:$0xff]  ;;  %v3897_v51 = vld [vmem:[#allocation13 + $0x1e50] sm:$0xff]  ;;  %v3904_v22 = vld [vmem:[#allocation13 + $0x1e88] sm:$0xff] }
 0x47e   :  { %v3912_v1 = vld [vmem:[#allocation13 + $0x1ec8] sm:$0xff]  ;;  %v3906_v25 = vld [vmem:[#allocation13 + $0x1e98] sm:$0xff] }
 0x47f   :  { %v3914_v26 = vld [vmem:[#allocation13 + $0x1ed8] sm:$0xff] }
 0x480   :  { %9364 = vmatpush1.bf16.msra.mxu0 %v9363_v45  ;;  %9620 = vmatpush1.bf16.msra.mxu1 %v9619_v33  ;;  %v9379_v45 = vpack.c.bf16 %v3847_v0, %v3839_v32  ;;  %v9635_v33 = vpack.c.bf16 %v3849_v38, %v3841_v37  ;;  %v3903_v32 = vld [vmem:[#allocation13 + $0x1e80] sm:$0xff]  ;;  %v3905_v37 = vld [vmem:[#allocation13 + $0x1e90] sm:$0xff] }
 0x481   :  { %9366 = vmatprep.subr.bf16.mxu0 %v9365_v53  ;;  %9622 = vmatprep.subr.bf16.mxu1 %v9621_v54  ;;  %v9381_v53 = vpack.c.bf16 %v3864_v49, %v3856_v36  ;;  %v9637_v54 = vpack.c.bf16 %v3866_v24, %v3858_v42  ;;  %v3911_v0 = vld [vmem:[#allocation13 + $0x1ec0] sm:$0xff]  ;;  %v3913_v38 = vld [vmem:[#allocation13 + $0x1ed0] sm:$0xff]  ;;  %v3920_v36 = vld [vmem:[#allocation13 + $0x1f08] sm:$0xff] }
 0x482   :  { %v3928_v49 = vld [vmem:[#allocation13 + $0x1f48] sm:$0xff]  ;;  %v3922_v42 = vld [vmem:[#allocation13 + $0x1f18] sm:$0xff] }
 0x483   :  { %v3930_v24 = vld [vmem:[#allocation13 + $0x1f58] sm:$0xff] }
 0x484   :  { %9368 = vmatpush1.bf16.msra.mxu0 %v9367_v62  ;;  %9624 = vmatpush1.bf16.msra.mxu1 %v9623_v44  ;;  %v9383_v62 = vpack.c.bf16 %v3863_v52, %v3855_v23  ;;  %v9639_v44 = vpack.c.bf16 %v3865_v55, %v3857_v40  ;;  %v3919_v23 = vld [vmem:[#allocation13 + $0x1f00] sm:$0xff]  ;;  %v3921_v40 = vld [vmem:[#allocation13 + $0x1f10] sm:$0xff] }
 0x485   :  { %9370 = vmatprep.subr.bf16.mxu0 %v9369_v5  ;;  %9626 = vmatprep.subr.bf16.mxu1 %v9625_v7  ;;  %v9385_v5 = vpack.c.bf16 %v3880_v58, %v3872_v57  ;;  %v9641_v7 = vpack.c.bf16 %v3882_v61, %v3874_v59  ;;  %v3927_v52 = vld [vmem:[#allocation13 + $0x1f40] sm:$0xff]  ;;  %v3929_v55 = vld [vmem:[#allocation13 + $0x1f50] sm:$0xff]  ;;  %v3936_v57 = vld [vmem:[#allocation13 + $0x1f88] sm:$0xff] }
 0x486   :  { %v3944_v58 = vld [vmem:[#allocation13 + $0x1fc8] sm:$0xff]  ;;  %v3938_v59 = vld [vmem:[#allocation13 + $0x1f98] sm:$0xff] }
 0x487   :  { %v3946_v61 = vld [vmem:[#allocation13 + $0x1fd8] sm:$0xff] }
 0x488   :  { %9372 = vmatpush1.bf16.msra.mxu0 %v9371_v16  ;;  %9628 = vmatpush1.bf16.msra.mxu1 %v9627_v6  ;;  %v9387_v16 = vpack.c.bf16 %v3879_v3, %v3871_v2  ;;  %v9643_v6 = vpack.c.bf16 %v3881_v11, %v3873_v28  ;;  %v3935_v2 = vld [vmem:[#allocation13 + $0x1f80] sm:$0xff]  ;;  %v9401_v28 = vpack.c.bf16 %v3944_v58, %v3936_v57  ;;  %v2965_v57 = vld [vmem:[#allocation13 + $0x130] sm:$0xff] }
 0x489   :  { %9374 = vmatprep.subr.bf16.mxu0 %v9373_v20  ;;  %9630 = vmatprep.subr.bf16.mxu1 %v9629_v47  ;;  %v9389_v20 = vpack.c.bf16 %v3896_v13, %v3888_v63  ;;  %v9645_v47 = vpack.c.bf16 %v3898_v15, %v3890_v14  ;;  %v3943_v3 = vld [vmem:[#allocation13 + $0x1fc0] sm:$0xff]  ;;  %v9657_v11 = vpack.c.bf16 %v3946_v61, %v3938_v59  ;;  %v3937_v63 = vld [vmem:[#allocation13 + $0x1f90] sm:$0xff]  ;;  %v2932_v14 = vld [vmem:[#allocation13 + $0x28] sm:$0xff] }
 0x48a   :  { %v3945_v13 = vld [vmem:[#allocation13 + $0x1fd0] sm:$0xff]  ;;  %v2940_v15 = vld [vmem:[#allocation13 + $0x68] sm:$0xff] }
 0x48b   :  { %v2973_v59 = vld [vmem:[#allocation13 + $0x170] sm:$0xff]  ;;  %v2980_v61 = vld [vmem:[#allocation13 + $0x1a8] sm:$0xff] }
 0x48c   :  { %9376 = vmatpush1.bf16.msra.mxu0 %v9375_v31  ;;  %9632 = vmatpush1.bf16.msra.mxu1 %v9631_v41  ;;  %v9391_v31 = vpack.c.bf16 %v3895_v19, %v3887_v18  ;;  %v9647_v41 = vpack.c.bf16 %v3897_v51, %v3889_v21  ;;  %v9403_v18 = vpack.c.bf16 %v3943_v3, %v3935_v2  ;;  %v2931_v51 = vld [vmem:[#allocation13 + $0x20] sm:$0xff]  ;;  %v2990_v2 = vld [vmem:[#allocation13 + $0x1f8] sm:$0xff] }
 0x48d   :  { %9378 = vmatprep.subr.bf16.mxu0 %v9377_v35  ;;  %9634 = vmatprep.subr.bf16.mxu1 %v9633_v10  ;;  %v9393_v35 = vpack.c.bf16 %v3912_v1, %v3904_v22  ;;  %v9649_v10 = vpack.c.bf16 %v3914_v26, %v3906_v25  ;;  %v9659_v19 = vpack.c.bf16 %v3945_v13, %v3937_v63  ;;  %v2939_v22 = vld [vmem:[#allocation13 + $0x60] sm:$0xff]  ;;  %v2933_v1 = vld [vmem:[#allocation13 + $0x30] sm:$0xff]  ;;  %v2948_v26 = vld [vmem:[#allocation13 + $0xa8] sm:$0xff] }
 0x48e   :  { %v2941_v25 = vld [vmem:[#allocation13 + $0x70] sm:$0xff] }
 0x48f   :  { %v2989_v13 = vld [vmem:[#allocation13 + $0x1f0] sm:$0xff] }
 0x490   :  { %9380 = vmatpush1.bf16.msra.mxu0 %v9379_v45  ;;  %9636 = vmatpush1.bf16.msra.mxu1 %v9635_v33  ;;  %v9395_v45 = vpack.c.bf16 %v3911_v0, %v3903_v32  ;;  %v9651_v33 = vpack.c.bf16 %v3913_v38, %v3905_v37  ;;  %v2958_v32 = vld [vmem:[#allocation13 + $0xf8] sm:$0xff]  ;;  %v9663_v0 = vpack.c.bf16 %v2939_v22, %v2931_v51  ;;  %v2955_v37 = vld [vmem:[#allocation13 + $0xe0] sm:$0xff]  ;;  %v2949_v38 = vld [vmem:[#allocation13 + $0xb0] sm:$0xff] }
 0x491   :  { %9382 = vmatprep.subr.bf16.mxu0 %v9381_v53  ;;  %9638 = vmatprep.subr.bf16.mxu1 %v9637_v54  ;;  %v9397_v53 = vpack.c.bf16 %v3928_v49, %v3920_v36  ;;  %v9653_v54 = vpack.c.bf16 %v3930_v24, %v3922_v42  ;;  %v2957_v42 = vld [vmem:[#allocation13 + $0xf0] sm:$0xff]  ;;  %v2964_v24 = vld [vmem:[#allocation13 + $0x128] sm:$0xff] }
 0x492   :  { %v2997_v51 = vld [vmem:[#allocation13 + $0x230] sm:$0xff] }
 0x494   :  { %9384 = vmatpush1.bf16.msra.mxu0 %v9383_v62  ;;  %9640 = vmatpush1.bf16.msra.mxu1 %v9639_v44  ;;  %v9399_v62 = vpack.c.bf16 %v3927_v52, %v3919_v23  ;;  %v9655_v44 = vpack.c.bf16 %v3929_v55, %v3921_v40  ;;  %v2974_v23 = vld [vmem:[#allocation13 + $0x178] sm:$0xff]  ;;  %v2963_v40 = vld [vmem:[#allocation13 + $0x120] sm:$0xff] }
 0x495   :  { %9386 = vmatprep.subr.bf16.mxu0 %v9385_v5  ;;  %9642 = vmatprep.subr.bf16.mxu1 %v9641_v7  ;;  %v11437_v5 = vld [vmem:[#allocation11] sm:$0xff]  ;;  %v2971_v55 = vld [vmem:[#allocation13 + $0x160] sm:$0xff] }
 0x496   :  { %v1770_v7 = vrot.slane %v11437_v5, %v12043_v4  ;;  %v9671_v3 = vpack.c.bf16 %v2971_v55, %v2963_v40  ;;  %v9927_v5 = vpack.c.bf16 %v2973_v59, %v2965_v57  ;;  %v3035_v40 = vld [vmem:[#allocation13 + $0x360] sm:$0xff]  ;;  %v3029_v55 = vld [vmem:[#allocation13 + $0x330] sm:$0xff]  ;;  %v3044_v59 = vld [vmem:[#allocation13 + $0x3a8] sm:$0xff] }
 0x498   :  { %9388 = vmatpush1.bf16.msra.mxu0 %v9387_v16  ;;  %9644 = vmatpush1.bf16.msra.mxu1 %v9643_v6  ;;  %v2934_v16 = vld [vmem:[#allocation13 + $0x38] sm:$0xff] }
 0x499   :  { %9390 = vmatprep.subr.bf16.mxu0 %v9389_v20  ;;  %9646 = vmatprep.subr.bf16.mxu1 %v9645_v47  ;;  %v2942_v6 = vld [vmem:[#allocation13 + $0x78] sm:$0xff]  ;;  %v11331_v20 = vadd.f32 %v12114_v17, %v1770_v7  ;;  %v9661_v47 = vpack.c.bf16 %v2940_v15, %v2932_v14  ;;  %v9919_v17 = vpack.c.bf16 %v2941_v25, %v2933_v1  ;;  %v2996_v14 = vld [vmem:[#allocation13 + $0x228] sm:$0xff]  ;;  %v3005_v1 = vld [vmem:[#allocation13 + $0x270] sm:$0xff] }
 0x49a   :  { %v9917_v21 = vpack.c.bf16 %v2942_v6, %v2934_v16  ;;  %v3004_v15 = vld [vmem:[#allocation13 + $0x268] sm:$0xff]  ;;  %v2998_v16 = vld [vmem:[#allocation13 + $0x238] sm:$0xff] }
 0x49b   :  { %v3006_v6 = vld [vmem:[#allocation13 + $0x278] sm:$0xff]  ;;  %v3012_v25 = vld [vmem:[#allocation13 + $0x2a8] sm:$0xff] }
 0x49c   :  { %9392 = vmatpush1.bf16.msra.mxu0 %v9391_v31  ;;  %9648 = vmatpush1.bf16.msra.mxu1 %v9647_v41  ;;  %v2956_v31 = vld [vmem:[#allocation13 + $0xe8] sm:$0xff]  ;;  %v2950_v41 = vld [vmem:[#allocation13 + $0xb8] sm:$0xff]  ;;  %v9933_v22 = vpack.c.bf16 %v3006_v6, %v2998_v16 }
 0x49d   :  { %9394 = vmatprep.subr.bf16.mxu0 %v9393_v35  ;;  %9650 = vmatprep.subr.bf16.mxu1 %v9649_v10  ;;  %v12130_v35 = vmax.f32 %v11331_v20, 0.0  ;;  %v2947_v10 = vld [vmem:[#allocation13 + $0xa0] sm:$0xff]  ;;  %v9665_v36 = vpack.c.bf16 %v2956_v31, %v2948_v26  ;;  %v9921_v49 = vpack.c.bf16 %v2958_v32, %v2950_v41  ;;  %v9677_v20 = vpack.c.bf16 %v3004_v15, %v2996_v14  ;;  %v3020_v26 = vld [vmem:[#allocation13 + $0x2e8] sm:$0xff]  ;;  %v3014_v31 = vld [vmem:[#allocation13 + $0x2b8] sm:$0xff] }
 0x49e   :  { %v9667_v52 = vpack.c.bf16 %v2955_v37, %v2947_v10  ;;  %v3022_v41 = vld [vmem:[#allocation13 + $0x2f8] sm:$0xff]  ;;  %v3011_v10 = vld [vmem:[#allocation13 + $0x2a0] sm:$0xff]  ;;  %v3068_v14 = vld [vmem:[#allocation13 + $0x468] sm:$0xff] }
 0x49f   :  { %v3019_v37 = vld [vmem:[#allocation13 + $0x2e0] sm:$0xff]  ;;  %v3062_v15 = vld [vmem:[#allocation13 + $0x438] sm:$0xff] }
 0x4a0   :  { %9396 = vmatpush1.bf16.msra.mxu0 %v9395_v45  ;;  %9652 = vmatpush1.bf16.msra.mxu1 %v9651_v33  ;;  %v2972_v45 = vld [vmem:[#allocation13 + $0x168] sm:$0xff]  ;;  %v2966_v33 = vld [vmem:[#allocation13 + $0x138] sm:$0xff] }
 0x4a1   :  { %9398 = vmatprep.subr.bf16.mxu0 %v9397_v53  ;;  %9654 = vmatprep.subr.bf16.mxu1 %v9653_v54  ;;  %v9923_v53 = vpack.c.bf16 %v2957_v42, %v2949_v38  ;;  %v9669_v54 = vpack.c.bf16 %v2972_v45, %v2964_v24  ;;  %v9925_v58 = vpack.c.bf16 %v2974_v23, %v2966_v33  ;;  %v3013_v38 = vld [vmem:[#allocation13 + $0x2b0] sm:$0xff]  ;;  %v3028_v42 = vld [vmem:[#allocation13 + $0x328] sm:$0xff]  ;;  %v3030_v45 = vld [vmem:[#allocation13 + $0x338] sm:$0xff] }
 0x4a2   :  { %v3036_v24 = vld [vmem:[#allocation13 + $0x368] sm:$0xff]  ;;  %v3038_v33 = vld [vmem:[#allocation13 + $0x378] sm:$0xff]  ;;  %v9683_v23 = vpack.c.bf16 %v3019_v37, %v3011_v10  ;;  %v3083_v10 = vld [vmem:[#allocation13 + $0x4e0] sm:$0xff] }
 0x4a3   :  { %v9941_v57 = vpack.c.bf16 %v3038_v33, %v3030_v45  ;;  %v3070_v16 = vld [vmem:[#allocation13 + $0x478] sm:$0xff]  ;;  %v3077_v37 = vld [vmem:[#allocation13 + $0x4b0] sm:$0xff] }
 0x4a4   :  { %9400 = vmatpush1.bf16.msra.mxu0 %v9399_v62  ;;  %9656 = vmatpush1.bf16.msra.mxu1 %v9655_v44  ;;  %v2988_v62 = vld [vmem:[#allocation13 + $0x1e8] sm:$0xff]  ;;  %v2982_v44 = vld [vmem:[#allocation13 + $0x1b8] sm:$0xff] }
 0x4a5   :  { %9402 = vmatprep.subr.bf16.mxu0 %v9401_v28  ;;  %9658 = vmatprep.subr.bf16.mxu1 %v9657_v11  ;;  %v9673_v7 = vpack.c.bf16 %v2988_v62, %v2980_v61  ;;  %v2987_v28 = vld [vmem:[#allocation13 + $0x1e0] sm:$0xff]  ;;  %v2981_v11 = vld [vmem:[#allocation13 + $0x1b0] sm:$0xff]  ;;  %v9929_v63 = vpack.c.bf16 %v2990_v2, %v2982_v44  ;;  %v3052_v61 = vld [vmem:[#allocation13 + $0x3e8] sm:$0xff] }
 0x4a6   :  { %v3046_v62 = vld [vmem:[#allocation13 + $0x3b8] sm:$0xff] }
 0x4a7   :  { %v3054_v44 = vld [vmem:[#allocation13 + $0x3f8] sm:$0xff] }
 0x4a8   :  { %9404 = vmatpush1.bf16.msra.mxu0 %v9403_v18  ;;  %9660 = vmatpush1.bf16.msra.mxu1 %v9659_v19  ;;  %v9931_v19 = vpack.c.bf16 %v2989_v13, %v2981_v11  ;;  %v9945_v11 = vpack.c.bf16 %v3054_v44, %v3046_v62  ;;  %v3060_v13 = vld [vmem:[#allocation13 + $0x428] sm:$0xff]  ;;  %v3102_v45 = vld [vmem:[#allocation13 + $0x578] sm:$0xff] }
 0x4a9   :  { %9662 = vmatprep.subr.bf16.mxu0 %v9661_v47  ;;  %9918 = vmatprep.subr.bf16.mxu1 %v9917_v21  ;;  %v2995_v47 = vld [vmem:[#allocation13 + $0x220] sm:$0xff]  ;;  %v3118_v62 = vld [vmem:[#allocation13 + $0x5f8] sm:$0xff] }
 0x4aa   :  { %v3003_v21 = vld [vmem:[#allocation13 + $0x260] sm:$0xff] }
 0x4ab   :  { %4271 = vmatmul.mubr.f32.vlgmr.msra.gmra.mrb[8].mxu0 %v12130_v35  ;;  %4555 = vmatmul.mubr.f32.vlgmr.msra.gmra.mrb[8].mxu1 %v12130_v35  ;;  %v9679_v32 = vpack.c.bf16 %v3003_v21, %v2995_v47  ;;  %v3067_v47 = vld [vmem:[#allocation13 + $0x460] sm:$0xff]  ;;  %v3061_v21 = vld [vmem:[#allocation13 + $0x430] sm:$0xff] }
 0x4ac   :  { %9664 = vmatpush1.bf16.msra.mxu0 %v9663_v0  ;;  %4625 = vmatprep.mubr.f32.mxu0 %v12079_v8  ;;  %v9935_v0 = vpack.c.bf16 %v3005_v1, %v2997_v51  ;;  %v9949_v51 = vpack.c.bf16 %v3070_v16, %v3062_v15  ;;  %v3076_v1 = vld [vmem:[#allocation13 + $0x4a8] sm:$0xff]  ;;  %v3134_v15 = vld [vmem:[#allocation13 + $0x678] sm:$0xff] }
 0x4ad   :  { %9920 = vmatpush1.bf16.msra.mxu1 %v9919_v17  ;;  %4909 = vmatprep.mubr.f32.mxu1 %v12079_v8  ;;  %v2979_v8 = vld [vmem:[#allocation13 + $0x1a0] sm:$0xff]  ;;  %v9681_v17 = vpack.c.bf16 %v3020_v26, %v3012_v25  ;;  %v3084_v25 = vld [vmem:[#allocation13 + $0x4e8] sm:$0xff]  ;;  %v3078_v26 = vld [vmem:[#allocation13 + $0x4b8] sm:$0xff] }
 0x4ae   :  { %9666 = vmatprep.subr.bf16.mxu0 %v9665_v36  ;;  %9922 = vmatprep.subr.bf16.mxu1 %v9921_v49  ;;  %v9675_v18 = vpack.c.bf16 %v2987_v28, %v2979_v8  ;;  %v9937_v36 = vpack.c.bf16 %v3022_v41, %v3014_v31  ;;  %v3021_v49 = vld [vmem:[#allocation13 + $0x2f0] sm:$0xff]  ;;  %v3051_v8 = vld [vmem:[#allocation13 + $0x3e0] sm:$0xff]  ;;  %v3086_v31 = vld [vmem:[#allocation13 + $0x4f8] sm:$0xff] }
 0x4af   :  { %v3045_v28 = vld [vmem:[#allocation13 + $0x3b0] sm:$0xff] }
 0x4b0   :  { %9668 = vmatpush1.bf16.msra.mxu0 %v9667_v52  ;;  %v9939_v52 = vpack.c.bf16 %v3021_v49, %v3013_v38  ;;  %v9953_v38 = vpack.c.bf16 %v3086_v31, %v3078_v26  ;;  %v3092_v49 = vld [vmem:[#allocation13 + $0x528] sm:$0xff]  ;;  %v3150_v26 = vld [vmem:[#allocation13 + $0x6f8] sm:$0xff] }
 0x4b1   :  { %9924 = vmatpush1.bf16.msra.mxu1 %v9923_v53  ;;  %9670 = vmatprep.subr.bf16.mxu0 %v9669_v54  ;;  %v9685_v53 = vpack.c.bf16 %v3036_v24, %v3028_v42  ;;  %v3027_v54 = vld [vmem:[#allocation13 + $0x320] sm:$0xff]  ;;  %v3100_v42 = vld [vmem:[#allocation13 + $0x568] sm:$0xff]  ;;  %v3094_v24 = vld [vmem:[#allocation13 + $0x538] sm:$0xff] }
 0x4b2   :  { %9926 = vmatprep.subr.bf16.mxu1 %v9925_v58  ;;  %v3037_v58 = vld [vmem:[#allocation13 + $0x370] sm:$0xff]  ;;  %v9687_v2 = vpack.c.bf16 %v3035_v40, %v3027_v54  ;;  %v3099_v54 = vld [vmem:[#allocation13 + $0x560] sm:$0xff] }
 0x4b3   :  { %v3093_v40 = vld [vmem:[#allocation13 + $0x530] sm:$0xff] }
 0x4b4   :  { %9672 = vmatpush1.bf16.msra.mxu0 %v9671_v3  ;;  %v9943_v3 = vpack.c.bf16 %v3037_v58, %v3029_v55  ;;  %v9957_v55 = vpack.c.bf16 %v3102_v45, %v3094_v24  ;;  %v3108_v58 = vld [vmem:[#allocation13 + $0x5a8] sm:$0xff]  ;;  %v3166_v24 = vld [vmem:[#allocation13 + $0x778] sm:$0xff] }
 0x4b5   :  { %9928 = vmatpush1.bf16.msra.mxu1 %v9927_v5  ;;  %9674 = vmatprep.subr.bf16.mxu0 %v9673_v7  ;;  %v9689_v5 = vpack.c.bf16 %v3052_v61, %v3044_v59  ;;  %v3043_v7 = vld [vmem:[#allocation13 + $0x3a0] sm:$0xff]  ;;  %v3116_v59 = vld [vmem:[#allocation13 + $0x5e8] sm:$0xff]  ;;  %v3110_v61 = vld [vmem:[#allocation13 + $0x5b8] sm:$0xff] }
 0x4b6   :  { %9930 = vmatprep.subr.bf16.mxu1 %v9929_v63  ;;  %v3053_v63 = vld [vmem:[#allocation13 + $0x3f0] sm:$0xff]  ;;  %v9691_v6 = vpack.c.bf16 %v3051_v8, %v3043_v7  ;;  %v3115_v7 = vld [vmem:[#allocation13 + $0x5e0] sm:$0xff] }
 0x4b7   :  { %v3109_v8 = vld [vmem:[#allocation13 + $0x5b0] sm:$0xff] }
 0x4b8   :  { %9676 = vmatpush1.bf16.msra.mxu0 %v9675_v18  ;;  %v9947_v18 = vpack.c.bf16 %v3053_v63, %v3045_v28  ;;  %v9961_v28 = vpack.c.bf16 %v3118_v62, %v3110_v61  ;;  %v3124_v63 = vld [vmem:[#allocation13 + $0x628] sm:$0xff]  ;;  %v3182_v61 = vld [vmem:[#allocation13 + $0x7f8] sm:$0xff] }
 0x4b9   :  { %9932 = vmatpush1.bf16.msra.mxu1 %v9931_v19  ;;  %9678 = vmatprep.subr.bf16.mxu0 %v9677_v20  ;;  %v9693_v19 = vpack.c.bf16 %v3068_v14, %v3060_v13  ;;  %v3059_v20 = vld [vmem:[#allocation13 + $0x420] sm:$0xff]  ;;  %v3132_v13 = vld [vmem:[#allocation13 + $0x668] sm:$0xff]  ;;  %v3126_v14 = vld [vmem:[#allocation13 + $0x638] sm:$0xff] }
 0x4ba   :  { %9934 = vmatprep.subr.bf16.mxu1 %v9933_v22  ;;  %v3069_v22 = vld [vmem:[#allocation13 + $0x470] sm:$0xff]  ;;  %v9695_v41 = vpack.c.bf16 %v3067_v47, %v3059_v20  ;;  %v3131_v20 = vld [vmem:[#allocation13 + $0x660] sm:$0xff] }
 0x4bb   :  { %v3125_v47 = vld [vmem:[#allocation13 + $0x630] sm:$0xff] }
 0x4bc   :  { %9680 = vmatpush1.bf16.msra.mxu0 %v9679_v32  ;;  %v9951_v32 = vpack.c.bf16 %v3069_v22, %v3061_v21  ;;  %v9965_v21 = vpack.c.bf16 %v3134_v15, %v3126_v14  ;;  %v3140_v22 = vld [vmem:[#allocation13 + $0x6a8] sm:$0xff]  ;;  %v3198_v14 = vld [vmem:[#allocation13 + $0x878] sm:$0xff] }
 0x4bd   :  { %9936 = vmatpush1.bf16.msra.mxu1 %v9935_v0  ;;  %9682 = vmatprep.subr.bf16.mxu0 %v9681_v17  ;;  %v9697_v0 = vpack.c.bf16 %v3084_v25, %v3076_v1  ;;  %v3075_v17 = vld [vmem:[#allocation13 + $0x4a0] sm:$0xff]  ;;  %v3148_v1 = vld [vmem:[#allocation13 + $0x6e8] sm:$0xff]  ;;  %v3142_v25 = vld [vmem:[#allocation13 + $0x6b8] sm:$0xff] }
 0x4be   :  { %9938 = vmatprep.subr.bf16.mxu1 %v9937_v36  ;;  %v3085_v36 = vld [vmem:[#allocation13 + $0x4f0] sm:$0xff]  ;;  %v9699_v33 = vpack.c.bf16 %v3083_v10, %v3075_v17  ;;  %v3147_v17 = vld [vmem:[#allocation13 + $0x6e0] sm:$0xff] }
 0x4bf   :  { %v3141_v10 = vld [vmem:[#allocation13 + $0x6b0] sm:$0xff] }
 0x4c0   :  { %9684 = vmatpush1.bf16.msra.mxu0 %v9683_v23  ;;  %v9955_v23 = vpack.c.bf16 %v3085_v36, %v3077_v37  ;;  %v9969_v37 = vpack.c.bf16 %v3150_v26, %v3142_v25  ;;  %v3156_v36 = vld [vmem:[#allocation13 + $0x728] sm:$0xff]  ;;  %v3206_v25 = vld [vmem:[#allocation13 + $0x8b8] sm:$0xff] }
 0x4c1   :  { %9940 = vmatpush1.bf16.msra.mxu1 %v9939_v52  ;;  %9686 = vmatprep.subr.bf16.mxu0 %v9685_v53  ;;  %v9701_v52 = vpack.c.bf16 %v3100_v42, %v3092_v49  ;;  %v3091_v53 = vld [vmem:[#allocation13 + $0x520] sm:$0xff]  ;;  %v3164_v49 = vld [vmem:[#allocation13 + $0x768] sm:$0xff]  ;;  %v3158_v42 = vld [vmem:[#allocation13 + $0x738] sm:$0xff] }
 0x4c2   :  { %9942 = vmatprep.subr.bf16.mxu1 %v9941_v57  ;;  %v3101_v57 = vld [vmem:[#allocation13 + $0x570] sm:$0xff]  ;;  %v9703_v44 = vpack.c.bf16 %v3099_v54, %v3091_v53  ;;  %v3163_v53 = vld [vmem:[#allocation13 + $0x760] sm:$0xff]  ;;  %v3214_v26 = vld [vmem:[#allocation13 + $0x8f8] sm:$0xff] }
 0x4c3   :  { %v3157_v54 = vld [vmem:[#allocation13 + $0x730] sm:$0xff] }
 0x4c4   :  { %9688 = vmatpush1.bf16.msra.mxu0 %v9687_v2  ;;  %v9959_v2 = vpack.c.bf16 %v3101_v57, %v3093_v40  ;;  %v9973_v40 = vpack.c.bf16 %v3166_v24, %v3158_v42  ;;  %v3172_v57 = vld [vmem:[#allocation13 + $0x7a8] sm:$0xff]  ;;  %v3230_v42 = vld [vmem:[#allocation13 + $0x978] sm:$0xff] }
 0x4c5   :  { %9944 = vmatpush1.bf16.msra.mxu1 %v9943_v3  ;;  %9690 = vmatprep.subr.bf16.mxu0 %v9689_v5  ;;  %v9705_v3 = vpack.c.bf16 %v3116_v59, %v3108_v58  ;;  %v3107_v5 = vld [vmem:[#allocation13 + $0x5a0] sm:$0xff]  ;;  %v3180_v58 = vld [vmem:[#allocation13 + $0x7e8] sm:$0xff]  ;;  %v3174_v59 = vld [vmem:[#allocation13 + $0x7b8] sm:$0xff] }
 0x4c6   :  { %9946 = vmatprep.subr.bf16.mxu1 %v9945_v11  ;;  %v3117_v11 = vld [vmem:[#allocation13 + $0x5f0] sm:$0xff]  ;;  %v9707_v16 = vpack.c.bf16 %v3115_v7, %v3107_v5  ;;  %v3179_v5 = vld [vmem:[#allocation13 + $0x7e0] sm:$0xff] }
 0x4c7   :  { %v3173_v7 = vld [vmem:[#allocation13 + $0x7b0] sm:$0xff] }
 0x4c8   :  { %9692 = vmatpush1.bf16.msra.mxu0 %v9691_v6  ;;  %v9963_v6 = vpack.c.bf16 %v3117_v11, %v3109_v8  ;;  %v9977_v8 = vpack.c.bf16 %v3182_v61, %v3174_v59  ;;  %v3188_v11 = vld [vmem:[#allocation13 + $0x828] sm:$0xff] }
 0x4c9   :  { %9948 = vmatpush1.bf16.msra.mxu1 %v9947_v18  ;;  %9694 = vmatprep.subr.bf16.mxu0 %v9693_v19  ;;  %v9709_v18 = vpack.c.bf16 %v3132_v13, %v3124_v63  ;;  %v3123_v19 = vld [vmem:[#allocation13 + $0x620] sm:$0xff]  ;;  %v3196_v63 = vld [vmem:[#allocation13 + $0x868] sm:$0xff]  ;;  %v3190_v13 = vld [vmem:[#allocation13 + $0x838] sm:$0xff] }
 0x4ca   :  { %9950 = vmatprep.subr.bf16.mxu1 %v9949_v51  ;;  %v3133_v51 = vld [vmem:[#allocation13 + $0x670] sm:$0xff]  ;;  %v9711_v31 = vpack.c.bf16 %v3131_v20, %v3123_v19  ;;  %v3195_v19 = vld [vmem:[#allocation13 + $0x860] sm:$0xff]  ;;  %v9981_v20 = vpack.c.bf16 %v3198_v14, %v3190_v13 }
 0x4cc   :  { %9696 = vmatpush1.bf16.msra.mxu0 %v9695_v41  ;;  %v9967_v41 = vpack.c.bf16 %v3133_v51, %v3125_v47  ;;  %v3189_v47 = vld [vmem:[#allocation13 + $0x830] sm:$0xff]  ;;  %v3204_v51 = vld [vmem:[#allocation13 + $0x8a8] sm:$0xff] }
 0x4cd   :  { %9952 = vmatpush1.bf16.msra.mxu1 %v9951_v32  ;;  %9698 = vmatprep.subr.bf16.mxu0 %v9697_v0  ;;  %v9713_v32 = vpack.c.bf16 %v3148_v1, %v3140_v22  ;;  %v3139_v0 = vld [vmem:[#allocation13 + $0x6a0] sm:$0xff]  ;;  %v3212_v22 = vld [vmem:[#allocation13 + $0x8e8] sm:$0xff] }
 0x4ce   :  { %9954 = vmatprep.subr.bf16.mxu1 %v9953_v38  ;;  %v3149_v38 = vld [vmem:[#allocation13 + $0x6f0] sm:$0xff]  ;;  %v9715_v45 = vpack.c.bf16 %v3147_v17, %v3139_v0  ;;  %v9729_v17 = vpack.c.bf16 %v3212_v22, %v3204_v51  ;;  %v3278_v51 = vld [vmem:[#allocation13 + $0xaf8] sm:$0xff] }
 0x4cf   :  { %v3205_v0 = vld [vmem:[#allocation13 + $0x8b0] sm:$0xff] }
 0x4d0   :  { %9700 = vmatpush1.bf16.msra.mxu0 %v9699_v33  ;;  %v9971_v33 = vpack.c.bf16 %v3149_v38, %v3141_v10  ;;  %v3213_v10 = vld [vmem:[#allocation13 + $0x8f0] sm:$0xff]  ;;  %v3228_v38 = vld [vmem:[#allocation13 + $0x968] sm:$0xff] }
 0x4d1   :  { %9956 = vmatpush1.bf16.msra.mxu1 %v9955_v23  ;;  %9702 = vmatprep.subr.bf16.mxu0 %v9701_v52  ;;  %v9717_v23 = vpack.c.bf16 %v3164_v49, %v3156_v36  ;;  %v3155_v52 = vld [vmem:[#allocation13 + $0x720] sm:$0xff]  ;;  %v9985_v36 = vpack.c.bf16 %v3214_v26, %v3206_v25  ;;  %v3222_v49 = vld [vmem:[#allocation13 + $0x938] sm:$0xff] }
 0x4d2   :  { %9958 = vmatprep.subr.bf16.mxu1 %v9957_v55  ;;  %v3165_v55 = vld [vmem:[#allocation13 + $0x770] sm:$0xff]  ;;  %v9719_v62 = vpack.c.bf16 %v3163_v53, %v3155_v52  ;;  %v3227_v52 = vld [vmem:[#allocation13 + $0x960] sm:$0xff] }
 0x4d3   :  { %v3221_v53 = vld [vmem:[#allocation13 + $0x930] sm:$0xff]  ;;  %v3267_v26 = vld [vmem:[#allocation13 + $0xaa0] sm:$0xff] }
 0x4d4   :  { %9704 = vmatpush1.bf16.msra.mxu0 %v9703_v44  ;;  %v9975_v44 = vpack.c.bf16 %v3165_v55, %v3157_v54  ;;  %v9989_v54 = vpack.c.bf16 %v3230_v42, %v3222_v49  ;;  %v3236_v55 = vld [vmem:[#allocation13 + $0x9a8] sm:$0xff] }
 0x4d5   :  { %9960 = vmatpush1.bf16.msra.mxu1 %v9959_v2  ;;  %9706 = vmatprep.subr.bf16.mxu0 %v9705_v3  ;;  %v9721_v2 = vpack.c.bf16 %v3180_v58, %v3172_v57  ;;  %v3171_v3 = vld [vmem:[#allocation13 + $0x7a0] sm:$0xff]  ;;  %v3244_v57 = vld [vmem:[#allocation13 + $0x9e8] sm:$0xff]  ;;  %v3238_v58 = vld [vmem:[#allocation13 + $0x9b8] sm:$0xff] }
 0x4d6   :  { %9962 = vmatprep.subr.bf16.mxu1 %v9961_v28  ;;  %v3181_v28 = vld [vmem:[#allocation13 + $0x7f0] sm:$0xff]  ;;  %v9723_v15 = vpack.c.bf16 %v3179_v5, %v3171_v3 }
 0x4d7   :  { %v3237_v3 = vld [vmem:[#allocation13 + $0x9b0] sm:$0xff] }
 0x4d8   :  { %9708 = vmatpush1.bf16.msra.mxu0 %v9707_v16  ;;  %v9979_v16 = vpack.c.bf16 %v3181_v28, %v3173_v7  ;;  %v3252_v7 = vld [vmem:[#allocation13 + $0xa28] sm:$0xff]  ;;  %v3254_v28 = vld [vmem:[#allocation13 + $0xa38] sm:$0xff] }
 0x4d9   :  { %9964 = vmatpush1.bf16.msra.mxu1 %v9963_v6  ;;  %9710 = vmatprep.subr.bf16.mxu0 %v9709_v18  ;;  %v9725_v6 = vpack.c.bf16 %v3196_v63, %v3188_v11  ;;  %v3187_v18 = vld [vmem:[#allocation13 + $0x820] sm:$0xff]  ;;  %v3262_v11 = vld [vmem:[#allocation13 + $0xa78] sm:$0xff] }
 0x4da   :  { %9966 = vmatprep.subr.bf16.mxu1 %v9965_v21  ;;  %v3197_v21 = vld [vmem:[#allocation13 + $0x870] sm:$0xff]  ;;  %v9727_v1 = vpack.c.bf16 %v3195_v19, %v3187_v18  ;;  %v9997_v18 = vpack.c.bf16 %v3262_v11, %v3254_v28 }
 0x4db   :  { %v3261_v19 = vld [vmem:[#allocation13 + $0xa70] sm:$0xff] }
 0x4dc   :  { %9712 = vmatpush1.bf16.msra.mxu0 %v9711_v31  ;;  %v9983_v31 = vpack.c.bf16 %v3197_v21, %v3189_v47  ;;  %v3276_v47 = vld [vmem:[#allocation13 + $0xae8] sm:$0xff]  ;;  %v3270_v21 = vld [vmem:[#allocation13 + $0xab8] sm:$0xff] }
 0x4dd   :  { %9968 = vmatpush1.bf16.msra.mxu1 %v9967_v41  ;;  %9714 = vmatprep.subr.bf16.mxu0 %v9713_v32  ;;  %v3203_v41 = vld [vmem:[#allocation13 + $0x8a0] sm:$0xff] }
 0x4de   :  { %9970 = vmatprep.subr.bf16.mxu1 %v9969_v37  ;;  %v3211_v32 = vld [vmem:[#allocation13 + $0x8e0] sm:$0xff]  ;;  %v3220_v37 = vld [vmem:[#allocation13 + $0x928] sm:$0xff] }
 0x4df   :  { %v9731_v24 = vpack.c.bf16 %v3211_v32, %v3203_v41  ;;  %v3269_v41 = vld [vmem:[#allocation13 + $0xab0] sm:$0xff]  ;;  %v10001_v32 = vpack.c.bf16 %v3278_v51, %v3270_v21 }
 0x4e0   :  { %9716 = vmatpush1.bf16.msra.mxu0 %v9715_v45  ;;  %v9987_v45 = vpack.c.bf16 %v3213_v10, %v3205_v0  ;;  %v3277_v0 = vld [vmem:[#allocation13 + $0xaf0] sm:$0xff]  ;;  %v3292_v10 = vld [vmem:[#allocation13 + $0xb68] sm:$0xff] }
 0x4e1   :  { %9972 = vmatpush1.bf16.msra.mxu1 %v9971_v33  ;;  %9718 = vmatprep.subr.bf16.mxu0 %v9717_v23  ;;  %v9733_v33 = vpack.c.bf16 %v3228_v38, %v3220_v37  ;;  %v3219_v23 = vld [vmem:[#allocation13 + $0x920] sm:$0xff]  ;;  %v3286_v37 = vld [vmem:[#allocation13 + $0xb38] sm:$0xff]  ;;  %v10003_v49 = vpack.c.bf16 %v3277_v0, %v3269_v41  ;;  %v3348_v41 = vld [vmem:[#allocation13 + $0xd28] sm:$0xff] }
 0x4e2   :  { %9974 = vmatprep.subr.bf16.mxu1 %v9973_v40  ;;  %v3229_v40 = vld [vmem:[#allocation13 + $0x970] sm:$0xff]  ;;  %v9735_v59 = vpack.c.bf16 %v3227_v52, %v3219_v23  ;;  %v3294_v38 = vld [vmem:[#allocation13 + $0xb78] sm:$0xff] }
 0x4e3   :  { %v9991_v61 = vpack.c.bf16 %v3229_v40, %v3221_v53  ;;  %v10005_v23 = vpack.c.bf16 %v3294_v38, %v3286_v37  ;;  %v3293_v52 = vld [vmem:[#allocation13 + $0xb70] sm:$0xff]  ;;  %v3300_v53 = vld [vmem:[#allocation13 + $0xba8] sm:$0xff]  ;;  %v3302_v40 = vld [vmem:[#allocation13 + $0xbb8] sm:$0xff] }
 0x4e4   :  { %9720 = vmatpush1.bf16.msra.mxu0 %v9719_v62  ;;  %v9737_v62 = vpack.c.bf16 %v3244_v57, %v3236_v55  ;;  %v3310_v55 = vld [vmem:[#allocation13 + $0xbf8] sm:$0xff] }
 0x4e5   :  { %9976 = vmatpush1.bf16.msra.mxu1 %v9975_v44  ;;  %9722 = vmatprep.subr.bf16.mxu0 %v9721_v2  ;;  %v3235_v44 = vld [vmem:[#allocation13 + $0x9a0] sm:$0xff]  ;;  %v3350_v0 = vld [vmem:[#allocation13 + $0xd38] sm:$0xff] }
 0x4e6   :  { %9978 = vmatprep.subr.bf16.mxu1 %v9977_v8  ;;  %v3243_v2 = vld [vmem:[#allocation13 + $0x9e0] sm:$0xff]  ;;  %v3260_v8 = vld [vmem:[#allocation13 + $0xa68] sm:$0xff] }
 0x4e7   :  { %v9739_v63 = vpack.c.bf16 %v3243_v2, %v3235_v44  ;;  %v9741_v14 = vpack.c.bf16 %v3260_v8, %v3252_v7  ;;  %v10009_v44 = vpack.c.bf16 %v3310_v55, %v3302_v40  ;;  %v3309_v2 = vld [vmem:[#allocation13 + $0xbf0] sm:$0xff]  ;;  %v3326_v7 = vld [vmem:[#allocation13 + $0xc78] sm:$0xff] }
 0x4e8   :  { %9724 = vmatpush1.bf16.msra.mxu0 %v9723_v15  ;;  %v3251_v15 = vld [vmem:[#allocation13 + $0xa20] sm:$0xff] }
 0x4e9   :  { %9980 = vmatpush1.bf16.msra.mxu1 %v9979_v16  ;;  %9726 = vmatprep.subr.bf16.mxu0 %v9725_v6  ;;  %v3259_v16 = vld [vmem:[#allocation13 + $0xa60] sm:$0xff]  ;;  %v3253_v6 = vld [vmem:[#allocation13 + $0xa30] sm:$0xff] }
 0x4ea   :  { %9982 = vmatprep.subr.bf16.mxu1 %v9981_v20  ;;  %v3268_v20 = vld [vmem:[#allocation13 + $0xaa8] sm:$0xff]  ;;  %v9743_v22 = vpack.c.bf16 %v3259_v16, %v3251_v15  ;;  %v3325_v16 = vld [vmem:[#allocation13 + $0xc70] sm:$0xff] }
 0x4eb   :  { %4626 = vmatmul.mubr.f32.vlgmr.msra.gmra.mrb[10].mxu0 %v12091_v46  ;;  %v9745_v25 = vpack.c.bf16 %v3276_v47, %v3268_v20  ;;  %v3342_v20 = vld [vmem:[#allocation13 + $0xcf8] sm:$0xff] }
 0x4ec   :  { %4910 = vmatmul.mubr.f32.vlgmr.msra.gmra.mrb[10].mxu1 %v12091_v46  ;;  %9728 = vmatpush1.bf16.msra.mxu0 %v9727_v1  ;;  %v3246_v46 = vld [vmem:[#allocation13 + $0x9f8] sm:$0xff]  ;;  %v9999_v1 = vpack.c.bf16 %v3261_v19, %v3253_v6  ;;  %v3332_v6 = vld [vmem:[#allocation13 + $0xca8] sm:$0xff] }
 0x4ed   :  { %4696 = vmatprep.mubr.f32.mxu0 %v12093_v29  ;;  %9984 = vmatpush1.bf16.msra.mxu1 %v9983_v31  ;;  %v9993_v5 = vpack.c.bf16 %v3246_v46, %v3238_v58  ;;  %v3275_v31 = vld [vmem:[#allocation13 + $0xae0] sm:$0xff]  ;;  %v3334_v19 = vld [vmem:[#allocation13 + $0xcb8] sm:$0xff] }
 0x4ee   :  { %4980 = vmatprep.mubr.f32.mxu1 %v12093_v29  ;;  %9730 = vmatprep.subr.bf16.mxu0 %v9729_v17  ;;  %v3245_v29 = vld [vmem:[#allocation13 + $0x9f0] sm:$0xff]  ;;  %v3284_v17 = vld [vmem:[#allocation13 + $0xb28] sm:$0xff] }
 0x4ef   :  { %9986 = vmatprep.subr.bf16.mxu1 %v9985_v36  ;;  %v9995_v13 = vpack.c.bf16 %v3245_v29, %v3237_v3  ;;  %v9747_v36 = vpack.c.bf16 %v3275_v31, %v3267_v26  ;;  %v9749_v42 = vpack.c.bf16 %v3292_v10, %v3284_v17  ;;  %v3316_v3 = vld [vmem:[#allocation13 + $0xc28] sm:$0xff]  ;;  %v3318_v29 = vld [vmem:[#allocation13 + $0xc38] sm:$0xff]  ;;  %v10017_v26 = vpack.c.bf16 %v3342_v20, %v3334_v19  ;;  %v3341_v31 = vld [vmem:[#allocation13 + $0xcf0] sm:$0xff] }
 0x4f0   :  { %9732 = vmatpush1.bf16.msra.mxu0 %v9731_v24  ;;  %v3283_v24 = vld [vmem:[#allocation13 + $0xb20] sm:$0xff]  ;;  %v10013_v15 = vpack.c.bf16 %v3326_v7, %v3318_v29  ;;  %v3358_v17 = vld [vmem:[#allocation13 + $0xd78] sm:$0xff] }
 0x4f1   :  { %9988 = vmatpush1.bf16.msra.mxu1 %v9987_v45  ;;  %9734 = vmatprep.subr.bf16.mxu0 %v9733_v33  ;;  %v3291_v45 = vld [vmem:[#allocation13 + $0xb60] sm:$0xff]  ;;  %v3285_v33 = vld [vmem:[#allocation13 + $0xb30] sm:$0xff] }
 0x4f2   :  { %9990 = vmatprep.subr.bf16.mxu1 %v9989_v54  ;;  %v3308_v54 = vld [vmem:[#allocation13 + $0xbe8] sm:$0xff]  ;;  %v9751_v57 = vpack.c.bf16 %v3291_v45, %v3283_v24  ;;  %v10007_v58 = vpack.c.bf16 %v3293_v52, %v3285_v33  ;;  %v10021_v24 = vpack.c.bf16 %v3358_v17, %v3350_v0  ;;  %v3357_v45 = vld [vmem:[#allocation13 + $0xd70] sm:$0xff]  ;;  %v3366_v52 = vld [vmem:[#allocation13 + $0xdb8] sm:$0xff] }
 0x4f3   :  { %v9753_v46 = vpack.c.bf16 %v3308_v54, %v3300_v53  ;;  %v3364_v33 = vld [vmem:[#allocation13 + $0xda8] sm:$0xff]  ;;  %v3374_v53 = vld [vmem:[#allocation13 + $0xdf8] sm:$0xff] }
 0x4f4   :  { %9736 = vmatpush1.bf16.msra.mxu0 %v9735_v59  ;;  %v3299_v59 = vld [vmem:[#allocation13 + $0xba0] sm:$0xff] }
 0x4f5   :  { %9992 = vmatpush1.bf16.msra.mxu1 %v9991_v61  ;;  %9738 = vmatprep.subr.bf16.mxu0 %v9737_v62  ;;  %v3307_v61 = vld [vmem:[#allocation13 + $0xbe0] sm:$0xff]  ;;  %v3301_v62 = vld [vmem:[#allocation13 + $0xbb0] sm:$0xff] }
 0x4f6   :  { %9994 = vmatprep.subr.bf16.mxu1 %v9993_v5  ;;  %v3324_v5 = vld [vmem:[#allocation13 + $0xc68] sm:$0xff]  ;;  %v9755_v8 = vpack.c.bf16 %v3307_v61, %v3299_v59  ;;  %v10011_v28 = vpack.c.bf16 %v3309_v2, %v3301_v62  ;;  %v10025_v59 = vpack.c.bf16 %v3374_v53, %v3366_v52  ;;  %v3373_v61 = vld [vmem:[#allocation13 + $0xdf0] sm:$0xff]  ;;  %v3382_v2 = vld [vmem:[#allocation13 + $0xe38] sm:$0xff] }
 0x4f7   :  { %v9757_v11 = vpack.c.bf16 %v3324_v5, %v3316_v3  ;;  %v3380_v62 = vld [vmem:[#allocation13 + $0xe28] sm:$0xff]  ;;  %v3390_v3 = vld [vmem:[#allocation13 + $0xe78] sm:$0xff] }
 0x4f8   :  { %9740 = vmatpush1.bf16.msra.mxu0 %v9739_v63  ;;  %v3315_v63 = vld [vmem:[#allocation13 + $0xc20] sm:$0xff] }
 0x4f9   :  { %9996 = vmatpush1.bf16.msra.mxu1 %v9995_v13  ;;  %9742 = vmatprep.subr.bf16.mxu0 %v9741_v14  ;;  %v3323_v13 = vld [vmem:[#allocation13 + $0xc60] sm:$0xff]  ;;  %v3317_v14 = vld [vmem:[#allocation13 + $0xc30] sm:$0xff] }
 0x4fa   :  { %9998 = vmatprep.subr.bf16.mxu1 %v9997_v18  ;;  %v3340_v18 = vld [vmem:[#allocation13 + $0xce8] sm:$0xff]  ;;  %v9759_v47 = vpack.c.bf16 %v3323_v13, %v3315_v63  ;;  %v10015_v21 = vpack.c.bf16 %v3325_v16, %v3317_v14  ;;  %v10029_v63 = vpack.c.bf16 %v3390_v3, %v3382_v2  ;;  %v3389_v13 = vld [vmem:[#allocation13 + $0xe70] sm:$0xff]  ;;  %v3398_v16 = vld [vmem:[#allocation13 + $0xeb8] sm:$0xff] }
 0x4fb   :  { %v9761_v51 = vpack.c.bf16 %v3340_v18, %v3332_v6  ;;  %v3396_v14 = vld [vmem:[#allocation13 + $0xea8] sm:$0xff]  ;;  %v3406_v6 = vld [vmem:[#allocation13 + $0xef8] sm:$0xff] }
 0x4fc   :  { %9744 = vmatpush1.bf16.msra.mxu0 %v9743_v22  ;;  %v3331_v22 = vld [vmem:[#allocation13 + $0xca0] sm:$0xff] }
 0x4fd   :  { %10000 = vmatpush1.bf16.msra.mxu1 %v9999_v1  ;;  %9746 = vmatprep.subr.bf16.mxu0 %v9745_v25  ;;  %v3339_v1 = vld [vmem:[#allocation13 + $0xce0] sm:$0xff]  ;;  %v3333_v25 = vld [vmem:[#allocation13 + $0xcb0] sm:$0xff] }
 0x4fe   :  { %10002 = vmatprep.subr.bf16.mxu1 %v10001_v32  ;;  %v3356_v32 = vld [vmem:[#allocation13 + $0xd68] sm:$0xff]  ;;  %v9763_v10 = vpack.c.bf16 %v3339_v1, %v3331_v22  ;;  %v10019_v37 = vpack.c.bf16 %v3341_v31, %v3333_v25  ;;  %v10033_v22 = vpack.c.bf16 %v3406_v6, %v3398_v16  ;;  %v3405_v1 = vld [vmem:[#allocation13 + $0xef0] sm:$0xff]  ;;  %v3414_v31 = vld [vmem:[#allocation13 + $0xf38] sm:$0xff] }
 0x4ff   :  { %v9765_v38 = vpack.c.bf16 %v3356_v32, %v3348_v41  ;;  %v3412_v25 = vld [vmem:[#allocation13 + $0xf28] sm:$0xff]  ;;  %v3422_v41 = vld [vmem:[#allocation13 + $0xf78] sm:$0xff]  ;;  %v3459_v6 = vld [vmem:[#allocation13 + $0x10a0] sm:$0xff] }
 0x500   :  { %9748 = vmatpush1.bf16.msra.mxu0 %v9747_v36  ;;  %v3347_v36 = vld [vmem:[#allocation13 + $0xd20] sm:$0xff] }
 0x501   :  { %10004 = vmatpush1.bf16.msra.mxu1 %v10003_v49  ;;  %9750 = vmatprep.subr.bf16.mxu0 %v9749_v42  ;;  %v3355_v49 = vld [vmem:[#allocation13 + $0xd60] sm:$0xff]  ;;  %v3349_v42 = vld [vmem:[#allocation13 + $0xd30] sm:$0xff] }
 0x502   :  { %10006 = vmatprep.subr.bf16.mxu1 %v10005_v23  ;;  %v3372_v23 = vld [vmem:[#allocation13 + $0xde8] sm:$0xff]  ;;  %v9767_v54 = vpack.c.bf16 %v3355_v49, %v3347_v36  ;;  %v10023_v40 = vpack.c.bf16 %v3357_v45, %v3349_v42  ;;  %v10037_v36 = vpack.c.bf16 %v3422_v41, %v3414_v31  ;;  %v3421_v49 = vld [vmem:[#allocation13 + $0xf70] sm:$0xff]  ;;  %v3430_v45 = vld [vmem:[#allocation13 + $0xfb8] sm:$0xff] }
 0x503   :  { %v9769_v55 = vpack.c.bf16 %v3372_v23, %v3364_v33  ;;  %v3428_v42 = vld [vmem:[#allocation13 + $0xfa8] sm:$0xff]  ;;  %v3438_v33 = vld [vmem:[#allocation13 + $0xff8] sm:$0xff] }
 0x504   :  { %9752 = vmatpush1.bf16.msra.mxu0 %v9751_v57  ;;  %v3363_v57 = vld [vmem:[#allocation13 + $0xda0] sm:$0xff] }
 0x505   :  { %10008 = vmatpush1.bf16.msra.mxu1 %v10007_v58  ;;  %9754 = vmatprep.subr.bf16.mxu0 %v9753_v46  ;;  %v3371_v58 = vld [vmem:[#allocation13 + $0xde0] sm:$0xff]  ;;  %v3365_v46 = vld [vmem:[#allocation13 + $0xdb0] sm:$0xff] }
 0x506   :  { %10010 = vmatprep.subr.bf16.mxu1 %v10009_v44  ;;  %v3388_v44 = vld [vmem:[#allocation13 + $0xe68] sm:$0xff]  ;;  %v9771_v5 = vpack.c.bf16 %v3371_v58, %v3363_v57  ;;  %v10027_v29 = vpack.c.bf16 %v3373_v61, %v3365_v46  ;;  %v10041_v57 = vpack.c.bf16 %v3438_v33, %v3430_v45  ;;  %v3437_v58 = vld [vmem:[#allocation13 + $0xff0] sm:$0xff]  ;;  %v3446_v61 = vld [vmem:[#allocation13 + $0x1038] sm:$0xff] }
 0x507   :  { %v9773_v7 = vpack.c.bf16 %v3388_v44, %v3380_v62  ;;  %v3444_v46 = vld [vmem:[#allocation13 + $0x1028] sm:$0xff]  ;;  %v3454_v62 = vld [vmem:[#allocation13 + $0x1078] sm:$0xff]  ;;  %v3491_v33 = vld [vmem:[#allocation13 + $0x11a0] sm:$0xff] }
 0x508   :  { %9756 = vmatpush1.bf16.msra.mxu0 %v9755_v8  ;;  %v3379_v8 = vld [vmem:[#allocation13 + $0xe20] sm:$0xff] }
 0x509   :  { %10012 = vmatpush1.bf16.msra.mxu1 %v10011_v28  ;;  %9758 = vmatprep.subr.bf16.mxu0 %v9757_v11  ;;  %v3387_v28 = vld [vmem:[#allocation13 + $0xe60] sm:$0xff]  ;;  %v3381_v11 = vld [vmem:[#allocation13 + $0xe30] sm:$0xff] }
 0x50a   :  { %10014 = vmatprep.subr.bf16.mxu1 %v10013_v15  ;;  %v3404_v15 = vld [vmem:[#allocation13 + $0xee8] sm:$0xff]  ;;  %v9775_v18 = vpack.c.bf16 %v3387_v28, %v3379_v8  ;;  %v10031_v19 = vpack.c.bf16 %v3389_v13, %v3381_v11  ;;  %v3445_v8 = vld [vmem:[#allocation13 + $0x1030] sm:$0xff] }
 0x50b   :  { %v9777_v20 = vpack.c.bf16 %v3404_v15, %v3396_v14  ;;  %v3453_v28 = vld [vmem:[#allocation13 + $0x1070] sm:$0xff]  ;;  %v3460_v11 = vld [vmem:[#allocation13 + $0x10a8] sm:$0xff]  ;;  %v3462_v14 = vld [vmem:[#allocation13 + $0x10b8] sm:$0xff] }
 0x50c   :  { %9760 = vmatpush1.bf16.msra.mxu0 %v9759_v47  ;;  %v3395_v47 = vld [vmem:[#allocation13 + $0xea0] sm:$0xff]  ;;  %v3470_v15 = vld [vmem:[#allocation13 + $0x10f8] sm:$0xff]  ;;  %v10047_v16 = vpack.c.bf16 %v3453_v28, %v3445_v8 }
 0x50d   :  { %10016 = vmatpush1.bf16.msra.mxu1 %v10015_v21  ;;  %9762 = vmatprep.subr.bf16.mxu0 %v9761_v51  ;;  %v3403_v21 = vld [vmem:[#allocation13 + $0xee0] sm:$0xff]  ;;  %v3397_v51 = vld [vmem:[#allocation13 + $0xeb0] sm:$0xff]  ;;  %v3534_v8 = vld [vmem:[#allocation13 + $0x12f8] sm:$0xff] }
 0x50e   :  { %10018 = vmatprep.subr.bf16.mxu1 %v10017_v26  ;;  %v3420_v26 = vld [vmem:[#allocation13 + $0xf68] sm:$0xff]  ;;  %v9779_v32 = vpack.c.bf16 %v3403_v21, %v3395_v47  ;;  %v10035_v0 = vpack.c.bf16 %v3405_v1, %v3397_v51  ;;  %v3469_v47 = vld [vmem:[#allocation13 + $0x10f0] sm:$0xff]  ;;  %v3478_v1 = vld [vmem:[#allocation13 + $0x1138] sm:$0xff] }
 0x50f   :  { %v9781_v17 = vpack.c.bf16 %v3420_v26, %v3412_v25  ;;  %v3476_v21 = vld [vmem:[#allocation13 + $0x1128] sm:$0xff]  ;;  %v3486_v25 = vld [vmem:[#allocation13 + $0x1178] sm:$0xff] }
 0x510   :  { %9764 = vmatpush1.bf16.msra.mxu0 %v9763_v10  ;;  %v3411_v10 = vld [vmem:[#allocation13 + $0xf20] sm:$0xff]  ;;  %v3484_v51 = vld [vmem:[#allocation13 + $0x1168] sm:$0xff] }
 0x511   :  { %10020 = vmatpush1.bf16.msra.mxu1 %v10019_v37  ;;  %9766 = vmatprep.subr.bf16.mxu0 %v9765_v38  ;;  %v3419_v37 = vld [vmem:[#allocation13 + $0xf60] sm:$0xff]  ;;  %v3413_v38 = vld [vmem:[#allocation13 + $0xf30] sm:$0xff]  ;;  %v9797_v41 = vpack.c.bf16 %v3484_v51, %v3476_v21 }
 0x512   :  { %10022 = vmatprep.subr.bf16.mxu1 %v10021_v24  ;;  %v3436_v24 = vld [vmem:[#allocation13 + $0xfe8] sm:$0xff]  ;;  %v9783_v23 = vpack.c.bf16 %v3419_v37, %v3411_v10  ;;  %v10039_v52 = vpack.c.bf16 %v3421_v49, %v3413_v38  ;;  %v10053_v10 = vpack.c.bf16 %v3486_v25, %v3478_v1  ;;  %v3485_v37 = vld [vmem:[#allocation13 + $0x1170] sm:$0xff]  ;;  %v3494_v49 = vld [vmem:[#allocation13 + $0x11b8] sm:$0xff] }
 0x513   :  { %v9785_v53 = vpack.c.bf16 %v3436_v24, %v3428_v42  ;;  %v3492_v38 = vld [vmem:[#allocation13 + $0x11a8] sm:$0xff]  ;;  %v3539_v1 = vld [vmem:[#allocation13 + $0x1320] sm:$0xff] }
 0x514   :  { %9768 = vmatpush1.bf16.msra.mxu0 %v9767_v54  ;;  %v3427_v54 = vld [vmem:[#allocation13 + $0xfa0] sm:$0xff] }
 0x515   :  { %10024 = vmatpush1.bf16.msra.mxu1 %v10023_v40  ;;  %9770 = vmatprep.subr.bf16.mxu0 %v9769_v55  ;;  %v3435_v40 = vld [vmem:[#allocation13 + $0xfe0] sm:$0xff]  ;;  %v3429_v55 = vld [vmem:[#allocation13 + $0xfb0] sm:$0xff] }
 0x516   :  { %10026 = vmatprep.subr.bf16.mxu1 %v10025_v59  ;;  %v3452_v59 = vld [vmem:[#allocation13 + $0x1068] sm:$0xff]  ;;  %v9787_v44 = vpack.c.bf16 %v3435_v40, %v3427_v54  ;;  %v10043_v2 = vpack.c.bf16 %v3437_v58, %v3429_v55  ;;  %v3510_v55 = vld [vmem:[#allocation13 + $0x1238] sm:$0xff]  ;;  %v3547_v25 = vld [vmem:[#allocation13 + $0x1360] sm:$0xff] }
 0x517   :  { %v9789_v3 = vpack.c.bf16 %v3452_v59, %v3444_v46  ;;  %v3508_v54 = vld [vmem:[#allocation13 + $0x1228] sm:$0xff] }
 0x518   :  { %9772 = vmatpush1.bf16.msra.mxu0 %v9771_v5  ;;  %v3443_v5 = vld [vmem:[#allocation13 + $0x1020] sm:$0xff]  ;;  %v3516_v40 = vld [vmem:[#allocation13 + $0x1268] sm:$0xff] }
 0x519   :  { %10028 = vmatpush1.bf16.msra.mxu1 %v10027_v29  ;;  %9774 = vmatprep.subr.bf16.mxu0 %v9773_v7  ;;  %v3451_v29 = vld [vmem:[#allocation13 + $0x1060] sm:$0xff]  ;;  %v10045_v7 = vpack.c.bf16 %v3454_v62, %v3446_v61  ;;  %v9805_v59 = vpack.c.bf16 %v3516_v40, %v3508_v54 }
 0x51a   :  { %10030 = vmatprep.subr.bf16.mxu1 %v10029_v63  ;;  %v3468_v63 = vld [vmem:[#allocation13 + $0x10e8] sm:$0xff]  ;;  %v9791_v13 = vpack.c.bf16 %v3451_v29, %v3443_v5  ;;  %v3507_v61 = vld [vmem:[#allocation13 + $0x1220] sm:$0xff] }
 0x51b   :  { %v3515_v62 = vld [vmem:[#allocation13 + $0x1260] sm:$0xff]  ;;  %v3524_v5 = vld [vmem:[#allocation13 + $0x12a8] sm:$0xff] }
 0x51c   :  { %9776 = vmatpush1.bf16.msra.mxu0 %v9775_v18  ;;  %v3467_v18 = vld [vmem:[#allocation13 + $0x10e0] sm:$0xff]  ;;  %v3532_v29 = vld [vmem:[#allocation13 + $0x12e8] sm:$0xff]  ;;  %v9807_v28 = vpack.c.bf16 %v3515_v62, %v3507_v61 }
 0x51d   :  { %10032 = vmatpush1.bf16.msra.mxu1 %v10031_v19  ;;  %9778 = vmatprep.subr.bf16.mxu0 %v9777_v20  ;;  %v3461_v19 = vld [vmem:[#allocation13 + $0x10b0] sm:$0xff]  ;;  %v9793_v20 = vpack.c.bf16 %v3468_v63, %v3460_v11  ;;  %v9795_v26 = vpack.c.bf16 %v3467_v18, %v3459_v6  ;;  %v9809_v63 = vpack.c.bf16 %v3532_v29, %v3524_v5  ;;  %v3540_v18 = vld [vmem:[#allocation13 + $0x1328] sm:$0xff] }
 0x51e   :  { %10034 = vmatprep.subr.bf16.mxu1 %v10033_v22  ;;  %v10049_v22 = vpack.c.bf16 %v3470_v15, %v3462_v14  ;;  %v10051_v31 = vpack.c.bf16 %v3469_v47, %v3461_v19  ;;  %v3531_v14 = vld [vmem:[#allocation13 + $0x12e0] sm:$0xff]  ;;  %v3525_v15 = vld [vmem:[#allocation13 + $0x12b0] sm:$0xff]  ;;  %v3548_v19 = vld [vmem:[#allocation13 + $0x1368] sm:$0xff] }
 0x51f   :  { %v3533_v6 = vld [vmem:[#allocation13 + $0x12f0] sm:$0xff]  ;;  %v3550_v47 = vld [vmem:[#allocation13 + $0x1378] sm:$0xff]  ;;  %v3588_v61 = vld [vmem:[#allocation13 + $0x14a8] sm:$0xff] }
 0x520   :  { %9780 = vmatpush1.bf16.msra.mxu0 %v9779_v32  ;;  %v3475_v32 = vld [vmem:[#allocation13 + $0x1120] sm:$0xff]  ;;  %v10067_v51 = vpack.c.bf16 %v3533_v6, %v3525_v15  ;;  %v3596_v62 = vld [vmem:[#allocation13 + $0x14e8] sm:$0xff]  ;;  %v3606_v15 = vld [vmem:[#allocation13 + $0x1538] sm:$0xff] }
 0x521   :  { %10036 = vmatpush1.bf16.msra.mxu1 %v10035_v0  ;;  %9782 = vmatprep.subr.bf16.mxu0 %v9781_v17  ;;  %v3483_v0 = vld [vmem:[#allocation13 + $0x1160] sm:$0xff]  ;;  %v3477_v17 = vld [vmem:[#allocation13 + $0x1130] sm:$0xff]  ;;  %v9825_v29 = vpack.c.bf16 %v3596_v62, %v3588_v61 }
 0x522   :  { %10038 = vmatprep.subr.bf16.mxu1 %v10037_v36  ;;  %v3500_v36 = vld [vmem:[#allocation13 + $0x11e8] sm:$0xff]  ;;  %v9799_v42 = vpack.c.bf16 %v3483_v0, %v3475_v32  ;;  %v10055_v24 = vpack.c.bf16 %v3485_v37, %v3477_v17  ;;  %v3558_v17 = vld [vmem:[#allocation13 + $0x13b8] sm:$0xff]  ;;  %v9815_v37 = vpack.c.bf16 %v3547_v25, %v3539_v1 }
 0x523   :  { %v9801_v45 = vpack.c.bf16 %v3500_v36, %v3492_v38  ;;  %v3556_v32 = vld [vmem:[#allocation13 + $0x13a8] sm:$0xff] }
 0x524   :  { %9784 = vmatpush1.bf16.msra.mxu0 %v9783_v23  ;;  %v3499_v23 = vld [vmem:[#allocation13 + $0x11e0] sm:$0xff]  ;;  %v3564_v0 = vld [vmem:[#allocation13 + $0x13e8] sm:$0xff] }
 0x525   :  { %10040 = vmatpush1.bf16.msra.mxu1 %v10039_v52  ;;  %9786 = vmatprep.subr.bf16.mxu0 %v9785_v53  ;;  %v3493_v52 = vld [vmem:[#allocation13 + $0x11b0] sm:$0xff]  ;;  %v9803_v58 = vpack.c.bf16 %v3499_v23, %v3491_v33  ;;  %v9817_v36 = vpack.c.bf16 %v3564_v0, %v3556_v32  ;;  %v3572_v33 = vld [vmem:[#allocation13 + $0x1428] sm:$0xff] }
 0x526   :  { %10042 = vmatprep.subr.bf16.mxu1 %v10041_v57  ;;  %v3518_v57 = vld [vmem:[#allocation13 + $0x1278] sm:$0xff]  ;;  %v3580_v23 = vld [vmem:[#allocation13 + $0x1468] sm:$0xff] }
 0x527   :  { %v9821_v40 = vpack.c.bf16 %v3580_v23, %v3572_v33  ;;  %v3620_v1 = vld [vmem:[#allocation13 + $0x15a8] sm:$0xff] }
 0x528   :  { %9788 = vmatpush1.bf16.msra.mxu0 %v9787_v44  ;;  %v3509_v44 = vld [vmem:[#allocation13 + $0x1230] sm:$0xff]  ;;  %v3628_v25 = vld [vmem:[#allocation13 + $0x15e8] sm:$0xff] }
 0x529   :  { %10044 = vmatpush1.bf16.msra.mxu1 %v10043_v2  ;;  %9790 = vmatprep.subr.bf16.mxu0 %v9789_v3  ;;  %v10061_v2 = vpack.c.bf16 %v3518_v57, %v3510_v55  ;;  %v3517_v3 = vld [vmem:[#allocation13 + $0x1270] sm:$0xff]  ;;  %v3571_v55 = vld [vmem:[#allocation13 + $0x1420] sm:$0xff]  ;;  %v9833_v0 = vpack.c.bf16 %v3628_v25, %v3620_v1 }
 0x52a   :  { %10046 = vmatprep.subr.bf16.mxu1 %v10045_v7  ;;  %v3526_v7 = vld [vmem:[#allocation13 + $0x12b8] sm:$0xff]  ;;  %v10063_v11 = vpack.c.bf16 %v3517_v3, %v3509_v44  ;;  %v3579_v57 = vld [vmem:[#allocation13 + $0x1460] sm:$0xff] }
 0x52b   :  { %4697 = vmatmul.mubr.f32.vlgmr.msra.gmra.mrb[10].mxu0 %v12104_v34  ;;  %v3590_v44 = vld [vmem:[#allocation13 + $0x14b8] sm:$0xff]  ;;  %v9823_v3 = vpack.c.bf16 %v3579_v57, %v3571_v55  ;;  %v3652_v55 = vld [vmem:[#allocation13 + $0x16a8] sm:$0xff] }
 0x52c   :  { %4981 = vmatmul.mubr.f32.vlgmr.msra.gmra.mrb[10].mxu1 %v12104_v34  ;;  %9792 = vmatpush1.bf16.msra.mxu0 %v9791_v13  ;;  %v3502_v34 = vld [vmem:[#allocation13 + $0x11f8] sm:$0xff]  ;;  %v3523_v13 = vld [vmem:[#allocation13 + $0x12a0] sm:$0xff]  ;;  %v3660_v57 = vld [vmem:[#allocation13 + $0x16e8] sm:$0xff] }
 0x52d   :  { %4767 = vmatprep.mubr.f32.mxu0 %v12116_v30  ;;  %10048 = vmatpush1.bf16.msra.mxu1 %v10047_v16  ;;  %v10057_v53 = vpack.c.bf16 %v3502_v34, %v3494_v49  ;;  %v10065_v16 = vpack.c.bf16 %v3534_v8, %v3526_v7  ;;  %v9811_v21 = vpack.c.bf16 %v3531_v14, %v3523_v13  ;;  %v3555_v49 = vld [vmem:[#allocation13 + $0x13a0] sm:$0xff]  ;;  %v3604_v13 = vld [vmem:[#allocation13 + $0x1528] sm:$0xff] }
 0x52e   :  { %5051 = vmatprep.mubr.f32.mxu1 %v12116_v30  ;;  %9794 = vmatprep.subr.bf16.mxu0 %v9793_v20  ;;  %v3501_v30 = vld [vmem:[#allocation13 + $0x11f0] sm:$0xff]  ;;  %v3542_v20 = vld [vmem:[#allocation13 + $0x1338] sm:$0xff]  ;;  %v3563_v34 = vld [vmem:[#allocation13 + $0x13e0] sm:$0xff]  ;;  %v9841_v62 = vpack.c.bf16 %v3660_v57, %v3652_v55 }
 0x52f   :  { %10050 = vmatprep.subr.bf16.mxu1 %v10049_v22  ;;  %v10059_v46 = vpack.c.bf16 %v3501_v30, %v3493_v52  ;;  %v9813_v22 = vpack.c.bf16 %v3548_v19, %v3540_v18  ;;  %v3574_v52 = vld [vmem:[#allocation13 + $0x1438] sm:$0xff]  ;;  %v9819_v30 = vpack.c.bf16 %v3563_v34, %v3555_v49  ;;  %v3587_v7 = vld [vmem:[#allocation13 + $0x14a0] sm:$0xff]  ;;  %v3612_v14 = vld [vmem:[#allocation13 + $0x1568] sm:$0xff] }
 0x530   :  { %9796 = vmatpush1.bf16.msra.mxu0 %v9795_v26  ;;  %v3541_v26 = vld [vmem:[#allocation13 + $0x1330] sm:$0xff]  ;;  %v3595_v8 = vld [vmem:[#allocation13 + $0x14e0] sm:$0xff]  ;;  %v9829_v19 = vpack.c.bf16 %v3612_v14, %v3604_v13  ;;  %v3636_v49 = vld [vmem:[#allocation13 + $0x1628] sm:$0xff] }
 0x531   :  { %10052 = vmatpush1.bf16.msra.mxu1 %v10051_v31  ;;  %9798 = vmatprep.subr.bf16.mxu0 %v9797_v41  ;;  %v10069_v31 = vpack.c.bf16 %v3550_v47, %v3542_v20  ;;  %v3549_v41 = vld [vmem:[#allocation13 + $0x1370] sm:$0xff]  ;;  %v9827_v6 = vpack.c.bf16 %v3595_v8, %v3587_v7  ;;  %v3603_v20 = vld [vmem:[#allocation13 + $0x1520] sm:$0xff]  ;;  %v3644_v34 = vld [vmem:[#allocation13 + $0x1668] sm:$0xff] }
 0x532   :  { %10054 = vmatprep.subr.bf16.mxu1 %v10053_v10  ;;  %v3566_v10 = vld [vmem:[#allocation13 + $0x13f8] sm:$0xff]  ;;  %v10071_v38 = vpack.c.bf16 %v3549_v41, %v3541_v26  ;;  %v3611_v47 = vld [vmem:[#allocation13 + $0x1560] sm:$0xff]  ;;  %v9837_v23 = vpack.c.bf16 %v3644_v34, %v3636_v49  ;;  %v3668_v7 = vld [vmem:[#allocation13 + $0x1728] sm:$0xff] }
 0x533   :  { %v3622_v26 = vld [vmem:[#allocation13 + $0x15b8] sm:$0xff]  ;;  %v9831_v41 = vpack.c.bf16 %v3611_v47, %v3603_v20  ;;  %v3676_v8 = vld [vmem:[#allocation13 + $0x1768] sm:$0xff]  ;;  %v3715_v57 = vld [vmem:[#allocation13 + $0x18a0] sm:$0xff] }
 0x534   :  { %9800 = vmatpush1.bf16.msra.mxu0 %v9799_v42  ;;  %v3557_v42 = vld [vmem:[#allocation13 + $0x13b0] sm:$0xff]  ;;  %v9845_v14 = vpack.c.bf16 %v3676_v8, %v3668_v7  ;;  %v3684_v20 = vld [vmem:[#allocation13 + $0x17a8] sm:$0xff] }
 0x535   :  { %10056 = vmatpush1.bf16.msra.mxu1 %v10055_v24  ;;  %9802 = vmatprep.subr.bf16.mxu0 %v9801_v45  ;;  %v10073_v24 = vpack.c.bf16 %v3566_v10, %v3558_v17  ;;  %v3565_v45 = vld [vmem:[#allocation13 + $0x13f0] sm:$0xff]  ;;  %v3619_v17 = vld [vmem:[#allocation13 + $0x15a0] sm:$0xff]  ;;  %v3692_v47 = vld [vmem:[#allocation13 + $0x17e8] sm:$0xff] }
 0x536   :  { %10058 = vmatprep.subr.bf16.mxu1 %v10057_v53  ;;  %v3582_v53 = vld [vmem:[#allocation13 + $0x1478] sm:$0xff]  ;;  %v10075_v54 = vpack.c.bf16 %v3565_v45, %v3557_v42  ;;  %v3627_v10 = vld [vmem:[#allocation13 + $0x15e0] sm:$0xff]  ;;  %v9849_v25 = vpack.c.bf16 %v3692_v47, %v3684_v20 }
 0x537   :  { %v3638_v42 = vld [vmem:[#allocation13 + $0x1638] sm:$0xff]  ;;  %v9835_v45 = vpack.c.bf16 %v3627_v10, %v3619_v17  ;;  %v3700_v17 = vld [vmem:[#allocation13 + $0x1828] sm:$0xff]  ;;  %v3747_v47 = vld [vmem:[#allocation13 + $0x19a0] sm:$0xff] }
 0x538   :  { %9804 = vmatpush1.bf16.msra.mxu0 %v9803_v58  ;;  %v3573_v58 = vld [vmem:[#allocation13 + $0x1430] sm:$0xff]  ;;  %v3708_v10 = vld [vmem:[#allocation13 + $0x1868] sm:$0xff] }
 0x539   :  { %10060 = vmatpush1.bf16.msra.mxu1 %v10059_v46  ;;  %9806 = vmatprep.subr.bf16.mxu0 %v9805_v59  ;;  %v10077_v46 = vpack.c.bf16 %v3582_v53, %v3574_v52  ;;  %v3581_v59 = vld [vmem:[#allocation13 + $0x1470] sm:$0xff]  ;;  %v3635_v52 = vld [vmem:[#allocation13 + $0x1620] sm:$0xff]  ;;  %v9853_v34 = vpack.c.bf16 %v3708_v10, %v3700_v17 }
 0x53a   :  { %10062 = vmatprep.subr.bf16.mxu1 %v10061_v2  ;;  %v3598_v2 = vld [vmem:[#allocation13 + $0x14f8] sm:$0xff]  ;;  %v10079_v5 = vpack.c.bf16 %v3581_v59, %v3573_v58  ;;  %v3643_v53 = vld [vmem:[#allocation13 + $0x1660] sm:$0xff] }
 0x53b   :  { %v3654_v58 = vld [vmem:[#allocation13 + $0x16b8] sm:$0xff]  ;;  %v9839_v59 = vpack.c.bf16 %v3643_v53, %v3635_v52  ;;  %v3716_v52 = vld [vmem:[#allocation13 + $0x18a8] sm:$0xff]  ;;  %v3763_v17 = vld [vmem:[#allocation13 + $0x1a20] sm:$0xff] }
 0x53c   :  { %9808 = vmatpush1.bf16.msra.mxu0 %v9807_v28  ;;  %v3589_v28 = vld [vmem:[#allocation13 + $0x14b0] sm:$0xff]  ;;  %v3724_v53 = vld [vmem:[#allocation13 + $0x18e8] sm:$0xff]  ;;  %v3771_v10 = vld [vmem:[#allocation13 + $0x1a60] sm:$0xff] }
 0x53d   :  { %10064 = vmatpush1.bf16.msra.mxu1 %v10063_v11  ;;  %9810 = vmatprep.subr.bf16.mxu0 %v9809_v63  ;;  %v10081_v11 = vpack.c.bf16 %v3598_v2, %v3590_v44  ;;  %v3597_v63 = vld [vmem:[#allocation13 + $0x14f0] sm:$0xff]  ;;  %v3651_v44 = vld [vmem:[#allocation13 + $0x16a0] sm:$0xff] }
 0x53e   :  { %10066 = vmatprep.subr.bf16.mxu1 %v10065_v16  ;;  %v3614_v16 = vld [vmem:[#allocation13 + $0x1578] sm:$0xff]  ;;  %v10083_v18 = vpack.c.bf16 %v3597_v63, %v3589_v28  ;;  %v3659_v2 = vld [vmem:[#allocation13 + $0x16e0] sm:$0xff] }
 0x53f   :  { %v3670_v28 = vld [vmem:[#allocation13 + $0x1738] sm:$0xff]  ;;  %v9843_v63 = vpack.c.bf16 %v3659_v2, %v3651_v44  ;;  %v3740_v44 = vld [vmem:[#allocation13 + $0x1968] sm:$0xff] }
 0x540   :  { %9812 = vmatpush1.bf16.msra.mxu0 %v9811_v21  ;;  %v3605_v21 = vld [vmem:[#allocation13 + $0x1530] sm:$0xff] }
 0x541   :  { %10068 = vmatpush1.bf16.msra.mxu1 %v10067_v51  ;;  %9814 = vmatprep.subr.bf16.mxu0 %v9813_v22  ;;  %v10085_v51 = vpack.c.bf16 %v3614_v16, %v3606_v15  ;;  %v3613_v22 = vld [vmem:[#allocation13 + $0x1570] sm:$0xff]  ;;  %v3667_v15 = vld [vmem:[#allocation13 + $0x1720] sm:$0xff] }
 0x542   :  { %10070 = vmatprep.subr.bf16.mxu1 %v10069_v31  ;;  %v3630_v31 = vld [vmem:[#allocation13 + $0x15f8] sm:$0xff]  ;;  %v10087_v32 = vpack.c.bf16 %v3613_v22, %v3605_v21  ;;  %v3675_v16 = vld [vmem:[#allocation13 + $0x1760] sm:$0xff] }
 0x543   :  { %v3686_v21 = vld [vmem:[#allocation13 + $0x17b8] sm:$0xff]  ;;  %v9847_v22 = vpack.c.bf16 %v3675_v16, %v3667_v15  ;;  %v3748_v15 = vld [vmem:[#allocation13 + $0x19a8] sm:$0xff] }
 0x544   :  { %9816 = vmatpush1.bf16.msra.mxu0 %v9815_v37  ;;  %v3621_v37 = vld [vmem:[#allocation13 + $0x15b0] sm:$0xff]  ;;  %v3756_v16 = vld [vmem:[#allocation13 + $0x19e8] sm:$0xff] }
 0x545   :  { %10072 = vmatpush1.bf16.msra.mxu1 %v10071_v38  ;;  %9818 = vmatprep.subr.bf16.mxu0 %v9817_v36  ;;  %v10089_v38 = vpack.c.bf16 %v3630_v31, %v3622_v26  ;;  %v3629_v36 = vld [vmem:[#allocation13 + $0x15f0] sm:$0xff]  ;;  %v3683_v26 = vld [vmem:[#allocation13 + $0x17a0] sm:$0xff]  ;;  %v9865_v20 = vpack.c.bf16 %v3756_v16, %v3748_v15  ;;  %v3822_v15 = vld [vmem:[#allocation13 + $0x1bf8] sm:$0xff] }
 0x546   :  { %10074 = vmatprep.subr.bf16.mxu1 %v10073_v24  ;;  %v3646_v24 = vld [vmem:[#allocation13 + $0x1678] sm:$0xff]  ;;  %v10091_v33 = vpack.c.bf16 %v3629_v36, %v3621_v37  ;;  %v3691_v31 = vld [vmem:[#allocation13 + $0x17e0] sm:$0xff] }
 0x547   :  { %v3702_v37 = vld [vmem:[#allocation13 + $0x1838] sm:$0xff]  ;;  %v9851_v36 = vpack.c.bf16 %v3691_v31, %v3683_v26 }
 0x548   :  { %9820 = vmatpush1.bf16.msra.mxu0 %v9819_v30  ;;  %v3637_v30 = vld [vmem:[#allocation13 + $0x1630] sm:$0xff]  ;;  %v3766_v26 = vld [vmem:[#allocation13 + $0x1a38] sm:$0xff] }
 0x549   :  { %10076 = vmatpush1.bf16.msra.mxu1 %v10075_v54  ;;  %9822 = vmatprep.subr.bf16.mxu0 %v9821_v40  ;;  %v10093_v54 = vpack.c.bf16 %v3646_v24, %v3638_v42  ;;  %v3645_v40 = vld [vmem:[#allocation13 + $0x1670] sm:$0xff]  ;;  %v3699_v42 = vld [vmem:[#allocation13 + $0x1820] sm:$0xff]  ;;  %v3774_v31 = vld [vmem:[#allocation13 + $0x1a78] sm:$0xff] }
 0x54a   :  { %10078 = vmatprep.subr.bf16.mxu1 %v10077_v46  ;;  %v3662_v46 = vld [vmem:[#allocation13 + $0x16f8] sm:$0xff]  ;;  %v10095_v61 = vpack.c.bf16 %v3645_v40, %v3637_v30  ;;  %v3707_v24 = vld [vmem:[#allocation13 + $0x1860] sm:$0xff] }
 0x54b   :  { %v9855_v30 = vpack.c.bf16 %v3707_v24, %v3699_v42  ;;  %v3726_v40 = vld [vmem:[#allocation13 + $0x18f8] sm:$0xff] }
 0x54c   :  { %9824 = vmatpush1.bf16.msra.mxu0 %v9823_v3  ;;  %v3653_v3 = vld [vmem:[#allocation13 + $0x16b0] sm:$0xff]  ;;  %v3782_v42 = vld [vmem:[#allocation13 + $0x1ab8] sm:$0xff] }
 0x54d   :  { %10080 = vmatpush1.bf16.msra.mxu1 %v10079_v5  ;;  %9826 = vmatprep.subr.bf16.mxu0 %v9825_v29  ;;  %v10097_v5 = vpack.c.bf16 %v3662_v46, %v3654_v58  ;;  %v3661_v29 = vld [vmem:[#allocation13 + $0x16f0] sm:$0xff]  ;;  %v3723_v58 = vld [vmem:[#allocation13 + $0x18e0] sm:$0xff]  ;;  %v3790_v24 = vld [vmem:[#allocation13 + $0x1af8] sm:$0xff] }
 0x54e   :  { %10082 = vmatprep.subr.bf16.mxu1 %v10081_v11  ;;  %v3678_v11 = vld [vmem:[#allocation13 + $0x1778] sm:$0xff]  ;;  %v10099_v13 = vpack.c.bf16 %v3661_v29, %v3653_v3  ;;  %v3717_v46 = vld [vmem:[#allocation13 + $0x18b0] sm:$0xff]  ;;  %v9859_v29 = vpack.c.bf16 %v3723_v58, %v3715_v57  ;;  %v3804_v57 = vld [vmem:[#allocation13 + $0x1b68] sm:$0xff] }
 0x54f   :  { %v3734_v3 = vld [vmem:[#allocation13 + $0x1938] sm:$0xff] }
 0x550   :  { %9828 = vmatpush1.bf16.msra.mxu0 %v9827_v6  ;;  %v3669_v6 = vld [vmem:[#allocation13 + $0x1730] sm:$0xff]  ;;  %v3798_v58 = vld [vmem:[#allocation13 + $0x1b38] sm:$0xff] }
 0x551   :  { %10084 = vmatpush1.bf16.msra.mxu1 %v10083_v18  ;;  %9830 = vmatprep.subr.bf16.mxu0 %v9829_v19  ;;  %v10101_v18 = vpack.c.bf16 %v3678_v11, %v3670_v28  ;;  %v3677_v19 = vld [vmem:[#allocation13 + $0x1770] sm:$0xff]  ;;  %v3731_v28 = vld [vmem:[#allocation13 + $0x1920] sm:$0xff] }
 0x552   :  { %10086 = vmatprep.subr.bf16.mxu1 %v10085_v51  ;;  %v3694_v51 = vld [vmem:[#allocation13 + $0x17f8] sm:$0xff]  ;;  %v10103_v1 = vpack.c.bf16 %v3677_v19, %v3669_v6  ;;  %v3739_v11 = vld [vmem:[#allocation13 + $0x1960] sm:$0xff] }
 0x553   :  { %v3750_v6 = vld [vmem:[#allocation13 + $0x19b8] sm:$0xff] }
 0x554   :  { %9832 = vmatpush1.bf16.msra.mxu0 %v9831_v41  ;;  %v3685_v41 = vld [vmem:[#allocation13 + $0x17b0] sm:$0xff] }
 0x555   :  { %10088 = vmatpush1.bf16.msra.mxu1 %v10087_v32  ;;  %9834 = vmatprep.subr.bf16.mxu0 %v9833_v0  ;;  %v10105_v32 = vpack.c.bf16 %v3694_v51, %v3686_v21  ;;  %v3693_v0 = vld [vmem:[#allocation13 + $0x17f0] sm:$0xff]  ;;  %v3755_v21 = vld [vmem:[#allocation13 + $0x19e0] sm:$0xff] }
 0x556   :  { %10090 = vmatprep.subr.bf16.mxu1 %v10089_v38  ;;  %v3710_v38 = vld [vmem:[#allocation13 + $0x1878] sm:$0xff]  ;;  %v10107_v49 = vpack.c.bf16 %v3693_v0, %v3685_v41  ;;  %v3749_v51 = vld [vmem:[#allocation13 + $0x19b0] sm:$0xff]  ;;  %v9867_v41 = vpack.c.bf16 %v3755_v21, %v3747_v47 }
 0x557   :  { %v3821_v21 = vld [vmem:[#allocation13 + $0x1bf0] sm:$0xff] }
 0x558   :  { %9836 = vmatpush1.bf16.msra.mxu0 %v9835_v45  ;;  %v10109_v45 = vpack.c.bf16 %v3710_v38, %v3702_v37  ;;  %v3765_v37 = vld [vmem:[#allocation13 + $0x1a30] sm:$0xff]  ;;  %v10125_v38 = vpack.c.bf16 %v3774_v31, %v3766_v26 }
 0x559   :  { %10092 = vmatpush1.bf16.msra.mxu1 %v10091_v33  ;;  %9838 = vmatprep.subr.bf16.mxu0 %v9837_v23  ;;  %v3701_v33 = vld [vmem:[#allocation13 + $0x1830] sm:$0xff] }
 0x55a   :  { %10094 = vmatprep.subr.bf16.mxu1 %v10093_v54  ;;  %v3709_v23 = vld [vmem:[#allocation13 + $0x1870] sm:$0xff]  ;;  %v3718_v54 = vld [vmem:[#allocation13 + $0x18b8] sm:$0xff] }
 0x55b   :  { %v10111_v55 = vpack.c.bf16 %v3709_v23, %v3701_v33  ;;  %v10113_v2 = vpack.c.bf16 %v3726_v40, %v3718_v54  ;;  %v10129_v54 = vpack.c.bf16 %v3790_v24, %v3782_v42  ;;  %v3789_v40 = vld [vmem:[#allocation13 + $0x1af0] sm:$0xff] }
 0x55c   :  { %9840 = vmatpush1.bf16.msra.mxu0 %v9839_v59  ;;  %v9857_v59 = vpack.c.bf16 %v3724_v53, %v3716_v52  ;;  %v3779_v52 = vld [vmem:[#allocation13 + $0x1aa0] sm:$0xff] }
 0x55d   :  { %10096 = vmatpush1.bf16.msra.mxu1 %v10095_v61  ;;  %9842 = vmatprep.subr.bf16.mxu0 %v9841_v62  ;;  %v3725_v61 = vld [vmem:[#allocation13 + $0x18f0] sm:$0xff]  ;;  %v3732_v62 = vld [vmem:[#allocation13 + $0x1928] sm:$0xff]  ;;  %v3787_v53 = vld [vmem:[#allocation13 + $0x1ae0] sm:$0xff] }
 0x55e   :  { %10098 = vmatprep.subr.bf16.mxu1 %v10097_v5  ;;  %v3742_v5 = vld [vmem:[#allocation13 + $0x1978] sm:$0xff]  ;;  %v10115_v7 = vpack.c.bf16 %v3725_v61, %v3717_v46  ;;  %v9861_v8 = vpack.c.bf16 %v3740_v44, %v3732_v62  ;;  %v3795_v44 = vld [vmem:[#allocation13 + $0x1b20] sm:$0xff] }
 0x55f   :  { %v3806_v46 = vld [vmem:[#allocation13 + $0x1b78] sm:$0xff] }
 0x560   :  { %9844 = vmatpush1.bf16.msra.mxu0 %v9843_v63  ;;  %v3733_v63 = vld [vmem:[#allocation13 + $0x1930] sm:$0xff] }
 0x561   :  { %10100 = vmatpush1.bf16.msra.mxu1 %v10099_v13  ;;  %9846 = vmatprep.subr.bf16.mxu0 %v9845_v14  ;;  %v10117_v13 = vpack.c.bf16 %v3742_v5, %v3734_v3  ;;  %v3741_v14 = vld [vmem:[#allocation13 + $0x1970] sm:$0xff] }
 0x562   :  { %10102 = vmatprep.subr.bf16.mxu1 %v10101_v18  ;;  %v9863_v18 = vpack.c.bf16 %v3739_v11, %v3731_v28  ;;  %v10119_v19 = vpack.c.bf16 %v3741_v14, %v3733_v63  ;;  %v3797_v3 = vld [vmem:[#allocation13 + $0x1b30] sm:$0xff]  ;;  %v3812_v28 = vld [vmem:[#allocation13 + $0x1ba8] sm:$0xff]  ;;  %v3814_v14 = vld [vmem:[#allocation13 + $0x1bb8] sm:$0xff] }
 0x563   :  { %v3820_v11 = vld [vmem:[#allocation13 + $0x1be8] sm:$0xff]  ;;  %v10137_v47 = vpack.c.bf16 %v3822_v15, %v3814_v14 }
 0x564   :  { %9848 = vmatpush1.bf16.msra.mxu0 %v9847_v22 }
 0x565   :  { %10104 = vmatpush1.bf16.msra.mxu1 %v10103_v1  ;;  %9850 = vmatprep.subr.bf16.mxu0 %v9849_v25  ;;  %v3764_v1 = vld [vmem:[#allocation13 + $0x1a28] sm:$0xff] }
 0x566   :  { %10106 = vmatprep.subr.bf16.mxu1 %v10105_v32  ;;  %v3772_v25 = vld [vmem:[#allocation13 + $0x1a68] sm:$0xff] }
 0x567   :  { %v9869_v0 = vpack.c.bf16 %v3772_v25, %v3764_v1  ;;  %v3838_v1 = vld [vmem:[#allocation13 + $0x1c78] sm:$0xff] }
 0x568   :  { %9852 = vmatpush1.bf16.msra.mxu0 %v9851_v36  ;;  %v3773_v36 = vld [vmem:[#allocation13 + $0x1a70] sm:$0xff] }
 0x569   :  { %10108 = vmatpush1.bf16.msra.mxu1 %v10107_v49  ;;  %9854 = vmatprep.subr.bf16.mxu0 %v9853_v34  ;;  %v3780_v49 = vld [vmem:[#allocation13 + $0x1aa8] sm:$0xff]  ;;  %v10127_v33 = vpack.c.bf16 %v3773_v36, %v3765_v37  ;;  %v3846_v36 = vld [vmem:[#allocation13 + $0x1cb8] sm:$0xff] }
 0x56a   :  { %10110 = vmatprep.subr.bf16.mxu1 %v10109_v45  ;;  %v3788_v34 = vld [vmem:[#allocation13 + $0x1ae8] sm:$0xff]  ;;  %v9871_v45 = vpack.c.bf16 %v3771_v10, %v3763_v17  ;;  %v3837_v10 = vld [vmem:[#allocation13 + $0x1c70] sm:$0xff] }
 0x56b   :  { %4768 = vmatmul.mubr.f32.vlgmr.msra.gmra.mrb[10].mxu0 %v12118_v43  ;;  %v9873_v23 = vpack.c.bf16 %v3788_v34, %v3780_v49  ;;  %v3844_v37 = vld [vmem:[#allocation13 + $0x1ca8] sm:$0xff]  ;;  %v3854_v49 = vld [vmem:[#allocation13 + $0x1cf8] sm:$0xff] }
 0x56c   :  { %5052 = vmatmul.mubr.f32.vlgmr.msra.gmra.mrb[10].mxu1 %v12118_v43  ;;  %9856 = vmatpush1.bf16.msra.mxu0 %v9855_v30  ;;  %v3758_v43 = vld [vmem:[#allocation13 + $0x19f8] sm:$0xff]  ;;  %v3781_v30 = vld [vmem:[#allocation13 + $0x1ab0] sm:$0xff] }
 0x56d   :  { %4838 = vmatprep.mubr.f32.mxu0 %v12122_v39  ;;  %10112 = vmatpush1.bf16.msra.mxu1 %v10111_v55  ;;  %v10121_v22 = vpack.c.bf16 %v3758_v43, %v3750_v6  ;;  %v3796_v55 = vld [vmem:[#allocation13 + $0x1b28] sm:$0xff]  ;;  %v10131_v61 = vpack.c.bf16 %v3789_v40, %v3781_v30  ;;  %v9881_v43 = vpack.c.bf16 %v3820_v11, %v3812_v28  ;;  %v3862_v40 = vld [vmem:[#allocation13 + $0x1d38] sm:$0xff] }
 0x56e   :  { %5122 = vmatprep.mubr.f32.mxu1 %v12122_v39  ;;  %9858 = vmatprep.subr.bf16.mxu0 %v9857_v59  ;;  %v3757_v39 = vld [vmem:[#allocation13 + $0x19f0] sm:$0xff]  ;;  %v9875_v59 = vpack.c.bf16 %v3787_v53, %v3779_v52  ;;  %v9877_v62 = vpack.c.bf16 %v3804_v57, %v3796_v55  ;;  %v10145_v52 = vpack.c.bf16 %v3854_v49, %v3846_v36  ;;  %v3860_v30 = vld [vmem:[#allocation13 + $0x1d28] sm:$0xff]  ;;  %v3870_v55 = vld [vmem:[#allocation13 + $0x1d78] sm:$0xff] }
 0x56f   :  { %10114 = vmatprep.subr.bf16.mxu1 %v10113_v2  ;;  %v10123_v32 = vpack.c.bf16 %v3757_v39, %v3749_v51  ;;  %v3803_v2 = vld [vmem:[#allocation13 + $0x1b60] sm:$0xff]  ;;  %v3828_v51 = vld [vmem:[#allocation13 + $0x1c28] sm:$0xff]  ;;  %v3830_v39 = vld [vmem:[#allocation13 + $0x1c38] sm:$0xff] }
 0x570   :  { %9860 = vmatpush1.bf16.msra.mxu0 %v9859_v29  ;;  %v9879_v16 = vpack.c.bf16 %v3803_v2, %v3795_v44  ;;  %v10141_v17 = vpack.c.bf16 %v3838_v1, %v3830_v39  ;;  %v3853_v53 = vld [vmem:[#allocation13 + $0x1cf0] sm:$0xff]  ;;  %v10149_v44 = vpack.c.bf16 %v3870_v55, %v3862_v40  ;;  %v3886_v28 = vld [vmem:[#allocation13 + $0x1df8] sm:$0xff] }
 0x571   :  { %10116 = vmatpush1.bf16.msra.mxu1 %v10115_v7  ;;  %9862 = vmatprep.subr.bf16.mxu0 %v9861_v8  ;;  %v10133_v7 = vpack.c.bf16 %v3806_v46, %v3798_v58  ;;  %v3805_v8 = vld [vmem:[#allocation13 + $0x1b70] sm:$0xff] }
 0x572   :  { %10118 = vmatprep.subr.bf16.mxu1 %v10117_v13  ;;  %v10135_v6 = vpack.c.bf16 %v3805_v8, %v3797_v3  ;;  %v3869_v2 = vld [vmem:[#allocation13 + $0x1d70] sm:$0xff]  ;;  %v3876_v3 = vld [vmem:[#allocation13 + $0x1da8] sm:$0xff]  ;;  %v3878_v8 = vld [vmem:[#allocation13 + $0x1db8] sm:$0xff] }
 0x574   :  { %9864 = vmatpush1.bf16.msra.mxu0 %v9863_v18  ;;  %v3811_v18 = vld [vmem:[#allocation13 + $0x1ba0] sm:$0xff] }
 0x575   :  { %10120 = vmatpush1.bf16.msra.mxu1 %v10119_v19  ;;  %9866 = vmatprep.subr.bf16.mxu0 %v9865_v20  ;;  %v3819_v19 = vld [vmem:[#allocation13 + $0x1be0] sm:$0xff]  ;;  %v3813_v20 = vld [vmem:[#allocation13 + $0x1bb0] sm:$0xff] }
 0x576   :  { %10122 = vmatprep.subr.bf16.mxu1 %v10121_v22  ;;  %v3836_v22 = vld [vmem:[#allocation13 + $0x1c68] sm:$0xff]  ;;  %v9883_v25 = vpack.c.bf16 %v3819_v19, %v3811_v18  ;;  %v10139_v26 = vpack.c.bf16 %v3821_v21, %v3813_v20  ;;  %v10153_v18 = vpack.c.bf16 %v3886_v28, %v3878_v8  ;;  %v3885_v19 = vld [vmem:[#allocation13 + $0x1df0] sm:$0xff]  ;;  %v3894_v21 = vld [vmem:[#allocation13 + $0x1e38] sm:$0xff] }
 0x577   :  { %v9885_v31 = vpack.c.bf16 %v3836_v22, %v3828_v51  ;;  %v3892_v20 = vld [vmem:[#allocation13 + $0x1e28] sm:$0xff]  ;;  %v3902_v51 = vld [vmem:[#allocation13 + $0x1e78] sm:$0xff] }
 0x578   :  { %9868 = vmatpush1.bf16.msra.mxu0 %v9867_v41  ;;  %v3827_v41 = vld [vmem:[#allocation13 + $0x1c20] sm:$0xff] }
 0x579   :  { %10124 = vmatpush1.bf16.msra.mxu1 %v10123_v32  ;;  %9870 = vmatprep.subr.bf16.mxu0 %v9869_v0  ;;  %v3835_v32 = vld [vmem:[#allocation13 + $0x1c60] sm:$0xff]  ;;  %v3829_v0 = vld [vmem:[#allocation13 + $0x1c30] sm:$0xff] }
 0x57a   :  { %10126 = vmatprep.subr.bf16.mxu1 %v10125_v38  ;;  %v3852_v38 = vld [vmem:[#allocation13 + $0x1ce8] sm:$0xff]  ;;  %v9887_v34 = vpack.c.bf16 %v3835_v32, %v3827_v41  ;;  %v10143_v42 = vpack.c.bf16 %v3837_v10, %v3829_v0  ;;  %v10157_v41 = vpack.c.bf16 %v3902_v51, %v3894_v21  ;;  %v3901_v32 = vld [vmem:[#allocation13 + $0x1e70] sm:$0xff]  ;;  %v3910_v10 = vld [vmem:[#allocation13 + $0x1eb8] sm:$0xff] }
 0x57b   :  { %v9889_v24 = vpack.c.bf16 %v3852_v38, %v3844_v37  ;;  %v3908_v0 = vld [vmem:[#allocation13 + $0x1ea8] sm:$0xff]  ;;  %v3918_v37 = vld [vmem:[#allocation13 + $0x1ef8] sm:$0xff]  ;;  %v5148_v21 = vld [vmem:[#allocation16 + $0x58] sm:$0xff] }
 0x57c   :  { %9872 = vmatpush1.bf16.msra.mxu0 %v9871_v45  ;;  %v3843_v45 = vld [vmem:[#allocation13 + $0x1ca0] sm:$0xff] }
 0x57d   :  { %10128 = vmatpush1.bf16.msra.mxu1 %v10127_v33  ;;  %9874 = vmatprep.subr.bf16.mxu0 %v9873_v23  ;;  %v3851_v33 = vld [vmem:[#allocation13 + $0x1ce0] sm:$0xff]  ;;  %v3845_v23 = vld [vmem:[#allocation13 + $0x1cb0] sm:$0xff] }
 0x57e   :  { %v12148_v5 = vpop.f32.mrb[8].mxu0  ;;  %v12150_v29 = vpop.f32.mrb[8].mxu1  ;;  %10130 = vmatprep.subr.bf16.mxu1 %v10129_v54  ;;  %v3868_v54 = vld [vmem:[#allocation13 + $0x1d68] sm:$0xff]  ;;  %v9891_v57 = vpack.c.bf16 %v3851_v33, %v3843_v45  ;;  %v10147_v58 = vpack.c.bf16 %v3853_v53, %v3845_v23  ;;  %v10161_v45 = vpack.c.bf16 %v3918_v37, %v3910_v10  ;;  %v3917_v33 = vld [vmem:[#allocation13 + $0x1ef0] sm:$0xff]  ;;  %v3926_v53 = vld [vmem:[#allocation13 + $0x1f38] sm:$0xff] }
 0x57f   :  { %v12152_v63 = vpop.f32.mrb[9].mxu0  ;;  %v12154_v13 = vpop.f32.mrb[9].mxu1  ;;  %v9893_v46 = vpack.c.bf16 %v3868_v54, %v3860_v30  ;;  %v3924_v23 = vld [vmem:[#allocation13 + $0x1f28] sm:$0xff]  ;;  %v3934_v30 = vld [vmem:[#allocation13 + $0x1f78] sm:$0xff]  ;;  %v5156_v37 = vld [vmem:[#allocation16 + $0x98] sm:$0xff] }
 0x580   :  { %9876 = vmatpush1.bf16.msra.mxu0 %v9875_v59  ;;  %v3859_v59 = vld [vmem:[#allocation13 + $0x1d20] sm:$0xff] }
 0x581   :  { %10132 = vmatpush1.bf16.msra.mxu1 %v10131_v61  ;;  %9878 = vmatprep.subr.bf16.mxu0 %v9877_v62  ;;  %v3867_v61 = vld [vmem:[#allocation13 + $0x1d60] sm:$0xff]  ;;  %v3861_v62 = vld [vmem:[#allocation13 + $0x1d30] sm:$0xff] }
 0x582   :  { %10134 = vmatprep.subr.bf16.mxu1 %v10133_v7  ;;  %v3884_v7 = vld [vmem:[#allocation13 + $0x1de8] sm:$0xff]  ;;  %v9895_v11 = vpack.c.bf16 %v3867_v61, %v3859_v59  ;;  %v10151_v14 = vpack.c.bf16 %v3869_v2, %v3861_v62  ;;  %v10165_v59 = vpack.c.bf16 %v3934_v30, %v3926_v53  ;;  %v3933_v61 = vld [vmem:[#allocation13 + $0x1f70] sm:$0xff]  ;;  %v3942_v2 = vld [vmem:[#allocation13 + $0x1fb8] sm:$0xff] }
 0x583   :  { %v9897_v15 = vpack.c.bf16 %v3884_v7, %v3876_v3  ;;  %v3940_v62 = vld [vmem:[#allocation13 + $0x1fa8] sm:$0xff]  ;;  %v3950_v3 = vld [vmem:[#allocation13 + $0x1ff8] sm:$0xff]  ;;  %v12156_v7 = vld [vmem:[#allocation14] sm:$0xff] }
 0x584   :  { %9880 = vmatpush1.bf16.msra.mxu0 %v9879_v16  ;;  %v3875_v16 = vld [vmem:[#allocation13 + $0x1da0] sm:$0xff] }
 0x585   :  { %10136 = vmatpush1.bf16.msra.mxu1 %v10135_v6  ;;  %9882 = vmatprep.subr.bf16.mxu0 %v9881_v43  ;;  %v3883_v6 = vld [vmem:[#allocation13 + $0x1de0] sm:$0xff]  ;;  %v3877_v43 = vld [vmem:[#allocation13 + $0x1db0] sm:$0xff] }
 0x586   :  { %10138 = vmatprep.subr.bf16.mxu1 %v10137_v47  ;;  %v3900_v47 = vld [vmem:[#allocation13 + $0x1e68] sm:$0xff]  ;;  %v9899_v22 = vpack.c.bf16 %v3883_v6, %v3875_v16  ;;  %v10155_v39 = vpack.c.bf16 %v3885_v19, %v3877_v43  ;;  %v3941_v16 = vld [vmem:[#allocation13 + $0x1fb0] sm:$0xff]  ;;  %v10169_v6 = vpack.c.bf16 %v3950_v3, %v3942_v2  ;;  %v5172_v53 = vld [vmem:[#allocation16 + $0x118] sm:$0xff] }
 0x587   :  { %v9901_v1 = vpack.c.bf16 %v3900_v47, %v3892_v20  ;;  %v3949_v43 = vld [vmem:[#allocation13 + $0x1ff0] sm:$0xff]  ;;  %v3960_v20 = vrot.slane %v12156_v7, %v11967_v50  ;;  %v5140_v47 = vld [vmem:[#allocation16 + $0x18] sm:$0xff] }
 0x588   :  { %9884 = vmatpush1.bf16.msra.mxu0 %v9883_v25  ;;  %v3891_v25 = vld [vmem:[#allocation13 + $0x1e20] sm:$0xff]  ;;  %v5146_v19 = vld [vmem:[#allocation16 + $0x48] sm:$0xff] }
 0x589   :  { %10140 = vmatpush1.bf16.msra.mxu1 %v10139_v26  ;;  %9886 = vmatprep.subr.bf16.mxu0 %v9885_v31  ;;  %v3899_v26 = vld [vmem:[#allocation13 + $0x1e60] sm:$0xff]  ;;  %v3893_v31 = vld [vmem:[#allocation13 + $0x1e30] sm:$0xff] }
 0x58a   :  { %10142 = vmatprep.subr.bf16.mxu1 %v10141_v17  ;;  %v3916_v17 = vld [vmem:[#allocation13 + $0x1ee8] sm:$0xff]  ;;  %v9903_v38 = vpack.c.bf16 %v3899_v26, %v3891_v25  ;;  %v10159_v36 = vpack.c.bf16 %v3901_v32, %v3893_v31  ;;  %v10429_v26 = vpack.c.bf16 %v5148_v21, %v5140_v47  ;;  %v5139_v31 = vld [vmem:[#allocation16 + $0x10] sm:$0xff]  ;;  %v11334_v32 = vadd.f32 %v12152_v63, %v3960_v20  ;;  %v5180_v30 = vld [vmem:[#allocation16 + $0x158] sm:$0xff] }
 0x58b   :  { %v9905_v49 = vpack.c.bf16 %v3916_v17, %v3908_v0  ;;  %v5145_v25 = vld [vmem:[#allocation16 + $0x40] sm:$0xff]  ;;  %v5154_v0 = vld [vmem:[#allocation16 + $0x88] sm:$0xff]  ;;  %v5188_v2 = vld [vmem:[#allocation16 + $0x198] sm:$0xff] }
 0x58c   :  { %9888 = vmatpush1.bf16.msra.mxu0 %v9887_v34  ;;  %v3907_v34 = vld [vmem:[#allocation13 + $0x1ea0] sm:$0xff]  ;;  %v5162_v17 = vld [vmem:[#allocation16 + $0xc8] sm:$0xff] }
 0x58d   :  { %10144 = vmatpush1.bf16.msra.mxu1 %v10143_v42  ;;  %9890 = vmatprep.subr.bf16.mxu0 %v9889_v24  ;;  %v3915_v42 = vld [vmem:[#allocation13 + $0x1ee0] sm:$0xff]  ;;  %v3909_v24 = vld [vmem:[#allocation13 + $0x1eb0] sm:$0xff] }
 0x58e   :  { %10146 = vmatprep.subr.bf16.mxu1 %v10145_v52  ;;  %v3932_v52 = vld [vmem:[#allocation13 + $0x1f68] sm:$0xff]  ;;  %v9907_v54 = vpack.c.bf16 %v3915_v42, %v3907_v34  ;;  %v10163_v40 = vpack.c.bf16 %v3917_v33, %v3909_v24  ;;  %v5155_v42 = vld [vmem:[#allocation16 + $0x90] sm:$0xff]  ;;  %v10177_v24 = vpack.c.bf16 %v5162_v17, %v5154_v0  ;;  %v5170_v33 = vld [vmem:[#allocation16 + $0x108] sm:$0xff] }
 0x58f   :  { %v9909_v55 = vpack.c.bf16 %v3932_v52, %v3924_v23  ;;  %v5161_v34 = vld [vmem:[#allocation16 + $0xc0] sm:$0xff]  ;;  %v5178_v23 = vld [vmem:[#allocation16 + $0x148] sm:$0xff]  ;;  %v12161_v52 = vmax.f32 %v11334_v32, 0.0  ;;  %v5212_v20 = vld [vmem:[#allocation16 + $0x258] sm:$0xff] }
 0x590   :  { %9892 = vmatpush1.bf16.msra.mxu0 %v9891_v57  ;;  %v3923_v57 = vld [vmem:[#allocation13 + $0x1f20] sm:$0xff] }
 0x591   :  { %10148 = vmatpush1.bf16.msra.mxu1 %v10147_v58  ;;  %9894 = vmatprep.subr.bf16.mxu0 %v9893_v46  ;;  %v3931_v58 = vld [vmem:[#allocation13 + $0x1f60] sm:$0xff]  ;;  %v3925_v46 = vld [vmem:[#allocation13 + $0x1f30] sm:$0xff] }
 0x592   :  { %10150 = vmatprep.subr.bf16.mxu1 %v10149_v44  ;;  %v3948_v44 = vld [vmem:[#allocation13 + $0x1fe8] sm:$0xff]  ;;  %v9911_v8 = vpack.c.bf16 %v3931_v58, %v3923_v57  ;;  %v10167_v28 = vpack.c.bf16 %v3933_v61, %v3925_v46  ;;  %v5171_v46 = vld [vmem:[#allocation16 + $0x110] sm:$0xff]  ;;  %v5220_v32 = vld [vmem:[#allocation16 + $0x298] sm:$0xff] }
 0x593   :  { %v5169_v57 = vld [vmem:[#allocation16 + $0x100] sm:$0xff]  ;;  %v5179_v61 = vld [vmem:[#allocation16 + $0x150] sm:$0xff]  ;;  %v5228_v0 = vld [vmem:[#allocation16 + $0x2d8] sm:$0xff] }
 0x594   :  { %9896 = vmatpush1.bf16.msra.mxu0 %v9895_v11  ;;  %v9913_v11 = vpack.c.bf16 %v3948_v44, %v3940_v62  ;;  %v5177_v58 = vld [vmem:[#allocation16 + $0x140] sm:$0xff]  ;;  %v5186_v62 = vld [vmem:[#allocation16 + $0x188] sm:$0xff] }
 0x595   :  { %10152 = vmatpush1.bf16.msra.mxu1 %v10151_v14  ;;  %9898 = vmatprep.subr.bf16.mxu0 %v9897_v15  ;;  %v3939_v14 = vld [vmem:[#allocation13 + $0x1fa0] sm:$0xff]  ;;  %v5194_v44 = vld [vmem:[#allocation16 + $0x1c8] sm:$0xff]  ;;  %v10183_v3 = vpack.c.bf16 %v5177_v58, %v5169_v57  ;;  %v5243_v58 = vld [vmem:[#allocation16 + $0x350] sm:$0xff] }
 0x596   :  { %10154 = vmatprep.subr.bf16.mxu1 %v10153_v18  ;;  %v3947_v15 = vld [vmem:[#allocation13 + $0x1fe0] sm:$0xff]  ;;  %v5138_v18 = vld [vmem:[#allocation16 + $0x8] sm:$0xff] }
 0x597   :  { %v9915_v51 = vpack.c.bf16 %v3947_v15, %v3939_v14  ;;  %v5193_v14 = vld [vmem:[#allocation16 + $0x1c0] sm:$0xff]  ;;  %v5187_v15 = vld [vmem:[#allocation16 + $0x190] sm:$0xff] }
 0x598   :  { %9900 = vmatpush1.bf16.msra.mxu0 %v9899_v22  ;;  %v10171_v22 = vpack.c.bf16 %v3949_v43, %v3941_v16  ;;  %v5202_v43 = vld [vmem:[#allocation16 + $0x208] sm:$0xff] }
 0x599   :  { %10156 = vmatpush1.bf16.msra.mxu1 %v10155_v39  ;;  %9902 = vmatprep.subr.bf16.mxu0 %v9901_v1  ;;  %v10173_v39 = vpack.c.bf16 %v5146_v19, %v5138_v18  ;;  %v5137_v1 = vld [vmem:[#allocation16] sm:$0xff]  ;;  %v5210_v18 = vld [vmem:[#allocation16 + $0x248] sm:$0xff]  ;;  %v5204_v19 = vld [vmem:[#allocation16 + $0x218] sm:$0xff] }
 0x59a   :  { %10158 = vmatprep.subr.bf16.mxu1 %v10157_v41  ;;  %v5147_v41 = vld [vmem:[#allocation16 + $0x50] sm:$0xff]  ;;  %v10175_v10 = vpack.c.bf16 %v5145_v25, %v5137_v1  ;;  %v10445_v25 = vpack.c.bf16 %v5212_v20, %v5204_v19 }
 0x59b   :  { %v5203_v1 = vld [vmem:[#allocation16 + $0x210] sm:$0xff] }
 0x59c   :  { %9904 = vmatpush1.bf16.msra.mxu0 %v9903_v38  ;;  %v5164_v38 = vld [vmem:[#allocation16 + $0xd8] sm:$0xff] }
 0x59d   :  { %10160 = vmatpush1.bf16.msra.mxu1 %v10159_v36  ;;  %9906 = vmatprep.subr.bf16.mxu0 %v9905_v49  ;;  %v10431_v36 = vpack.c.bf16 %v5147_v41, %v5139_v31  ;;  %v5153_v49 = vld [vmem:[#allocation16 + $0x80] sm:$0xff]  ;;  %v10433_v63 = vpack.c.bf16 %v5164_v38, %v5156_v37  ;;  %v5218_v31 = vld [vmem:[#allocation16 + $0x288] sm:$0xff] }
 0x59e   :  { %10162 = vmatprep.subr.bf16.mxu1 %v10161_v45  ;;  %v5163_v45 = vld [vmem:[#allocation16 + $0xd0] sm:$0xff]  ;;  %v5226_v41 = vld [vmem:[#allocation16 + $0x2c8] sm:$0xff]  ;;  %v5217_v38 = vld [vmem:[#allocation16 + $0x280] sm:$0xff] }
 0x59f   :  { %v10193_v37 = vpack.c.bf16 %v5226_v41, %v5218_v31  ;;  %v5292_v31 = vld [vmem:[#allocation16 + $0x4d8] sm:$0xff] }
 0x5a0   :  { %9908 = vmatpush1.bf16.msra.mxu0 %v9907_v54  ;;  %v10179_v54 = vpack.c.bf16 %v5161_v34, %v5153_v49  ;;  %v5219_v49 = vld [vmem:[#allocation16 + $0x290] sm:$0xff]  ;;  %v10449_v34 = vpack.c.bf16 %v5228_v0, %v5220_v32 }
 0x5a1   :  { %10164 = vmatpush1.bf16.msra.mxu1 %v10163_v40  ;;  %9910 = vmatprep.subr.bf16.mxu0 %v9909_v55  ;;  %v10435_v40 = vpack.c.bf16 %v5163_v45, %v5155_v42  ;;  %v10181_v55 = vpack.c.bf16 %v5178_v23, %v5170_v33  ;;  %v5227_v42 = vld [vmem:[#allocation16 + $0x2d0] sm:$0xff]  ;;  %v5242_v45 = vld [vmem:[#allocation16 + $0x348] sm:$0xff]  ;;  %v5236_v33 = vld [vmem:[#allocation16 + $0x318] sm:$0xff] }
 0x5a2   :  { %10166 = vmatprep.subr.bf16.mxu1 %v10165_v59  ;;  %v10437_v59 = vpack.c.bf16 %v5180_v30, %v5172_v53  ;;  %v5244_v23 = vld [vmem:[#allocation16 + $0x358] sm:$0xff]  ;;  %v10451_v53 = vpack.c.bf16 %v5227_v42, %v5219_v49  ;;  %v5298_v49 = vld [vmem:[#allocation16 + $0x508] sm:$0xff] }
 0x5a3   :  { %v10453_v57 = vpack.c.bf16 %v5244_v23, %v5236_v33  ;;  %v5300_v42 = vld [vmem:[#allocation16 + $0x518] sm:$0xff] }
 0x5a4   :  { %9912 = vmatpush1.bf16.msra.mxu0 %v9911_v8  ;;  %v10439_v8 = vpack.c.bf16 %v5179_v61, %v5171_v46  ;;  %v5250_v46 = vld [vmem:[#allocation16 + $0x388] sm:$0xff]  ;;  %v5252_v61 = vld [vmem:[#allocation16 + $0x398] sm:$0xff] }
 0x5a5   :  { %10168 = vmatpush1.bf16.msra.mxu1 %v10167_v28  ;;  %9914 = vmatprep.subr.bf16.mxu0 %v9913_v11  ;;  %v10185_v28 = vpack.c.bf16 %v5194_v44, %v5186_v62  ;;  %v5185_v11 = vld [vmem:[#allocation16 + $0x180] sm:$0xff]  ;;  %v5260_v62 = vld [vmem:[#allocation16 + $0x3d8] sm:$0xff] }
 0x5a6   :  { %10170 = vmatprep.subr.bf16.mxu1 %v10169_v6  ;;  %v5195_v6 = vld [vmem:[#allocation16 + $0x1d0] sm:$0xff]  ;;  %v10187_v47 = vpack.c.bf16 %v5193_v14, %v5185_v11  ;;  %v10457_v11 = vpack.c.bf16 %v5260_v62, %v5252_v61 }
 0x5a7   :  { %v10443_v21 = vpack.c.bf16 %v5195_v6, %v5187_v15  ;;  %v5259_v14 = vld [vmem:[#allocation16 + $0x3d0] sm:$0xff]  ;;  %v5266_v15 = vld [vmem:[#allocation16 + $0x408] sm:$0xff]  ;;  %v5268_v6 = vld [vmem:[#allocation16 + $0x418] sm:$0xff] }
 0x5a8   :  { %9916 = vmatpush1.bf16.msra.mxu0 %v9915_v51  ;;  %v10189_v51 = vpack.c.bf16 %v5210_v18, %v5202_v43  ;;  %v5276_v43 = vld [vmem:[#allocation16 + $0x458] sm:$0xff] }
 0x5a9   :  { %10172 = vmatpush1.bf16.msra.mxu1 %v10171_v22  ;;  %10174 = vmatprep.subr.bf16.mxu0 %v10173_v39  ;;  %v5201_v22 = vld [vmem:[#allocation16 + $0x200] sm:$0xff] }
 0x5aa   :  { %10430 = vmatprep.subr.bf16.mxu1 %v10429_v26  ;;  %v5209_v39 = vld [vmem:[#allocation16 + $0x240] sm:$0xff]  ;;  %v5211_v26 = vld [vmem:[#allocation16 + $0x250] sm:$0xff] }
 0x5ab   :  { %4839 = vmatmul.mubr.f32.vlgmr.msra.gmra.mrb[10].mxu0 %v12130_v35  ;;  %v10191_v17 = vpack.c.bf16 %v5209_v39, %v5201_v22  ;;  %v10461_v22 = vpack.c.bf16 %v5276_v43, %v5268_v6  ;;  %v5275_v39 = vld [vmem:[#allocation16 + $0x450] sm:$0xff] }
 0x5ac   :  { %5123 = vmatmul.mubr.f32.vlgmr.msra.gmra.mrb[10].mxu1 %v12130_v35  ;;  %10176 = vmatpush1.bf16.msra.mxu0 %v10175_v10  ;;  %v5196_v35 = vld [vmem:[#allocation16 + $0x1d8] sm:$0xff]  ;;  %v10447_v10 = vpack.c.bf16 %v5211_v26, %v5203_v1  ;;  %v5282_v1 = vld [vmem:[#allocation16 + $0x488] sm:$0xff] }
 0x5ad   :  { %6267 = vmatprep.mubr.f32.mxu0 %v12161_v52  ;;  %10432 = vmatpush1.bf16.msra.mxu1 %v10431_v36  ;;  %v10441_v16 = vpack.c.bf16 %v5196_v35, %v5188_v2  ;;  %v5225_v36 = vld [vmem:[#allocation16 + $0x2c0] sm:$0xff]  ;;  %v5284_v26 = vld [vmem:[#allocation16 + $0x498] sm:$0xff] }
 0x5ae   :  { %6551 = vmatprep.mubr.f32.mxu1 %v12161_v52  ;;  %10178 = vmatprep.subr.bf16.mxu0 %v10177_v24  ;;  %v5234_v24 = vld [vmem:[#allocation16 + $0x308] sm:$0xff] }
 0x5af   :  { %10434 = vmatprep.subr.bf16.mxu1 %v10433_v63  ;;  %v10195_v63 = vpack.c.bf16 %v5225_v36, %v5217_v38  ;;  %v10197_v30 = vpack.c.bf16 %v5242_v45, %v5234_v24  ;;  %v10465_v38 = vpack.c.bf16 %v5292_v31, %v5284_v26  ;;  %v5291_v36 = vld [vmem:[#allocation16 + $0x4d0] sm:$0xff]  ;;  %v5308_v24 = vld [vmem:[#allocation16 + $0x558] sm:$0xff] }
 0x5b0   :  { %10180 = vmatpush1.bf16.msra.mxu0 %v10179_v54  ;;  %v5233_v54 = vld [vmem:[#allocation16 + $0x300] sm:$0xff] }
 0x5b1   :  { %10436 = vmatpush1.bf16.msra.mxu1 %v10435_v40  ;;  %10182 = vmatprep.subr.bf16.mxu0 %v10181_v55  ;;  %v5241_v40 = vld [vmem:[#allocation16 + $0x340] sm:$0xff]  ;;  %v5235_v55 = vld [vmem:[#allocation16 + $0x310] sm:$0xff] }
 0x5b2   :  { %10438 = vmatprep.subr.bf16.mxu1 %v10437_v59  ;;  %v5258_v59 = vld [vmem:[#allocation16 + $0x3c8] sm:$0xff]  ;;  %v10199_v44 = vpack.c.bf16 %v5241_v40, %v5233_v54  ;;  %v10455_v2 = vpack.c.bf16 %v5243_v58, %v5235_v55  ;;  %v10469_v54 = vpack.c.bf16 %v5308_v24, %v5300_v42  ;;  %v5307_v40 = vld [vmem:[#allocation16 + $0x550] sm:$0xff]  ;;  %v5316_v58 = vld [vmem:[#allocation16 + $0x598] sm:$0xff] }
 0x5b3   :  { %v10201_v35 = vpack.c.bf16 %v5258_v59, %v5250_v46  ;;  %v5314_v55 = vld [vmem:[#allocation16 + $0x588] sm:$0xff]  ;;  %v5324_v46 = vld [vmem:[#allocation16 + $0x5d8] sm:$0xff] }
 0x5b4   :  { %10184 = vmatpush1.bf16.msra.mxu0 %v10183_v3  ;;  %v5249_v3 = vld [vmem:[#allocation16 + $0x380] sm:$0xff] }
 0x5b5   :  { %10440 = vmatpush1.bf16.msra.mxu1 %v10439_v8  ;;  %10186 = vmatprep.subr.bf16.mxu0 %v10185_v28  ;;  %v5257_v8 = vld [vmem:[#allocation16 + $0x3c0] sm:$0xff]  ;;  %v5251_v28 = vld [vmem:[#allocation16 + $0x390] sm:$0xff] }
 0x5b6   :  { %10442 = vmatprep.subr.bf16.mxu1 %v10441_v16  ;;  %v5274_v16 = vld [vmem:[#allocation16 + $0x448] sm:$0xff]  ;;  %v10203_v18 = vpack.c.bf16 %v5257_v8, %v5249_v3  ;;  %v10459_v19 = vpack.c.bf16 %v5259_v14, %v5251_v28  ;;  %v10473_v3 = vpack.c.bf16 %v5324_v46, %v5316_v58  ;;  %v5323_v8 = vld [vmem:[#allocation16 + $0x5d0] sm:$0xff]  ;;  %v5332_v14 = vld [vmem:[#allocation16 + $0x618] sm:$0xff]  ;;  %v3956_v58 = vrot.slane %v12156_v7, %v11962_v48 }
 0x5b7   :  { %v10205_v20 = vpack.c.bf16 %v5274_v16, %v5266_v15  ;;  %v5330_v28 = vld [vmem:[#allocation16 + $0x608] sm:$0xff]  ;;  %v5340_v15 = vld [vmem:[#allocation16 + $0x658] sm:$0xff] }
 0x5b8   :  { %10188 = vmatpush1.bf16.msra.mxu0 %v10187_v47  ;;  %v5265_v47 = vld [vmem:[#allocation16 + $0x400] sm:$0xff] }
 0x5b9   :  { %10444 = vmatpush1.bf16.msra.mxu1 %v10443_v21  ;;  %10190 = vmatprep.subr.bf16.mxu0 %v10189_v51  ;;  %v5273_v21 = vld [vmem:[#allocation16 + $0x440] sm:$0xff]  ;;  %v5267_v51 = vld [vmem:[#allocation16 + $0x410] sm:$0xff] }
 0x5ba   :  { %10446 = vmatprep.subr.bf16.mxu1 %v10445_v25  ;;  %v5290_v25 = vld [vmem:[#allocation16 + $0x4c8] sm:$0xff]  ;;  %v10207_v41 = vpack.c.bf16 %v5273_v21, %v5265_v47  ;;  %v10463_v32 = vpack.c.bf16 %v5275_v39, %v5267_v51  ;;  %v10477_v47 = vpack.c.bf16 %v5340_v15, %v5332_v14  ;;  %v5339_v21 = vld [vmem:[#allocation16 + $0x650] sm:$0xff]  ;;  %v5348_v39 = vld [vmem:[#allocation16 + $0x698] sm:$0xff] }
 0x5bb   :  { %v10209_v0 = vpack.c.bf16 %v5290_v25, %v5282_v1  ;;  %v5346_v51 = vld [vmem:[#allocation16 + $0x688] sm:$0xff]  ;;  %v5356_v1 = vld [vmem:[#allocation16 + $0x6d8] sm:$0xff] }
 0x5bc   :  { %10192 = vmatpush1.bf16.msra.mxu0 %v10191_v17  ;;  %v5281_v17 = vld [vmem:[#allocation16 + $0x480] sm:$0xff]  ;;  %v5404_v14 = vld [vmem:[#allocation16 + $0x858] sm:$0xff] }
 0x5bd   :  { %10448 = vmatpush1.bf16.msra.mxu1 %v10447_v10  ;;  %10194 = vmatprep.subr.bf16.mxu0 %v10193_v37  ;;  %v5289_v10 = vld [vmem:[#allocation16 + $0x4c0] sm:$0xff]  ;;  %v5283_v37 = vld [vmem:[#allocation16 + $0x490] sm:$0xff] }
 0x5be   :  { %10450 = vmatprep.subr.bf16.mxu1 %v10449_v34  ;;  %v5306_v34 = vld [vmem:[#allocation16 + $0x548] sm:$0xff]  ;;  %v10211_v45 = vpack.c.bf16 %v5289_v10, %v5281_v17  ;;  %v10467_v33 = vpack.c.bf16 %v5291_v36, %v5283_v37  ;;  %v10481_v17 = vpack.c.bf16 %v5356_v1, %v5348_v39  ;;  %v5355_v10 = vld [vmem:[#allocation16 + $0x6d0] sm:$0xff]  ;;  %v5364_v36 = vld [vmem:[#allocation16 + $0x718] sm:$0xff] }
 0x5bf   :  { %v10213_v23 = vpack.c.bf16 %v5306_v34, %v5298_v49  ;;  %v5362_v37 = vld [vmem:[#allocation16 + $0x708] sm:$0xff]  ;;  %v5372_v49 = vld [vmem:[#allocation16 + $0x758] sm:$0xff] }
 0x5c0   :  { %10196 = vmatpush1.bf16.msra.mxu0 %v10195_v63  ;;  %v5297_v63 = vld [vmem:[#allocation16 + $0x500] sm:$0xff]  ;;  %v5412_v1 = vld [vmem:[#allocation16 + $0x898] sm:$0xff] }
 0x5c1   :  { %10452 = vmatpush1.bf16.msra.mxu1 %v10451_v53  ;;  %10198 = vmatprep.subr.bf16.mxu0 %v10197_v30  ;;  %v5305_v53 = vld [vmem:[#allocation16 + $0x540] sm:$0xff]  ;;  %v5299_v30 = vld [vmem:[#allocation16 + $0x510] sm:$0xff] }
 0x5c2   :  { %10454 = vmatprep.subr.bf16.mxu1 %v10453_v57  ;;  %v5322_v57 = vld [vmem:[#allocation16 + $0x5c8] sm:$0xff]  ;;  %v10215_v59 = vpack.c.bf16 %v5305_v53, %v5297_v63  ;;  %v10471_v61 = vpack.c.bf16 %v5307_v40, %v5299_v30  ;;  %v10485_v63 = vpack.c.bf16 %v5372_v49, %v5364_v36  ;;  %v5371_v53 = vld [vmem:[#allocation16 + $0x750] sm:$0xff]  ;;  %v5380_v40 = vld [vmem:[#allocation16 + $0x798] sm:$0xff] }
 0x5c3   :  { %v10217_v62 = vpack.c.bf16 %v5322_v57, %v5314_v55  ;;  %v5378_v30 = vld [vmem:[#allocation16 + $0x788] sm:$0xff]  ;;  %v5388_v55 = vld [vmem:[#allocation16 + $0x7d8] sm:$0xff] }
 0x5c4   :  { %10200 = vmatpush1.bf16.msra.mxu0 %v10199_v44  ;;  %v5313_v44 = vld [vmem:[#allocation16 + $0x580] sm:$0xff]  ;;  %v5428_v36 = vld [vmem:[#allocation16 + $0x918] sm:$0xff] }
 0x5c5   :  { %10456 = vmatpush1.bf16.msra.mxu1 %v10455_v2  ;;  %10202 = vmatprep.subr.bf16.mxu0 %v10201_v35  ;;  %v5321_v2 = vld [vmem:[#allocation16 + $0x5c0] sm:$0xff]  ;;  %v5315_v35 = vld [vmem:[#allocation16 + $0x590] sm:$0xff]  ;;  %v5436_v49 = vld [vmem:[#allocation16 + $0x958] sm:$0xff] }
 0x5c6   :  { %10458 = vmatprep.subr.bf16.mxu1 %v10457_v11  ;;  %v5338_v11 = vld [vmem:[#allocation16 + $0x648] sm:$0xff]  ;;  %v10219_v16 = vpack.c.bf16 %v5321_v2, %v5313_v44  ;;  %v10475_v6 = vpack.c.bf16 %v5323_v8, %v5315_v35  ;;  %v5379_v44 = vld [vmem:[#allocation16 + $0x790] sm:$0xff]  ;;  %v10489_v2 = vpack.c.bf16 %v5388_v55, %v5380_v40  ;;  %v5444_v40 = vld [vmem:[#allocation16 + $0x998] sm:$0xff] }
 0x5c7   :  { %v10221_v43 = vpack.c.bf16 %v5338_v11, %v5330_v28  ;;  %v5387_v35 = vld [vmem:[#allocation16 + $0x7d0] sm:$0xff]  ;;  %v5402_v8 = vld [vmem:[#allocation16 + $0x848] sm:$0xff]  ;;  %v3968_v28 = vrot.slane %v12156_v7, %v11982_v27  ;;  %v5396_v11 = vld [vmem:[#allocation16 + $0x818] sm:$0xff] }
 0x5c8   :  { %10204 = vmatpush1.bf16.msra.mxu0 %v10203_v18  ;;  %v5329_v18 = vld [vmem:[#allocation16 + $0x600] sm:$0xff]  ;;  %v5418_v7 = vld [vmem:[#allocation16 + $0x8c8] sm:$0xff]  ;;  %v5452_v55 = vld [vmem:[#allocation16 + $0x9d8] sm:$0xff] }
 0x5c9   :  { %10460 = vmatpush1.bf16.msra.mxu1 %v10459_v19  ;;  %10206 = vmatprep.subr.bf16.mxu0 %v10205_v20  ;;  %v5337_v19 = vld [vmem:[#allocation16 + $0x640] sm:$0xff]  ;;  %v5331_v20 = vld [vmem:[#allocation16 + $0x610] sm:$0xff] }
 0x5ca   :  { %10462 = vmatprep.subr.bf16.mxu1 %v10461_v22  ;;  %v5354_v22 = vld [vmem:[#allocation16 + $0x6c8] sm:$0xff]  ;;  %v10223_v25 = vpack.c.bf16 %v5337_v19, %v5329_v18  ;;  %v10479_v26 = vpack.c.bf16 %v5339_v21, %v5331_v20  ;;  %v5393_v18 = vld [vmem:[#allocation16 + $0x800] sm:$0xff]  ;;  %v10493_v20 = vpack.c.bf16 %v5404_v14, %v5396_v11  ;;  %v5403_v21 = vld [vmem:[#allocation16 + $0x850] sm:$0xff] }
 0x5cb   :  { %v10225_v31 = vpack.c.bf16 %v5354_v22, %v5346_v51  ;;  %v5401_v19 = vld [vmem:[#allocation16 + $0x840] sm:$0xff]  ;;  %v11336_v51 = vadd.f32 %v12154_v13, %v3968_v28  ;;  %v5410_v22 = vld [vmem:[#allocation16 + $0x888] sm:$0xff]  ;;  %v5468_v28 = vld [vmem:[#allocation16 + $0xa58] sm:$0xff] }
 0x5cc   :  { %10208 = vmatpush1.bf16.msra.mxu0 %v10207_v41  ;;  %v5345_v41 = vld [vmem:[#allocation16 + $0x680] sm:$0xff]  ;;  %v10239_v39 = vpack.c.bf16 %v5401_v19, %v5393_v18  ;;  %v5467_v19 = vld [vmem:[#allocation16 + $0xa50] sm:$0xff] }
 0x5cd   :  { %10464 = vmatpush1.bf16.msra.mxu1 %v10463_v32  ;;  %10210 = vmatprep.subr.bf16.mxu0 %v10209_v0  ;;  %v5353_v32 = vld [vmem:[#allocation16 + $0x6c0] sm:$0xff]  ;;  %v5347_v0 = vld [vmem:[#allocation16 + $0x690] sm:$0xff]  ;;  %v12175_v13 = vmax.f32 %v11336_v51, 0.0  ;;  %v5484_v51 = vld [vmem:[#allocation16 + $0xad8] sm:$0xff] }
 0x5ce   :  { %10466 = vmatprep.subr.bf16.mxu1 %v10465_v38  ;;  %v5370_v38 = vld [vmem:[#allocation16 + $0x748] sm:$0xff]  ;;  %v10227_v34 = vpack.c.bf16 %v5353_v32, %v5345_v41  ;;  %v10483_v42 = vpack.c.bf16 %v5355_v10, %v5347_v0  ;;  %v5417_v41 = vld [vmem:[#allocation16 + $0x8c0] sm:$0xff]  ;;  %v5411_v32 = vld [vmem:[#allocation16 + $0x890] sm:$0xff]  ;;  %v10241_v0 = vpack.c.bf16 %v5418_v7, %v5410_v22 }
 0x5cf   :  { %v10229_v24 = vpack.c.bf16 %v5370_v38, %v5362_v37  ;;  %v5426_v10 = vld [vmem:[#allocation16 + $0x908] sm:$0xff] }
 0x5d0   :  { %10212 = vmatpush1.bf16.msra.mxu0 %v10211_v45  ;;  %v5361_v45 = vld [vmem:[#allocation16 + $0x700] sm:$0xff]  ;;  %v5434_v37 = vld [vmem:[#allocation16 + $0x948] sm:$0xff] }
 0x5d1   :  { %10468 = vmatpush1.bf16.msra.mxu1 %v10467_v33  ;;  %10214 = vmatprep.subr.bf16.mxu0 %v10213_v23  ;;  %v5369_v33 = vld [vmem:[#allocation16 + $0x740] sm:$0xff]  ;;  %v5363_v23 = vld [vmem:[#allocation16 + $0x710] sm:$0xff] }
 0x5d2   :  { %10470 = vmatprep.subr.bf16.mxu1 %v10469_v54  ;;  %v5386_v54 = vld [vmem:[#allocation16 + $0x7c8] sm:$0xff]  ;;  %v10231_v57 = vpack.c.bf16 %v5369_v33, %v5361_v45  ;;  %v10487_v46 = vpack.c.bf16 %v5371_v53, %v5363_v23  ;;  %v5425_v45 = vld [vmem:[#allocation16 + $0x900] sm:$0xff]  ;;  %v5427_v23 = vld [vmem:[#allocation16 + $0x910] sm:$0xff] }
 0x5d3   :  { %v5433_v33 = vld [vmem:[#allocation16 + $0x940] sm:$0xff]  ;;  %v5435_v53 = vld [vmem:[#allocation16 + $0x950] sm:$0xff] }
 0x5d4   :  { %10216 = vmatpush1.bf16.msra.mxu0 %v10215_v59  ;;  %v10233_v59 = vpack.c.bf16 %v5386_v54, %v5378_v30  ;;  %v5442_v30 = vld [vmem:[#allocation16 + $0x988] sm:$0xff] }
 0x5d5   :  { %10472 = vmatpush1.bf16.msra.mxu1 %v10471_v61  ;;  %10218 = vmatprep.subr.bf16.mxu0 %v10217_v62  ;;  %v5377_v61 = vld [vmem:[#allocation16 + $0x780] sm:$0xff]  ;;  %v5450_v54 = vld [vmem:[#allocation16 + $0x9c8] sm:$0xff] }
 0x5d6   :  { %10474 = vmatprep.subr.bf16.mxu1 %v10473_v3  ;;  %v5385_v62 = vld [vmem:[#allocation16 + $0x7c0] sm:$0xff]  ;;  %v5394_v3 = vld [vmem:[#allocation16 + $0x808] sm:$0xff] }
 0x5d7   :  { %v10235_v15 = vpack.c.bf16 %v5385_v62, %v5377_v61  ;;  %v5449_v61 = vld [vmem:[#allocation16 + $0x9c0] sm:$0xff]  ;;  %v5443_v62 = vld [vmem:[#allocation16 + $0x990] sm:$0xff] }
 0x5d8   :  { %10220 = vmatpush1.bf16.msra.mxu0 %v10219_v16  ;;  %v11333_v16 = vadd.f32 %v12148_v5, %v3956_v58  ;;  %v10503_v58 = vpack.c.bf16 %v5435_v53, %v5427_v23  ;;  %v5514_v23 = vld [vmem:[#allocation16 + $0xbc8] sm:$0xff]  ;;  %v5516_v53 = vld [vmem:[#allocation16 + $0xbd8] sm:$0xff] }
 0x5d9   :  { %10476 = vmatpush1.bf16.msra.mxu1 %v10475_v6  ;;  %10222 = vmatprep.subr.bf16.mxu0 %v10221_v43  ;;  %v10491_v6 = vpack.c.bf16 %v5387_v35, %v5379_v44  ;;  %v10237_v43 = vpack.c.bf16 %v5402_v8, %v5394_v3  ;;  %v10505_v44 = vpack.c.bf16 %v5452_v55, %v5444_v40  ;;  %v5458_v35 = vld [vmem:[#allocation16 + $0xa08] sm:$0xff]  ;;  %v5460_v8 = vld [vmem:[#allocation16 + $0xa18] sm:$0xff]  ;;  %v5505_v55 = vld [vmem:[#allocation16 + $0xb80] sm:$0xff] }
 0x5da   :  { %10478 = vmatprep.subr.bf16.mxu1 %v10477_v47  ;;  %v5395_v47 = vld [vmem:[#allocation16 + $0x810] sm:$0xff]  ;;  %v5466_v3 = vld [vmem:[#allocation16 + $0xa48] sm:$0xff]  ;;  %v10509_v18 = vpack.c.bf16 %v5468_v28, %v5460_v8  ;;  %v5521_v28 = vld [vmem:[#allocation16 + $0xc00] sm:$0xff] }
 0x5db   :  { %v10495_v5 = vpack.c.bf16 %v5403_v21, %v5395_v47  ;;  %v5482_v47 = vld [vmem:[#allocation16 + $0xac8] sm:$0xff]  ;;  %v5476_v21 = vld [vmem:[#allocation16 + $0xa98] sm:$0xff] }
 0x5dc   :  { %10224 = vmatpush1.bf16.msra.mxu0 %v10223_v25  ;;  %v5420_v25 = vld [vmem:[#allocation16 + $0x8d8] sm:$0xff] }
 0x5dd   :  { %10480 = vmatpush1.bf16.msra.mxu1 %v10479_v26  ;;  %10226 = vmatprep.subr.bf16.mxu0 %v10225_v31  ;;  %v12173_v26 = vmax.f32 %v11333_v16, 0.0  ;;  %v5409_v31 = vld [vmem:[#allocation16 + $0x880] sm:$0xff]  ;;  %v10497_v38 = vpack.c.bf16 %v5420_v25, %v5412_v1 }
 0x5de   :  { %10482 = vmatprep.subr.bf16.mxu1 %v10481_v17  ;;  %v5419_v17 = vld [vmem:[#allocation16 + $0x8d0] sm:$0xff]  ;;  %v5457_v16 = vld [vmem:[#allocation16 + $0xa00] sm:$0xff] }
 0x5df   :  { %v5473_v1 = vld [vmem:[#allocation16 + $0xa80] sm:$0xff] }
 0x5e0   :  { %10228 = vmatpush1.bf16.msra.mxu0 %v10227_v34  ;;  %v10243_v34 = vpack.c.bf16 %v5417_v41, %v5409_v31  ;;  %v5481_v25 = vld [vmem:[#allocation16 + $0xac0] sm:$0xff]  ;;  %v10513_v31 = vpack.c.bf16 %v5484_v51, %v5476_v21  ;;  %v5483_v41 = vld [vmem:[#allocation16 + $0xad0] sm:$0xff] }
 0x5e1   :  { %10484 = vmatpush1.bf16.msra.mxu1 %v10483_v42  ;;  %10230 = vmatprep.subr.bf16.mxu0 %v10229_v24  ;;  %v10499_v42 = vpack.c.bf16 %v5419_v17, %v5411_v32  ;;  %v10245_v24 = vpack.c.bf16 %v5434_v37, %v5426_v10  ;;  %v5490_v32 = vld [vmem:[#allocation16 + $0xb08] sm:$0xff]  ;;  %v5492_v17 = vld [vmem:[#allocation16 + $0xb18] sm:$0xff]  ;;  %v10259_v37 = vpack.c.bf16 %v5481_v25, %v5473_v1  ;;  %v5537_v51 = vld [vmem:[#allocation16 + $0xc80] sm:$0xff] }
 0x5e2   :  { %10486 = vmatprep.subr.bf16.mxu1 %v10485_v63  ;;  %v10501_v63 = vpack.c.bf16 %v5436_v49, %v5428_v36  ;;  %v5500_v10 = vld [vmem:[#allocation16 + $0xb58] sm:$0xff]  ;;  %v5489_v49 = vld [vmem:[#allocation16 + $0xb00] sm:$0xff]  ;;  %v5547_v1 = vld [vmem:[#allocation16 + $0xcd0] sm:$0xff] }
 0x5e3   :  { %v5554_v25 = vld [vmem:[#allocation16 + $0xd08] sm:$0xff] }
 0x5e4   :  { %10232 = vmatpush1.bf16.msra.mxu0 %v10231_v57  ;;  %v10247_v57 = vpack.c.bf16 %v5433_v33, %v5425_v45  ;;  %v5499_v45 = vld [vmem:[#allocation16 + $0xb50] sm:$0xff]  ;;  %v5506_v33 = vld [vmem:[#allocation16 + $0xb88] sm:$0xff] }
 0x5e5   :  { %10488 = vmatpush1.bf16.msra.mxu1 %v10487_v46  ;;  %10234 = vmatprep.subr.bf16.mxu0 %v10233_v59  ;;  %v10249_v46 = vpack.c.bf16 %v5450_v54, %v5442_v30  ;;  %v5441_v59 = vld [vmem:[#allocation16 + $0x980] sm:$0xff]  ;;  %v10265_v40 = vpack.c.bf16 %v5514_v23, %v5506_v33 }
 0x5e6   :  { %10490 = vmatprep.subr.bf16.mxu1 %v10489_v2  ;;  %v5451_v2 = vld [vmem:[#allocation16 + $0x9d0] sm:$0xff]  ;;  %v10251_v11 = vpack.c.bf16 %v5449_v61, %v5441_v59  ;;  %v5522_v61 = vld [vmem:[#allocation16 + $0xc08] sm:$0xff] }
 0x5e7   :  { %v10507_v14 = vpack.c.bf16 %v5451_v2, %v5443_v62  ;;  %v5515_v59 = vld [vmem:[#allocation16 + $0xbd0] sm:$0xff]  ;;  %v5530_v62 = vld [vmem:[#allocation16 + $0xc48] sm:$0xff]  ;;  %v5532_v2 = vld [vmem:[#allocation16 + $0xc58] sm:$0xff] }
 0x5e8   :  { %10236 = vmatpush1.bf16.msra.mxu0 %v10235_v15  ;;  %v10253_v15 = vpack.c.bf16 %v5466_v3, %v5458_v35  ;;  %v10269_v8 = vpack.c.bf16 %v5530_v62, %v5522_v61 }
 0x5e9   :  { %10492 = vmatpush1.bf16.msra.mxu1 %v10491_v6  ;;  %10238 = vmatprep.subr.bf16.mxu0 %v10237_v43  ;;  %v5465_v6 = vld [vmem:[#allocation16 + $0xa40] sm:$0xff]  ;;  %v5459_v43 = vld [vmem:[#allocation16 + $0xa10] sm:$0xff] }
 0x5ea   :  { %10494 = vmatprep.subr.bf16.mxu1 %v10493_v20  ;;  %v5474_v20 = vld [vmem:[#allocation16 + $0xa88] sm:$0xff]  ;;  %v10255_v22 = vpack.c.bf16 %v5465_v6, %v5457_v16  ;;  %v10511_v7 = vpack.c.bf16 %v5467_v19, %v5459_v43  ;;  %v5531_v16 = vld [vmem:[#allocation16 + $0xc50] sm:$0xff]  ;;  %v5548_v19 = vld [vmem:[#allocation16 + $0xcd8] sm:$0xff] }
 0x5eb   :  { %6268 = vmatmul.mubr.f32.vlgmr.msra.gmra.mrb[12].mxu0 %v12173_v26  ;;  %v5538_v6 = vld [vmem:[#allocation16 + $0xc88] sm:$0xff] }
 0x5ec   :  { %6552 = vmatmul.mubr.f32.vlgmr.msra.gmra.mrb[12].mxu1 %v12173_v26  ;;  %10240 = vmatpush1.bf16.msra.mxu0 %v10239_v39  ;;  %v10257_v39 = vpack.c.bf16 %v5482_v47, %v5474_v20  ;;  %v5546_v43 = vld [vmem:[#allocation16 + $0xcc8] sm:$0xff] }
 0x5ed   :  { %6338 = vmatprep.mubr.f32.mxu0 %v12175_v13  ;;  %10496 = vmatpush1.bf16.msra.mxu1 %v10495_v5  ;;  %v5475_v5 = vld [vmem:[#allocation16 + $0xa90] sm:$0xff]  ;;  %v10273_v21 = vpack.c.bf16 %v5546_v43, %v5538_v6 }
 0x5ee   :  { %6622 = vmatprep.mubr.f32.mxu1 %v12175_v13  ;;  %10242 = vmatprep.subr.bf16.mxu0 %v10241_v0  ;;  %v5498_v0 = vld [vmem:[#allocation16 + $0xb48] sm:$0xff] }
 0x5ef   :  { %10498 = vmatprep.subr.bf16.mxu1 %v10497_v38  ;;  %v10515_v38 = vpack.c.bf16 %v5483_v41, %v5475_v5  ;;  %v10261_v36 = vpack.c.bf16 %v5498_v0, %v5490_v32  ;;  %v5562_v5 = vld [vmem:[#allocation16 + $0xd48] sm:$0xff]  ;;  %v5564_v41 = vld [vmem:[#allocation16 + $0xd58] sm:$0xff] }
 0x5f0   :  { %10244 = vmatpush1.bf16.msra.mxu0 %v10243_v34  ;;  %v5497_v34 = vld [vmem:[#allocation16 + $0xb40] sm:$0xff] }
 0x5f1   :  { %10500 = vmatpush1.bf16.msra.mxu1 %v10499_v42  ;;  %10246 = vmatprep.subr.bf16.mxu0 %v10245_v24  ;;  %v5491_v42 = vld [vmem:[#allocation16 + $0xb10] sm:$0xff]  ;;  %v10517_v24 = vpack.c.bf16 %v5500_v10, %v5492_v17  ;;  %v10263_v30 = vpack.c.bf16 %v5497_v34, %v5489_v49  ;;  %v10277_v17 = vpack.c.bf16 %v5562_v5, %v5554_v25  ;;  %v5553_v10 = vld [vmem:[#allocation16 + $0xd00] sm:$0xff]  ;;  %v5570_v34 = vld [vmem:[#allocation16 + $0xd88] sm:$0xff] }
 0x5f2   :  { %10502 = vmatprep.subr.bf16.mxu1 %v10501_v63  ;;  %v5508_v63 = vld [vmem:[#allocation16 + $0xb98] sm:$0xff]  ;;  %v10519_v54 = vpack.c.bf16 %v5499_v45, %v5491_v42  ;;  %v5563_v49 = vld [vmem:[#allocation16 + $0xd50] sm:$0xff]  ;;  %v5578_v42 = vld [vmem:[#allocation16 + $0xdc8] sm:$0xff] }
 0x5f3   :  { %v5580_v45 = vld [vmem:[#allocation16 + $0xdd8] sm:$0xff] }
 0x5f4   :  { %10248 = vmatpush1.bf16.msra.mxu0 %v10247_v57  ;;  %v5513_v57 = vld [vmem:[#allocation16 + $0xbc0] sm:$0xff] }
 0x5f5   :  { %10504 = vmatpush1.bf16.msra.mxu1 %v10503_v58  ;;  %10250 = vmatprep.subr.bf16.mxu0 %v10249_v46  ;;  %v5507_v58 = vld [vmem:[#allocation16 + $0xb90] sm:$0xff]  ;;  %v10521_v46 = vpack.c.bf16 %v5516_v53, %v5508_v63  ;;  %v10267_v35 = vpack.c.bf16 %v5513_v57, %v5505_v55  ;;  %v10281_v63 = vpack.c.bf16 %v5578_v42, %v5570_v34  ;;  %v5569_v53 = vld [vmem:[#allocation16 + $0xd80] sm:$0xff]  ;;  %v5586_v57 = vld [vmem:[#allocation16 + $0xe08] sm:$0xff] }
 0x5f6   :  { %10506 = vmatprep.subr.bf16.mxu1 %v10505_v44  ;;  %v5524_v44 = vld [vmem:[#allocation16 + $0xc18] sm:$0xff]  ;;  %v10523_v3 = vpack.c.bf16 %v5515_v59, %v5507_v58  ;;  %v5579_v55 = vld [vmem:[#allocation16 + $0xdd0] sm:$0xff]  ;;  %v5594_v58 = vld [vmem:[#allocation16 + $0xe48] sm:$0xff] }
 0x5f7   :  { %v5596_v59 = vld [vmem:[#allocation16 + $0xe58] sm:$0xff] }
 0x5f8   :  { %10252 = vmatpush1.bf16.msra.mxu0 %v10251_v11  ;;  %v5529_v11 = vld [vmem:[#allocation16 + $0xc40] sm:$0xff]  ;;  %v12181_v42 = vld [vmem:[#allocation14] sm:$0xff] }
 0x5f9   :  { %10508 = vmatpush1.bf16.msra.mxu1 %v10507_v14  ;;  %10254 = vmatprep.subr.bf16.mxu0 %v10253_v15  ;;  %v5523_v14 = vld [vmem:[#allocation16 + $0xc10] sm:$0xff]  ;;  %v10525_v15 = vpack.c.bf16 %v5532_v2, %v5524_v44  ;;  %v10271_v20 = vpack.c.bf16 %v5529_v11, %v5521_v28  ;;  %v10285_v44 = vpack.c.bf16 %v5594_v58, %v5586_v57  ;;  %v5585_v2 = vld [vmem:[#allocation16 + $0xe00] sm:$0xff]  ;;  %v5602_v11 = vld [vmem:[#allocation16 + $0xe88] sm:$0xff] }
 0x5fa   :  { %10510 = vmatprep.subr.bf16.mxu1 %v10509_v18  ;;  %v5540_v18 = vld [vmem:[#allocation16 + $0xc98] sm:$0xff]  ;;  %v10527_v47 = vpack.c.bf16 %v5531_v16, %v5523_v14  ;;  %v5595_v28 = vld [vmem:[#allocation16 + $0xe50] sm:$0xff]  ;;  %v5610_v14 = vld [vmem:[#allocation16 + $0xec8] sm:$0xff] }
 0x5fb   :  { %v5612_v16 = vld [vmem:[#allocation16 + $0xed8] sm:$0xff] }
 0x5fc   :  { %10256 = vmatpush1.bf16.msra.mxu0 %v10255_v22  ;;  %v5545_v22 = vld [vmem:[#allocation16 + $0xcc0] sm:$0xff]  ;;  %v5652_v57 = vld [vmem:[#allocation16 + $0x1018] sm:$0xff] }
 0x5fd   :  { %10512 = vmatpush1.bf16.msra.mxu1 %v10511_v7  ;;  %10258 = vmatprep.subr.bf16.mxu0 %v10257_v39  ;;  %v5539_v7 = vld [vmem:[#allocation16 + $0xc90] sm:$0xff]  ;;  %v10529_v39 = vpack.c.bf16 %v5548_v19, %v5540_v18  ;;  %v10275_v32 = vpack.c.bf16 %v5545_v22, %v5537_v51  ;;  %v10289_v18 = vpack.c.bf16 %v5610_v14, %v5602_v11  ;;  %v5601_v19 = vld [vmem:[#allocation16 + $0xe80] sm:$0xff]  ;;  %v5618_v22 = vld [vmem:[#allocation16 + $0xf08] sm:$0xff] }
 0x5fe   :  { %10514 = vmatprep.subr.bf16.mxu1 %v10513_v31  ;;  %v5556_v31 = vld [vmem:[#allocation16 + $0xd18] sm:$0xff]  ;;  %v10531_v0 = vpack.c.bf16 %v5547_v1, %v5539_v7  ;;  %v5611_v51 = vld [vmem:[#allocation16 + $0xed0] sm:$0xff]  ;;  %v5626_v7 = vld [vmem:[#allocation16 + $0xf48] sm:$0xff] }
 0x5ff   :  { %v5628_v1 = vld [vmem:[#allocation16 + $0xf58] sm:$0xff]  ;;  %v5674_v11 = vld [vmem:[#allocation16 + $0x10c8] sm:$0xff] }
 0x600   :  { %10260 = vmatpush1.bf16.msra.mxu0 %v10259_v37  ;;  %v5561_v37 = vld [vmem:[#allocation16 + $0xd40] sm:$0xff]  ;;  %v5660_v58 = vld [vmem:[#allocation16 + $0x1058] sm:$0xff] }
 0x601   :  { %10516 = vmatpush1.bf16.msra.mxu1 %v10515_v38  ;;  %10262 = vmatprep.subr.bf16.mxu0 %v10261_v36  ;;  %v5555_v38 = vld [vmem:[#allocation16 + $0xd10] sm:$0xff]  ;;  %v10533_v36 = vpack.c.bf16 %v5564_v41, %v5556_v31  ;;  %v10279_v33 = vpack.c.bf16 %v5561_v37, %v5553_v10  ;;  %v10293_v31 = vpack.c.bf16 %v5626_v7, %v5618_v22  ;;  %v5617_v41 = vld [vmem:[#allocation16 + $0xf00] sm:$0xff]  ;;  %v5634_v37 = vld [vmem:[#allocation16 + $0xf88] sm:$0xff] }
 0x602   :  { %10518 = vmatprep.subr.bf16.mxu1 %v10517_v24  ;;  %v5572_v24 = vld [vmem:[#allocation16 + $0xd98] sm:$0xff]  ;;  %v10535_v23 = vpack.c.bf16 %v5563_v49, %v5555_v38  ;;  %v5627_v10 = vld [vmem:[#allocation16 + $0xf50] sm:$0xff]  ;;  %v5642_v38 = vld [vmem:[#allocation16 + $0xfc8] sm:$0xff] }
 0x603   :  { %v5644_v49 = vld [vmem:[#allocation16 + $0xfd8] sm:$0xff]  ;;  %v5690_v22 = vld [vmem:[#allocation16 + $0x1148] sm:$0xff] }
 0x604   :  { %10264 = vmatpush1.bf16.msra.mxu0 %v10263_v30  ;;  %v5577_v30 = vld [vmem:[#allocation16 + $0xdc0] sm:$0xff]  ;;  %v5668_v14 = vld [vmem:[#allocation16 + $0x1098] sm:$0xff] }
 0x605   :  { %10520 = vmatpush1.bf16.msra.mxu1 %v10519_v54  ;;  %10266 = vmatprep.subr.bf16.mxu0 %v10265_v40  ;;  %v5571_v54 = vld [vmem:[#allocation16 + $0xd90] sm:$0xff]  ;;  %v10537_v40 = vpack.c.bf16 %v5580_v45, %v5572_v24  ;;  %v10283_v61 = vpack.c.bf16 %v5577_v30, %v5569_v53  ;;  %v3964_v24 = vrot.slane %v12181_v42, %v11997_v60  ;;  %v5684_v7 = vld [vmem:[#allocation16 + $0x1118] sm:$0xff] }
 0x606   :  { %10522 = vmatprep.subr.bf16.mxu1 %v10521_v46  ;;  %v5588_v46 = vld [vmem:[#allocation16 + $0xe18] sm:$0xff]  ;;  %v10539_v62 = vpack.c.bf16 %v5579_v55, %v5571_v54  ;;  %v5635_v53 = vld [vmem:[#allocation16 + $0xf90] sm:$0xff]  ;;  %v5658_v55 = vld [vmem:[#allocation16 + $0x1048] sm:$0xff] }
 0x607   :  { %v5643_v54 = vld [vmem:[#allocation16 + $0xfd0] sm:$0xff] }
 0x608   :  { %10268 = vmatpush1.bf16.msra.mxu0 %v10267_v35  ;;  %v5593_v35 = vld [vmem:[#allocation16 + $0xe40] sm:$0xff] }
 0x609   :  { %10524 = vmatpush1.bf16.msra.mxu1 %v10523_v3  ;;  %10270 = vmatprep.subr.bf16.mxu0 %v10269_v8  ;;  %v5587_v3 = vld [vmem:[#allocation16 + $0xe10] sm:$0xff]  ;;  %v10541_v8 = vpack.c.bf16 %v5596_v59, %v5588_v46  ;;  %v10287_v6 = vpack.c.bf16 %v5593_v35, %v5585_v2  ;;  %v11335_v59 = vadd.f32 %v12150_v29, %v3964_v24  ;;  %v5657_v2 = vld [vmem:[#allocation16 + $0x1040] sm:$0xff] }
 0x60a   :  { %10526 = vmatprep.subr.bf16.mxu1 %v10525_v15  ;;  %v5604_v15 = vld [vmem:[#allocation16 + $0xe98] sm:$0xff]  ;;  %v10543_v43 = vpack.c.bf16 %v5595_v28, %v5587_v3  ;;  %v5651_v35 = vld [vmem:[#allocation16 + $0x1010] sm:$0xff]  ;;  %v10557_v3 = vpack.c.bf16 %v5660_v58, %v5652_v57  ;;  %v5666_v28 = vld [vmem:[#allocation16 + $0x1088] sm:$0xff] }
 0x60c   :  { %10272 = vmatpush1.bf16.msra.mxu0 %v10271_v20  ;;  %v5609_v20 = vld [vmem:[#allocation16 + $0xec0] sm:$0xff] }
 0x60d   :  { %10528 = vmatpush1.bf16.msra.mxu1 %v10527_v47  ;;  %10274 = vmatprep.subr.bf16.mxu0 %v10273_v21  ;;  %v5603_v47 = vld [vmem:[#allocation16 + $0xe90] sm:$0xff]  ;;  %v10545_v21 = vpack.c.bf16 %v5612_v16, %v5604_v15  ;;  %v10291_v25 = vpack.c.bf16 %v5609_v20, %v5601_v19  ;;  %v5676_v15 = vld [vmem:[#allocation16 + $0x10d8] sm:$0xff]  ;;  %v5673_v19 = vld [vmem:[#allocation16 + $0x10c0] sm:$0xff] }
 0x60e   :  { %10530 = vmatprep.subr.bf16.mxu1 %v10529_v39  ;;  %v5620_v39 = vld [vmem:[#allocation16 + $0xf18] sm:$0xff]  ;;  %v10547_v5 = vpack.c.bf16 %v5611_v51, %v5603_v47  ;;  %v5667_v20 = vld [vmem:[#allocation16 + $0x1090] sm:$0xff]  ;;  %v10561_v47 = vpack.c.bf16 %v5676_v15, %v5668_v14  ;;  %v5682_v51 = vld [vmem:[#allocation16 + $0x1108] sm:$0xff] }
 0x610   :  { %10276 = vmatpush1.bf16.msra.mxu0 %v10275_v32  ;;  %v5625_v32 = vld [vmem:[#allocation16 + $0xf40] sm:$0xff] }
 0x611   :  { %10532 = vmatpush1.bf16.msra.mxu1 %v10531_v0  ;;  %10278 = vmatprep.subr.bf16.mxu0 %v10277_v17  ;;  %v5619_v0 = vld [vmem:[#allocation16 + $0xf10] sm:$0xff]  ;;  %v10549_v17 = vpack.c.bf16 %v5628_v1, %v5620_v39  ;;  %v10295_v34 = vpack.c.bf16 %v5625_v32, %v5617_v41  ;;  %v5692_v39 = vld [vmem:[#allocation16 + $0x1158] sm:$0xff]  ;;  %v5689_v41 = vld [vmem:[#allocation16 + $0x1140] sm:$0xff] }
 0x612   :  { %10534 = vmatprep.subr.bf16.mxu1 %v10533_v36  ;;  %v5636_v36 = vld [vmem:[#allocation16 + $0xf98] sm:$0xff]  ;;  %v10551_v45 = vpack.c.bf16 %v5627_v10, %v5619_v0  ;;  %v5683_v32 = vld [vmem:[#allocation16 + $0x1110] sm:$0xff]  ;;  %v10565_v0 = vpack.c.bf16 %v5692_v39, %v5684_v7  ;;  %v5698_v10 = vld [vmem:[#allocation16 + $0x1188] sm:$0xff] }
 0x613   :  { %v10553_v30 = vpack.c.bf16 %v5644_v49, %v5636_v36  ;;  %v5708_v36 = vld [vmem:[#allocation16 + $0x11d8] sm:$0xff] }
 0x614   :  { %10280 = vmatpush1.bf16.msra.mxu0 %v10279_v33  ;;  %v10297_v33 = vpack.c.bf16 %v5642_v38, %v5634_v37  ;;  %v5706_v37 = vld [vmem:[#allocation16 + $0x11c8] sm:$0xff]  ;;  %v5700_v38 = vld [vmem:[#allocation16 + $0x1198] sm:$0xff] }
 0x615   :  { %10536 = vmatpush1.bf16.msra.mxu1 %v10535_v23  ;;  %10282 = vmatprep.subr.bf16.mxu0 %v10281_v63  ;;  %v5633_v23 = vld [vmem:[#allocation16 + $0xf80] sm:$0xff]  ;;  %v10313_v24 = vpack.c.bf16 %v5706_v37, %v5698_v10  ;;  %v5772_v10 = vld [vmem:[#allocation16 + $0x13d8] sm:$0xff] }
 0x616   :  { %10538 = vmatprep.subr.bf16.mxu1 %v10537_v40  ;;  %v5641_v63 = vld [vmem:[#allocation16 + $0xfc0] sm:$0xff]  ;;  %v5650_v40 = vld [vmem:[#allocation16 + $0x1008] sm:$0xff] }
 0x617   :  { %v10299_v46 = vpack.c.bf16 %v5641_v63, %v5633_v23  ;;  %v5699_v23 = vld [vmem:[#allocation16 + $0x1190] sm:$0xff]  ;;  %v10569_v63 = vpack.c.bf16 %v5708_v36, %v5700_v38 }
 0x618   :  { %10284 = vmatpush1.bf16.msra.mxu0 %v10283_v61  ;;  %v10555_v61 = vpack.c.bf16 %v5643_v54, %v5635_v53  ;;  %v5707_v53 = vld [vmem:[#allocation16 + $0x11d0] sm:$0xff]  ;;  %v5722_v54 = vld [vmem:[#allocation16 + $0x1248] sm:$0xff] }
 0x619   :  { %10540 = vmatpush1.bf16.msra.mxu1 %v10539_v62  ;;  %10286 = vmatprep.subr.bf16.mxu0 %v10285_v44  ;;  %v10301_v62 = vpack.c.bf16 %v5658_v55, %v5650_v40  ;;  %v5649_v44 = vld [vmem:[#allocation16 + $0x1000] sm:$0xff]  ;;  %v5716_v40 = vld [vmem:[#allocation16 + $0x1218] sm:$0xff]  ;;  %v10571_v58 = vpack.c.bf16 %v5707_v53, %v5699_v23  ;;  %v5778_v23 = vld [vmem:[#allocation16 + $0x1408] sm:$0xff] }
 0x61a   :  { %10542 = vmatprep.subr.bf16.mxu1 %v10541_v8  ;;  %v5659_v8 = vld [vmem:[#allocation16 + $0x1050] sm:$0xff]  ;;  %v10303_v16 = vpack.c.bf16 %v5657_v2, %v5649_v44  ;;  %v5724_v55 = vld [vmem:[#allocation16 + $0x1258] sm:$0xff] }
 0x61b   :  { %v10559_v29 = vpack.c.bf16 %v5659_v8, %v5651_v35  ;;  %v10573_v44 = vpack.c.bf16 %v5724_v55, %v5716_v40  ;;  %v5723_v2 = vld [vmem:[#allocation16 + $0x1250] sm:$0xff]  ;;  %v5730_v35 = vld [vmem:[#allocation16 + $0x1288] sm:$0xff]  ;;  %v5732_v8 = vld [vmem:[#allocation16 + $0x1298] sm:$0xff] }
 0x61c   :  { %10288 = vmatpush1.bf16.msra.mxu0 %v10287_v6  ;;  %v12186_v6 = vmax.f32 %v11335_v59, 0.0  ;;  %v5713_v59 = vld [vmem:[#allocation16 + $0x1200] sm:$0xff]  ;;  %v5780_v53 = vld [vmem:[#allocation16 + $0x1418] sm:$0xff] }
 0x61d   :  { %10544 = vmatpush1.bf16.msra.mxu1 %v10543_v43  ;;  %10290 = vmatprep.subr.bf16.mxu0 %v10289_v18  ;;  %v10305_v43 = vpack.c.bf16 %v5674_v11, %v5666_v28  ;;  %v5665_v18 = vld [vmem:[#allocation16 + $0x1080] sm:$0xff]  ;;  %v5740_v28 = vld [vmem:[#allocation16 + $0x12d8] sm:$0xff] }
 0x61e   :  { %10546 = vmatprep.subr.bf16.mxu1 %v10545_v21  ;;  %v5675_v21 = vld [vmem:[#allocation16 + $0x10d0] sm:$0xff]  ;;  %v10307_v1 = vpack.c.bf16 %v5673_v19, %v5665_v18  ;;  %v10577_v18 = vpack.c.bf16 %v5740_v28, %v5732_v8 }
 0x61f   :  { %v5739_v19 = vld [vmem:[#allocation16 + $0x12d0] sm:$0xff] }
 0x620   :  { %10292 = vmatpush1.bf16.msra.mxu0 %v10291_v25  ;;  %v10563_v25 = vpack.c.bf16 %v5675_v21, %v5667_v20  ;;  %v5746_v20 = vld [vmem:[#allocation16 + $0x1308] sm:$0xff]  ;;  %v5748_v21 = vld [vmem:[#allocation16 + $0x1318] sm:$0xff] }
 0x621   :  { %10548 = vmatpush1.bf16.msra.mxu1 %v10547_v5  ;;  %10294 = vmatprep.subr.bf16.mxu0 %v10293_v31  ;;  %v10309_v5 = vpack.c.bf16 %v5690_v22, %v5682_v51  ;;  %v5681_v31 = vld [vmem:[#allocation16 + $0x1100] sm:$0xff]  ;;  %v5756_v51 = vld [vmem:[#allocation16 + $0x1358] sm:$0xff] }
 0x622   :  { %10550 = vmatprep.subr.bf16.mxu1 %v10549_v17  ;;  %v5691_v17 = vld [vmem:[#allocation16 + $0x1150] sm:$0xff]  ;;  %v10311_v49 = vpack.c.bf16 %v5689_v41, %v5681_v31  ;;  %v10581_v31 = vpack.c.bf16 %v5756_v51, %v5748_v21 }
 0x623   :  { %v5755_v41 = vld [vmem:[#allocation16 + $0x1350] sm:$0xff] }
 0x624   :  { %10296 = vmatpush1.bf16.msra.mxu0 %v10295_v34  ;;  %v10567_v34 = vpack.c.bf16 %v5691_v17, %v5683_v32  ;;  %v5762_v32 = vld [vmem:[#allocation16 + $0x1388] sm:$0xff]  ;;  %v5764_v17 = vld [vmem:[#allocation16 + $0x1398] sm:$0xff] }
 0x625   :  { %10552 = vmatpush1.bf16.msra.mxu1 %v10551_v45  ;;  %10298 = vmatprep.subr.bf16.mxu0 %v10297_v33  ;;  %v5697_v45 = vld [vmem:[#allocation16 + $0x1180] sm:$0xff] }
 0x626   :  { %10554 = vmatprep.subr.bf16.mxu1 %v10553_v30  ;;  %v5705_v33 = vld [vmem:[#allocation16 + $0x11c0] sm:$0xff]  ;;  %v5714_v30 = vld [vmem:[#allocation16 + $0x1208] sm:$0xff] }
 0x627   :  { %v10315_v57 = vpack.c.bf16 %v5705_v33, %v5697_v45  ;;  %v10585_v45 = vpack.c.bf16 %v5772_v10, %v5764_v17  ;;  %v5771_v33 = vld [vmem:[#allocation16 + $0x13d0] sm:$0xff] }
 0x628   :  { %10300 = vmatpush1.bf16.msra.mxu0 %v10299_v46  ;;  %v10317_v46 = vpack.c.bf16 %v5722_v54, %v5714_v30  ;;  %v5788_v30 = vld [vmem:[#allocation16 + $0x1458] sm:$0xff] }
 0x629   :  { %10556 = vmatpush1.bf16.msra.mxu1 %v10555_v61  ;;  %10302 = vmatprep.subr.bf16.mxu0 %v10301_v62  ;;  %v5721_v61 = vld [vmem:[#allocation16 + $0x1240] sm:$0xff]  ;;  %v5715_v62 = vld [vmem:[#allocation16 + $0x1210] sm:$0xff] }
 0x62a   :  { %10558 = vmatprep.subr.bf16.mxu1 %v10557_v3  ;;  %v5738_v3 = vld [vmem:[#allocation16 + $0x12c8] sm:$0xff]  ;;  %v10319_v11 = vpack.c.bf16 %v5721_v61, %v5713_v59  ;;  %v10575_v14 = vpack.c.bf16 %v5723_v2, %v5715_v62  ;;  %v10589_v59 = vpack.c.bf16 %v5788_v30, %v5780_v53  ;;  %v5787_v61 = vld [vmem:[#allocation16 + $0x1450] sm:$0xff]  ;;  %v5796_v2 = vld [vmem:[#allocation16 + $0x1498] sm:$0xff] }
 0x62b   :  { %6339 = vmatmul.mubr.f32.vlgmr.msra.gmra.mrb[12].mxu0 %v12186_v6  ;;  %v10321_v15 = vpack.c.bf16 %v5738_v3, %v5730_v35  ;;  %v5794_v62 = vld [vmem:[#allocation16 + $0x1488] sm:$0xff]  ;;  %v5804_v35 = vld [vmem:[#allocation16 + $0x14d8] sm:$0xff] }
 0x62c   :  { %6623 = vmatmul.mubr.f32.vlgmr.msra.gmra.mrb[12].mxu1 %v12186_v6  ;;  %10304 = vmatpush1.bf16.msra.mxu0 %v10303_v16  ;;  %v5729_v16 = vld [vmem:[#allocation16 + $0x1280] sm:$0xff] }
 0x62d   :  { %10560 = vmatpush1.bf16.msra.mxu1 %v10559_v29  ;;  %10306 = vmatprep.subr.bf16.mxu0 %v10305_v43  ;;  %v5737_v29 = vld [vmem:[#allocation16 + $0x12c0] sm:$0xff]  ;;  %v5731_v43 = vld [vmem:[#allocation16 + $0x1290] sm:$0xff] }
 0x62e   :  { %10562 = vmatprep.subr.bf16.mxu1 %v10561_v47  ;;  %v5754_v47 = vld [vmem:[#allocation16 + $0x1348] sm:$0xff]  ;;  %v10323_v22 = vpack.c.bf16 %v5737_v29, %v5729_v16  ;;  %v10579_v7 = vpack.c.bf16 %v5739_v19, %v5731_v43  ;;  %v10593_v16 = vpack.c.bf16 %v5804_v35, %v5796_v2  ;;  %v5803_v29 = vld [vmem:[#allocation16 + $0x14d0] sm:$0xff]  ;;  %v5812_v19 = vld [vmem:[#allocation16 + $0x1518] sm:$0xff] }
 0x62f   :  { %v10325_v39 = vpack.c.bf16 %v5754_v47, %v5746_v20  ;;  %v5810_v43 = vld [vmem:[#allocation16 + $0x1508] sm:$0xff]  ;;  %v5820_v20 = vld [vmem:[#allocation16 + $0x1558] sm:$0xff] }
 0x630   :  { %10308 = vmatpush1.bf16.msra.mxu0 %v10307_v1  ;;  %v5745_v1 = vld [vmem:[#allocation16 + $0x1300] sm:$0xff] }
 0x631   :  { %10564 = vmatpush1.bf16.msra.mxu1 %v10563_v25  ;;  %10310 = vmatprep.subr.bf16.mxu0 %v10309_v5  ;;  %v5753_v25 = vld [vmem:[#allocation16 + $0x1340] sm:$0xff]  ;;  %v5747_v5 = vld [vmem:[#allocation16 + $0x1310] sm:$0xff] }
 0x632   :  { %10566 = vmatprep.subr.bf16.mxu1 %v10565_v0  ;;  %v5770_v0 = vld [vmem:[#allocation16 + $0x13c8] sm:$0xff]  ;;  %v10327_v37 = vpack.c.bf16 %v5753_v25, %v5745_v1  ;;  %v10583_v38 = vpack.c.bf16 %v5755_v41, %v5747_v5  ;;  %v10597_v1 = vpack.c.bf16 %v5820_v20, %v5812_v19  ;;  %v5819_v25 = vld [vmem:[#allocation16 + $0x1550] sm:$0xff]  ;;  %v5828_v41 = vld [vmem:[#allocation16 + $0x1598] sm:$0xff] }
 0x633   :  { %v10329_v36 = vpack.c.bf16 %v5770_v0, %v5762_v32  ;;  %v5826_v5 = vld [vmem:[#allocation16 + $0x1588] sm:$0xff]  ;;  %v5836_v32 = vld [vmem:[#allocation16 + $0x15d8] sm:$0xff] }
 0x634   :  { %10312 = vmatpush1.bf16.msra.mxu0 %v10311_v49  ;;  %v5761_v49 = vld [vmem:[#allocation16 + $0x1380] sm:$0xff] }
 0x635   :  { %10568 = vmatpush1.bf16.msra.mxu1 %v10567_v34  ;;  %10314 = vmatprep.subr.bf16.mxu0 %v10313_v24  ;;  %v5769_v34 = vld [vmem:[#allocation16 + $0x13c0] sm:$0xff]  ;;  %v5763_v24 = vld [vmem:[#allocation16 + $0x1390] sm:$0xff] }
 0x636   :  { %10570 = vmatprep.subr.bf16.mxu1 %v10569_v63  ;;  %v5786_v63 = vld [vmem:[#allocation16 + $0x1448] sm:$0xff]  ;;  %v10331_v54 = vpack.c.bf16 %v5769_v34, %v5761_v49  ;;  %v10587_v40 = vpack.c.bf16 %v5771_v33, %v5763_v24  ;;  %v10601_v49 = vpack.c.bf16 %v5836_v32, %v5828_v41  ;;  %v5835_v34 = vld [vmem:[#allocation16 + $0x15d0] sm:$0xff]  ;;  %v5844_v33 = vld [vmem:[#allocation16 + $0x1618] sm:$0xff] }
 0x637   :  { %v10333_v55 = vpack.c.bf16 %v5786_v63, %v5778_v23  ;;  %v5842_v24 = vld [vmem:[#allocation16 + $0x1608] sm:$0xff]  ;;  %v5852_v23 = vld [vmem:[#allocation16 + $0x1658] sm:$0xff] }
 0x638   :  { %10316 = vmatpush1.bf16.msra.mxu0 %v10315_v57  ;;  %v5777_v57 = vld [vmem:[#allocation16 + $0x1400] sm:$0xff] }
 0x639   :  { %10572 = vmatpush1.bf16.msra.mxu1 %v10571_v58  ;;  %10318 = vmatprep.subr.bf16.mxu0 %v10317_v46  ;;  %v5785_v58 = vld [vmem:[#allocation16 + $0x1440] sm:$0xff]  ;;  %v5779_v46 = vld [vmem:[#allocation16 + $0x1410] sm:$0xff] }
 0x63a   :  { %10574 = vmatprep.subr.bf16.mxu1 %v10573_v44  ;;  %v5802_v44 = vld [vmem:[#allocation16 + $0x14c8] sm:$0xff]  ;;  %v10335_v3 = vpack.c.bf16 %v5785_v58, %v5777_v57  ;;  %v10591_v8 = vpack.c.bf16 %v5787_v61, %v5779_v46  ;;  %v10605_v57 = vpack.c.bf16 %v5852_v23, %v5844_v33  ;;  %v5851_v58 = vld [vmem:[#allocation16 + $0x1650] sm:$0xff]  ;;  %v5860_v61 = vld [vmem:[#allocation16 + $0x1698] sm:$0xff] }
 0x63b   :  { %v10337_v28 = vpack.c.bf16 %v5802_v44, %v5794_v62  ;;  %v5858_v46 = vld [vmem:[#allocation16 + $0x1688] sm:$0xff]  ;;  %v5868_v62 = vld [vmem:[#allocation16 + $0x16d8] sm:$0xff] }
 0x63c   :  { %10320 = vmatpush1.bf16.msra.mxu0 %v10319_v11  ;;  %v5793_v11 = vld [vmem:[#allocation16 + $0x1480] sm:$0xff] }
 0x63d   :  { %10576 = vmatpush1.bf16.msra.mxu1 %v10575_v14  ;;  %10322 = vmatprep.subr.bf16.mxu0 %v10321_v15  ;;  %v5801_v14 = vld [vmem:[#allocation16 + $0x14c0] sm:$0xff]  ;;  %v5795_v15 = vld [vmem:[#allocation16 + $0x1490] sm:$0xff] }
 0x63e   :  { %10578 = vmatprep.subr.bf16.mxu1 %v10577_v18  ;;  %v5818_v18 = vld [vmem:[#allocation16 + $0x1548] sm:$0xff]  ;;  %v10339_v47 = vpack.c.bf16 %v5801_v14, %v5793_v11  ;;  %v10595_v21 = vpack.c.bf16 %v5803_v29, %v5795_v15  ;;  %v10609_v11 = vpack.c.bf16 %v5868_v62, %v5860_v61  ;;  %v5867_v14 = vld [vmem:[#allocation16 + $0x16d0] sm:$0xff]  ;;  %v5876_v29 = vld [vmem:[#allocation16 + $0x1718] sm:$0xff] }
 0x63f   :  { %v10341_v51 = vpack.c.bf16 %v5818_v18, %v5810_v43  ;;  %v5874_v15 = vld [vmem:[#allocation16 + $0x1708] sm:$0xff]  ;;  %v5884_v43 = vld [vmem:[#allocation16 + $0x1758] sm:$0xff]  ;;  %v5907_v61 = vld [vmem:[#allocation16 + $0x1810] sm:$0xff] }
 0x640   :  { %10324 = vmatpush1.bf16.msra.mxu0 %v10323_v22  ;;  %v5809_v22 = vld [vmem:[#allocation16 + $0x1500] sm:$0xff]  ;;  %v5915_v62 = vld [vmem:[#allocation16 + $0x1850] sm:$0xff] }
 0x641   :  { %10580 = vmatpush1.bf16.msra.mxu1 %v10579_v7  ;;  %10326 = vmatprep.subr.bf16.mxu0 %v10325_v39  ;;  %v5817_v7 = vld [vmem:[#allocation16 + $0x1540] sm:$0xff]  ;;  %v5811_v39 = vld [vmem:[#allocation16 + $0x1510] sm:$0xff] }
 0x642   :  { %10582 = vmatprep.subr.bf16.mxu1 %v10581_v31  ;;  %v5834_v31 = vld [vmem:[#allocation16 + $0x15c8] sm:$0xff]  ;;  %v10343_v0 = vpack.c.bf16 %v5817_v7, %v5809_v22  ;;  %v10599_v17 = vpack.c.bf16 %v5819_v25, %v5811_v39  ;;  %v10613_v22 = vpack.c.bf16 %v5884_v43, %v5876_v29  ;;  %v5883_v7 = vld [vmem:[#allocation16 + $0x1750] sm:$0xff]  ;;  %v5892_v25 = vld [vmem:[#allocation16 + $0x1798] sm:$0xff] }
 0x643   :  { %v10345_v10 = vpack.c.bf16 %v5834_v31, %v5826_v5  ;;  %v5890_v39 = vld [vmem:[#allocation16 + $0x1788] sm:$0xff]  ;;  %v5900_v5 = vld [vmem:[#allocation16 + $0x17d8] sm:$0xff]  ;;  %v5929_v29 = vld [vmem:[#allocation16 + $0x18c0] sm:$0xff] }
 0x644   :  { %10328 = vmatpush1.bf16.msra.mxu0 %v10327_v37  ;;  %v5825_v37 = vld [vmem:[#allocation16 + $0x1580] sm:$0xff] }
 0x645   :  { %10584 = vmatpush1.bf16.msra.mxu1 %v10583_v38  ;;  %10330 = vmatprep.subr.bf16.mxu0 %v10329_v36  ;;  %v5833_v38 = vld [vmem:[#allocation16 + $0x15c0] sm:$0xff]  ;;  %v5827_v36 = vld [vmem:[#allocation16 + $0x1590] sm:$0xff] }
 0x646   :  { %10586 = vmatprep.subr.bf16.mxu1 %v10585_v45  ;;  %v5850_v45 = vld [vmem:[#allocation16 + $0x1648] sm:$0xff]  ;;  %v10347_v63 = vpack.c.bf16 %v5833_v38, %v5825_v37  ;;  %v10603_v53 = vpack.c.bf16 %v5835_v34, %v5827_v36  ;;  %v10617_v37 = vpack.c.bf16 %v5900_v5, %v5892_v25  ;;  %v5899_v38 = vld [vmem:[#allocation16 + $0x17d0] sm:$0xff]  ;;  %v5908_v34 = vld [vmem:[#allocation16 + $0x1818] sm:$0xff] }
 0x647   :  { %v10349_v30 = vpack.c.bf16 %v5850_v45, %v5842_v24  ;;  %v5906_v36 = vld [vmem:[#allocation16 + $0x1808] sm:$0xff]  ;;  %v5916_v24 = vld [vmem:[#allocation16 + $0x1858] sm:$0xff]  ;;  %v5937_v5 = vld [vmem:[#allocation16 + $0x1900] sm:$0xff] }
 0x648   :  { %10332 = vmatpush1.bf16.msra.mxu0 %v10331_v54  ;;  %v5841_v54 = vld [vmem:[#allocation16 + $0x1600] sm:$0xff] }
 0x649   :  { %10588 = vmatpush1.bf16.msra.mxu1 %v10587_v40  ;;  %10334 = vmatprep.subr.bf16.mxu0 %v10333_v55  ;;  %v5849_v40 = vld [vmem:[#allocation16 + $0x1640] sm:$0xff]  ;;  %v5843_v55 = vld [vmem:[#allocation16 + $0x1610] sm:$0xff] }
 0x64a   :  { %10590 = vmatprep.subr.bf16.mxu1 %v10589_v59  ;;  %v5866_v59 = vld [vmem:[#allocation16 + $0x16c8] sm:$0xff]  ;;  %v10351_v44 = vpack.c.bf16 %v5849_v40, %v5841_v54  ;;  %v10607_v2 = vpack.c.bf16 %v5851_v58, %v5843_v55  ;;  %v3984_v54 = vrot.slane %v12181_v42, %v12024_v9  ;;  %v5905_v55 = vld [vmem:[#allocation16 + $0x1800] sm:$0xff] }
 0x64b   :  { %v10353_v35 = vpack.c.bf16 %v5866_v59, %v5858_v46  ;;  %v5913_v59 = vld [vmem:[#allocation16 + $0x1840] sm:$0xff] }
 0x64c   :  { %10336 = vmatpush1.bf16.msra.mxu0 %v10335_v3  ;;  %v5857_v3 = vld [vmem:[#allocation16 + $0x1680] sm:$0xff] }
 0x64d   :  { %10592 = vmatpush1.bf16.msra.mxu1 %v10591_v8  ;;  %10338 = vmatprep.subr.bf16.mxu0 %v10337_v28  ;;  %v5865_v8 = vld [vmem:[#allocation16 + $0x16c0] sm:$0xff]  ;;  %v5859_v28 = vld [vmem:[#allocation16 + $0x1690] sm:$0xff] }
 0x64e   :  { %10594 = vmatprep.subr.bf16.mxu1 %v10593_v16  ;;  %v5882_v16 = vld [vmem:[#allocation16 + $0x1748] sm:$0xff]  ;;  %v10355_v18 = vpack.c.bf16 %v5865_v8, %v5857_v3  ;;  %v10611_v19 = vpack.c.bf16 %v5867_v14, %v5859_v28  ;;  %v5924_v28 = vld [vmem:[#allocation16 + $0x1898] sm:$0xff] }
 0x64f   :  { %v10357_v20 = vpack.c.bf16 %v5882_v16, %v5874_v15  ;;  %v5930_v8 = vld [vmem:[#allocation16 + $0x18c8] sm:$0xff]  ;;  %v10367_v15 = vpack.c.bf16 %v5913_v59, %v5905_v55  ;;  %v5921_v16 = vld [vmem:[#allocation16 + $0x1880] sm:$0xff]  ;;  %v5980_v55 = vld [vmem:[#allocation16 + $0x1a58] sm:$0xff] }
 0x650   :  { %10340 = vmatpush1.bf16.msra.mxu0 %v10339_v47  ;;  %v5873_v47 = vld [vmem:[#allocation16 + $0x1700] sm:$0xff] }
 0x651   :  { %10596 = vmatpush1.bf16.msra.mxu1 %v10595_v21  ;;  %10342 = vmatprep.subr.bf16.mxu0 %v10341_v51  ;;  %v5881_v21 = vld [vmem:[#allocation16 + $0x1740] sm:$0xff]  ;;  %v5875_v51 = vld [vmem:[#allocation16 + $0x1710] sm:$0xff] }
 0x652   :  { %10598 = vmatprep.subr.bf16.mxu1 %v10597_v1  ;;  %v5898_v1 = vld [vmem:[#allocation16 + $0x17c8] sm:$0xff]  ;;  %v10359_v31 = vpack.c.bf16 %v5881_v21, %v5873_v47  ;;  %v10615_v41 = vpack.c.bf16 %v5883_v7, %v5875_v51  ;;  %v5948_v7 = vld [vmem:[#allocation16 + $0x1958] sm:$0xff]  ;;  %v5969_v59 = vld [vmem:[#allocation16 + $0x1a00] sm:$0xff] }
 0x653   :  { %v10361_v32 = vpack.c.bf16 %v5898_v1, %v5890_v39  ;;  %v5946_v51 = vld [vmem:[#allocation16 + $0x1948] sm:$0xff]  ;;  %v10371_v1 = vpack.c.bf16 %v5929_v29, %v5921_v16  ;;  %v5985_v16 = vld [vmem:[#allocation16 + $0x1a80] sm:$0xff] }
 0x654   :  { %10344 = vmatpush1.bf16.msra.mxu0 %v10343_v0  ;;  %v5889_v0 = vld [vmem:[#allocation16 + $0x1780] sm:$0xff] }
 0x655   :  { %10600 = vmatpush1.bf16.msra.mxu1 %v10599_v17  ;;  %10346 = vmatprep.subr.bf16.mxu0 %v10345_v10  ;;  %v5897_v17 = vld [vmem:[#allocation16 + $0x17c0] sm:$0xff]  ;;  %v5891_v10 = vld [vmem:[#allocation16 + $0x1790] sm:$0xff] }
 0x656   :  { %10602 = vmatprep.subr.bf16.mxu1 %v10601_v49  ;;  %v5914_v49 = vld [vmem:[#allocation16 + $0x1848] sm:$0xff]  ;;  %v10363_v45 = vpack.c.bf16 %v5897_v17, %v5889_v0  ;;  %v10619_v33 = vpack.c.bf16 %v5899_v38, %v5891_v10  ;;  %v5939_v0 = vld [vmem:[#allocation16 + $0x1910] sm:$0xff]  ;;  %v5956_v38 = vld [vmem:[#allocation16 + $0x1998] sm:$0xff] }
 0x657   :  { %v10365_v23 = vpack.c.bf16 %v5914_v49, %v5906_v36  ;;  %v5947_v17 = vld [vmem:[#allocation16 + $0x1950] sm:$0xff]  ;;  %v5954_v10 = vld [vmem:[#allocation16 + $0x1988] sm:$0xff]  ;;  %v5964_v36 = vld [vmem:[#allocation16 + $0x19d8] sm:$0xff] }
 0x658   :  { %10348 = vmatpush1.bf16.msra.mxu0 %v10347_v63  ;;  %v10621_v63 = vpack.c.bf16 %v5916_v24, %v5908_v34  ;;  %v10631_v34 = vpack.c.bf16 %v5947_v17, %v5939_v0  ;;  %v5953_v24 = vld [vmem:[#allocation16 + $0x1980] sm:$0xff]  ;;  %v6003_v0 = vld [vmem:[#allocation16 + $0x1b10] sm:$0xff] }
 0x659   :  { %10604 = vmatpush1.bf16.msra.mxu1 %v10603_v53  ;;  %10350 = vmatprep.subr.bf16.mxu0 %v10349_v30  ;;  %v3972_v53 = vrot.slane %v12181_v42, %v12021_v56  ;;  %v3976_v30 = vrot.slane %v12181_v42, %v12000_v12  ;;  %v10623_v42 = vpack.c.bf16 %v5915_v62, %v5907_v61  ;;  %v5977_v61 = vld [vmem:[#allocation16 + $0x1a40] sm:$0xff]  ;;  %v6011_v17 = vld [vmem:[#allocation16 + $0x1b50] sm:$0xff] }
 0x65a   :  { %10606 = vmatprep.subr.bf16.mxu1 %v10605_v57  ;;  %v5993_v29 = vld [vmem:[#allocation16 + $0x1ac0] sm:$0xff] }
 0x65c   :  { %10352 = vmatpush1.bf16.msra.mxu0 %v10351_v44 }
 0x65d   :  { %10608 = vmatpush1.bf16.msra.mxu1 %v10607_v2  ;;  %10354 = vmatprep.subr.bf16.mxu0 %v10353_v35  ;;  %v5922_v35 = vld [vmem:[#allocation16 + $0x1888] sm:$0xff] }
 0x65e   :  { %10610 = vmatprep.subr.bf16.mxu1 %v10609_v11  ;;  %v5932_v11 = vld [vmem:[#allocation16 + $0x18d8] sm:$0xff]  ;;  %v10369_v47 = vpack.c.bf16 %v5930_v8, %v5922_v35  ;;  %v5979_v35 = vld [vmem:[#allocation16 + $0x1a50] sm:$0xff]  ;;  %v5994_v8 = vld [vmem:[#allocation16 + $0x1ac8] sm:$0xff] }
 0x65f   :  { %v10625_v21 = vpack.c.bf16 %v5932_v11, %v5924_v28  ;;  %v5988_v28 = vld [vmem:[#allocation16 + $0x1a98] sm:$0xff] }
 0x660   :  { %10356 = vmatpush1.bf16.msra.mxu0 %v10355_v18  ;;  %v5923_v18 = vld [vmem:[#allocation16 + $0x1890] sm:$0xff]  ;;  %v5996_v11 = vld [vmem:[#allocation16 + $0x1ad8] sm:$0xff] }
 0x661   :  { %10612 = vmatpush1.bf16.msra.mxu1 %v10611_v19  ;;  %10358 = vmatprep.subr.bf16.mxu0 %v10357_v20  ;;  %v5931_v19 = vld [vmem:[#allocation16 + $0x18d0] sm:$0xff]  ;;  %v5938_v20 = vld [vmem:[#allocation16 + $0x1908] sm:$0xff] }
 0x662   :  { %10614 = vmatprep.subr.bf16.mxu1 %v10613_v22  ;;  %v5940_v22 = vld [vmem:[#allocation16 + $0x1918] sm:$0xff]  ;;  %v10627_v25 = vpack.c.bf16 %v5931_v19, %v5923_v18  ;;  %v10641_v19 = vpack.c.bf16 %v5996_v11, %v5988_v28 }
 0x663   :  { %v6052_v28 = vld [vmem:[#allocation16 + $0x1c98] sm:$0xff] }
 0x664   :  { %10360 = vmatpush1.bf16.msra.mxu0 %v10359_v31  ;;  %v5945_v31 = vld [vmem:[#allocation16 + $0x1940] sm:$0xff]  ;;  %v6060_v11 = vld [vmem:[#allocation16 + $0x1cd8] sm:$0xff] }
 0x665   :  { %10616 = vmatpush1.bf16.msra.mxu1 %v10615_v41  ;;  %10362 = vmatprep.subr.bf16.mxu0 %v10361_v32  ;;  %v10373_v41 = vpack.c.bf16 %v5946_v51, %v5938_v20  ;;  %v10629_v32 = vpack.c.bf16 %v5948_v7, %v5940_v22  ;;  %v10375_v49 = vpack.c.bf16 %v5945_v31, %v5937_v5  ;;  %v5987_v20 = vld [vmem:[#allocation16 + $0x1a90] sm:$0xff]  ;;  %v6010_v51 = vld [vmem:[#allocation16 + $0x1b48] sm:$0xff]  ;;  %v6004_v22 = vld [vmem:[#allocation16 + $0x1b18] sm:$0xff] }
 0x666   :  { %10618 = vmatprep.subr.bf16.mxu1 %v10617_v37  ;;  %v5962_v37 = vld [vmem:[#allocation16 + $0x19c8] sm:$0xff]  ;;  %v6012_v7 = vld [vmem:[#allocation16 + $0x1b58] sm:$0xff]  ;;  %v6001_v5 = vld [vmem:[#allocation16 + $0x1b00] sm:$0xff] }
 0x667   :  { %v6009_v31 = vld [vmem:[#allocation16 + $0x1b40] sm:$0xff] }
 0x668   :  { %10364 = vmatpush1.bf16.msra.mxu0 %v10363_v45  ;;  %v5961_v45 = vld [vmem:[#allocation16 + $0x19c0] sm:$0xff] }
 0x669   :  { %10620 = vmatpush1.bf16.msra.mxu1 %v10619_v33  ;;  %10366 = vmatprep.subr.bf16.mxu0 %v10365_v23  ;;  %v10377_v33 = vpack.c.bf16 %v5962_v37, %v5954_v10  ;;  %v10633_v23 = vpack.c.bf16 %v5964_v36, %v5956_v38  ;;  %v6018_v10 = vld [vmem:[#allocation16 + $0x1b88] sm:$0xff]  ;;  %v6020_v38 = vld [vmem:[#allocation16 + $0x1b98] sm:$0xff] }
 0x66a   :  { %10622 = vmatprep.subr.bf16.mxu1 %v10621_v63  ;;  %v5955_v63 = vld [vmem:[#allocation16 + $0x1990] sm:$0xff]  ;;  %v6026_v37 = vld [vmem:[#allocation16 + $0x1bc8] sm:$0xff]  ;;  %v6028_v36 = vld [vmem:[#allocation16 + $0x1bd8] sm:$0xff] }
 0x67e   :  { %v4840_v40 = vpop.f32.mrb[10].mxu0 }
 0x67f   :  { %v11337_v57 = vadd.f32 %v4840_v40, %v3972_v53  ;;  %v12196_v58 = vpop.f32.mrb[10].mxu1  ;;  %v4842_v46 = vpop.f32.mrb[11].mxu0  ;;  %v5963_v53 = vld [vmem:[#allocation16 + $0x19d0] sm:$0xff]  ;;  %v5972_v40 = vld [vmem:[#allocation16 + $0x1a18] sm:$0xff] }
 0x680   :  { %v11338_v44 = vadd.f32 %v4842_v46, %v3976_v30  ;;  %v5126_v2 = vpop.f32.mrb[11].mxu1  ;;  %v5970_v30 = vld [vmem:[#allocation16 + $0x1a08] sm:$0xff]  ;;  %v10635_v46 = vpack.c.bf16 %v5963_v53, %v5955_v63  ;;  %v6019_v63 = vld [vmem:[#allocation16 + $0x1b90] sm:$0xff] }
 0x681   :  { %v11340_v3 = vadd.f32 %v5126_v2, %v3984_v54  ;;  %v12200_v43 = vmax.f32 %v11337_v57, 0.0  ;;  %v5978_v54 = vld [vmem:[#allocation16 + $0x1a48] sm:$0xff]  ;;  %v10379_v57 = vpack.c.bf16 %v5961_v45, %v5953_v24  ;;  %v5971_v2 = vld [vmem:[#allocation16 + $0x1a10] sm:$0xff]  ;;  %v6017_v24 = vld [vmem:[#allocation16 + $0x1b80] sm:$0xff] }
 0x682   :  { %v12198_v14 = vmax.f32 %v11338_v44, 0.0  ;;  %v10381_v62 = vpack.c.bf16 %v5978_v54, %v5970_v30  ;;  %v10637_v44 = vpack.c.bf16 %v5980_v55, %v5972_v40  ;;  %v6025_v45 = vld [vmem:[#allocation16 + $0x1bc0] sm:$0xff]  ;;  %v6027_v53 = vld [vmem:[#allocation16 + $0x1bd0] sm:$0xff]  ;;  %v6034_v30 = vld [vmem:[#allocation16 + $0x1c08] sm:$0xff] }
 0x683   :  { %v12204_v39 = vmax.f32 %v11340_v3, 0.0  ;;  %v5986_v3 = vld [vmem:[#allocation16 + $0x1a88] sm:$0xff]  ;;  %v6036_v40 = vld [vmem:[#allocation16 + $0x1c18] sm:$0xff] }
 0x684   :  { %6409 = vmatprep.mubr.f32.mxu0 %v12198_v14  ;;  %6693 = vmatprep.mubr.f32.mxu1 %v12198_v14  ;;  %v10385_v18 = vpack.c.bf16 %v5994_v8, %v5986_v3  ;;  %v6042_v54 = vld [vmem:[#allocation16 + $0x1c48] sm:$0xff]  ;;  %v6044_v55 = vld [vmem:[#allocation16 + $0x1c58] sm:$0xff] }
 0x685   :  { %6410 = vmatmul.mubr.f32.vlgmr.msra.gmra.mrb[12].mxu0 %v12200_v43  ;;  %6694 = vmatmul.mubr.f32.vlgmr.msra.gmra.mrb[12].mxu1 %v12200_v43  ;;  %v6050_v3 = vld [vmem:[#allocation16 + $0x1c88] sm:$0xff] }
 0x686   :  { %10368 = vmatpush1.bf16.msra.mxu0 %v10367_v15  ;;  %10624 = vmatpush1.bf16.msra.mxu1 %v10623_v42  ;;  %v10383_v15 = vpack.c.bf16 %v5977_v61, %v5969_v59  ;;  %v10639_v42 = vpack.c.bf16 %v5979_v35, %v5971_v2  ;;  %v6033_v59 = vld [vmem:[#allocation16 + $0x1c00] sm:$0xff]  ;;  %v6035_v2 = vld [vmem:[#allocation16 + $0x1c10] sm:$0xff]  ;;  %v6058_v8 = vld [vmem:[#allocation16 + $0x1cc8] sm:$0xff] }
 0x687   :  { %6480 = vmatprep.mubr.f32.mxu0 %v12204_v39  ;;  %6764 = vmatprep.mubr.f32.mxu1 %v12204_v39  ;;  %v6041_v61 = vld [vmem:[#allocation16 + $0x1c40] sm:$0xff]  ;;  %v6043_v35 = vld [vmem:[#allocation16 + $0x1c50] sm:$0xff] }
 0x688   :  { %10370 = vmatprep.subr.bf16.mxu0 %v10369_v47  ;;  %10626 = vmatprep.subr.bf16.mxu1 %v10625_v21  ;;  %v5995_v47 = vld [vmem:[#allocation16 + $0x1ad0] sm:$0xff]  ;;  %v6002_v21 = vld [vmem:[#allocation16 + $0x1b08] sm:$0xff] }
 0x68a   :  { %10372 = vmatpush1.bf16.msra.mxu0 %v10371_v1  ;;  %10628 = vmatpush1.bf16.msra.mxu1 %v10627_v25  ;;  %v10387_v1 = vpack.c.bf16 %v5993_v29, %v5985_v16  ;;  %v10643_v25 = vpack.c.bf16 %v5995_v47, %v5987_v20  ;;  %v6049_v16 = vld [vmem:[#allocation16 + $0x1c80] sm:$0xff]  ;;  %v6051_v20 = vld [vmem:[#allocation16 + $0x1c90] sm:$0xff] }
 0x68b   :  { %10374 = vmatprep.subr.bf16.mxu0 %v10373_v41  ;;  %10630 = vmatprep.subr.bf16.mxu1 %v10629_v32  ;;  %v10389_v41 = vpack.c.bf16 %v6010_v51, %v6002_v21  ;;  %v10645_v32 = vpack.c.bf16 %v6012_v7, %v6004_v22  ;;  %v6057_v29 = vld [vmem:[#allocation16 + $0x1cc0] sm:$0xff]  ;;  %v6059_v47 = vld [vmem:[#allocation16 + $0x1cd0] sm:$0xff]  ;;  %v6066_v21 = vld [vmem:[#allocation16 + $0x1d08] sm:$0xff] }
 0x68c   :  { %v6074_v51 = vld [vmem:[#allocation16 + $0x1d48] sm:$0xff]  ;;  %v6068_v22 = vld [vmem:[#allocation16 + $0x1d18] sm:$0xff] }
 0x68d   :  { %v6076_v7 = vld [vmem:[#allocation16 + $0x1d58] sm:$0xff] }
 0x68e   :  { %10376 = vmatpush1.bf16.msra.mxu0 %v10375_v49  ;;  %10632 = vmatpush1.bf16.msra.mxu1 %v10631_v34  ;;  %v10391_v49 = vpack.c.bf16 %v6009_v31, %v6001_v5  ;;  %v10647_v34 = vpack.c.bf16 %v6011_v17, %v6003_v0  ;;  %v6065_v5 = vld [vmem:[#allocation16 + $0x1d00] sm:$0xff]  ;;  %v6067_v0 = vld [vmem:[#allocation16 + $0x1d10] sm:$0xff] }
 0x68f   :  { %10378 = vmatprep.subr.bf16.mxu0 %v10377_v33  ;;  %10634 = vmatprep.subr.bf16.mxu1 %v10633_v23  ;;  %v10393_v33 = vpack.c.bf16 %v6026_v37, %v6018_v10  ;;  %v10649_v23 = vpack.c.bf16 %v6028_v36, %v6020_v38  ;;  %v6073_v31 = vld [vmem:[#allocation16 + $0x1d40] sm:$0xff]  ;;  %v6075_v17 = vld [vmem:[#allocation16 + $0x1d50] sm:$0xff]  ;;  %v6082_v10 = vld [vmem:[#allocation16 + $0x1d88] sm:$0xff] }
 0x690   :  { %v6090_v37 = vld [vmem:[#allocation16 + $0x1dc8] sm:$0xff]  ;;  %v6084_v38 = vld [vmem:[#allocation16 + $0x1d98] sm:$0xff] }
 0x691   :  { %v6092_v36 = vld [vmem:[#allocation16 + $0x1dd8] sm:$0xff] }
 0x692   :  { %10380 = vmatpush1.bf16.msra.mxu0 %v10379_v57  ;;  %10636 = vmatpush1.bf16.msra.mxu1 %v10635_v46  ;;  %v10395_v57 = vpack.c.bf16 %v6025_v45, %v6017_v24  ;;  %v10651_v46 = vpack.c.bf16 %v6027_v53, %v6019_v63  ;;  %v6081_v24 = vld [vmem:[#allocation16 + $0x1d80] sm:$0xff]  ;;  %v6083_v63 = vld [vmem:[#allocation16 + $0x1d90] sm:$0xff] }
 0x693   :  { %10382 = vmatprep.subr.bf16.mxu0 %v10381_v62  ;;  %10638 = vmatprep.subr.bf16.mxu1 %v10637_v44  ;;  %v10397_v62 = vpack.c.bf16 %v6042_v54, %v6034_v30  ;;  %v10653_v44 = vpack.c.bf16 %v6044_v55, %v6036_v40  ;;  %v6089_v45 = vld [vmem:[#allocation16 + $0x1dc0] sm:$0xff]  ;;  %v6091_v53 = vld [vmem:[#allocation16 + $0x1dd0] sm:$0xff]  ;;  %v6098_v30 = vld [vmem:[#allocation16 + $0x1e08] sm:$0xff] }
 0x694   :  { %v6106_v54 = vld [vmem:[#allocation16 + $0x1e48] sm:$0xff]  ;;  %v6100_v40 = vld [vmem:[#allocation16 + $0x1e18] sm:$0xff] }
 0x695   :  { %v6108_v55 = vld [vmem:[#allocation16 + $0x1e58] sm:$0xff] }
 0x696   :  { %10384 = vmatpush1.bf16.msra.mxu0 %v10383_v15  ;;  %10640 = vmatpush1.bf16.msra.mxu1 %v10639_v42  ;;  %v10399_v15 = vpack.c.bf16 %v6041_v61, %v6033_v59  ;;  %v10655_v42 = vpack.c.bf16 %v6043_v35, %v6035_v2  ;;  %v6097_v59 = vld [vmem:[#allocation16 + $0x1e00] sm:$0xff]  ;;  %v6099_v2 = vld [vmem:[#allocation16 + $0x1e10] sm:$0xff] }
 0x697   :  { %10386 = vmatprep.subr.bf16.mxu0 %v10385_v18  ;;  %10642 = vmatprep.subr.bf16.mxu1 %v10641_v19  ;;  %v10401_v18 = vpack.c.bf16 %v6058_v8, %v6050_v3  ;;  %v10657_v19 = vpack.c.bf16 %v6060_v11, %v6052_v28  ;;  %v6105_v61 = vld [vmem:[#allocation16 + $0x1e40] sm:$0xff]  ;;  %v6107_v35 = vld [vmem:[#allocation16 + $0x1e50] sm:$0xff]  ;;  %v6114_v3 = vld [vmem:[#allocation16 + $0x1e88] sm:$0xff] }
 0x698   :  { %v6122_v8 = vld [vmem:[#allocation16 + $0x1ec8] sm:$0xff]  ;;  %v6116_v28 = vld [vmem:[#allocation16 + $0x1e98] sm:$0xff] }
 0x699   :  { %v6124_v11 = vld [vmem:[#allocation16 + $0x1ed8] sm:$0xff] }
 0x69a   :  { %10388 = vmatpush1.bf16.msra.mxu0 %v10387_v1  ;;  %10644 = vmatpush1.bf16.msra.mxu1 %v10643_v25  ;;  %v10403_v1 = vpack.c.bf16 %v6057_v29, %v6049_v16  ;;  %v10659_v25 = vpack.c.bf16 %v6059_v47, %v6051_v20  ;;  %v6113_v16 = vld [vmem:[#allocation16 + $0x1e80] sm:$0xff]  ;;  %v6115_v20 = vld [vmem:[#allocation16 + $0x1e90] sm:$0xff] }
 0x69b   :  { %10390 = vmatprep.subr.bf16.mxu0 %v10389_v41  ;;  %10646 = vmatprep.subr.bf16.mxu1 %v10645_v32  ;;  %v10405_v41 = vpack.c.bf16 %v6074_v51, %v6066_v21  ;;  %v10661_v32 = vpack.c.bf16 %v6076_v7, %v6068_v22  ;;  %v6121_v29 = vld [vmem:[#allocation16 + $0x1ec0] sm:$0xff]  ;;  %v6123_v47 = vld [vmem:[#allocation16 + $0x1ed0] sm:$0xff]  ;;  %v6130_v21 = vld [vmem:[#allocation16 + $0x1f08] sm:$0xff] }
 0x69c   :  { %v6138_v51 = vld [vmem:[#allocation16 + $0x1f48] sm:$0xff]  ;;  %v6132_v22 = vld [vmem:[#allocation16 + $0x1f18] sm:$0xff] }
 0x69d   :  { %v6140_v7 = vld [vmem:[#allocation16 + $0x1f58] sm:$0xff] }
 0x69e   :  { %10392 = vmatpush1.bf16.msra.mxu0 %v10391_v49  ;;  %10648 = vmatpush1.bf16.msra.mxu1 %v10647_v34  ;;  %v10407_v49 = vpack.c.bf16 %v6073_v31, %v6065_v5  ;;  %v10663_v34 = vpack.c.bf16 %v6075_v17, %v6067_v0  ;;  %v6129_v5 = vld [vmem:[#allocation16 + $0x1f00] sm:$0xff]  ;;  %v6131_v0 = vld [vmem:[#allocation16 + $0x1f10] sm:$0xff] }
 0x69f   :  { %10394 = vmatprep.subr.bf16.mxu0 %v10393_v33  ;;  %10650 = vmatprep.subr.bf16.mxu1 %v10649_v23  ;;  %v10409_v33 = vpack.c.bf16 %v6090_v37, %v6082_v10  ;;  %v10665_v23 = vpack.c.bf16 %v6092_v36, %v6084_v38  ;;  %v6137_v31 = vld [vmem:[#allocation16 + $0x1f40] sm:$0xff]  ;;  %v6139_v17 = vld [vmem:[#allocation16 + $0x1f50] sm:$0xff]  ;;  %v6146_v10 = vld [vmem:[#allocation16 + $0x1f88] sm:$0xff] }
 0x6a0   :  { %v6154_v37 = vld [vmem:[#allocation16 + $0x1fc8] sm:$0xff]  ;;  %v6148_v38 = vld [vmem:[#allocation16 + $0x1f98] sm:$0xff] }
 0x6a1   :  { %v6156_v36 = vld [vmem:[#allocation16 + $0x1fd8] sm:$0xff] }
 0x6a2   :  { %10396 = vmatpush1.bf16.msra.mxu0 %v10395_v57  ;;  %10652 = vmatpush1.bf16.msra.mxu1 %v10651_v46  ;;  %v10411_v57 = vpack.c.bf16 %v6089_v45, %v6081_v24  ;;  %v10667_v46 = vpack.c.bf16 %v6091_v53, %v6083_v63  ;;  %v6145_v24 = vld [vmem:[#allocation16 + $0x1f80] sm:$0xff]  ;;  %v10425_v63 = vpack.c.bf16 %v6154_v37, %v6146_v10  ;;  %v5175_v10 = vld [vmem:[#allocation16 + $0x130] sm:$0xff] }
 0x6a3   :  { %10398 = vmatprep.subr.bf16.mxu0 %v10397_v62  ;;  %10654 = vmatprep.subr.bf16.mxu1 %v10653_v44  ;;  %v10413_v62 = vpack.c.bf16 %v6106_v54, %v6098_v30  ;;  %v10669_v44 = vpack.c.bf16 %v6108_v55, %v6100_v40  ;;  %v6153_v45 = vld [vmem:[#allocation16 + $0x1fc0] sm:$0xff]  ;;  %v10681_v53 = vpack.c.bf16 %v6156_v36, %v6148_v38  ;;  %v6147_v30 = vld [vmem:[#allocation16 + $0x1f90] sm:$0xff]  ;;  %v5142_v40 = vld [vmem:[#allocation16 + $0x28] sm:$0xff] }
 0x6a4   :  { %v6155_v54 = vld [vmem:[#allocation16 + $0x1fd0] sm:$0xff]  ;;  %v5150_v55 = vld [vmem:[#allocation16 + $0x68] sm:$0xff] }
 0x6a5   :  { %v5183_v38 = vld [vmem:[#allocation16 + $0x170] sm:$0xff]  ;;  %v5190_v36 = vld [vmem:[#allocation16 + $0x1a8] sm:$0xff] }
 0x6a6   :  { %10400 = vmatpush1.bf16.msra.mxu0 %v10399_v15  ;;  %10656 = vmatpush1.bf16.msra.mxu1 %v10655_v42  ;;  %v10415_v15 = vpack.c.bf16 %v6105_v61, %v6097_v59  ;;  %v10671_v42 = vpack.c.bf16 %v6107_v35, %v6099_v2  ;;  %v10427_v59 = vpack.c.bf16 %v6153_v45, %v6145_v24  ;;  %v5141_v35 = vld [vmem:[#allocation16 + $0x20] sm:$0xff]  ;;  %v5200_v24 = vld [vmem:[#allocation16 + $0x1f8] sm:$0xff] }
 0x6a7   :  { %10402 = vmatprep.subr.bf16.mxu0 %v10401_v18  ;;  %10658 = vmatprep.subr.bf16.mxu1 %v10657_v19  ;;  %v10417_v18 = vpack.c.bf16 %v6122_v8, %v6114_v3  ;;  %v10673_v19 = vpack.c.bf16 %v6124_v11, %v6116_v28  ;;  %v10683_v61 = vpack.c.bf16 %v6155_v54, %v6147_v30  ;;  %v5149_v3 = vld [vmem:[#allocation16 + $0x60] sm:$0xff]  ;;  %v5143_v8 = vld [vmem:[#allocation16 + $0x30] sm:$0xff]  ;;  %v5158_v11 = vld [vmem:[#allocation16 + $0xa8] sm:$0xff] }
 0x6a8   :  { %v5151_v28 = vld [vmem:[#allocation16 + $0x70] sm:$0xff] }
 0x6a9   :  { %v5199_v54 = vld [vmem:[#allocation16 + $0x1f0] sm:$0xff] }
 0x6aa   :  { %10404 = vmatpush1.bf16.msra.mxu0 %v10403_v1  ;;  %10660 = vmatpush1.bf16.msra.mxu1 %v10659_v25  ;;  %v10419_v1 = vpack.c.bf16 %v6121_v29, %v6113_v16  ;;  %v10675_v25 = vpack.c.bf16 %v6123_v47, %v6115_v20  ;;  %v5168_v16 = vld [vmem:[#allocation16 + $0xf8] sm:$0xff]  ;;  %v10687_v29 = vpack.c.bf16 %v5149_v3, %v5141_v35  ;;  %v5165_v20 = vld [vmem:[#allocation16 + $0xe0] sm:$0xff]  ;;  %v5159_v47 = vld [vmem:[#allocation16 + $0xb0] sm:$0xff] }
 0x6ab   :  { %10406 = vmatprep.subr.bf16.mxu0 %v10405_v41  ;;  %10662 = vmatprep.subr.bf16.mxu1 %v10661_v32  ;;  %v10421_v41 = vpack.c.bf16 %v6138_v51, %v6130_v21  ;;  %v10677_v32 = vpack.c.bf16 %v6140_v7, %v6132_v22  ;;  %v5167_v22 = vld [vmem:[#allocation16 + $0xf0] sm:$0xff]  ;;  %v5174_v7 = vld [vmem:[#allocation16 + $0x128] sm:$0xff] }
 0x6ac   :  { %v5207_v35 = vld [vmem:[#allocation16 + $0x230] sm:$0xff] }
 0x6ae   :  { %10408 = vmatpush1.bf16.msra.mxu0 %v10407_v49  ;;  %10664 = vmatpush1.bf16.msra.mxu1 %v10663_v34  ;;  %v10423_v49 = vpack.c.bf16 %v6137_v31, %v6129_v5  ;;  %v10679_v34 = vpack.c.bf16 %v6139_v17, %v6131_v0  ;;  %v5184_v5 = vld [vmem:[#allocation16 + $0x178] sm:$0xff]  ;;  %v5173_v0 = vld [vmem:[#allocation16 + $0x120] sm:$0xff] }
 0x6af   :  { %10410 = vmatprep.subr.bf16.mxu0 %v10409_v33  ;;  %10666 = vmatprep.subr.bf16.mxu1 %v10665_v23  ;;  %v11439_v33 = vld [vmem:[#allocation14] sm:$0xff]  ;;  %v5181_v17 = vld [vmem:[#allocation16 + $0x160] sm:$0xff] }
 0x6b0   :  { %v3980_v23 = vrot.slane %v11439_v33, %v12043_v4  ;;  %v10695_v45 = vpack.c.bf16 %v5181_v17, %v5173_v0  ;;  %v10951_v33 = vpack.c.bf16 %v5183_v38, %v5175_v10  ;;  %v5245_v0 = vld [vmem:[#allocation16 + $0x360] sm:$0xff]  ;;  %v5239_v17 = vld [vmem:[#allocation16 + $0x330] sm:$0xff]  ;;  %v5254_v38 = vld [vmem:[#allocation16 + $0x3a8] sm:$0xff] }
 0x6b2   :  { %10412 = vmatpush1.bf16.msra.mxu0 %v10411_v57  ;;  %10668 = vmatpush1.bf16.msra.mxu1 %v10667_v46  ;;  %v5144_v57 = vld [vmem:[#allocation16 + $0x38] sm:$0xff] }
 0x6b3   :  { %10414 = vmatprep.subr.bf16.mxu0 %v10413_v62  ;;  %10670 = vmatprep.subr.bf16.mxu1 %v10669_v44  ;;  %v5152_v46 = vld [vmem:[#allocation16 + $0x78] sm:$0xff]  ;;  %v11339_v62 = vadd.f32 %v12196_v58, %v3980_v23  ;;  %v10685_v44 = vpack.c.bf16 %v5150_v55, %v5142_v40  ;;  %v10943_v58 = vpack.c.bf16 %v5151_v28, %v5143_v8  ;;  %v5206_v40 = vld [vmem:[#allocation16 + $0x228] sm:$0xff]  ;;  %v5215_v8 = vld [vmem:[#allocation16 + $0x270] sm:$0xff] }
 0x6b4   :  { %v10941_v2 = vpack.c.bf16 %v5152_v46, %v5144_v57  ;;  %v5214_v55 = vld [vmem:[#allocation16 + $0x268] sm:$0xff]  ;;  %v5208_v57 = vld [vmem:[#allocation16 + $0x238] sm:$0xff] }
 0x6b5   :  { %v5216_v46 = vld [vmem:[#allocation16 + $0x278] sm:$0xff]  ;;  %v5222_v28 = vld [vmem:[#allocation16 + $0x2a8] sm:$0xff] }
 0x6b6   :  { %10416 = vmatpush1.bf16.msra.mxu0 %v10415_v15  ;;  %10672 = vmatpush1.bf16.msra.mxu1 %v10671_v42  ;;  %v5166_v15 = vld [vmem:[#allocation16 + $0xe8] sm:$0xff]  ;;  %v5160_v42 = vld [vmem:[#allocation16 + $0xb8] sm:$0xff]  ;;  %v10957_v3 = vpack.c.bf16 %v5216_v46, %v5208_v57 }
 0x6b7   :  { %10418 = vmatprep.subr.bf16.mxu0 %v10417_v18  ;;  %10674 = vmatprep.subr.bf16.mxu1 %v10673_v19  ;;  %v12212_v18 = vmax.f32 %v11339_v62, 0.0  ;;  %v5157_v19 = vld [vmem:[#allocation16 + $0xa0] sm:$0xff]  ;;  %v10689_v21 = vpack.c.bf16 %v5166_v15, %v5158_v11  ;;  %v10945_v51 = vpack.c.bf16 %v5168_v16, %v5160_v42  ;;  %v10701_v62 = vpack.c.bf16 %v5214_v55, %v5206_v40  ;;  %v5230_v11 = vld [vmem:[#allocation16 + $0x2e8] sm:$0xff]  ;;  %v5224_v15 = vld [vmem:[#allocation16 + $0x2b8] sm:$0xff] }
 0x6b8   :  { %v10691_v31 = vpack.c.bf16 %v5165_v20, %v5157_v19  ;;  %v5232_v42 = vld [vmem:[#allocation16 + $0x2f8] sm:$0xff]  ;;  %v5221_v19 = vld [vmem:[#allocation16 + $0x2a0] sm:$0xff]  ;;  %v5278_v40 = vld [vmem:[#allocation16 + $0x468] sm:$0xff] }
 0x6b9   :  { %v5229_v20 = vld [vmem:[#allocation16 + $0x2e0] sm:$0xff]  ;;  %v5272_v55 = vld [vmem:[#allocation16 + $0x438] sm:$0xff] }
 0x6ba   :  { %10420 = vmatpush1.bf16.msra.mxu0 %v10419_v1  ;;  %10676 = vmatpush1.bf16.msra.mxu1 %v10675_v25  ;;  %v5182_v1 = vld [vmem:[#allocation16 + $0x168] sm:$0xff]  ;;  %v5176_v25 = vld [vmem:[#allocation16 + $0x138] sm:$0xff] }
 0x6bb   :  { %10422 = vmatprep.subr.bf16.mxu0 %v10421_v41  ;;  %10678 = vmatprep.subr.bf16.mxu1 %v10677_v32  ;;  %v10947_v41 = vpack.c.bf16 %v5167_v22, %v5159_v47  ;;  %v10693_v32 = vpack.c.bf16 %v5182_v1, %v5174_v7  ;;  %v10949_v37 = vpack.c.bf16 %v5184_v5, %v5176_v25  ;;  %v5223_v47 = vld [vmem:[#allocation16 + $0x2b0] sm:$0xff]  ;;  %v5238_v22 = vld [vmem:[#allocation16 + $0x328] sm:$0xff]  ;;  %v5240_v1 = vld [vmem:[#allocation16 + $0x338] sm:$0xff] }
 0x6bc   :  { %v5246_v7 = vld [vmem:[#allocation16 + $0x368] sm:$0xff]  ;;  %v5248_v25 = vld [vmem:[#allocation16 + $0x378] sm:$0xff]  ;;  %v10707_v5 = vpack.c.bf16 %v5229_v20, %v5221_v19  ;;  %v5293_v19 = vld [vmem:[#allocation16 + $0x4e0] sm:$0xff] }
 0x6bd   :  { %v10965_v10 = vpack.c.bf16 %v5248_v25, %v5240_v1  ;;  %v5280_v57 = vld [vmem:[#allocation16 + $0x478] sm:$0xff]  ;;  %v5287_v20 = vld [vmem:[#allocation16 + $0x4b0] sm:$0xff] }
 0x6be   :  { %10424 = vmatpush1.bf16.msra.mxu0 %v10423_v49  ;;  %10680 = vmatpush1.bf16.msra.mxu1 %v10679_v34  ;;  %v5198_v49 = vld [vmem:[#allocation16 + $0x1e8] sm:$0xff]  ;;  %v5192_v34 = vld [vmem:[#allocation16 + $0x1b8] sm:$0xff] }
 0x6bf   :  { %10426 = vmatprep.subr.bf16.mxu0 %v10425_v63  ;;  %10682 = vmatprep.subr.bf16.mxu1 %v10681_v53  ;;  %v10697_v23 = vpack.c.bf16 %v5198_v49, %v5190_v36  ;;  %v5197_v63 = vld [vmem:[#allocation16 + $0x1e0] sm:$0xff]  ;;  %v5191_v53 = vld [vmem:[#allocation16 + $0x1b0] sm:$0xff]  ;;  %v10953_v30 = vpack.c.bf16 %v5200_v24, %v5192_v34  ;;  %v5262_v36 = vld [vmem:[#allocation16 + $0x3e8] sm:$0xff] }
 0x6c0   :  { %v5256_v49 = vld [vmem:[#allocation16 + $0x3b8] sm:$0xff] }
 0x6c1   :  { %v5264_v34 = vld [vmem:[#allocation16 + $0x3f8] sm:$0xff] }
 0x6c2   :  { %10428 = vmatpush1.bf16.msra.mxu0 %v10427_v59  ;;  %10684 = vmatpush1.bf16.msra.mxu1 %v10683_v61  ;;  %v10955_v61 = vpack.c.bf16 %v5199_v54, %v5191_v53  ;;  %v10969_v53 = vpack.c.bf16 %v5264_v34, %v5256_v49  ;;  %v5270_v54 = vld [vmem:[#allocation16 + $0x428] sm:$0xff]  ;;  %v5312_v1 = vld [vmem:[#allocation16 + $0x578] sm:$0xff] }
 0x6c3   :  { %10686 = vmatprep.subr.bf16.mxu0 %v10685_v44  ;;  %10942 = vmatprep.subr.bf16.mxu1 %v10941_v2  ;;  %v5205_v44 = vld [vmem:[#allocation16 + $0x220] sm:$0xff]  ;;  %v5328_v49 = vld [vmem:[#allocation16 + $0x5f8] sm:$0xff] }
 0x6c4   :  { %v5213_v2 = vld [vmem:[#allocation16 + $0x260] sm:$0xff] }
 0x6c5   :  { %6481 = vmatmul.mubr.f32.vlgmr.msra.gmra.mrb[12].mxu0 %v12212_v18  ;;  %6765 = vmatmul.mubr.f32.vlgmr.msra.gmra.mrb[12].mxu1 %v12212_v18  ;;  %v10703_v16 = vpack.c.bf16 %v5213_v2, %v5205_v44  ;;  %v5277_v44 = vld [vmem:[#allocation16 + $0x460] sm:$0xff]  ;;  %v5271_v2 = vld [vmem:[#allocation16 + $0x430] sm:$0xff] }
 0x6c6   :  { %10688 = vmatpush1.bf16.msra.mxu0 %v10687_v29  ;;  %6835 = vmatprep.mubr.f32.mxu0 %v12161_v52  ;;  %v10959_v29 = vpack.c.bf16 %v5215_v8, %v5207_v35  ;;  %v10973_v35 = vpack.c.bf16 %v5280_v57, %v5272_v55  ;;  %v5286_v8 = vld [vmem:[#allocation16 + $0x4a8] sm:$0xff]  ;;  %v5344_v55 = vld [vmem:[#allocation16 + $0x678] sm:$0xff] }
 0x6c7   :  { %10944 = vmatpush1.bf16.msra.mxu1 %v10943_v58  ;;  %7119 = vmatprep.mubr.f32.mxu1 %v12161_v52  ;;  %v5189_v52 = vld [vmem:[#allocation16 + $0x1a0] sm:$0xff]  ;;  %v10705_v58 = vpack.c.bf16 %v5230_v11, %v5222_v28  ;;  %v5294_v28 = vld [vmem:[#allocation16 + $0x4e8] sm:$0xff]  ;;  %v5288_v11 = vld [vmem:[#allocation16 + $0x4b8] sm:$0xff] }
 0x6c8   :  { %10690 = vmatprep.subr.bf16.mxu0 %v10689_v21  ;;  %10946 = vmatprep.subr.bf16.mxu1 %v10945_v51  ;;  %v10699_v59 = vpack.c.bf16 %v5197_v63, %v5189_v52  ;;  %v10961_v21 = vpack.c.bf16 %v5232_v42, %v5224_v15  ;;  %v5231_v51 = vld [vmem:[#allocation16 + $0x2f0] sm:$0xff]  ;;  %v5261_v52 = vld [vmem:[#allocation16 + $0x3e0] sm:$0xff]  ;;  %v5296_v15 = vld [vmem:[#allocation16 + $0x4f8] sm:$0xff] }
 0x6c9   :  { %v5255_v63 = vld [vmem:[#allocation16 + $0x3b0] sm:$0xff] }
 0x6ca   :  { %10692 = vmatpush1.bf16.msra.mxu0 %v10691_v31  ;;  %v10963_v31 = vpack.c.bf16 %v5231_v51, %v5223_v47  ;;  %v10977_v47 = vpack.c.bf16 %v5296_v15, %v5288_v11  ;;  %v5302_v51 = vld [vmem:[#allocation16 + $0x528] sm:$0xff]  ;;  %v5360_v11 = vld [vmem:[#allocation16 + $0x6f8] sm:$0xff] }
 0x6cb   :  { %10948 = vmatpush1.bf16.msra.mxu1 %v10947_v41  ;;  %10694 = vmatprep.subr.bf16.mxu0 %v10693_v32  ;;  %v10709_v41 = vpack.c.bf16 %v5246_v7, %v5238_v22  ;;  %v5237_v32 = vld [vmem:[#allocation16 + $0x320] sm:$0xff]  ;;  %v5310_v22 = vld [vmem:[#allocation16 + $0x568] sm:$0xff]  ;;  %v5304_v7 = vld [vmem:[#allocation16 + $0x538] sm:$0xff] }
 0x6cc   :  { %10950 = vmatprep.subr.bf16.mxu1 %v10949_v37  ;;  %v5247_v37 = vld [vmem:[#allocation16 + $0x370] sm:$0xff]  ;;  %v10711_v24 = vpack.c.bf16 %v5245_v0, %v5237_v32  ;;  %v5309_v32 = vld [vmem:[#allocation16 + $0x560] sm:$0xff] }
 0x6cd   :  { %v5303_v0 = vld [vmem:[#allocation16 + $0x530] sm:$0xff] }
 0x6ce   :  { %10696 = vmatpush1.bf16.msra.mxu0 %v10695_v45  ;;  %v10967_v45 = vpack.c.bf16 %v5247_v37, %v5239_v17  ;;  %v10981_v17 = vpack.c.bf16 %v5312_v1, %v5304_v7  ;;  %v5318_v37 = vld [vmem:[#allocation16 + $0x5a8] sm:$0xff]  ;;  %v5376_v7 = vld [vmem:[#allocation16 + $0x778] sm:$0xff] }
 0x6cf   :  { %10952 = vmatpush1.bf16.msra.mxu1 %v10951_v33  ;;  %10698 = vmatprep.subr.bf16.mxu0 %v10697_v23  ;;  %v10713_v33 = vpack.c.bf16 %v5262_v36, %v5254_v38  ;;  %v5253_v23 = vld [vmem:[#allocation16 + $0x3a0] sm:$0xff]  ;;  %v5326_v38 = vld [vmem:[#allocation16 + $0x5e8] sm:$0xff]  ;;  %v5320_v36 = vld [vmem:[#allocation16 + $0x5b8] sm:$0xff] }
 0x6d0   :  { %10954 = vmatprep.subr.bf16.mxu1 %v10953_v30  ;;  %v5263_v30 = vld [vmem:[#allocation16 + $0x3f0] sm:$0xff]  ;;  %v10715_v46 = vpack.c.bf16 %v5261_v52, %v5253_v23  ;;  %v5325_v23 = vld [vmem:[#allocation16 + $0x5e0] sm:$0xff] }
 0x6d1   :  { %v5319_v52 = vld [vmem:[#allocation16 + $0x5b0] sm:$0xff] }
 0x6d2   :  { %10700 = vmatpush1.bf16.msra.mxu0 %v10699_v59  ;;  %v10971_v59 = vpack.c.bf16 %v5263_v30, %v5255_v63  ;;  %v10985_v63 = vpack.c.bf16 %v5328_v49, %v5320_v36  ;;  %v5334_v30 = vld [vmem:[#allocation16 + $0x628] sm:$0xff]  ;;  %v5392_v36 = vld [vmem:[#allocation16 + $0x7f8] sm:$0xff] }
 0x6d3   :  { %10956 = vmatpush1.bf16.msra.mxu1 %v10955_v61  ;;  %10702 = vmatprep.subr.bf16.mxu0 %v10701_v62  ;;  %v10717_v61 = vpack.c.bf16 %v5278_v40, %v5270_v54  ;;  %v5269_v62 = vld [vmem:[#allocation16 + $0x420] sm:$0xff]  ;;  %v5342_v54 = vld [vmem:[#allocation16 + $0x668] sm:$0xff]  ;;  %v5336_v40 = vld [vmem:[#allocation16 + $0x638] sm:$0xff] }
 0x6d4   :  { %10958 = vmatprep.subr.bf16.mxu1 %v10957_v3  ;;  %v5279_v3 = vld [vmem:[#allocation16 + $0x470] sm:$0xff]  ;;  %v10719_v42 = vpack.c.bf16 %v5277_v44, %v5269_v62  ;;  %v5341_v62 = vld [vmem:[#allocation16 + $0x660] sm:$0xff] }
 0x6d5   :  { %v5335_v44 = vld [vmem:[#allocation16 + $0x630] sm:$0xff] }
 0x6d6   :  { %10704 = vmatpush1.bf16.msra.mxu0 %v10703_v16  ;;  %v10975_v16 = vpack.c.bf16 %v5279_v3, %v5271_v2  ;;  %v10989_v2 = vpack.c.bf16 %v5344_v55, %v5336_v40  ;;  %v5350_v3 = vld [vmem:[#allocation16 + $0x6a8] sm:$0xff]  ;;  %v5408_v40 = vld [vmem:[#allocation16 + $0x878] sm:$0xff] }
 0x6d7   :  { %10960 = vmatpush1.bf16.msra.mxu1 %v10959_v29  ;;  %10706 = vmatprep.subr.bf16.mxu0 %v10705_v58  ;;  %v10721_v29 = vpack.c.bf16 %v5294_v28, %v5286_v8  ;;  %v5285_v58 = vld [vmem:[#allocation16 + $0x4a0] sm:$0xff]  ;;  %v5358_v8 = vld [vmem:[#allocation16 + $0x6e8] sm:$0xff]  ;;  %v5352_v28 = vld [vmem:[#allocation16 + $0x6b8] sm:$0xff] }
 0x6d8   :  { %10962 = vmatprep.subr.bf16.mxu1 %v10961_v21  ;;  %v5295_v21 = vld [vmem:[#allocation16 + $0x4f0] sm:$0xff]  ;;  %v10723_v25 = vpack.c.bf16 %v5293_v19, %v5285_v58  ;;  %v5357_v58 = vld [vmem:[#allocation16 + $0x6e0] sm:$0xff] }
 0x6d9   :  { %v5351_v19 = vld [vmem:[#allocation16 + $0x6b0] sm:$0xff] }
 0x6da   :  { %10708 = vmatpush1.bf16.msra.mxu0 %v10707_v5  ;;  %v10979_v5 = vpack.c.bf16 %v5295_v21, %v5287_v20  ;;  %v10993_v20 = vpack.c.bf16 %v5360_v11, %v5352_v28  ;;  %v5366_v21 = vld [vmem:[#allocation16 + $0x728] sm:$0xff]  ;;  %v5416_v28 = vld [vmem:[#allocation16 + $0x8b8] sm:$0xff] }
 0x6db   :  { %10964 = vmatpush1.bf16.msra.mxu1 %v10963_v31  ;;  %10710 = vmatprep.subr.bf16.mxu0 %v10709_v41  ;;  %v10725_v31 = vpack.c.bf16 %v5310_v22, %v5302_v51  ;;  %v5301_v41 = vld [vmem:[#allocation16 + $0x520] sm:$0xff]  ;;  %v5374_v51 = vld [vmem:[#allocation16 + $0x768] sm:$0xff]  ;;  %v5368_v22 = vld [vmem:[#allocation16 + $0x738] sm:$0xff] }
 0x6dc   :  { %10966 = vmatprep.subr.bf16.mxu1 %v10965_v10  ;;  %v5311_v10 = vld [vmem:[#allocation16 + $0x570] sm:$0xff]  ;;  %v10727_v34 = vpack.c.bf16 %v5309_v32, %v5301_v41  ;;  %v5373_v41 = vld [vmem:[#allocation16 + $0x760] sm:$0xff]  ;;  %v5424_v11 = vld [vmem:[#allocation16 + $0x8f8] sm:$0xff] }
 0x6dd   :  { %v5367_v32 = vld [vmem:[#allocation16 + $0x730] sm:$0xff] }
 0x6de   :  { %10712 = vmatpush1.bf16.msra.mxu0 %v10711_v24  ;;  %v10983_v24 = vpack.c.bf16 %v5311_v10, %v5303_v0  ;;  %v10997_v0 = vpack.c.bf16 %v5376_v7, %v5368_v22  ;;  %v5382_v10 = vld [vmem:[#allocation16 + $0x7a8] sm:$0xff]  ;;  %v5440_v22 = vld [vmem:[#allocation16 + $0x978] sm:$0xff] }
 0x6df   :  { %10968 = vmatpush1.bf16.msra.mxu1 %v10967_v45  ;;  %10714 = vmatprep.subr.bf16.mxu0 %v10713_v33  ;;  %v10729_v45 = vpack.c.bf16 %v5326_v38, %v5318_v37  ;;  %v5317_v33 = vld [vmem:[#allocation16 + $0x5a0] sm:$0xff]  ;;  %v5390_v37 = vld [vmem:[#allocation16 + $0x7e8] sm:$0xff]  ;;  %v5384_v38 = vld [vmem:[#allocation16 + $0x7b8] sm:$0xff] }
 0x6e0   :  { %10970 = vmatprep.subr.bf16.mxu1 %v10969_v53  ;;  %v5327_v53 = vld [vmem:[#allocation16 + $0x5f0] sm:$0xff]  ;;  %v10731_v57 = vpack.c.bf16 %v5325_v23, %v5317_v33  ;;  %v5389_v33 = vld [vmem:[#allocation16 + $0x7e0] sm:$0xff] }
 0x6e1   :  { %v5383_v23 = vld [vmem:[#allocation16 + $0x7b0] sm:$0xff] }
 0x6e2   :  { %10716 = vmatpush1.bf16.msra.mxu0 %v10715_v46  ;;  %v10987_v46 = vpack.c.bf16 %v5327_v53, %v5319_v52  ;;  %v11001_v52 = vpack.c.bf16 %v5392_v36, %v5384_v38  ;;  %v5398_v53 = vld [vmem:[#allocation16 + $0x828] sm:$0xff] }
 0x6e3   :  { %10972 = vmatpush1.bf16.msra.mxu1 %v10971_v59  ;;  %10718 = vmatprep.subr.bf16.mxu0 %v10717_v61  ;;  %v10733_v59 = vpack.c.bf16 %v5342_v54, %v5334_v30  ;;  %v5333_v61 = vld [vmem:[#allocation16 + $0x620] sm:$0xff]  ;;  %v5406_v30 = vld [vmem:[#allocation16 + $0x868] sm:$0xff]  ;;  %v5400_v54 = vld [vmem:[#allocation16 + $0x838] sm:$0xff] }
 0x6e4   :  { %10974 = vmatprep.subr.bf16.mxu1 %v10973_v35  ;;  %v5343_v35 = vld [vmem:[#allocation16 + $0x670] sm:$0xff]  ;;  %v10735_v15 = vpack.c.bf16 %v5341_v62, %v5333_v61  ;;  %v5405_v61 = vld [vmem:[#allocation16 + $0x860] sm:$0xff]  ;;  %v11005_v62 = vpack.c.bf16 %v5408_v40, %v5400_v54 }
 0x6e6   :  { %10720 = vmatpush1.bf16.msra.mxu0 %v10719_v42  ;;  %v10991_v42 = vpack.c.bf16 %v5343_v35, %v5335_v44  ;;  %v5399_v44 = vld [vmem:[#allocation16 + $0x830] sm:$0xff]  ;;  %v5414_v35 = vld [vmem:[#allocation16 + $0x8a8] sm:$0xff] }
 0x6e7   :  { %10976 = vmatpush1.bf16.msra.mxu1 %v10975_v16  ;;  %10722 = vmatprep.subr.bf16.mxu0 %v10721_v29  ;;  %v10737_v16 = vpack.c.bf16 %v5358_v8, %v5350_v3  ;;  %v5349_v29 = vld [vmem:[#allocation16 + $0x6a0] sm:$0xff]  ;;  %v5422_v3 = vld [vmem:[#allocation16 + $0x8e8] sm:$0xff] }
 0x6e8   :  { %10978 = vmatprep.subr.bf16.mxu1 %v10977_v47  ;;  %v5359_v47 = vld [vmem:[#allocation16 + $0x6f0] sm:$0xff]  ;;  %v10739_v1 = vpack.c.bf16 %v5357_v58, %v5349_v29  ;;  %v10753_v58 = vpack.c.bf16 %v5422_v3, %v5414_v35  ;;  %v5488_v35 = vld [vmem:[#allocation16 + $0xaf8] sm:$0xff] }
 0x6e9   :  { %v5415_v29 = vld [vmem:[#allocation16 + $0x8b0] sm:$0xff] }
 0x6ea   :  { %10724 = vmatpush1.bf16.msra.mxu0 %v10723_v25  ;;  %v10995_v25 = vpack.c.bf16 %v5359_v47, %v5351_v19  ;;  %v5423_v19 = vld [vmem:[#allocation16 + $0x8f0] sm:$0xff]  ;;  %v5438_v47 = vld [vmem:[#allocation16 + $0x968] sm:$0xff] }
 0x6eb   :  { %10980 = vmatpush1.bf16.msra.mxu1 %v10979_v5  ;;  %10726 = vmatprep.subr.bf16.mxu0 %v10725_v31  ;;  %v10741_v5 = vpack.c.bf16 %v5374_v51, %v5366_v21  ;;  %v5365_v31 = vld [vmem:[#allocation16 + $0x720] sm:$0xff]  ;;  %v11009_v21 = vpack.c.bf16 %v5424_v11, %v5416_v28  ;;  %v5432_v51 = vld [vmem:[#allocation16 + $0x938] sm:$0xff] }
 0x6ec   :  { %10982 = vmatprep.subr.bf16.mxu1 %v10981_v17  ;;  %v5375_v17 = vld [vmem:[#allocation16 + $0x770] sm:$0xff]  ;;  %v10743_v49 = vpack.c.bf16 %v5373_v41, %v5365_v31  ;;  %v5437_v31 = vld [vmem:[#allocation16 + $0x960] sm:$0xff] }
 0x6ed   :  { %v5431_v41 = vld [vmem:[#allocation16 + $0x930] sm:$0xff]  ;;  %v5477_v11 = vld [vmem:[#allocation16 + $0xaa0] sm:$0xff] }
 0x6ee   :  { %10728 = vmatpush1.bf16.msra.mxu0 %v10727_v34  ;;  %v10999_v34 = vpack.c.bf16 %v5375_v17, %v5367_v32  ;;  %v11013_v32 = vpack.c.bf16 %v5440_v22, %v5432_v51  ;;  %v5446_v17 = vld [vmem:[#allocation16 + $0x9a8] sm:$0xff] }
 0x6ef   :  { %10984 = vmatpush1.bf16.msra.mxu1 %v10983_v24  ;;  %10730 = vmatprep.subr.bf16.mxu0 %v10729_v45  ;;  %v10745_v24 = vpack.c.bf16 %v5390_v37, %v5382_v10  ;;  %v5381_v45 = vld [vmem:[#allocation16 + $0x7a0] sm:$0xff]  ;;  %v5454_v10 = vld [vmem:[#allocation16 + $0x9e8] sm:$0xff]  ;;  %v5448_v37 = vld [vmem:[#allocation16 + $0x9b8] sm:$0xff] }
 0x6f0   :  { %10986 = vmatprep.subr.bf16.mxu1 %v10985_v63  ;;  %v5391_v63 = vld [vmem:[#allocation16 + $0x7f0] sm:$0xff]  ;;  %v10747_v55 = vpack.c.bf16 %v5389_v33, %v5381_v45 }
 0x6f1   :  { %v5447_v45 = vld [vmem:[#allocation16 + $0x9b0] sm:$0xff] }
 0x6f2   :  { %10732 = vmatpush1.bf16.msra.mxu0 %v10731_v57  ;;  %v11003_v57 = vpack.c.bf16 %v5391_v63, %v5383_v23  ;;  %v5462_v23 = vld [vmem:[#allocation16 + $0xa28] sm:$0xff]  ;;  %v5464_v63 = vld [vmem:[#allocation16 + $0xa38] sm:$0xff] }
 0x6f3   :  { %10988 = vmatpush1.bf16.msra.mxu1 %v10987_v46  ;;  %10734 = vmatprep.subr.bf16.mxu0 %v10733_v59  ;;  %v10749_v46 = vpack.c.bf16 %v5406_v30, %v5398_v53  ;;  %v5397_v59 = vld [vmem:[#allocation16 + $0x820] sm:$0xff]  ;;  %v5472_v53 = vld [vmem:[#allocation16 + $0xa78] sm:$0xff] }
 0x6f4   :  { %10990 = vmatprep.subr.bf16.mxu1 %v10989_v2  ;;  %v5407_v2 = vld [vmem:[#allocation16 + $0x870] sm:$0xff]  ;;  %v10751_v8 = vpack.c.bf16 %v5405_v61, %v5397_v59  ;;  %v11021_v59 = vpack.c.bf16 %v5472_v53, %v5464_v63 }
 0x6f5   :  { %v5471_v61 = vld [vmem:[#allocation16 + $0xa70] sm:$0xff] }
 0x6f6   :  { %10736 = vmatpush1.bf16.msra.mxu0 %v10735_v15  ;;  %v11007_v15 = vpack.c.bf16 %v5407_v2, %v5399_v44  ;;  %v5486_v44 = vld [vmem:[#allocation16 + $0xae8] sm:$0xff]  ;;  %v5480_v2 = vld [vmem:[#allocation16 + $0xab8] sm:$0xff] }
 0x6f7   :  { %10992 = vmatpush1.bf16.msra.mxu1 %v10991_v42  ;;  %10738 = vmatprep.subr.bf16.mxu0 %v10737_v16  ;;  %v5413_v42 = vld [vmem:[#allocation16 + $0x8a0] sm:$0xff] }
 0x6f8   :  { %10994 = vmatprep.subr.bf16.mxu1 %v10993_v20  ;;  %v5421_v16 = vld [vmem:[#allocation16 + $0x8e0] sm:$0xff]  ;;  %v5430_v20 = vld [vmem:[#allocation16 + $0x928] sm:$0xff] }
 0x6f9   :  { %v10755_v7 = vpack.c.bf16 %v5421_v16, %v5413_v42  ;;  %v5479_v42 = vld [vmem:[#allocation16 + $0xab0] sm:$0xff]  ;;  %v11025_v16 = vpack.c.bf16 %v5488_v35, %v5480_v2 }
 0x6fa   :  { %10740 = vmatpush1.bf16.msra.mxu0 %v10739_v1  ;;  %v11011_v1 = vpack.c.bf16 %v5423_v19, %v5415_v29  ;;  %v5487_v29 = vld [vmem:[#allocation16 + $0xaf0] sm:$0xff]  ;;  %v5502_v19 = vld [vmem:[#allocation16 + $0xb68] sm:$0xff] }
 0x6fb   :  { %10996 = vmatpush1.bf16.msra.mxu1 %v10995_v25  ;;  %10742 = vmatprep.subr.bf16.mxu0 %v10741_v5  ;;  %v10757_v25 = vpack.c.bf16 %v5438_v47, %v5430_v20  ;;  %v5429_v5 = vld [vmem:[#allocation16 + $0x920] sm:$0xff]  ;;  %v5496_v20 = vld [vmem:[#allocation16 + $0xb38] sm:$0xff]  ;;  %v11027_v51 = vpack.c.bf16 %v5487_v29, %v5479_v42  ;;  %v5558_v42 = vld [vmem:[#allocation16 + $0xd28] sm:$0xff] }
 0x6fc   :  { %10998 = vmatprep.subr.bf16.mxu1 %v10997_v0  ;;  %v5439_v0 = vld [vmem:[#allocation16 + $0x970] sm:$0xff]  ;;  %v10759_v38 = vpack.c.bf16 %v5437_v31, %v5429_v5  ;;  %v5504_v47 = vld [vmem:[#allocation16 + $0xb78] sm:$0xff] }
 0x6fd   :  { %v11015_v36 = vpack.c.bf16 %v5439_v0, %v5431_v41  ;;  %v11029_v5 = vpack.c.bf16 %v5504_v47, %v5496_v20  ;;  %v5503_v31 = vld [vmem:[#allocation16 + $0xb70] sm:$0xff]  ;;  %v5510_v41 = vld [vmem:[#allocation16 + $0xba8] sm:$0xff]  ;;  %v5512_v0 = vld [vmem:[#allocation16 + $0xbb8] sm:$0xff] }
 0x6fe   :  { %10744 = vmatpush1.bf16.msra.mxu0 %v10743_v49  ;;  %v10761_v49 = vpack.c.bf16 %v5454_v10, %v5446_v17  ;;  %v5520_v17 = vld [vmem:[#allocation16 + $0xbf8] sm:$0xff] }
 0x6ff   :  { %11000 = vmatpush1.bf16.msra.mxu1 %v10999_v34  ;;  %10746 = vmatprep.subr.bf16.mxu0 %v10745_v24  ;;  %v5445_v34 = vld [vmem:[#allocation16 + $0x9a0] sm:$0xff]  ;;  %v5560_v29 = vld [vmem:[#allocation16 + $0xd38] sm:$0xff] }
 0x700   :  { %11002 = vmatprep.subr.bf16.mxu1 %v11001_v52  ;;  %v5453_v24 = vld [vmem:[#allocation16 + $0x9e0] sm:$0xff]  ;;  %v5470_v52 = vld [vmem:[#allocation16 + $0xa68] sm:$0xff] }
 0x701   :  { %v10763_v30 = vpack.c.bf16 %v5453_v24, %v5445_v34  ;;  %v10765_v40 = vpack.c.bf16 %v5470_v52, %v5462_v23  ;;  %v11033_v34 = vpack.c.bf16 %v5520_v17, %v5512_v0  ;;  %v5519_v24 = vld [vmem:[#allocation16 + $0xbf0] sm:$0xff]  ;;  %v5536_v23 = vld [vmem:[#allocation16 + $0xc78] sm:$0xff] }
 0x702   :  { %10748 = vmatpush1.bf16.msra.mxu0 %v10747_v55  ;;  %v5461_v55 = vld [vmem:[#allocation16 + $0xa20] sm:$0xff] }
 0x703   :  { %11004 = vmatpush1.bf16.msra.mxu1 %v11003_v57  ;;  %10750 = vmatprep.subr.bf16.mxu0 %v10749_v46  ;;  %v5469_v57 = vld [vmem:[#allocation16 + $0xa60] sm:$0xff]  ;;  %v5463_v46 = vld [vmem:[#allocation16 + $0xa30] sm:$0xff] }
 0x704   :  { %11006 = vmatprep.subr.bf16.mxu1 %v11005_v62  ;;  %v5478_v62 = vld [vmem:[#allocation16 + $0xaa8] sm:$0xff]  ;;  %v10767_v3 = vpack.c.bf16 %v5469_v57, %v5461_v55  ;;  %v5535_v57 = vld [vmem:[#allocation16 + $0xc70] sm:$0xff] }
 0x705   :  { %6836 = vmatmul.mubr.f32.vlgmr.msra.gmra.mrb[14].mxu0 %v12173_v26  ;;  %v10769_v28 = vpack.c.bf16 %v5486_v44, %v5478_v62  ;;  %v5552_v62 = vld [vmem:[#allocation16 + $0xcf8] sm:$0xff] }
 0x706   :  { %7120 = vmatmul.mubr.f32.vlgmr.msra.gmra.mrb[14].mxu1 %v12173_v26  ;;  %10752 = vmatpush1.bf16.msra.mxu0 %v10751_v8  ;;  %v5456_v26 = vld [vmem:[#allocation16 + $0x9f8] sm:$0xff]  ;;  %v11023_v8 = vpack.c.bf16 %v5471_v61, %v5463_v46  ;;  %v5542_v46 = vld [vmem:[#allocation16 + $0xca8] sm:$0xff] }
 0x707   :  { %6906 = vmatprep.mubr.f32.mxu0 %v12175_v13  ;;  %11008 = vmatpush1.bf16.msra.mxu1 %v11007_v15  ;;  %v11017_v33 = vpack.c.bf16 %v5456_v26, %v5448_v37  ;;  %v5485_v15 = vld [vmem:[#allocation16 + $0xae0] sm:$0xff]  ;;  %v5544_v61 = vld [vmem:[#allocation16 + $0xcb8] sm:$0xff] }
 0x708   :  { %7190 = vmatprep.mubr.f32.mxu1 %v12175_v13  ;;  %10754 = vmatprep.subr.bf16.mxu0 %v10753_v58  ;;  %v5455_v13 = vld [vmem:[#allocation16 + $0x9f0] sm:$0xff]  ;;  %v5494_v58 = vld [vmem:[#allocation16 + $0xb28] sm:$0xff] }
 0x709   :  { %11010 = vmatprep.subr.bf16.mxu1 %v11009_v21  ;;  %v11019_v54 = vpack.c.bf16 %v5455_v13, %v5447_v45  ;;  %v10771_v21 = vpack.c.bf16 %v5485_v15, %v5477_v11  ;;  %v10773_v22 = vpack.c.bf16 %v5502_v19, %v5494_v58  ;;  %v5526_v45 = vld [vmem:[#allocation16 + $0xc28] sm:$0xff]  ;;  %v5528_v13 = vld [vmem:[#allocation16 + $0xc38] sm:$0xff]  ;;  %v11041_v11 = vpack.c.bf16 %v5552_v62, %v5544_v61  ;;  %v5551_v15 = vld [vmem:[#allocation16 + $0xcf0] sm:$0xff] }
 0x70a   :  { %10756 = vmatpush1.bf16.msra.mxu0 %v10755_v7  ;;  %v5493_v7 = vld [vmem:[#allocation16 + $0xb20] sm:$0xff]  ;;  %v11037_v55 = vpack.c.bf16 %v5536_v23, %v5528_v13  ;;  %v5568_v58 = vld [vmem:[#allocation16 + $0xd78] sm:$0xff] }
 0x70b   :  { %11012 = vmatpush1.bf16.msra.mxu1 %v11011_v1  ;;  %10758 = vmatprep.subr.bf16.mxu0 %v10757_v25  ;;  %v5501_v1 = vld [vmem:[#allocation16 + $0xb60] sm:$0xff]  ;;  %v5495_v25 = vld [vmem:[#allocation16 + $0xb30] sm:$0xff] }
 0x70c   :  { %11014 = vmatprep.subr.bf16.mxu1 %v11013_v32  ;;  %v5518_v32 = vld [vmem:[#allocation16 + $0xbe8] sm:$0xff]  ;;  %v10775_v10 = vpack.c.bf16 %v5501_v1, %v5493_v7  ;;  %v11031_v37 = vpack.c.bf16 %v5503_v31, %v5495_v25  ;;  %v11045_v7 = vpack.c.bf16 %v5568_v58, %v5560_v29  ;;  %v5567_v1 = vld [vmem:[#allocation16 + $0xd70] sm:$0xff]  ;;  %v5576_v31 = vld [vmem:[#allocation16 + $0xdb8] sm:$0xff] }
 0x70d   :  { %v10777_v26 = vpack.c.bf16 %v5518_v32, %v5510_v41  ;;  %v5574_v25 = vld [vmem:[#allocation16 + $0xda8] sm:$0xff]  ;;  %v5584_v41 = vld [vmem:[#allocation16 + $0xdf8] sm:$0xff] }
 0x70e   :  { %10760 = vmatpush1.bf16.msra.mxu0 %v10759_v38  ;;  %v5509_v38 = vld [vmem:[#allocation16 + $0xba0] sm:$0xff] }
 0x70f   :  { %11016 = vmatpush1.bf16.msra.mxu1 %v11015_v36  ;;  %10762 = vmatprep.subr.bf16.mxu0 %v10761_v49  ;;  %v5517_v36 = vld [vmem:[#allocation16 + $0xbe0] sm:$0xff]  ;;  %v5511_v49 = vld [vmem:[#allocation16 + $0xbb0] sm:$0xff] }
 0x710   :  { %11018 = vmatprep.subr.bf16.mxu1 %v11017_v33  ;;  %v5534_v33 = vld [vmem:[#allocation16 + $0xc68] sm:$0xff]  ;;  %v10779_v52 = vpack.c.bf16 %v5517_v36, %v5509_v38  ;;  %v11035_v63 = vpack.c.bf16 %v5519_v24, %v5511_v49  ;;  %v11049_v38 = vpack.c.bf16 %v5584_v41, %v5576_v31  ;;  %v5583_v36 = vld [vmem:[#allocation16 + $0xdf0] sm:$0xff]  ;;  %v5592_v24 = vld [vmem:[#allocation16 + $0xe38] sm:$0xff] }
 0x711   :  { %v10781_v53 = vpack.c.bf16 %v5534_v33, %v5526_v45  ;;  %v5590_v49 = vld [vmem:[#allocation16 + $0xe28] sm:$0xff]  ;;  %v5600_v45 = vld [vmem:[#allocation16 + $0xe78] sm:$0xff] }
 0x712   :  { %10764 = vmatpush1.bf16.msra.mxu0 %v10763_v30  ;;  %v5525_v30 = vld [vmem:[#allocation16 + $0xc20] sm:$0xff] }
 0x713   :  { %11020 = vmatpush1.bf16.msra.mxu1 %v11019_v54  ;;  %10766 = vmatprep.subr.bf16.mxu0 %v10765_v40  ;;  %v5533_v54 = vld [vmem:[#allocation16 + $0xc60] sm:$0xff]  ;;  %v5527_v40 = vld [vmem:[#allocation16 + $0xc30] sm:$0xff] }
 0x714   :  { %11022 = vmatprep.subr.bf16.mxu1 %v11021_v59  ;;  %v5550_v59 = vld [vmem:[#allocation16 + $0xce8] sm:$0xff]  ;;  %v10783_v44 = vpack.c.bf16 %v5533_v54, %v5525_v30  ;;  %v11039_v2 = vpack.c.bf16 %v5535_v57, %v5527_v40  ;;  %v11053_v30 = vpack.c.bf16 %v5600_v45, %v5592_v24  ;;  %v5599_v54 = vld [vmem:[#allocation16 + $0xe70] sm:$0xff]  ;;  %v5608_v57 = vld [vmem:[#allocation16 + $0xeb8] sm:$0xff] }
 0x715   :  { %v10785_v35 = vpack.c.bf16 %v5550_v59, %v5542_v46  ;;  %v5606_v40 = vld [vmem:[#allocation16 + $0xea8] sm:$0xff]  ;;  %v5616_v46 = vld [vmem:[#allocation16 + $0xef8] sm:$0xff] }
 0x716   :  { %10768 = vmatpush1.bf16.msra.mxu0 %v10767_v3  ;;  %v5541_v3 = vld [vmem:[#allocation16 + $0xca0] sm:$0xff] }
 0x717   :  { %11024 = vmatpush1.bf16.msra.mxu1 %v11023_v8  ;;  %10770 = vmatprep.subr.bf16.mxu0 %v10769_v28  ;;  %v5549_v8 = vld [vmem:[#allocation16 + $0xce0] sm:$0xff]  ;;  %v5543_v28 = vld [vmem:[#allocation16 + $0xcb0] sm:$0xff] }
 0x718   :  { %11026 = vmatprep.subr.bf16.mxu1 %v11025_v16  ;;  %v5566_v16 = vld [vmem:[#allocation16 + $0xd68] sm:$0xff]  ;;  %v10787_v19 = vpack.c.bf16 %v5549_v8, %v5541_v3  ;;  %v11043_v20 = vpack.c.bf16 %v5551_v15, %v5543_v28  ;;  %v11057_v3 = vpack.c.bf16 %v5616_v46, %v5608_v57  ;;  %v5615_v8 = vld [vmem:[#allocation16 + $0xef0] sm:$0xff]  ;;  %v5624_v15 = vld [vmem:[#allocation16 + $0xf38] sm:$0xff] }
 0x719   :  { %v10789_v47 = vpack.c.bf16 %v5566_v16, %v5558_v42  ;;  %v5622_v28 = vld [vmem:[#allocation16 + $0xf28] sm:$0xff]  ;;  %v5632_v42 = vld [vmem:[#allocation16 + $0xf78] sm:$0xff]  ;;  %v5669_v46 = vld [vmem:[#allocation16 + $0x10a0] sm:$0xff] }
 0x71a   :  { %10772 = vmatpush1.bf16.msra.mxu0 %v10771_v21  ;;  %v5557_v21 = vld [vmem:[#allocation16 + $0xd20] sm:$0xff] }
 0x71b   :  { %11028 = vmatpush1.bf16.msra.mxu1 %v11027_v51  ;;  %10774 = vmatprep.subr.bf16.mxu0 %v10773_v22  ;;  %v5565_v51 = vld [vmem:[#allocation16 + $0xd60] sm:$0xff]  ;;  %v5559_v22 = vld [vmem:[#allocation16 + $0xd30] sm:$0xff] }
 0x71c   :  { %11030 = vmatprep.subr.bf16.mxu1 %v11029_v5  ;;  %v5582_v5 = vld [vmem:[#allocation16 + $0xde8] sm:$0xff]  ;;  %v10791_v32 = vpack.c.bf16 %v5565_v51, %v5557_v21  ;;  %v11047_v0 = vpack.c.bf16 %v5567_v1, %v5559_v22  ;;  %v11061_v21 = vpack.c.bf16 %v5632_v42, %v5624_v15  ;;  %v5631_v51 = vld [vmem:[#allocation16 + $0xf70] sm:$0xff]  ;;  %v5640_v1 = vld [vmem:[#allocation16 + $0xfb8] sm:$0xff] }
 0x71d   :  { %v10793_v17 = vpack.c.bf16 %v5582_v5, %v5574_v25  ;;  %v5638_v22 = vld [vmem:[#allocation16 + $0xfa8] sm:$0xff]  ;;  %v5648_v25 = vld [vmem:[#allocation16 + $0xff8] sm:$0xff] }
 0x71e   :  { %10776 = vmatpush1.bf16.msra.mxu0 %v10775_v10  ;;  %v5573_v10 = vld [vmem:[#allocation16 + $0xda0] sm:$0xff] }
 0x71f   :  { %11032 = vmatpush1.bf16.msra.mxu1 %v11031_v37  ;;  %10778 = vmatprep.subr.bf16.mxu0 %v10777_v26  ;;  %v5581_v37 = vld [vmem:[#allocation16 + $0xde0] sm:$0xff]  ;;  %v5575_v26 = vld [vmem:[#allocation16 + $0xdb0] sm:$0xff] }
 0x720   :  { %11034 = vmatprep.subr.bf16.mxu1 %v11033_v34  ;;  %v5598_v34 = vld [vmem:[#allocation16 + $0xe68] sm:$0xff]  ;;  %v10795_v33 = vpack.c.bf16 %v5581_v37, %v5573_v10  ;;  %v11051_v13 = vpack.c.bf16 %v5583_v36, %v5575_v26  ;;  %v11065_v10 = vpack.c.bf16 %v5648_v25, %v5640_v1  ;;  %v5647_v37 = vld [vmem:[#allocation16 + $0xff0] sm:$0xff]  ;;  %v5656_v36 = vld [vmem:[#allocation16 + $0x1038] sm:$0xff] }
 0x721   :  { %v10797_v23 = vpack.c.bf16 %v5598_v34, %v5590_v49  ;;  %v5654_v26 = vld [vmem:[#allocation16 + $0x1028] sm:$0xff]  ;;  %v5664_v49 = vld [vmem:[#allocation16 + $0x1078] sm:$0xff]  ;;  %v5701_v25 = vld [vmem:[#allocation16 + $0x11a0] sm:$0xff] }
 0x722   :  { %10780 = vmatpush1.bf16.msra.mxu0 %v10779_v52  ;;  %v5589_v52 = vld [vmem:[#allocation16 + $0xe20] sm:$0xff] }
 0x723   :  { %11036 = vmatpush1.bf16.msra.mxu1 %v11035_v63  ;;  %10782 = vmatprep.subr.bf16.mxu0 %v10781_v53  ;;  %v5597_v63 = vld [vmem:[#allocation16 + $0xe60] sm:$0xff]  ;;  %v5591_v53 = vld [vmem:[#allocation16 + $0xe30] sm:$0xff] }
 0x724   :  { %11038 = vmatprep.subr.bf16.mxu1 %v11037_v55  ;;  %v5614_v55 = vld [vmem:[#allocation16 + $0xee8] sm:$0xff]  ;;  %v10799_v59 = vpack.c.bf16 %v5597_v63, %v5589_v52  ;;  %v11055_v61 = vpack.c.bf16 %v5599_v54, %v5591_v53  ;;  %v5655_v52 = vld [vmem:[#allocation16 + $0x1030] sm:$0xff] }
 0x725   :  { %v10801_v62 = vpack.c.bf16 %v5614_v55, %v5606_v40  ;;  %v5663_v63 = vld [vmem:[#allocation16 + $0x1070] sm:$0xff]  ;;  %v5670_v53 = vld [vmem:[#allocation16 + $0x10a8] sm:$0xff]  ;;  %v5672_v40 = vld [vmem:[#allocation16 + $0x10b8] sm:$0xff] }
 0x726   :  { %10784 = vmatpush1.bf16.msra.mxu0 %v10783_v44  ;;  %v5605_v44 = vld [vmem:[#allocation16 + $0xea0] sm:$0xff]  ;;  %v5680_v55 = vld [vmem:[#allocation16 + $0x10f8] sm:$0xff]  ;;  %v11071_v57 = vpack.c.bf16 %v5663_v63, %v5655_v52 }
 0x727   :  { %11040 = vmatpush1.bf16.msra.mxu1 %v11039_v2  ;;  %10786 = vmatprep.subr.bf16.mxu0 %v10785_v35  ;;  %v5613_v2 = vld [vmem:[#allocation16 + $0xee0] sm:$0xff]  ;;  %v5607_v35 = vld [vmem:[#allocation16 + $0xeb0] sm:$0xff]  ;;  %v5744_v52 = vld [vmem:[#allocation16 + $0x12f8] sm:$0xff] }
 0x728   :  { %11042 = vmatprep.subr.bf16.mxu1 %v11041_v11  ;;  %v5630_v11 = vld [vmem:[#allocation16 + $0xf68] sm:$0xff]  ;;  %v10803_v16 = vpack.c.bf16 %v5613_v2, %v5605_v44  ;;  %v11059_v29 = vpack.c.bf16 %v5615_v8, %v5607_v35  ;;  %v5679_v44 = vld [vmem:[#allocation16 + $0x10f0] sm:$0xff]  ;;  %v5688_v8 = vld [vmem:[#allocation16 + $0x1138] sm:$0xff] }
 0x729   :  { %v10805_v58 = vpack.c.bf16 %v5630_v11, %v5622_v28  ;;  %v5686_v2 = vld [vmem:[#allocation16 + $0x1128] sm:$0xff]  ;;  %v5696_v28 = vld [vmem:[#allocation16 + $0x1178] sm:$0xff] }
 0x72a   :  { %10788 = vmatpush1.bf16.msra.mxu0 %v10787_v19  ;;  %v5621_v19 = vld [vmem:[#allocation16 + $0xf20] sm:$0xff]  ;;  %v5694_v35 = vld [vmem:[#allocation16 + $0x1168] sm:$0xff] }
 0x72b   :  { %11044 = vmatpush1.bf16.msra.mxu1 %v11043_v20  ;;  %10790 = vmatprep.subr.bf16.mxu0 %v10789_v47  ;;  %v5629_v20 = vld [vmem:[#allocation16 + $0xf60] sm:$0xff]  ;;  %v5623_v47 = vld [vmem:[#allocation16 + $0xf30] sm:$0xff]  ;;  %v10821_v42 = vpack.c.bf16 %v5694_v35, %v5686_v2 }
 0x72c   :  { %11046 = vmatprep.subr.bf16.mxu1 %v11045_v7  ;;  %v5646_v7 = vld [vmem:[#allocation16 + $0xfe8] sm:$0xff]  ;;  %v10807_v5 = vpack.c.bf16 %v5629_v20, %v5621_v19  ;;  %v11063_v31 = vpack.c.bf16 %v5631_v51, %v5623_v47  ;;  %v11077_v19 = vpack.c.bf16 %v5696_v28, %v5688_v8  ;;  %v5695_v20 = vld [vmem:[#allocation16 + $0x1170] sm:$0xff]  ;;  %v5704_v51 = vld [vmem:[#allocation16 + $0x11b8] sm:$0xff] }
 0x72d   :  { %v10809_v41 = vpack.c.bf16 %v5646_v7, %v5638_v22  ;;  %v5702_v47 = vld [vmem:[#allocation16 + $0x11a8] sm:$0xff]  ;;  %v5749_v8 = vld [vmem:[#allocation16 + $0x1320] sm:$0xff] }
 0x72e   :  { %10792 = vmatpush1.bf16.msra.mxu0 %v10791_v32  ;;  %v5637_v32 = vld [vmem:[#allocation16 + $0xfa0] sm:$0xff] }
 0x72f   :  { %11048 = vmatpush1.bf16.msra.mxu1 %v11047_v0  ;;  %10794 = vmatprep.subr.bf16.mxu0 %v10793_v17  ;;  %v5645_v0 = vld [vmem:[#allocation16 + $0xfe0] sm:$0xff]  ;;  %v5639_v17 = vld [vmem:[#allocation16 + $0xfb0] sm:$0xff] }
 0x730   :  { %11050 = vmatprep.subr.bf16.mxu1 %v11049_v38  ;;  %v5662_v38 = vld [vmem:[#allocation16 + $0x1068] sm:$0xff]  ;;  %v10811_v34 = vpack.c.bf16 %v5645_v0, %v5637_v32  ;;  %v11067_v24 = vpack.c.bf16 %v5647_v37, %v5639_v17  ;;  %v5720_v17 = vld [vmem:[#allocation16 + $0x1238] sm:$0xff]  ;;  %v5757_v28 = vld [vmem:[#allocation16 + $0x1360] sm:$0xff] }
 0x731   :  { %v10813_v45 = vpack.c.bf16 %v5662_v38, %v5654_v26  ;;  %v5718_v32 = vld [vmem:[#allocation16 + $0x1228] sm:$0xff] }
 0x732   :  { %10796 = vmatpush1.bf16.msra.mxu0 %v10795_v33  ;;  %v5653_v33 = vld [vmem:[#allocation16 + $0x1020] sm:$0xff]  ;;  %v5726_v0 = vld [vmem:[#allocation16 + $0x1268] sm:$0xff] }
 0x733   :  { %11052 = vmatpush1.bf16.msra.mxu1 %v11051_v13  ;;  %10798 = vmatprep.subr.bf16.mxu0 %v10797_v23  ;;  %v5661_v13 = vld [vmem:[#allocation16 + $0x1060] sm:$0xff]  ;;  %v11069_v23 = vpack.c.bf16 %v5664_v49, %v5656_v36  ;;  %v10829_v38 = vpack.c.bf16 %v5726_v0, %v5718_v32 }
 0x734   :  { %11054 = vmatprep.subr.bf16.mxu1 %v11053_v30  ;;  %v5678_v30 = vld [vmem:[#allocation16 + $0x10e8] sm:$0xff]  ;;  %v10815_v54 = vpack.c.bf16 %v5661_v13, %v5653_v33  ;;  %v5717_v36 = vld [vmem:[#allocation16 + $0x1220] sm:$0xff] }
 0x735   :  { %v5725_v49 = vld [vmem:[#allocation16 + $0x1260] sm:$0xff]  ;;  %v5734_v33 = vld [vmem:[#allocation16 + $0x12a8] sm:$0xff] }
 0x736   :  { %10800 = vmatpush1.bf16.msra.mxu0 %v10799_v59  ;;  %v5677_v59 = vld [vmem:[#allocation16 + $0x10e0] sm:$0xff]  ;;  %v5742_v13 = vld [vmem:[#allocation16 + $0x12e8] sm:$0xff]  ;;  %v10831_v63 = vpack.c.bf16 %v5725_v49, %v5717_v36 }
 0x737   :  { %11056 = vmatpush1.bf16.msra.mxu1 %v11055_v61  ;;  %10802 = vmatprep.subr.bf16.mxu0 %v10801_v62  ;;  %v5671_v61 = vld [vmem:[#allocation16 + $0x10b0] sm:$0xff]  ;;  %v10817_v62 = vpack.c.bf16 %v5678_v30, %v5670_v53  ;;  %v10819_v11 = vpack.c.bf16 %v5677_v59, %v5669_v46  ;;  %v10833_v30 = vpack.c.bf16 %v5742_v13, %v5734_v33  ;;  %v5750_v59 = vld [vmem:[#allocation16 + $0x1328] sm:$0xff] }
 0x738   :  { %11058 = vmatprep.subr.bf16.mxu1 %v11057_v3  ;;  %v11073_v3 = vpack.c.bf16 %v5680_v55, %v5672_v40  ;;  %v11075_v15 = vpack.c.bf16 %v5679_v44, %v5671_v61  ;;  %v5741_v40 = vld [vmem:[#allocation16 + $0x12e0] sm:$0xff]  ;;  %v5735_v55 = vld [vmem:[#allocation16 + $0x12b0] sm:$0xff]  ;;  %v5758_v61 = vld [vmem:[#allocation16 + $0x1368] sm:$0xff] }
 0x739   :  { %v5743_v46 = vld [vmem:[#allocation16 + $0x12f0] sm:$0xff]  ;;  %v5760_v44 = vld [vmem:[#allocation16 + $0x1378] sm:$0xff]  ;;  %v5798_v36 = vld [vmem:[#allocation16 + $0x14a8] sm:$0xff] }
 0x73a   :  { %10804 = vmatpush1.bf16.msra.mxu0 %v10803_v16  ;;  %v5685_v16 = vld [vmem:[#allocation16 + $0x1120] sm:$0xff]  ;;  %v11091_v35 = vpack.c.bf16 %v5743_v46, %v5735_v55  ;;  %v5806_v49 = vld [vmem:[#allocation16 + $0x14e8] sm:$0xff]  ;;  %v5816_v55 = vld [vmem:[#allocation16 + $0x1538] sm:$0xff] }
 0x73b   :  { %11060 = vmatpush1.bf16.msra.mxu1 %v11059_v29  ;;  %10806 = vmatprep.subr.bf16.mxu0 %v10805_v58  ;;  %v5693_v29 = vld [vmem:[#allocation16 + $0x1160] sm:$0xff]  ;;  %v5687_v58 = vld [vmem:[#allocation16 + $0x1130] sm:$0xff]  ;;  %v10849_v13 = vpack.c.bf16 %v5806_v49, %v5798_v36 }
 0x73c   :  { %11062 = vmatprep.subr.bf16.mxu1 %v11061_v21  ;;  %v5710_v21 = vld [vmem:[#allocation16 + $0x11e8] sm:$0xff]  ;;  %v10823_v22 = vpack.c.bf16 %v5693_v29, %v5685_v16  ;;  %v11079_v7 = vpack.c.bf16 %v5695_v20, %v5687_v58  ;;  %v5768_v58 = vld [vmem:[#allocation16 + $0x13b8] sm:$0xff]  ;;  %v10839_v20 = vpack.c.bf16 %v5757_v28, %v5749_v8 }
 0x73d   :  { %v10825_v1 = vpack.c.bf16 %v5710_v21, %v5702_v47  ;;  %v5766_v16 = vld [vmem:[#allocation16 + $0x13a8] sm:$0xff] }
 0x73e   :  { %10808 = vmatpush1.bf16.msra.mxu0 %v10807_v5  ;;  %v5709_v5 = vld [vmem:[#allocation16 + $0x11e0] sm:$0xff]  ;;  %v5774_v29 = vld [vmem:[#allocation16 + $0x13e8] sm:$0xff] }
 0x73f   :  { %11064 = vmatpush1.bf16.msra.mxu1 %v11063_v31  ;;  %10810 = vmatprep.subr.bf16.mxu0 %v10809_v41  ;;  %v5703_v31 = vld [vmem:[#allocation16 + $0x11b0] sm:$0xff]  ;;  %v10827_v37 = vpack.c.bf16 %v5709_v5, %v5701_v25  ;;  %v10841_v21 = vpack.c.bf16 %v5774_v29, %v5766_v16  ;;  %v5782_v25 = vld [vmem:[#allocation16 + $0x1428] sm:$0xff] }
 0x740   :  { %11066 = vmatprep.subr.bf16.mxu1 %v11065_v10  ;;  %v5728_v10 = vld [vmem:[#allocation16 + $0x1278] sm:$0xff]  ;;  %v5790_v5 = vld [vmem:[#allocation16 + $0x1468] sm:$0xff] }
 0x741   :  { %v10845_v0 = vpack.c.bf16 %v5790_v5, %v5782_v25  ;;  %v5830_v8 = vld [vmem:[#allocation16 + $0x15a8] sm:$0xff] }
 0x742   :  { %10812 = vmatpush1.bf16.msra.mxu0 %v10811_v34  ;;  %v5719_v34 = vld [vmem:[#allocation16 + $0x1230] sm:$0xff]  ;;  %v5838_v28 = vld [vmem:[#allocation16 + $0x15e8] sm:$0xff] }
 0x743   :  { %11068 = vmatpush1.bf16.msra.mxu1 %v11067_v24  ;;  %10814 = vmatprep.subr.bf16.mxu0 %v10813_v45  ;;  %v11085_v24 = vpack.c.bf16 %v5728_v10, %v5720_v17  ;;  %v5727_v45 = vld [vmem:[#allocation16 + $0x1270] sm:$0xff]  ;;  %v5781_v17 = vld [vmem:[#allocation16 + $0x1420] sm:$0xff]  ;;  %v10857_v29 = vpack.c.bf16 %v5838_v28, %v5830_v8 }
 0x744   :  { %11070 = vmatprep.subr.bf16.mxu1 %v11069_v23  ;;  %v5736_v23 = vld [vmem:[#allocation16 + $0x12b8] sm:$0xff]  ;;  %v11087_v53 = vpack.c.bf16 %v5727_v45, %v5719_v34  ;;  %v5789_v10 = vld [vmem:[#allocation16 + $0x1460] sm:$0xff] }
 0x745   :  { %6907 = vmatmul.mubr.f32.vlgmr.msra.gmra.mrb[14].mxu0 %v12186_v6  ;;  %v5800_v34 = vld [vmem:[#allocation16 + $0x14b8] sm:$0xff]  ;;  %v10847_v45 = vpack.c.bf16 %v5789_v10, %v5781_v17  ;;  %v5862_v17 = vld [vmem:[#allocation16 + $0x16a8] sm:$0xff] }
 0x746   :  { %7191 = vmatmul.mubr.f32.vlgmr.msra.gmra.mrb[14].mxu1 %v12186_v6  ;;  %10816 = vmatpush1.bf16.msra.mxu0 %v10815_v54  ;;  %v5712_v6 = vld [vmem:[#allocation16 + $0x11f8] sm:$0xff]  ;;  %v5733_v54 = vld [vmem:[#allocation16 + $0x12a0] sm:$0xff]  ;;  %v5870_v10 = vld [vmem:[#allocation16 + $0x16e8] sm:$0xff] }
 0x747   :  { %6977 = vmatprep.mubr.f32.mxu0 %v12198_v14  ;;  %11072 = vmatpush1.bf16.msra.mxu1 %v11071_v57  ;;  %v11081_v41 = vpack.c.bf16 %v5712_v6, %v5704_v51  ;;  %v11089_v57 = vpack.c.bf16 %v5744_v52, %v5736_v23  ;;  %v10835_v2 = vpack.c.bf16 %v5741_v40, %v5733_v54  ;;  %v5765_v51 = vld [vmem:[#allocation16 + $0x13a0] sm:$0xff]  ;;  %v5814_v54 = vld [vmem:[#allocation16 + $0x1528] sm:$0xff] }
 0x748   :  { %7261 = vmatprep.mubr.f32.mxu1 %v12198_v14  ;;  %10818 = vmatprep.subr.bf16.mxu0 %v10817_v62  ;;  %v5711_v14 = vld [vmem:[#allocation16 + $0x11f0] sm:$0xff]  ;;  %v5752_v62 = vld [vmem:[#allocation16 + $0x1338] sm:$0xff]  ;;  %v5773_v6 = vld [vmem:[#allocation16 + $0x13e0] sm:$0xff]  ;;  %v10865_v49 = vpack.c.bf16 %v5870_v10, %v5862_v17 }
 0x749   :  { %11074 = vmatprep.subr.bf16.mxu1 %v11073_v3  ;;  %v11083_v26 = vpack.c.bf16 %v5711_v14, %v5703_v31  ;;  %v10837_v3 = vpack.c.bf16 %v5758_v61, %v5750_v59  ;;  %v5784_v31 = vld [vmem:[#allocation16 + $0x1438] sm:$0xff]  ;;  %v10843_v14 = vpack.c.bf16 %v5773_v6, %v5765_v51  ;;  %v5797_v23 = vld [vmem:[#allocation16 + $0x14a0] sm:$0xff]  ;;  %v5822_v40 = vld [vmem:[#allocation16 + $0x1568] sm:$0xff] }
 0x74a   :  { %10820 = vmatpush1.bf16.msra.mxu0 %v10819_v11  ;;  %v5751_v11 = vld [vmem:[#allocation16 + $0x1330] sm:$0xff]  ;;  %v5805_v52 = vld [vmem:[#allocation16 + $0x14e0] sm:$0xff]  ;;  %v10853_v61 = vpack.c.bf16 %v5822_v40, %v5814_v54  ;;  %v5846_v51 = vld [vmem:[#allocation16 + $0x1628] sm:$0xff] }
 0x74b   :  { %11076 = vmatpush1.bf16.msra.mxu1 %v11075_v15  ;;  %10822 = vmatprep.subr.bf16.mxu0 %v10821_v42  ;;  %v11093_v15 = vpack.c.bf16 %v5760_v44, %v5752_v62  ;;  %v5759_v42 = vld [vmem:[#allocation16 + $0x1370] sm:$0xff]  ;;  %v10851_v46 = vpack.c.bf16 %v5805_v52, %v5797_v23  ;;  %v5813_v62 = vld [vmem:[#allocation16 + $0x1520] sm:$0xff]  ;;  %v5854_v6 = vld [vmem:[#allocation16 + $0x1668] sm:$0xff] }
 0x74c   :  { %11078 = vmatprep.subr.bf16.mxu1 %v11077_v19  ;;  %v5776_v19 = vld [vmem:[#allocation16 + $0x13f8] sm:$0xff]  ;;  %v11095_v47 = vpack.c.bf16 %v5759_v42, %v5751_v11  ;;  %v5821_v44 = vld [vmem:[#allocation16 + $0x1560] sm:$0xff]  ;;  %v10861_v5 = vpack.c.bf16 %v5854_v6, %v5846_v51  ;;  %v5878_v23 = vld [vmem:[#allocation16 + $0x1728] sm:$0xff] }
 0x74d   :  { %v5832_v11 = vld [vmem:[#allocation16 + $0x15b8] sm:$0xff]  ;;  %v10855_v42 = vpack.c.bf16 %v5821_v44, %v5813_v62  ;;  %v5886_v52 = vld [vmem:[#allocation16 + $0x1768] sm:$0xff]  ;;  %v5925_v10 = vld [vmem:[#allocation16 + $0x18a0] sm:$0xff] }
 0x74e   :  { %10824 = vmatpush1.bf16.msra.mxu0 %v10823_v22  ;;  %v5767_v22 = vld [vmem:[#allocation16 + $0x13b0] sm:$0xff]  ;;  %v10869_v40 = vpack.c.bf16 %v5886_v52, %v5878_v23  ;;  %v5894_v62 = vld [vmem:[#allocation16 + $0x17a8] sm:$0xff] }
 0x74f   :  { %11080 = vmatpush1.bf16.msra.mxu1 %v11079_v7  ;;  %10826 = vmatprep.subr.bf16.mxu0 %v10825_v1  ;;  %v11097_v7 = vpack.c.bf16 %v5776_v19, %v5768_v58  ;;  %v5775_v1 = vld [vmem:[#allocation16 + $0x13f0] sm:$0xff]  ;;  %v5829_v58 = vld [vmem:[#allocation16 + $0x15a0] sm:$0xff]  ;;  %v5902_v44 = vld [vmem:[#allocation16 + $0x17e8] sm:$0xff] }
 0x750   :  { %11082 = vmatprep.subr.bf16.mxu1 %v11081_v41  ;;  %v5792_v41 = vld [vmem:[#allocation16 + $0x1478] sm:$0xff]  ;;  %v11099_v32 = vpack.c.bf16 %v5775_v1, %v5767_v22  ;;  %v5837_v19 = vld [vmem:[#allocation16 + $0x15e0] sm:$0xff]  ;;  %v10873_v28 = vpack.c.bf16 %v5902_v44, %v5894_v62 }
 0x751   :  { %v5848_v22 = vld [vmem:[#allocation16 + $0x1638] sm:$0xff]  ;;  %v10859_v1 = vpack.c.bf16 %v5837_v19, %v5829_v58  ;;  %v5910_v58 = vld [vmem:[#allocation16 + $0x1828] sm:$0xff]  ;;  %v5957_v44 = vld [vmem:[#allocation16 + $0x19a0] sm:$0xff] }
 0x752   :  { %10828 = vmatpush1.bf16.msra.mxu0 %v10827_v37  ;;  %v5783_v37 = vld [vmem:[#allocation16 + $0x1430] sm:$0xff]  ;;  %v5918_v19 = vld [vmem:[#allocation16 + $0x1868] sm:$0xff] }
 0x753   :  { %11084 = vmatpush1.bf16.msra.mxu1 %v11083_v26  ;;  %10830 = vmatprep.subr.bf16.mxu0 %v10829_v38  ;;  %v11101_v26 = vpack.c.bf16 %v5792_v41, %v5784_v31  ;;  %v5791_v38 = vld [vmem:[#allocation16 + $0x1470] sm:$0xff]  ;;  %v5845_v31 = vld [vmem:[#allocation16 + $0x1620] sm:$0xff]  ;;  %v10877_v6 = vpack.c.bf16 %v5918_v19, %v5910_v58 }
 0x754   :  { %11086 = vmatprep.subr.bf16.mxu1 %v11085_v24  ;;  %v5808_v24 = vld [vmem:[#allocation16 + $0x14f8] sm:$0xff]  ;;  %v11103_v33 = vpack.c.bf16 %v5791_v38, %v5783_v37  ;;  %v5853_v41 = vld [vmem:[#allocation16 + $0x1660] sm:$0xff] }
 0x755   :  { %v5864_v37 = vld [vmem:[#allocation16 + $0x16b8] sm:$0xff]  ;;  %v10863_v38 = vpack.c.bf16 %v5853_v41, %v5845_v31  ;;  %v5926_v31 = vld [vmem:[#allocation16 + $0x18a8] sm:$0xff]  ;;  %v5973_v58 = vld [vmem:[#allocation16 + $0x1a20] sm:$0xff] }
 0x756   :  { %10832 = vmatpush1.bf16.msra.mxu0 %v10831_v63  ;;  %v5799_v63 = vld [vmem:[#allocation16 + $0x14b0] sm:$0xff]  ;;  %v5934_v41 = vld [vmem:[#allocation16 + $0x18e8] sm:$0xff]  ;;  %v5981_v19 = vld [vmem:[#allocation16 + $0x1a60] sm:$0xff] }
 0x757   :  { %11088 = vmatpush1.bf16.msra.mxu1 %v11087_v53  ;;  %10834 = vmatprep.subr.bf16.mxu0 %v10833_v30  ;;  %v11105_v53 = vpack.c.bf16 %v5808_v24, %v5800_v34  ;;  %v5807_v30 = vld [vmem:[#allocation16 + $0x14f0] sm:$0xff]  ;;  %v5861_v34 = vld [vmem:[#allocation16 + $0x16a0] sm:$0xff] }
 0x758   :  { %11090 = vmatprep.subr.bf16.mxu1 %v11089_v57  ;;  %v5824_v57 = vld [vmem:[#allocation16 + $0x1578] sm:$0xff]  ;;  %v11107_v59 = vpack.c.bf16 %v5807_v30, %v5799_v63  ;;  %v5869_v24 = vld [vmem:[#allocation16 + $0x16e0] sm:$0xff] }
 0x759   :  { %v5880_v63 = vld [vmem:[#allocation16 + $0x1738] sm:$0xff]  ;;  %v10867_v30 = vpack.c.bf16 %v5869_v24, %v5861_v34  ;;  %v5950_v34 = vld [vmem:[#allocation16 + $0x1968] sm:$0xff] }
 0x75a   :  { %10836 = vmatpush1.bf16.msra.mxu0 %v10835_v2  ;;  %v5815_v2 = vld [vmem:[#allocation16 + $0x1530] sm:$0xff] }
 0x75b   :  { %11092 = vmatpush1.bf16.msra.mxu1 %v11091_v35  ;;  %10838 = vmatprep.subr.bf16.mxu0 %v10837_v3  ;;  %v11109_v35 = vpack.c.bf16 %v5824_v57, %v5816_v55  ;;  %v5823_v3 = vld [vmem:[#allocation16 + $0x1570] sm:$0xff]  ;;  %v5877_v55 = vld [vmem:[#allocation16 + $0x1720] sm:$0xff] }
 0x75c   :  { %11094 = vmatprep.subr.bf16.mxu1 %v11093_v15  ;;  %v5840_v15 = vld [vmem:[#allocation16 + $0x15f8] sm:$0xff]  ;;  %v11111_v16 = vpack.c.bf16 %v5823_v3, %v5815_v2  ;;  %v5885_v57 = vld [vmem:[#allocation16 + $0x1760] sm:$0xff] }
 0x75d   :  { %v5896_v2 = vld [vmem:[#allocation16 + $0x17b8] sm:$0xff]  ;;  %v10871_v3 = vpack.c.bf16 %v5885_v57, %v5877_v55  ;;  %v5958_v55 = vld [vmem:[#allocation16 + $0x19a8] sm:$0xff] }
 0x75e   :  { %10840 = vmatpush1.bf16.msra.mxu0 %v10839_v20  ;;  %v5831_v20 = vld [vmem:[#allocation16 + $0x15b0] sm:$0xff]  ;;  %v5966_v57 = vld [vmem:[#allocation16 + $0x19e8] sm:$0xff] }
 0x75f   :  { %11096 = vmatpush1.bf16.msra.mxu1 %v11095_v47  ;;  %10842 = vmatprep.subr.bf16.mxu0 %v10841_v21  ;;  %v11113_v47 = vpack.c.bf16 %v5840_v15, %v5832_v11  ;;  %v5839_v21 = vld [vmem:[#allocation16 + $0x15f0] sm:$0xff]  ;;  %v5893_v11 = vld [vmem:[#allocation16 + $0x17a0] sm:$0xff]  ;;  %v10889_v62 = vpack.c.bf16 %v5966_v57, %v5958_v55  ;;  %v6032_v55 = vld [vmem:[#allocation16 + $0x1bf8] sm:$0xff] }
 0x760   :  { %11098 = vmatprep.subr.bf16.mxu1 %v11097_v7  ;;  %v5856_v7 = vld [vmem:[#allocation16 + $0x1678] sm:$0xff]  ;;  %v11115_v25 = vpack.c.bf16 %v5839_v21, %v5831_v20  ;;  %v5901_v15 = vld [vmem:[#allocation16 + $0x17e0] sm:$0xff] }
 0x761   :  { %v5912_v20 = vld [vmem:[#allocation16 + $0x1838] sm:$0xff]  ;;  %v10875_v21 = vpack.c.bf16 %v5901_v15, %v5893_v11 }
 0x762   :  { %10844 = vmatpush1.bf16.msra.mxu0 %v10843_v14  ;;  %v5847_v14 = vld [vmem:[#allocation16 + $0x1630] sm:$0xff]  ;;  %v5976_v11 = vld [vmem:[#allocation16 + $0x1a38] sm:$0xff] }
 0x763   :  { %11100 = vmatpush1.bf16.msra.mxu1 %v11099_v32  ;;  %10846 = vmatprep.subr.bf16.mxu0 %v10845_v0  ;;  %v11117_v32 = vpack.c.bf16 %v5856_v7, %v5848_v22  ;;  %v5855_v0 = vld [vmem:[#allocation16 + $0x1670] sm:$0xff]  ;;  %v5909_v22 = vld [vmem:[#allocation16 + $0x1820] sm:$0xff]  ;;  %v5984_v15 = vld [vmem:[#allocation16 + $0x1a78] sm:$0xff] }
 0x764   :  { %11102 = vmatprep.subr.bf16.mxu1 %v11101_v26  ;;  %v5872_v26 = vld [vmem:[#allocation16 + $0x16f8] sm:$0xff]  ;;  %v11119_v36 = vpack.c.bf16 %v5855_v0, %v5847_v14  ;;  %v5917_v7 = vld [vmem:[#allocation16 + $0x1860] sm:$0xff] }
 0x765   :  { %v10879_v14 = vpack.c.bf16 %v5917_v7, %v5909_v22  ;;  %v5936_v0 = vld [vmem:[#allocation16 + $0x18f8] sm:$0xff] }
 0x766   :  { %10848 = vmatpush1.bf16.msra.mxu0 %v10847_v45  ;;  %v5863_v45 = vld [vmem:[#allocation16 + $0x16b0] sm:$0xff]  ;;  %v5992_v22 = vld [vmem:[#allocation16 + $0x1ab8] sm:$0xff] }
 0x767   :  { %11104 = vmatpush1.bf16.msra.mxu1 %v11103_v33  ;;  %10850 = vmatprep.subr.bf16.mxu0 %v10849_v13  ;;  %v11121_v33 = vpack.c.bf16 %v5872_v26, %v5864_v37  ;;  %v5871_v13 = vld [vmem:[#allocation16 + $0x16f0] sm:$0xff]  ;;  %v5933_v37 = vld [vmem:[#allocation16 + $0x18e0] sm:$0xff]  ;;  %v6000_v7 = vld [vmem:[#allocation16 + $0x1af8] sm:$0xff] }
 0x768   :  { %11106 = vmatprep.subr.bf16.mxu1 %v11105_v53  ;;  %v5888_v53 = vld [vmem:[#allocation16 + $0x1778] sm:$0xff]  ;;  %v11123_v54 = vpack.c.bf16 %v5871_v13, %v5863_v45  ;;  %v5927_v26 = vld [vmem:[#allocation16 + $0x18b0] sm:$0xff]  ;;  %v10883_v13 = vpack.c.bf16 %v5933_v37, %v5925_v10  ;;  %v6014_v10 = vld [vmem:[#allocation16 + $0x1b68] sm:$0xff] }
 0x769   :  { %v5944_v45 = vld [vmem:[#allocation16 + $0x1938] sm:$0xff] }
 0x76a   :  { %10852 = vmatpush1.bf16.msra.mxu0 %v10851_v46  ;;  %v5879_v46 = vld [vmem:[#allocation16 + $0x1730] sm:$0xff]  ;;  %v6008_v37 = vld [vmem:[#allocation16 + $0x1b38] sm:$0xff] }
 0x76b   :  { %11108 = vmatpush1.bf16.msra.mxu1 %v11107_v59  ;;  %10854 = vmatprep.subr.bf16.mxu0 %v10853_v61  ;;  %v11125_v59 = vpack.c.bf16 %v5888_v53, %v5880_v63  ;;  %v5887_v61 = vld [vmem:[#allocation16 + $0x1770] sm:$0xff]  ;;  %v5941_v63 = vld [vmem:[#allocation16 + $0x1920] sm:$0xff] }
 0x76c   :  { %11110 = vmatprep.subr.bf16.mxu1 %v11109_v35  ;;  %v5904_v35 = vld [vmem:[#allocation16 + $0x17f8] sm:$0xff]  ;;  %v11127_v8 = vpack.c.bf16 %v5887_v61, %v5879_v46  ;;  %v5949_v53 = vld [vmem:[#allocation16 + $0x1960] sm:$0xff] }
 0x76d   :  { %v5960_v46 = vld [vmem:[#allocation16 + $0x19b8] sm:$0xff] }
 0x76e   :  { %10856 = vmatpush1.bf16.msra.mxu0 %v10855_v42  ;;  %v5895_v42 = vld [vmem:[#allocation16 + $0x17b0] sm:$0xff] }
 0x76f   :  { %11112 = vmatpush1.bf16.msra.mxu1 %v11111_v16  ;;  %10858 = vmatprep.subr.bf16.mxu0 %v10857_v29  ;;  %v11129_v16 = vpack.c.bf16 %v5904_v35, %v5896_v2  ;;  %v5903_v29 = vld [vmem:[#allocation16 + $0x17f0] sm:$0xff]  ;;  %v5965_v2 = vld [vmem:[#allocation16 + $0x19e0] sm:$0xff] }
 0x770   :  { %11114 = vmatprep.subr.bf16.mxu1 %v11113_v47  ;;  %v5920_v47 = vld [vmem:[#allocation16 + $0x1878] sm:$0xff]  ;;  %v11131_v51 = vpack.c.bf16 %v5903_v29, %v5895_v42  ;;  %v5959_v35 = vld [vmem:[#allocation16 + $0x19b0] sm:$0xff]  ;;  %v10891_v42 = vpack.c.bf16 %v5965_v2, %v5957_v44 }
 0x771   :  { %v6031_v2 = vld [vmem:[#allocation16 + $0x1bf0] sm:$0xff] }
 0x772   :  { %10860 = vmatpush1.bf16.msra.mxu0 %v10859_v1  ;;  %v11133_v1 = vpack.c.bf16 %v5920_v47, %v5912_v20  ;;  %v5975_v20 = vld [vmem:[#allocation16 + $0x1a30] sm:$0xff]  ;;  %v11149_v47 = vpack.c.bf16 %v5984_v15, %v5976_v11 }
 0x773   :  { %11116 = vmatpush1.bf16.msra.mxu1 %v11115_v25  ;;  %10862 = vmatprep.subr.bf16.mxu0 %v10861_v5  ;;  %v5911_v25 = vld [vmem:[#allocation16 + $0x1830] sm:$0xff] }
 0x774   :  { %11118 = vmatprep.subr.bf16.mxu1 %v11117_v32  ;;  %v5919_v5 = vld [vmem:[#allocation16 + $0x1870] sm:$0xff]  ;;  %v5928_v32 = vld [vmem:[#allocation16 + $0x18b8] sm:$0xff] }
 0x775   :  { %v11135_v17 = vpack.c.bf16 %v5919_v5, %v5911_v25  ;;  %v11137_v24 = vpack.c.bf16 %v5936_v0, %v5928_v32  ;;  %v11153_v32 = vpack.c.bf16 %v6000_v7, %v5992_v22  ;;  %v5999_v0 = vld [vmem:[#allocation16 + $0x1af0] sm:$0xff] }
 0x776   :  { %10864 = vmatpush1.bf16.msra.mxu0 %v10863_v38  ;;  %v10881_v38 = vpack.c.bf16 %v5934_v41, %v5926_v31  ;;  %v5989_v31 = vld [vmem:[#allocation16 + $0x1aa0] sm:$0xff] }
 0x777   :  { %11120 = vmatpush1.bf16.msra.mxu1 %v11119_v36  ;;  %10866 = vmatprep.subr.bf16.mxu0 %v10865_v49  ;;  %v5935_v36 = vld [vmem:[#allocation16 + $0x18f0] sm:$0xff]  ;;  %v5942_v49 = vld [vmem:[#allocation16 + $0x1928] sm:$0xff]  ;;  %v5997_v41 = vld [vmem:[#allocation16 + $0x1ae0] sm:$0xff] }
 0x778   :  { %11122 = vmatprep.subr.bf16.mxu1 %v11121_v33  ;;  %v5952_v33 = vld [vmem:[#allocation16 + $0x1978] sm:$0xff]  ;;  %v11139_v23 = vpack.c.bf16 %v5935_v36, %v5927_v26  ;;  %v10885_v52 = vpack.c.bf16 %v5950_v34, %v5942_v49  ;;  %v6005_v34 = vld [vmem:[#allocation16 + $0x1b20] sm:$0xff] }
 0x779   :  { %v6016_v26 = vld [vmem:[#allocation16 + $0x1b78] sm:$0xff] }
 0x77a   :  { %10868 = vmatpush1.bf16.msra.mxu0 %v10867_v30  ;;  %v5943_v30 = vld [vmem:[#allocation16 + $0x1930] sm:$0xff] }
 0x77b   :  { %11124 = vmatpush1.bf16.msra.mxu1 %v11123_v54  ;;  %10870 = vmatprep.subr.bf16.mxu0 %v10869_v40  ;;  %v11141_v54 = vpack.c.bf16 %v5952_v33, %v5944_v45  ;;  %v5951_v40 = vld [vmem:[#allocation16 + $0x1970] sm:$0xff] }
 0x77c   :  { %11126 = vmatprep.subr.bf16.mxu1 %v11125_v59  ;;  %v10887_v59 = vpack.c.bf16 %v5949_v53, %v5941_v63  ;;  %v11143_v61 = vpack.c.bf16 %v5951_v40, %v5943_v30  ;;  %v6007_v45 = vld [vmem:[#allocation16 + $0x1b30] sm:$0xff]  ;;  %v6022_v63 = vld [vmem:[#allocation16 + $0x1ba8] sm:$0xff]  ;;  %v6024_v40 = vld [vmem:[#allocation16 + $0x1bb8] sm:$0xff] }
 0x77d   :  { %v6030_v53 = vld [vmem:[#allocation16 + $0x1be8] sm:$0xff]  ;;  %v11161_v44 = vpack.c.bf16 %v6032_v55, %v6024_v40 }
 0x77e   :  { %10872 = vmatpush1.bf16.msra.mxu0 %v10871_v3 }
 0x77f   :  { %11128 = vmatpush1.bf16.msra.mxu1 %v11127_v8  ;;  %10874 = vmatprep.subr.bf16.mxu0 %v10873_v28  ;;  %v5974_v8 = vld [vmem:[#allocation16 + $0x1a28] sm:$0xff] }
 0x780   :  { %11130 = vmatprep.subr.bf16.mxu1 %v11129_v16  ;;  %v5982_v28 = vld [vmem:[#allocation16 + $0x1a68] sm:$0xff] }
 0x781   :  { %v10893_v29 = vpack.c.bf16 %v5982_v28, %v5974_v8  ;;  %v6048_v8 = vld [vmem:[#allocation16 + $0x1c78] sm:$0xff] }
 0x782   :  { %10876 = vmatpush1.bf16.msra.mxu0 %v10875_v21  ;;  %v5983_v21 = vld [vmem:[#allocation16 + $0x1a70] sm:$0xff] }
 0x783   :  { %11132 = vmatpush1.bf16.msra.mxu1 %v11131_v51  ;;  %10878 = vmatprep.subr.bf16.mxu0 %v10877_v6  ;;  %v5990_v51 = vld [vmem:[#allocation16 + $0x1aa8] sm:$0xff]  ;;  %v11151_v25 = vpack.c.bf16 %v5983_v21, %v5975_v20  ;;  %v6056_v21 = vld [vmem:[#allocation16 + $0x1cb8] sm:$0xff] }
 0x784   :  { %11134 = vmatprep.subr.bf16.mxu1 %v11133_v1  ;;  %v5998_v6 = vld [vmem:[#allocation16 + $0x1ae8] sm:$0xff]  ;;  %v10895_v1 = vpack.c.bf16 %v5981_v19, %v5973_v58  ;;  %v6047_v19 = vld [vmem:[#allocation16 + $0x1c70] sm:$0xff] }
 0x785   :  { %6978 = vmatmul.mubr.f32.vlgmr.msra.gmra.mrb[14].mxu0 %v12200_v43  ;;  %v10897_v5 = vpack.c.bf16 %v5998_v6, %v5990_v51  ;;  %v6054_v20 = vld [vmem:[#allocation16 + $0x1ca8] sm:$0xff]  ;;  %v6064_v51 = vld [vmem:[#allocation16 + $0x1cf8] sm:$0xff] }
 0x786   :  { %7262 = vmatmul.mubr.f32.vlgmr.msra.gmra.mrb[14].mxu1 %v12200_v43  ;;  %10880 = vmatpush1.bf16.msra.mxu0 %v10879_v14  ;;  %v5968_v43 = vld [vmem:[#allocation16 + $0x19f8] sm:$0xff]  ;;  %v5991_v14 = vld [vmem:[#allocation16 + $0x1ab0] sm:$0xff] }
 0x787   :  { %7048 = vmatprep.mubr.f32.mxu0 %v12204_v39  ;;  %11136 = vmatpush1.bf16.msra.mxu1 %v11135_v17  ;;  %v11145_v3 = vpack.c.bf16 %v5968_v43, %v5960_v46  ;;  %v6006_v17 = vld [vmem:[#allocation16 + $0x1b28] sm:$0xff]  ;;  %v11155_v36 = vpack.c.bf16 %v5999_v0, %v5991_v14  ;;  %v10905_v43 = vpack.c.bf16 %v6030_v53, %v6022_v63  ;;  %v6072_v0 = vld [vmem:[#allocation16 + $0x1d38] sm:$0xff] }
 0x788   :  { %7332 = vmatprep.mubr.f32.mxu1 %v12204_v39  ;;  %10882 = vmatprep.subr.bf16.mxu0 %v10881_v38  ;;  %v5967_v39 = vld [vmem:[#allocation16 + $0x19f0] sm:$0xff]  ;;  %v10899_v38 = vpack.c.bf16 %v5997_v41, %v5989_v31  ;;  %v10901_v49 = vpack.c.bf16 %v6014_v10, %v6006_v17  ;;  %v11169_v31 = vpack.c.bf16 %v6064_v51, %v6056_v21  ;;  %v6070_v14 = vld [vmem:[#allocation16 + $0x1d28] sm:$0xff]  ;;  %v6080_v17 = vld [vmem:[#allocation16 + $0x1d78] sm:$0xff] }
 0x789   :  { %11138 = vmatprep.subr.bf16.mxu1 %v11137_v24  ;;  %v11147_v16 = vpack.c.bf16 %v5967_v39, %v5959_v35  ;;  %v6013_v24 = vld [vmem:[#allocation16 + $0x1b60] sm:$0xff]  ;;  %v6038_v35 = vld [vmem:[#allocation16 + $0x1c28] sm:$0xff]  ;;  %v6040_v39 = vld [vmem:[#allocation16 + $0x1c38] sm:$0xff] }
 0x78a   :  { %10884 = vmatpush1.bf16.msra.mxu0 %v10883_v13  ;;  %v10903_v57 = vpack.c.bf16 %v6013_v24, %v6005_v34  ;;  %v11165_v58 = vpack.c.bf16 %v6048_v8, %v6040_v39  ;;  %v6063_v41 = vld [vmem:[#allocation16 + $0x1cf0] sm:$0xff]  ;;  %v11173_v34 = vpack.c.bf16 %v6080_v17, %v6072_v0  ;;  %v6096_v63 = vld [vmem:[#allocation16 + $0x1df8] sm:$0xff] }
 0x78b   :  { %11140 = vmatpush1.bf16.msra.mxu1 %v11139_v23  ;;  %10886 = vmatprep.subr.bf16.mxu0 %v10885_v52  ;;  %v11157_v23 = vpack.c.bf16 %v6016_v26, %v6008_v37  ;;  %v6015_v52 = vld [vmem:[#allocation16 + $0x1b70] sm:$0xff] }
 0x78c   :  { %11142 = vmatprep.subr.bf16.mxu1 %v11141_v54  ;;  %v11159_v46 = vpack.c.bf16 %v6015_v52, %v6007_v45  ;;  %v6079_v24 = vld [vmem:[#allocation16 + $0x1d70] sm:$0xff]  ;;  %v6086_v45 = vld [vmem:[#allocation16 + $0x1da8] sm:$0xff]  ;;  %v6088_v52 = vld [vmem:[#allocation16 + $0x1db8] sm:$0xff] }
 0x78e   :  { %10888 = vmatpush1.bf16.msra.mxu0 %v10887_v59  ;;  %v6021_v59 = vld [vmem:[#allocation16 + $0x1ba0] sm:$0xff] }
 0x78f   :  { %11144 = vmatpush1.bf16.msra.mxu1 %v11143_v61  ;;  %10890 = vmatprep.subr.bf16.mxu0 %v10889_v62  ;;  %v6029_v61 = vld [vmem:[#allocation16 + $0x1be0] sm:$0xff]  ;;  %v6023_v62 = vld [vmem:[#allocation16 + $0x1bb0] sm:$0xff] }
 0x790   :  { %11146 = vmatprep.subr.bf16.mxu1 %v11145_v3  ;;  %v6046_v3 = vld [vmem:[#allocation16 + $0x1c68] sm:$0xff]  ;;  %v10907_v28 = vpack.c.bf16 %v6029_v61, %v6021_v59  ;;  %v11163_v11 = vpack.c.bf16 %v6031_v2, %v6023_v62  ;;  %v11177_v59 = vpack.c.bf16 %v6096_v63, %v6088_v52  ;;  %v6095_v61 = vld [vmem:[#allocation16 + $0x1df0] sm:$0xff]  ;;  %v6104_v2 = vld [vmem:[#allocation16 + $0x1e38] sm:$0xff] }
 0x791   :  { %v10909_v15 = vpack.c.bf16 %v6046_v3, %v6038_v35  ;;  %v6102_v62 = vld [vmem:[#allocation16 + $0x1e28] sm:$0xff]  ;;  %v6112_v35 = vld [vmem:[#allocation16 + $0x1e78] sm:$0xff] }
 0x792   :  { %10892 = vmatpush1.bf16.msra.mxu0 %v10891_v42  ;;  %v6037_v42 = vld [vmem:[#allocation16 + $0x1c20] sm:$0xff] }
 0x793   :  { %11148 = vmatpush1.bf16.msra.mxu1 %v11147_v16  ;;  %10894 = vmatprep.subr.bf16.mxu0 %v10893_v29  ;;  %v6045_v16 = vld [vmem:[#allocation16 + $0x1c60] sm:$0xff]  ;;  %v6039_v29 = vld [vmem:[#allocation16 + $0x1c30] sm:$0xff] }
 0x794   :  { %11150 = vmatprep.subr.bf16.mxu1 %v11149_v47  ;;  %v6062_v47 = vld [vmem:[#allocation16 + $0x1ce8] sm:$0xff]  ;;  %v10911_v6 = vpack.c.bf16 %v6045_v16, %v6037_v42  ;;  %v11167_v22 = vpack.c.bf16 %v6047_v19, %v6039_v29  ;;  %v11181_v42 = vpack.c.bf16 %v6112_v35, %v6104_v2  ;;  %v6111_v16 = vld [vmem:[#allocation16 + $0x1e70] sm:$0xff]  ;;  %v6120_v19 = vld [vmem:[#allocation16 + $0x1eb8] sm:$0xff] }
 0x795   :  { %v10913_v7 = vpack.c.bf16 %v6062_v47, %v6054_v20  ;;  %v6118_v29 = vld [vmem:[#allocation16 + $0x1ea8] sm:$0xff]  ;;  %v6128_v20 = vld [vmem:[#allocation16 + $0x1ef8] sm:$0xff] }
 0x796   :  { %10896 = vmatpush1.bf16.msra.mxu0 %v10895_v1  ;;  %v6053_v1 = vld [vmem:[#allocation16 + $0x1ca0] sm:$0xff]  ;;  %v7396_v2 = vld [vmem:[%s12668_s10 + $0x188] sm:$0xff] }
 0x797   :  { %11152 = vmatpush1.bf16.msra.mxu1 %v11151_v25  ;;  %10898 = vmatprep.subr.bf16.mxu0 %v10897_v5  ;;  %v6061_v25 = vld [vmem:[#allocation16 + $0x1ce0] sm:$0xff]  ;;  %v6055_v5 = vld [vmem:[#allocation16 + $0x1cb0] sm:$0xff] }
 0x798   :  { %v12230_v33 = vpop.f32.mrb[12].mxu0  ;;  %v12232_v13 = vpop.f32.mrb[12].mxu1  ;;  %11154 = vmatprep.subr.bf16.mxu1 %v11153_v32  ;;  %v6078_v32 = vld [vmem:[#allocation16 + $0x1d68] sm:$0xff]  ;;  %v10915_v10 = vpack.c.bf16 %v6061_v25, %v6053_v1  ;;  %v11171_v37 = vpack.c.bf16 %v6063_v41, %v6055_v5  ;;  %v11185_v1 = vpack.c.bf16 %v6128_v20, %v6120_v19  ;;  %v6127_v25 = vld [vmem:[#allocation16 + $0x1ef0] sm:$0xff]  ;;  %v6136_v41 = vld [vmem:[#allocation16 + $0x1f38] sm:$0xff] }
 0x799   :  { %v12234_v30 = vpop.f32.mrb[13].mxu0  ;;  %v12236_v54 = vpop.f32.mrb[13].mxu1  ;;  %v10917_v26 = vpack.c.bf16 %v6078_v32, %v6070_v14  ;;  %v6134_v5 = vld [vmem:[#allocation16 + $0x1f28] sm:$0xff]  ;;  %v6144_v14 = vld [vmem:[#allocation16 + $0x1f78] sm:$0xff] }
 0x79a   :  { %10900 = vmatpush1.bf16.msra.mxu0 %v10899_v38  ;;  %v6069_v38 = vld [vmem:[#allocation16 + $0x1d20] sm:$0xff]  ;;  %v7397_v20 = vld [vmem:[%s12668_s10 + $0x190] sm:$0xff] }
 0x79b   :  { %11156 = vmatpush1.bf16.msra.mxu1 %v11155_v36  ;;  %10902 = vmatprep.subr.bf16.mxu0 %v10901_v49  ;;  %v6077_v36 = vld [vmem:[#allocation16 + $0x1d60] sm:$0xff]  ;;  %v6071_v49 = vld [vmem:[#allocation16 + $0x1d30] sm:$0xff] }
 0x79c   :  { %11158 = vmatprep.subr.bf16.mxu1 %v11157_v23  ;;  %v6094_v23 = vld [vmem:[#allocation16 + $0x1de8] sm:$0xff]  ;;  %v10919_v53 = vpack.c.bf16 %v6077_v36, %v6069_v38  ;;  %v11175_v40 = vpack.c.bf16 %v6079_v24, %v6071_v49  ;;  %v11189_v38 = vpack.c.bf16 %v6144_v14, %v6136_v41  ;;  %v6143_v36 = vld [vmem:[#allocation16 + $0x1f70] sm:$0xff]  ;;  %v6152_v24 = vld [vmem:[#allocation16 + $0x1fb8] sm:$0xff] }
 0x79d   :  { %v10921_v55 = vpack.c.bf16 %v6094_v23, %v6086_v45  ;;  %v6150_v49 = vld [vmem:[#allocation16 + $0x1fa8] sm:$0xff]  ;;  %v6160_v45 = vld [vmem:[#allocation16 + $0x1ff8] sm:$0xff]  ;;  %v12238_v23 = vld [vmem:[#allocation17] sm:$0xff] }
 0x79e   :  { %10904 = vmatpush1.bf16.msra.mxu0 %v10903_v57  ;;  %v6085_v57 = vld [vmem:[#allocation16 + $0x1da0] sm:$0xff]  ;;  %v6178_v35 = vrot.slane %v12238_v23, %v11982_v27  ;;  %v7400_v41 = vld [vmem:[%s12668_s10 + $0x1a8] sm:$0xff] }
 0x79f   :  { %11160 = vmatpush1.bf16.msra.mxu1 %v11159_v46  ;;  %10906 = vmatprep.subr.bf16.mxu0 %v10905_v43  ;;  %v6093_v46 = vld [vmem:[#allocation16 + $0x1de0] sm:$0xff]  ;;  %v6087_v43 = vld [vmem:[#allocation16 + $0x1db0] sm:$0xff] }
 0x7a0   :  { %11162 = vmatprep.subr.bf16.mxu1 %v11161_v44  ;;  %v6110_v44 = vld [vmem:[#allocation16 + $0x1e68] sm:$0xff]  ;;  %v10923_v3 = vpack.c.bf16 %v6093_v46, %v6085_v57  ;;  %v11179_v39 = vpack.c.bf16 %v6095_v61, %v6087_v43  ;;  %v6151_v57 = vld [vmem:[#allocation16 + $0x1fb0] sm:$0xff]  ;;  %v11193_v46 = vpack.c.bf16 %v6160_v45, %v6152_v24  ;;  %v7402_v24 = vld [vmem:[%s12668_s10 + $0x1b8] sm:$0xff] }
 0x7a1   :  { %v10925_v8 = vpack.c.bf16 %v6110_v44, %v6102_v62  ;;  %v6159_v43 = vld [vmem:[#allocation16 + $0x1ff0] sm:$0xff]  ;;  %v6170_v62 = vrot.slane %v12238_v23, %v11967_v50  ;;  %v7395_v44 = vld [vmem:[%s12668_s10 + $0x180] sm:$0xff] }
 0x7a2   :  { %10908 = vmatpush1.bf16.msra.mxu0 %v10907_v28  ;;  %v6101_v28 = vld [vmem:[#allocation16 + $0x1e20] sm:$0xff]  ;;  %v7364_v61 = vld [vmem:[%s12668_s10 + $0x88] sm:$0xff] }
 0x7a3   :  { %11164 = vmatpush1.bf16.msra.mxu1 %v11163_v11  ;;  %10910 = vmatprep.subr.bf16.mxu0 %v10909_v15  ;;  %v6109_v11 = vld [vmem:[#allocation16 + $0x1e60] sm:$0xff]  ;;  %v6103_v15 = vld [vmem:[#allocation16 + $0x1e30] sm:$0xff] }
 0x7a4   :  { %11166 = vmatprep.subr.bf16.mxu1 %v11165_v58  ;;  %v6126_v58 = vld [vmem:[#allocation16 + $0x1ee8] sm:$0xff]  ;;  %v10927_v47 = vpack.c.bf16 %v6109_v11, %v6101_v28  ;;  %v11183_v21 = vpack.c.bf16 %v6111_v16, %v6103_v15  ;;  %v11229_v11 = vpack.c.bf16 %v7396_v2, %v7395_v44  ;;  %v7365_v16 = vld [vmem:[%s12668_s10 + $0x90] sm:$0xff] }
 0x7a5   :  { %v10929_v51 = vpack.c.bf16 %v6126_v58, %v6118_v29  ;;  %v7347_v50 = vld [vmem:[%s12668_s10] sm:$0xff]  ;;  %v7348_v28 = vld [vmem:[%s12668_s10 + $0x8] sm:$0xff]  ;;  %v7366_v29 = vld [vmem:[%s12668_s10 + $0x98] sm:$0xff]  ;;  %v11344_v58 = vadd.f32 %v12236_v54, %v6178_v35 }
 0x7a6   :  { %10912 = vmatpush1.bf16.msra.mxu0 %v10911_v6  ;;  %v6117_v6 = vld [vmem:[#allocation16 + $0x1ea0] sm:$0xff]  ;;  %v7380_v15 = vld [vmem:[%s12668_s10 + $0x108] sm:$0xff]  ;;  %v11199_v19 = vpack.c.bf16 %v7348_v28, %v7347_v50 }
 0x7a7   :  { %11168 = vmatpush1.bf16.msra.mxu1 %v11167_v22  ;;  %10914 = vmatprep.subr.bf16.mxu0 %v10913_v7  ;;  %v6125_v22 = vld [vmem:[#allocation16 + $0x1ee0] sm:$0xff]  ;;  %v6119_v7 = vld [vmem:[#allocation16 + $0x1eb0] sm:$0xff]  ;;  %v7342_v14 = vmax.f32 %v11344_v58, 0.0 }
 0x7a8   :  { %11170 = vmatprep.subr.bf16.mxu1 %v11169_v31  ;;  %v6142_v31 = vld [vmem:[#allocation16 + $0x1f68] sm:$0xff]  ;;  %v10931_v32 = vpack.c.bf16 %v6125_v22, %v6117_v6  ;;  %v11187_v0 = vpack.c.bf16 %v6127_v25, %v6119_v7  ;;  %v7350_v54 = vld [vmem:[%s12668_s10 + $0x18] sm:$0xff]  ;;  %v11201_v6 = vpack.c.bf16 %v7366_v29, %v7365_v16 }
 0x7a9   :  { %v10933_v17 = vpack.c.bf16 %v6142_v31, %v6134_v5  ;;  %v7379_v27 = vld [vmem:[%s12668_s10 + $0x100] sm:$0xff]  ;;  %v7382_v22 = vld [vmem:[%s12668_s10 + $0x118] sm:$0xff]  ;;  %v7388_v28 = vld [vmem:[%s12668_s10 + $0x148] sm:$0xff] }
 0x7aa   :  { %10916 = vmatpush1.bf16.msra.mxu0 %v10915_v10  ;;  %v6133_v10 = vld [vmem:[#allocation16 + $0x1f20] sm:$0xff] }
 0x7ab   :  { %11172 = vmatpush1.bf16.msra.mxu1 %v11171_v37  ;;  %10918 = vmatprep.subr.bf16.mxu0 %v10917_v26  ;;  %v6141_v37 = vld [vmem:[#allocation16 + $0x1f60] sm:$0xff]  ;;  %v6135_v26 = vld [vmem:[#allocation16 + $0x1f30] sm:$0xff] }
 0x7ac   :  { %11174 = vmatprep.subr.bf16.mxu1 %v11173_v34  ;;  %v6158_v34 = vld [vmem:[#allocation16 + $0x1fe8] sm:$0xff]  ;;  %v10935_v52 = vpack.c.bf16 %v6141_v37, %v6133_v10  ;;  %v11191_v63 = vpack.c.bf16 %v6143_v36, %v6135_v26  ;;  %v7369_v36 = vld [vmem:[%s12668_s10 + $0xb0] sm:$0xff] }
 0x7ad   :  { %v7367_v7 = vld [vmem:[%s12668_s10 + $0xa0] sm:$0xff]  ;;  %v7352_v37 = vld [vmem:[%s12668_s10 + $0x28] sm:$0xff] }
 0x7ae   :  { %10920 = vmatpush1.bf16.msra.mxu0 %v10919_v53  ;;  %v10937_v53 = vpack.c.bf16 %v6158_v34, %v6150_v49  ;;  %v7399_v31 = vld [vmem:[%s12668_s10 + $0x1a0] sm:$0xff]  ;;  %v7370_v49 = vld [vmem:[%s12668_s10 + $0xb8] sm:$0xff]  ;;  %v7401_v34 = vld [vmem:[%s12668_s10 + $0x1b0] sm:$0xff] }
 0x7af   :  { %11176 = vmatpush1.bf16.msra.mxu1 %v11175_v40  ;;  %10922 = vmatprep.subr.bf16.mxu0 %v10921_v55  ;;  %v6149_v40 = vld [vmem:[#allocation16 + $0x1fa0] sm:$0xff] }
 0x7b0   :  { %11178 = vmatprep.subr.bf16.mxu1 %v11177_v59  ;;  %v6157_v55 = vld [vmem:[#allocation16 + $0x1fe0] sm:$0xff] }
 0x7b1   :  { %v7363_v59 = vld [vmem:[%s12668_s10 + $0x80] sm:$0xff] }
 0x7b2   :  { %10924 = vmatpush1.bf16.msra.mxu0 %v10923_v3  ;;  %v10939_v3 = vpack.c.bf16 %v6157_v55, %v6149_v40  ;;  %v7351_v10 = vld [vmem:[%s12668_s10 + $0x20] sm:$0xff]  ;;  %v7354_v40 = vld [vmem:[%s12668_s10 + $0x38] sm:$0xff]  ;;  %v7385_v55 = vld [vmem:[%s12668_s10 + $0x130] sm:$0xff] }
 0x7b3   :  { %11180 = vmatpush1.bf16.msra.mxu1 %v11179_v39  ;;  %10926 = vmatprep.subr.bf16.mxu0 %v10925_v8  ;;  %v11195_v39 = vpack.c.bf16 %v6159_v43, %v6151_v57  ;;  %v11197_v8 = vpack.c.bf16 %v7364_v61, %v7363_v59  ;;  %v7383_v26 = vld [vmem:[%s12668_s10 + $0x120] sm:$0xff]  ;;  %v11207_v45 = vpack.c.bf16 %v7352_v37, %v7351_v10  ;;  %v7372_v59 = vld [vmem:[%s12668_s10 + $0xc8] sm:$0xff]  ;;  %v7409_v10 = vld [vmem:[%s12668_s10 + $0x1f0] sm:$0xff] }
 0x7b4   :  { %11182 = vmatprep.subr.bf16.mxu1 %v11181_v42  ;;  %v11342_v42 = vadd.f32 %v12234_v30, %v6170_v62  ;;  %v7398_v30 = vld [vmem:[%s12668_s10 + $0x198] sm:$0xff]  ;;  %v11241_v57 = vpack.c.bf16 %v7402_v24, %v7401_v34  ;;  %v7371_v43 = vld [vmem:[%s12668_s10 + $0xc0] sm:$0xff]  ;;  %v7404_v62 = vld [vmem:[%s12668_s10 + $0x1c8] sm:$0xff] }
 0x7b5   :  { %v11233_v5 = vpack.c.bf16 %v7398_v30, %v7397_v20  ;;  %v7403_v61 = vld [vmem:[%s12668_s10 + $0x1c0] sm:$0xff]  ;;  %v11213_v35 = vpack.c.bf16 %v7372_v59, %v7371_v43  ;;  %v7358_v20 = vld [vmem:[%s12668_s10 + $0x58] sm:$0xff]  ;;  %v7389_v30 = vld [vmem:[%s12668_s10 + $0x150] sm:$0xff] }
 0x7b6   :  { %10928 = vmatpush1.bf16.msra.mxu0 %v10927_v47  ;;  %v11231_v47 = vpack.c.bf16 %v7380_v15, %v7379_v27  ;;  %v7340_v25 = vmax.f32 %v11342_v42, 0.0  ;;  %v11245_v50 = vpack.c.bf16 %v7404_v62, %v7403_v61  ;;  %v7374_v27 = vld [vmem:[%s12668_s10 + $0xd8] sm:$0xff]  ;;  %v7405_v15 = vld [vmem:[%s12668_s10 + $0x1d0] sm:$0xff]  ;;  %v7411_v59 = vld [vmem:[%s12668_s10 + $0x200] sm:$0xff] }
 0x7b7   :  { %11184 = vmatpush1.bf16.msra.mxu1 %v11183_v21  ;;  %10930 = vmatprep.subr.bf16.mxu0 %v10929_v51  ;;  %v7349_v21 = vld [vmem:[%s12668_s10 + $0x10] sm:$0xff]  ;;  %v7406_v42 = vld [vmem:[%s12668_s10 + $0x1d8] sm:$0xff]  ;;  %v7412_v61 = vld [vmem:[%s12668_s10 + $0x208] sm:$0xff] }
 0x7b8   :  { %11186 = vmatprep.subr.bf16.mxu1 %v11185_v1  ;;  %v7381_v51 = vld [vmem:[%s12668_s10 + $0x110] sm:$0xff]  ;;  %v7368_v1 = vld [vmem:[%s12668_s10 + $0xa8] sm:$0xff]  ;;  %v7410_v37 = vld [vmem:[%s12668_s10 + $0x1f8] sm:$0xff] }
 0x7b9   :  { %v7362_v34 = vld [vmem:[%s12668_s10 + $0x78] sm:$0xff]  ;;  %v7393_v24 = vld [vmem:[%s12668_s10 + $0x170] sm:$0xff]  ;;  %v7443_v62 = vld [vmem:[%s12668_s10 + $0x300] sm:$0xff] }
 0x7ba   :  { %10932 = vmatpush1.bf16.msra.mxu0 %v10931_v32  ;;  %v11203_v32 = vpack.c.bf16 %v7350_v54, %v7349_v21  ;;  %v7390_v21 = vld [vmem:[%s12668_s10 + $0x158] sm:$0xff]  ;;  %v7375_v54 = vld [vmem:[%s12668_s10 + $0xe0] sm:$0xff] }
 0x7bb   :  { %11188 = vmatpush1.bf16.msra.mxu1 %v11187_v0  ;;  %10934 = vmatprep.subr.bf16.mxu0 %v10933_v17  ;;  %v11235_v0 = vpack.c.bf16 %v7382_v22, %v7381_v51  ;;  %v11205_v17 = vpack.c.bf16 %v7368_v1, %v7367_v7  ;;  %v7376_v51 = vld [vmem:[%s12668_s10 + $0xe8] sm:$0xff]  ;;  %v11251_v1 = vpack.c.bf16 %v7390_v21, %v7389_v30  ;;  %v7463_v30 = vld [vmem:[%s12668_s10 + $0x3a0] sm:$0xff] }
 0x7bc   :  { %11190 = vmatprep.subr.bf16.mxu1 %v11189_v38  ;;  %v7384_v38 = vld [vmem:[%s12668_s10 + $0x128] sm:$0xff] }
 0x7bd   :  { %v7408_v22 = vld [vmem:[%s12668_s10 + $0x1e8] sm:$0xff] }
 0x7be   :  { %10936 = vmatpush1.bf16.msra.mxu0 %v10935_v52  ;;  %v11239_v52 = vpack.c.bf16 %v7384_v38, %v7383_v26 }
 0x7bf   :  { %11192 = vmatpush1.bf16.msra.mxu1 %v11191_v63  ;;  %10938 = vmatprep.subr.bf16.mxu0 %v10937_v53  ;;  %v11209_v63 = vpack.c.bf16 %v7370_v49, %v7369_v36  ;;  %v7353_v53 = vld [vmem:[%s12668_s10 + $0x30] sm:$0xff] }
 0x7c0   :  { %11194 = vmatprep.subr.bf16.mxu1 %v11193_v46  ;;  %v7386_v46 = vld [vmem:[%s12668_s10 + $0x138] sm:$0xff]  ;;  %v11211_v44 = vpack.c.bf16 %v7354_v40, %v7353_v53  ;;  %v7361_v49 = vld [vmem:[%s12668_s10 + $0x70] sm:$0xff]  ;;  %v7428_v53 = vld [vmem:[%s12668_s10 + $0x288] sm:$0xff] }
 0x7c1   :  { %v11243_v2 = vpack.c.bf16 %v7386_v46, %v7385_v55  ;;  %v7459_v40 = vld [vmem:[%s12668_s10 + $0x380] sm:$0xff]  ;;  %v11227_v55 = vpack.c.bf16 %v7362_v34, %v7361_v49  ;;  %v7436_v49 = vld [vmem:[%s12668_s10 + $0x2c8] sm:$0xff] }
 0x7c2   :  { %10940 = vmatpush1.bf16.msra.mxu0 %v10939_v3  ;;  %v7355_v3 = vld [vmem:[%s12668_s10 + $0x40] sm:$0xff] }
 0x7c3   :  { %11196 = vmatpush1.bf16.msra.mxu1 %v11195_v39  ;;  %11198 = vmatprep.subr.bf16.mxu0 %v11197_v8  ;;  %v7356_v39 = vld [vmem:[%s12668_s10 + $0x48] sm:$0xff]  ;;  %v7387_v8 = vld [vmem:[%s12668_s10 + $0x140] sm:$0xff] }
 0x7c4   :  { %11230 = vmatprep.subr.bf16.mxu1 %v11229_v11  ;;  %v7373_v11 = vld [vmem:[%s12668_s10 + $0xd0] sm:$0xff]  ;;  %v11215_v16 = vpack.c.bf16 %v7356_v39, %v7355_v3  ;;  %v11247_v29 = vpack.c.bf16 %v7388_v28, %v7387_v8  ;;  %v7430_v3 = vld [vmem:[%s12668_s10 + $0x298] sm:$0xff]  ;;  %v11263_v8 = vpack.c.bf16 %v7412_v61, %v7411_v59  ;;  %v7467_v34 = vld [vmem:[%s12668_s10 + $0x3c0] sm:$0xff] }
 0x7c5   :  { %7049 = vmatmul.mubr.f32.vlgmr.msra.gmra.mrb[14].mxu0 %v12212_v18  ;;  %v11217_v58 = vpack.c.bf16 %v7374_v27, %v7373_v11  ;;  %v7461_v39 = vld [vmem:[%s12668_s10 + $0x390] sm:$0xff]  ;;  %v7470_v59 = vld [vmem:[%s12668_s10 + $0x3d8] sm:$0xff] }
 0x7c6   :  { %7333 = vmatmul.mubr.f32.vlgmr.msra.gmra.mrb[14].mxu1 %v12212_v18  ;;  %11200 = vmatpush3.bf16.msra.mxu0 %v11199_v19  ;;  %v11237_v18 = vpack.c.bf16 %v7400_v41, %v7399_v31  ;;  %v7357_v19 = vld [vmem:[%s12668_s10 + $0x50] sm:$0xff]  ;;  %v7360_v31 = vld [vmem:[%s12668_s10 + $0x68] sm:$0xff]  ;;  %v7391_v41 = vld [vmem:[%s12668_s10 + $0x160] sm:$0xff] }
 0x7c7   :  { %7546 = vmatprep.mubr.f32.mxu0 %v7340_v25  ;;  %11232 = vmatpush3.bf16.msra.mxu1 %v11231_v47  ;;  %v11249_v47 = vpack.c.bf16 %v7406_v42, %v7405_v15  ;;  %v11219_v7 = vpack.c.bf16 %v7358_v20, %v7357_v19  ;;  %v11221_v25 = vpack.c.bf16 %v7376_v51, %v7375_v54  ;;  %v7413_v27 = vld [vmem:[%s12668_s10 + $0x210] sm:$0xff]  ;;  %v7414_v15 = vld [vmem:[%s12668_s10 + $0x218] sm:$0xff]  ;;  %v7431_v19 = vld [vmem:[%s12668_s10 + $0x2a0] sm:$0xff] }
 0x7c8   :  { %7616 = vmatprep.mubr.f32.mxu1 %v7342_v14  ;;  %11202 = vmatprep.subr.bf16.mxu0 %v11201_v6  ;;  %v7407_v6 = vld [vmem:[%s12668_s10 + $0x1e0] sm:$0xff]  ;;  %v7445_v42 = vld [vmem:[%s12668_s10 + $0x310] sm:$0xff]  ;;  %v7432_v20 = vld [vmem:[%s12668_s10 + $0x2a8] sm:$0xff]  ;;  %v11267_v21 = vpack.c.bf16 %v7414_v15, %v7413_v27 }
 0x7c9   :  { %11234 = vmatprep.subr.bf16.mxu1 %v11233_v5  ;;  %v7359_v5 = vld [vmem:[%s12668_s10 + $0x60] sm:$0xff]  ;;  %v11253_v14 = vpack.c.bf16 %v7408_v22, %v7407_v6  ;;  %v11269_v51 = vpack.c.bf16 %v7432_v20, %v7431_v19  ;;  %v7416_v22 = vld [vmem:[%s12668_s10 + $0x228] sm:$0xff] }
 0x7ca   :  { %11204 = vmatpush3.bf16.msra.mxu0 %v11203_v32  ;;  %v7392_v32 = vld [vmem:[%s12668_s10 + $0x168] sm:$0xff]  ;;  %v11223_v26 = vpack.c.bf16 %v7360_v31, %v7359_v5  ;;  %v7415_v6 = vld [vmem:[%s12668_s10 + $0x220] sm:$0xff]  ;;  %v7433_v5 = vld [vmem:[%s12668_s10 + $0x2b0] sm:$0xff] }
 0x7cb   :  { %11236 = vmatpush3.bf16.msra.mxu1 %v11235_v0  ;;  %11206 = vmatprep.subr.bf16.mxu0 %v11205_v17  ;;  %v7377_v0 = vld [vmem:[%s12668_s10 + $0xf0] sm:$0xff]  ;;  %v7378_v17 = vld [vmem:[%s12668_s10 + $0xf8] sm:$0xff]  ;;  %v11255_v38 = vpack.c.bf16 %v7392_v32, %v7391_v41  ;;  %v11271_v32 = vpack.c.bf16 %v7416_v22, %v7415_v6  ;;  %v7456_v20 = vld [vmem:[%s12668_s10 + $0x368] sm:$0xff] }
 0x7cc   :  { %11238 = vmatprep.subr.bf16.mxu1 %v11237_v18  ;;  %v6166_v18 = vrot.slane %v12238_v23, %v11962_v48  ;;  %v11225_v36 = vpack.c.bf16 %v7378_v17, %v7377_v0  ;;  %v11257_v48 = vpack.c.bf16 %v7410_v37, %v7409_v10  ;;  %v7434_v31 = vld [vmem:[%s12668_s10 + $0x2b8] sm:$0xff]  ;;  %v7465_v41 = vld [vmem:[%s12668_s10 + $0x3b0] sm:$0xff] }
 0x7cd   :  { %v11273_v17 = vpack.c.bf16 %v7434_v31, %v7433_v5  ;;  %v7417_v10 = vld [vmem:[%s12668_s10 + $0x230] sm:$0xff]  ;;  %v7418_v37 = vld [vmem:[%s12668_s10 + $0x238] sm:$0xff] }
 0x7ce   :  { %11208 = vmatpush3.bf16.msra.mxu0 %v11207_v45  ;;  %v6174_v45 = vrot.slane %v12238_v23, %v11997_v60  ;;  %v7460_v60 = vld [vmem:[%s12668_s10 + $0x388] sm:$0xff]  ;;  %v7474_v6 = vld [vmem:[%s12668_s10 + $0x3f8] sm:$0xff]  ;;  %v7425_v22 = vld [vmem:[%s12668_s10 + $0x270] sm:$0xff] }
 0x7cf   :  { %11240 = vmatpush3.bf16.msra.mxu1 %v11239_v52  ;;  %11210 = vmatprep.subr.bf16.mxu0 %v11209_v63  ;;  %v7394_v52 = vld [vmem:[%s12668_s10 + $0x178] sm:$0xff]  ;;  %v7427_v63 = vld [vmem:[%s12668_s10 + $0x280] sm:$0xff]  ;;  %v7457_v5 = vld [vmem:[%s12668_s10 + $0x370] sm:$0xff] }
 0x7d0   :  { %11242 = vmatprep.subr.bf16.mxu1 %v11241_v57  ;;  %v11341_v57 = vadd.f32 %v12230_v33, %v6166_v18  ;;  %v11259_v46 = vpack.c.bf16 %v7394_v52, %v7393_v24  ;;  %v11261_v43 = vpack.c.bf16 %v7428_v53, %v7427_v63  ;;  %v11293_v33 = vpack.c.bf16 %v7460_v60, %v7459_v40  ;;  %v7468_v24 = vld [vmem:[%s12668_s10 + $0x3c8] sm:$0xff]  ;;  %v7419_v63 = vld [vmem:[%s12668_s10 + $0x240] sm:$0xff]  ;;  %v7458_v31 = vld [vmem:[%s12668_s10 + $0x378] sm:$0xff] }
 0x7d1   :  { %v7420_v53 = vld [vmem:[%s12668_s10 + $0x248] sm:$0xff]  ;;  %v7451_v40 = vld [vmem:[%s12668_s10 + $0x340] sm:$0xff]  ;;  %v11309_v60 = vpack.c.bf16 %v7468_v24, %v7467_v34 }
 0x7d2   :  { %11212 = vmatpush3.bf16.msra.mxu0 %v11211_v44  ;;  %v11343_v44 = vadd.f32 %v12232_v13, %v6174_v45  ;;  %v7462_v13 = vld [vmem:[%s12668_s10 + $0x398] sm:$0xff]  ;;  %v11275_v45 = vpack.c.bf16 %v7418_v37, %v7417_v10  ;;  %v11279_v61 = vpack.c.bf16 %v7420_v53, %v7419_v63 }
 0x7d3   :  { %11244 = vmatpush3.bf16.msra.mxu1 %v11243_v2  ;;  %11214 = vmatprep.subr.bf16.mxu0 %v11213_v35  ;;  %v7444_v2 = vld [vmem:[%s12668_s10 + $0x308] sm:$0xff]  ;;  %v7429_v35 = vld [vmem:[%s12668_s10 + $0x290] sm:$0xff] }
 0x7d4   :  { %11246 = vmatprep.subr.bf16.mxu1 %v11245_v50  ;;  %v7339_v50 = vmax.f32 %v11341_v57, 0.0  ;;  %v11295_v28 = vpack.c.bf16 %v7444_v2, %v7443_v62  ;;  %v11265_v11 = vpack.c.bf16 %v7430_v3, %v7429_v35  ;;  %v7437_v57 = vld [vmem:[%s12668_s10 + $0x2d0] sm:$0xff]  ;;  %v7422_v2 = vld [vmem:[%s12668_s10 + $0x258] sm:$0xff] }
 0x7d5   :  { %v7453_v35 = vld [vmem:[%s12668_s10 + $0x350] sm:$0xff] }
 0x7d6   :  { %11216 = vmatpush3.bf16.msra.mxu0 %v11215_v16  ;;  %v7341_v16 = vmax.f32 %v11343_v44, 0.0 }
 0x7d7   :  { %11248 = vmatpush3.bf16.msra.mxu1 %v11247_v29  ;;  %11218 = vmatprep.subr.bf16.mxu0 %v11217_v58  ;;  %v11297_v29 = vpack.c.bf16 %v7462_v13, %v7461_v39  ;;  %v7446_v58 = vld [vmem:[%s12668_s10 + $0x318] sm:$0xff]  ;;  %v7439_v13 = vld [vmem:[%s12668_s10 + $0x2e0] sm:$0xff] }
 0x7d8   :  { %11250 = vmatprep.subr.bf16.mxu1 %v11249_v47  ;;  %v7464_v47 = vld [vmem:[%s12668_s10 + $0x3a8] sm:$0xff]  ;;  %v11299_v54 = vpack.c.bf16 %v7446_v58, %v7445_v42  ;;  %v7454_v39 = vld [vmem:[%s12668_s10 + $0x358] sm:$0xff]  ;;  %v7455_v58 = vld [vmem:[%s12668_s10 + $0x360] sm:$0xff] }
 0x7d9   :  { %v11315_v27 = vpack.c.bf16 %v7454_v39, %v7453_v35 }
 0x7da   :  { %11220 = vmatpush3.bf16.msra.mxu0 %v11219_v7  ;;  %v7447_v7 = vld [vmem:[%s12668_s10 + $0x320] sm:$0xff] }
 0x7db   :  { %11252 = vmatpush3.bf16.msra.mxu1 %v11251_v1  ;;  %11222 = vmatprep.subr.bf16.mxu0 %v11221_v25  ;;  %v11301_v1 = vpack.c.bf16 %v7464_v47, %v7463_v30  ;;  %v7448_v25 = vld [vmem:[%s12668_s10 + $0x328] sm:$0xff]  ;;  %v11319_v30 = vpack.c.bf16 %v7456_v20, %v7455_v58  ;;  %v7441_v47 = vld [vmem:[%s12668_s10 + $0x2f0] sm:$0xff] }
 0x7dc   :  { %11254 = vmatprep.subr.bf16.mxu1 %v11253_v14  ;;  %v7466_v14 = vld [vmem:[%s12668_s10 + $0x3b8] sm:$0xff]  ;;  %v11303_v0 = vpack.c.bf16 %v7448_v25, %v7447_v7 }
 0x7dd   :  { %v11305_v18 = vpack.c.bf16 %v7466_v14, %v7465_v41  ;;  %v7426_v7 = vld [vmem:[%s12668_s10 + $0x278] sm:$0xff]  ;;  %v11323_v41 = vpack.c.bf16 %v7458_v31, %v7457_v5  ;;  %v6182_v14 = vrot.slane %v12238_v23, %v12021_v56 }
 0x7de   :  { %11224 = vmatpush3.bf16.msra.mxu0 %v11223_v26  ;;  %v7449_v26 = vld [vmem:[%s12668_s10 + $0x330] sm:$0xff]  ;;  %v11291_v25 = vpack.c.bf16 %v7426_v7, %v7425_v22 }
 0x7df   :  { %11256 = vmatpush3.bf16.msra.mxu1 %v11255_v38  ;;  %11226 = vmatprep.subr.bf16.mxu0 %v11225_v36  ;;  %v7450_v38 = vld [vmem:[%s12668_s10 + $0x338] sm:$0xff]  ;;  %v7435_v36 = vld [vmem:[%s12668_s10 + $0x2c0] sm:$0xff] }
 0x7e0   :  { %11258 = vmatprep.subr.bf16.mxu1 %v11257_v48  ;;  %v11307_v48 = vpack.c.bf16 %v7450_v38, %v7449_v26  ;;  %v11277_v52 = vpack.c.bf16 %v7436_v49, %v7435_v36 }
 0x7e2   :  { %11228 = vmatpush3.bf16.msra.mxu0 %v11227_v55  ;;  %v7452_v55 = vld [vmem:[%s12668_s10 + $0x348] sm:$0xff] }
 0x7e3   :  { %11260 = vmatpush3.bf16.msra.mxu1 %v11259_v46  ;;  %11262 = vmatprep.subr.bf16.mxu0 %v11261_v43  ;;  %v7438_v46 = vld [vmem:[%s12668_s10 + $0x2d8] sm:$0xff]  ;;  %v7469_v43 = vld [vmem:[%s12668_s10 + $0x3d0] sm:$0xff]  ;;  %v11311_v62 = vpack.c.bf16 %v7452_v55, %v7451_v40 }
 0x7e4   :  { %11294 = vmatprep.subr.bf16.mxu1 %v11293_v33  ;;  %v11281_v44 = vpack.c.bf16 %v7438_v46, %v7437_v57  ;;  %v7421_v33 = vld [vmem:[%s12668_s10 + $0x250] sm:$0xff]  ;;  %v11313_v3 = vpack.c.bf16 %v7470_v59, %v7469_v43 }
 0x7e5   :  { %7547 = vmatmul.mubr.f32.vlgmr.msra.gmra.mrb[16].mxu0 %v7339_v50  ;;  %v7471_v50 = vld [vmem:[%s12668_s10 + $0x3e0] sm:$0xff] }
 0x7e6   :  { %7617 = vmatmul.mubr.f32.vlgmr.msra.gmra.mrb[16].mxu1 %v7341_v16  ;;  %11264 = vmatpush3.bf16.msra.mxu0 %v11263_v8  ;;  %v7440_v8 = vld [vmem:[%s12668_s10 + $0x2e8] sm:$0xff]  ;;  %v7423_v16 = vld [vmem:[%s12668_s10 + $0x260] sm:$0xff] }
 0x7e7   :  { %11296 = vmatpush3.bf16.msra.mxu1 %v11295_v28  ;;  %11266 = vmatprep.subr.bf16.mxu0 %v11265_v11  ;;  %v7472_v28 = vld [vmem:[%s12668_s10 + $0x3e8] sm:$0xff]  ;;  %v11283_v11 = vpack.c.bf16 %v7422_v2, %v7421_v33  ;;  %v11285_v15 = vpack.c.bf16 %v7440_v8, %v7439_v13 }
 0x7e8   :  { %11298 = vmatprep.subr.bf16.mxu1 %v11297_v29  ;;  %v11317_v42 = vpack.c.bf16 %v7472_v28, %v7471_v50  ;;  %v7424_v29 = vld [vmem:[%s12668_s10 + $0x268] sm:$0xff] }
 0x7e9   :  { %v11287_v19 = vpack.c.bf16 %v7424_v29, %v7423_v16 }
 0x7ea   :  { %11268 = vmatpush3.bf16.msra.mxu0 %v11267_v21  ;;  %v7442_v21 = vld [vmem:[%s12668_s10 + $0x2f8] sm:$0xff] }
 0x7eb   :  { %11300 = vmatpush3.bf16.msra.mxu1 %v11299_v54  ;;  %11270 = vmatprep.subr.bf16.mxu0 %v11269_v51  ;;  %v7473_v54 = vld [vmem:[%s12668_s10 + $0x3f0] sm:$0xff]  ;;  %v11289_v51 = vpack.c.bf16 %v7442_v21, %v7441_v47  ;;  %s11731_s10 = smov [#allocation20]  }
 0x7ec   :  { %11302 = vmatprep.subr.bf16.mxu1 %v11301_v1  ;;  %v11321_v1 = vpack.c.bf16 %v7474_v6, %v7473_v54  ;;  %s7773_s21 = sshll.u32 %s11731_s10, 4  ;;  %s7774_s21 = int_to_ptr.vmem [resolvable:$true] %s7773_s21 }
 0x7ed   :  { %s11682_s7 = scalar_lea.vmem %s7774_s21, 32  ;;  %p11687_p5 = scmp.lt.s32.totalorder %s7774_s21, %s7774_s21 }
 0x7ee   :  { %11272 = vmatpush3.bf16.msra.mxu0 %v11271_v32  ;;  %v6190_v32 = vrot.slane %v12238_v23, %v12043_v4  ;;  %p11683_p4 = scmp.ne.s32.totalorder %s7774_s21, %s11682_s7  ;;  %p11688_p6 = scmp.lt.s32.totalorder %s11682_s7, %s11682_s7 }
 0x7ef   :  { %11304 = vmatpush3.bf16.msra.mxu1 %v11303_v0  ;;  %11274 = vmatprep.subr.bf16.mxu0 %v11273_v17  ;;  %v6186_v0 = vrot.slane %v12238_v23, %v12000_v12  ;;  %v6194_v17 = vrot.slane %v12238_v23, %v12024_v9 }
 0x7f0   :  { %11306 = vmatprep.subr.bf16.mxu1 %v11305_v18  ;;  %p11689_p7 = por %p11688_p6, %p11687_p5 }
 0x7f2   :  { %11276 = vmatpush3.bf16.msra.mxu0 %v11275_v45  ;;  %p11690_p8 = pnand %p11689_p7, %p11683_p4 }
 0x7f3   :  { %11308 = vmatpush3.bf16.msra.mxu1 %v11307_v48  ;;  %11278 = vmatprep.subr.bf16.mxu0 %v11277_v52  ;;  %v7792_v52 = vld [vmem:[#allocation19] ss:$0 sm:$0xff] }
 0x7f4   :  { %11310 = vmatprep.subr.bf16.mxu1 %v11309_v60 }
 0x7f6   :  { %11280 = vmatpush3.bf16.msra.mxu0 %v11279_v61  ;;  %v7762_v61 = vld [vmem:[#allocation5] sm:$0x3] }
 0x7f7   :  { %11312 = vmatpush3.bf16.msra.mxu1 %v11311_v62  ;;  %11282 = vmatprep.subr.bf16.mxu0 %v11281_v44  ;;  %vm7763_vm1 = vcmp.ne.f32.partialorder %v7762_v61, 0.0 }
 0x7f8   :  { %11314 = vmatprep.subr.bf16.mxu1 %v11313_v3 }
 0x7fa   :  { %11284 = vmatpush3.bf16.msra.mxu0 %v11283_v11 }
 0x7fb   :  { %11316 = vmatpush3.bf16.msra.mxu1 %v11315_v27  ;;  %11286 = vmatprep.subr.bf16.mxu0 %v11285_v15 }
 0x7fc   :  { %11318 = vmatprep.subr.bf16.mxu1 %v11317_v42 }
 0x7fe   :  { %11288 = vmatpush3.bf16.msra.mxu0 %v11287_v19 }
 0x7ff   :  { %11320 = vmatpush3.bf16.msra.mxu1 %v11319_v30  ;;  %11290 = vmatprep.subr.bf16.mxu0 %v11289_v51 }
 0x800   :  { %11322 = vmatprep.subr.bf16.mxu1 %v11321_v1 }
 0x802   :  { %11292 = vmatpush3.bf16.msra.mxu0 %v11291_v25 }
 0x803   :  { %11324 = vmatpush3.bf16.msra.mxu1 %v11323_v41 }
 0x898   :  { %v7050_v10 = vpop.f32.mrb[14].mxu0 }
 0x899   :  { %v11345_v37 = vadd.f32 %v7050_v10, %v6182_v14  ;;  %v7334_v26 = vpop.f32.mrb[14].mxu1  ;;  %v7052_v18 = vpop.f32.mrb[15].mxu0 }
 0x89a   :  { %v11347_v38 = vadd.f32 %v7334_v26, %v6190_v32  ;;  %v11346_v36 = vadd.f32 %v7052_v18, %v6186_v0  ;;  %v7336_v49 = vpop.f32.mrb[15].mxu1 }
 0x89b   :  { %v11348_v34 = vadd.f32 %v7336_v49, %v6194_v17  ;;  %v7343_v45 = vmax.f32 %v11345_v37, 0.0 }
 0x89c   :  { %v7344_v24 = vmax.f32 %v11346_v36, 0.0  ;;  %v7345_v48 = vmax.f32 %v11347_v38, 0.0 }
 0x89d   :  { %v7346_v56 = vmax.f32 %v11348_v34, 0.0 }
 0x89e   :  { %7686 = vmatprep.mubr.f32.mxu0 %v7344_v24 }
 0x89f   :  { %7756 = vmatprep.mubr.f32.mxu1 %v7346_v56  ;;  %7687 = vmatmul.mubr.f32.vlgmr.msra.gmra.mrb[18].mxu0 %v7343_v45 }
 0x8a0   :  { %7757 = vmatmul.mubr.f32.vlgmr.msra.gmra.mrb[18].mxu1 %v7345_v48 }
 0x8b8   :  { %v7825_v12 = vpop.f32.mrb[16].mxu0 }
 0x8b9   :  { %v7860_v4 = vpop.f32.mrb[16].mxu1  ;;  %v7826_v9 = vpop.f32.mrb[17].mxu0 }
 0x8ba   :  { %v7827_v23 = vadd.f32 %v7826_v9, %v7825_v12  ;;  %v7861_v63 = vpop.f32.mrb[17].mxu1 }
 0x8bb   :  { %v7862_v53 = vadd.f32 %v7861_v63, %v7860_v4 }
 0x8bc   :  { %v7549_v40 = vadd.f32 %v7827_v23, %v7792_v52 }
 0x8be   :  { %v7619_v60 = vadd.f32 %v7862_v53, %v7549_v40 }
 0x972   :  { %v7895_v55 = vpop.f32.mrb[18].mxu0 }
 0x973   :  { %v7930_v57 = vpop.f32.mrb[18].mxu1  ;;  %v7896_v46 = vpop.f32.mrb[19].mxu0 }
 0x974   :  { %v7897_v43 = vadd.f32 %v7896_v46, %v7895_v55  ;;  %v7931_v59 = vpop.f32.mrb[19].mxu1 }
 0x975   :  { %v7932_v62 = vadd.f32 %v7931_v59, %v7930_v57 }
 0x976   :  { %v7689_v44 = vadd.f32 %v7897_v43, %v7619_v60 }
 0x978   :  { %v7759_v33 = vadd.f32 %v7932_v62, %v7689_v44 }
 0x97a   :  { %v7764_v2 = vsel %vm7763_vm1, %v7759_v33, 0.0 }
 0x97b   :  { %7766 = vst.msk [vmem:[#allocation20] sm:$0x3] %vm7765_vm2, %v7764_v2 }
 0x97c   :  { %11693 = shalt.err (!%p11690_p8)
}
 0x97d   :  { %s11694_s0 = scalar_lea.hbm %s12670_s12, 32 }
 0x97e   :  { %p11695_p9 = scmp.ne.s32.totalorder %s12670_s12, %s11694_s0  ;;  %p11698_p10 = scmp.lt.u32.totalorder %s11694_s0, %s12670_s12 }
 0x980   :  { %p11700_p11 = pnand %p11698_p10, %p11695_p9 }
 0x982   :  { %11703 = shalt.err (!%p11700_p11)
}
 0x983   :  { %7776 = dma.vmem_to_hbm [thread:$0]  %s7774_s21, 32, %s12670_s12, [#allocation4]  }
 0x984   :  { %11716 = dma.done.wait [#allocation4], 32  }
 0x985   :  { %11717 = vsyncadd [#allocation4], 4294967264 }
 0x986   :  { %7780 = vsyncpa [#allocation3], 1 }
 0x987   :  { %7781 = vsyncpa [#allocation6], 1 }
 0x988   :  { %7782 = vsyncpa [#allocation9], 1 }
 0x989   :  { %7783 = vsyncpa [#allocation12], 1 }
 0x98a   :  { %7784 = vsyncpa [#allocation15], 1 }
 0x98b   :  { %7785 = vsyncpa [#allocation18], 1 }
 0x98c   :  { %7786 = vsyncpa [#allocation4], 1 }

</bundles_post_ra>
